<compile_context>
chip_gen: v7x
topology: tpu7x:2x2x1
jax: 0.10.0
libtpu: 0.0.40
codegen_flags: <defaults>
</compile_context>

<pallas_src>
import numpy as np
import jax
import jax.numpy as jnp
from jax import lax
from jax.experimental import pallas as pl
from jax.experimental.pallas import tpu as pltpu

DIM = 8  # args.dim (small, synthetic)

# Padded sizes (lane multiples of 128).
K2_PAD = 1024   # conv2 output 8*11*11 = 968 -> 1024
OUT_PAD = 896   # final output 28*28 = 784 -> 896 = 7*128
OUT_REAL = 28 * 28


# ----------------------------------------------------------------------------
# Setup-time glue: express ConvTranspose2d (stride s, no padding) as a dense
# matrix acting on the NCHW-flattened activation row.
#   out[(co,oh,ow)] += x[(ci,ih,iw)] * W[ci,co,kh,kw],  oh=ih*s+kh, ow=iw*s+kw
# ----------------------------------------------------------------------------
def _convT_matrix(W, H_in, W_in, stride):
    """W: (C_in, C_out, K, K) in torch ConvTranspose2d weight layout."""
    C_in, C_out, K, _ = W.shape
    H_out = (H_in - 1) * stride + K
    W_out = (W_in - 1) * stride + K
    ci, ih, iw, co, kh, kw = np.meshgrid(
        np.arange(C_in), np.arange(H_in), np.arange(W_in),
        np.arange(C_out), np.arange(K), np.arange(K), indexing="ij")
    in_idx = ((ci * H_in + ih) * W_in + iw).ravel()
    oh = ih * stride + kh
    ow = iw * stride + kw
    out_idx = ((co * H_out + oh) * W_out + ow).ravel()
    vals = W[ci, co, kh, kw].ravel().astype(np.float32)
    M = np.zeros((C_in * H_in * W_in, C_out * H_out * W_out), np.float32)
    np.add.at(M, (in_idx, out_idx), vals)
    return M, H_out, W_out


def init_raw_params(key, dim=DIM):
    ks = jax.random.split(key, 8)
    n = lambda k, s: np.asarray(0.05 * jax.random.normal(k, s, jnp.float32))
    return dict(
        W1=n(ks[0], (4 * 4 * 4 * dim, 128)),        # Linear(128, 64*dim)
        b1=n(ks[1], (4 * 4 * 4 * dim,)),
        Wc1=n(ks[2], (4 * dim, 2 * dim, 5, 5)),     # ConvTranspose2d(4d, 2d, 5)
        bc1=n(ks[3], (2 * dim,)),
        Wc2=n(ks[4], (2 * dim, dim, 5, 5)),         # ConvTranspose2d(2d, d, 5)
        bc2=n(ks[5], (dim,)),
        Wc3=n(ks[6], (dim, 1, 8, 8)),               # ConvTranspose2d(d, 1, 8, s=2)
        bc3=n(ks[7], (1,)),
    )


def build_matmul_params(raw, dim=DIM):
    # Linear: store transposed weight (128, 64*dim), bf16.
    w1t = raw["W1"].T.astype(np.float32)                       # (128, 512)
    b1 = raw["b1"]                                             # (512,)

    # conv1: (4d, 4, 4) -> (2d, 8, 8)
    M1, H1, W1o = _convT_matrix(raw["Wc1"], 4, 4, 1)           # (512, 1024)
    c1 = np.repeat(raw["bc1"], H1 * W1o)                       # (1024,)

    # crop [:, :, :7, :7] then conv2: (2d, 7, 7) -> (d, 11, 11)
    M2s, H2, W2o = _convT_matrix(raw["Wc2"], 7, 7, 1)          # (784, 968)
    C1 = 2 * dim
    ci, ih, iw = np.meshgrid(np.arange(C1), np.arange(7), np.arange(7),
                             indexing="ij")
    full_rows = ((ci * 8 + ih) * 8 + iw).ravel()   # crop folded into the matrix
    M2 = np.zeros((C1 * 8 * 8, M2s.shape[1]), np.float32)      # (1024, 968)
    M2[full_rows] = M2s
    c2 = np.repeat(raw["bc2"], H2 * W2o)                       # (968,)

    # conv3: (d, 11, 11) -> (1, 28, 28), stride 2
    M3, H3, W3o = _convT_matrix(raw["Wc3"], 11, 11, 2)         # (968, 784)
    c3 = np.repeat(raw["bc3"], H3 * W3o)                       # (784,)

    # --- zero-pad the ragged dims to lane multiples (free at setup time) ---
    M2p = np.zeros((M2.shape[0], K2_PAD), np.float32)
    M2p[:, :M2.shape[1]] = M2
    c2p = np.zeros((K2_PAD,), np.float32)
    c2p[:c2.shape[0]] = c2
    M3p = np.zeros((K2_PAD, OUT_PAD), np.float32)
    M3p[:M3.shape[0], :M3.shape[1]] = M3

    # Fold the conv3 bias into M3p using a dead K column: column `BIAS_COL`
    # of M2p is all-zero, so setting c2p[BIAS_COL] = 1 makes layer-3's
    # activation at that lane exactly ELU(1) == 1; writing c3 into row
    # BIAS_COL of M3p then delivers the bias through the (already-paid-for)
    # K=1024 matmul, and the kernel's last layer needs no broadcast-add.
    BIAS_COL = M2.shape[1]                                     # 968
    assert BIAS_COL == M3.shape[0] and BIAS_COL < K2_PAD
    c2p[BIAS_COL] = 1.0
    M3p[BIAS_COL, :c3.shape[0]] = c3

    as_bf16 = lambda m: jnp.asarray(m, jnp.bfloat16)           # MXU-native
    as_row = lambda v: jnp.asarray(np.asarray(v, np.float32).reshape(1, -1))
    return (as_bf16(w1t), as_row(b1),
            as_bf16(M1), as_row(c1),
            as_bf16(M2p), as_row(c2p),
            as_bf16(M3p))


# ----------------------------------------------------------------------------
# Pallas kernel: full generator forward for one batch tile.
# ----------------------------------------------------------------------------
def make_generator_kernel(bf16_elu_exp):
    def _elu(v):
        # Negative branch: exp(v) - 1.  No clamp needed: exp of a large
        # positive v gives +inf, but that lane is discarded by the where
        # (never a NaN).  On v6e/v7x the exp runs in bf16 on the EUP (~2x
        # transcendental throughput); select/compare stay f32 on the VPU.
        if bf16_elu_exp:
            e = jnp.exp(v.astype(jnp.bfloat16)).astype(jnp.float32)
        else:
            e = jnp.exp(v)
        return jnp.where(v > 0, v, e - 1.0)

    def kernel(x_ref, w1_ref, b1_ref, m1_ref, c1_ref, m2_ref, c2_ref,
               m3_ref, o_ref):
        def mm(a, w_ref, b_ref=None):
            # bf16 operands on the MXU, f32 accumulate, f32 bias add.
            r = jnp.dot(a.astype(jnp.bfloat16), w_ref[...],
                        preferred_element_type=jnp.float32)
            if b_ref is not None:
                r = r + b_ref[...]
            return r

        h = _elu(mm(x_ref[...], w1_ref, b1_ref))   # (bm, 512)
        h = _elu(mm(h, m1_ref, c1_ref))            # (bm, 1024)
        h = _elu(mm(h, m2_ref, c2_ref))            # (bm, 1024) [968 real + pad]
        h = mm(h, m3_ref)                          # (bm, 896) bias folded into M3
        # sigmoid(h) == 0.5 * tanh(0.5 * h) + 0.5: a single EUP push per
        # element (vs exp + reciprocal), mul/add on the VPU, exact form.
        o_ref[...] = (0.5 * jnp.tanh(0.5 * h) + 0.5).astype(o_ref.dtype)

    return kernel


# ----------------------------------------------------------------------------
# Wrapper
# ----------------------------------------------------------------------------
def _round_up(x, m):
    return ((x + m - 1) // m) * m


def _tpu_budget():
    """(vmem_limit_bytes, bm_cap, bf16_elu_exp_ok) gated by chip generation."""
    try:
        kind = jax.devices()[0].device_kind.lower()
    except Exception:
        kind = ""
    if "v7" in kind:     # 64 MiB physical VMEM per TC -> stay conservative
        return 32 * 1024 * 1024, 256, True
    if "v6" in kind:     # 128 MiB VMEM, bf16 EUP available
        return 64 * 1024 * 1024, 512, True
    if "v5" in kind:     # 128 MiB VMEM, no bf16 VPU/EUP
        return 64 * 1024 * 1024, 512, False
    return 32 * 1024 * 1024, 256, False   # unknown: conservative defaults


def generator_forward(x, params):
    """x: (B, 128) f32 -> (B, 784) f32."""
    B = x.shape[0]
    w1t, b1, m1, c1, m2, c2, m3 = params
    vmem_bytes, bm_cap, bf16_exp = _tpu_budget()

    # Adaptive batch tile: at least 2 grid steps whenever B > 8 so the
    # "parallel" batch axis can be sharded across TensorCores (v7x megacore);
    # larger tiles (up to bm_cap) amortize the ~0.35 us per-grid-step cost.
    b8 = _round_up(max(B, 1), 8)
    if b8 <= 8:
        bm = 8
    else:
        bm = min(bm_cap, _round_up(pl.cdiv(b8, 2), 8))
    B_pad = _round_up(b8, bm)

    # bf16 input tile: halves input DMA and drops the layer-1 pack in-kernel.
    xb = x.astype(jnp.bfloat16)
    if B_pad != B:
        xb = jnp.pad(xb, ((0, B_pad - B), (0, 0)))

    # Weights/biases: whole-array, single-buffered VMEM residents (DMA'd once
    # per pallas_call, constant across the batch grid), ~5 MB total in bf16.
    resident = lambda: pl.BlockSpec(memory_space=pltpu.MemorySpace.VMEM)

    out = pl.pallas_call(
        make_generator_kernel(bf16_exp),
        out_shape=jax.ShapeDtypeStruct((B_pad, OUT_PAD), jnp.bfloat16),
        grid_spec=pltpu.PrefetchScalarGridSpec(
            num_scalar_prefetch=0,
            grid=(B_pad // bm,),
            in_specs=[
                pl.BlockSpec((bm, 128), lambda i: (i, 0)),
                resident(), resident(), resident(), resident(),
                resident(), resident(), resident(),
            ],
            out_specs=pl.BlockSpec((bm, OUT_PAD), lambda i: (i, 0)),
        ),
        compiler_params=pltpu.CompilerParams(
            # Batch tiles are independent -> shard across TensorCores.
            dimension_semantics=("parallel",),
            vmem_limit_bytes=vmem_bytes,
        ),
    )(xb, w1t, b1, m1, c1, m2, c2, m3)

    # Strip batch padding, lane padding, and upcast (bf16 writeback halves
    # the HBM store traffic; callers get f32 back).
    return out[:B, :OUT_REAL].astype(jnp.float32)


# ----------------------------------------------------------------------------
# Pure-JAX reference (mirrors the PyTorch module exactly) for validation.
# ----------------------------------------------------------------------------
def _convT_ref(x, W, b, stride):
    K = W.shape[2]
    kernel = jnp.transpose(W[:, :, ::-1, ::-1], (1, 0, 2, 3))  # (Cout,Cin,K,K)
    out = lax.conv_general_dilated(
        x, jnp.asarray(kernel), window_strides=(1, 1),
        padding=[(K - 1, K - 1), (K - 1, K - 1)],
        lhs_dilation=(stride, stride),
        dimension_numbers=("NCHW", "OIHW", "NCHW"),
        precision=lax.Precision.HIGHEST)
    return out + jnp.asarray(b).reshape(1, -1, 1, 1)


def generator_ref(x, raw, dim=DIM):
    elu = lambda v: jnp.where(v > 0, v, jnp.expm1(v))
    h = elu(jnp.dot(x, jnp.asarray(raw["W1"]).T,
                    precision=lax.Precision.HIGHEST) + jnp.asarray(raw["b1"]))
    h = h.reshape(-1, 4 * dim, 4, 4)
    h = elu(_convT_ref(h, raw["Wc1"], raw["bc1"], 1))
    h = h[:, :, :7, :7]
    h = elu(_convT_ref(h, raw["Wc2"], raw["bc2"], 1))
    h = _convT_ref(h, raw["Wc3"], raw["bc3"], 2)
    h = jax.nn.sigmoid(h)
    return h.reshape(-1, 28 * 28)


if __name__ == "__main__":
    key = jax.random.PRNGKey(0)
    kx, kp = jax.random.split(key)
    B = 8
    x = jax.random.normal(kx, (B, 128), jnp.float32)

    raw = init_raw_params(kp)
    params = build_matmul_params(raw)

    out = jax.block_until_ready(generator_forward(x, params))
    assert out.shape == (B, 28 * 28)

    ref = generator_ref(x, raw)
    # bf16 weights / input / output / ELU-exp paths -> loosened tolerance;
    # sigmoid outputs live in (0,1), so 2.5e-2 absolute is still meaningful.
    np.testing.assert_allclose(np.asarray(out), np.asarray(ref), atol=2.5e-2)
    print("KERNEL_OK")
</pallas_src>

<mosaic_0001>
module attributes {stable_mosaic.version = 11 : i64} {
  func.func @kernel(%arg0: i32, %arg1: memref<8x128xbf16, #tpu.memory_space<vmem>>, %arg2: memref<128x512xbf16, #tpu.memory_space<vmem>>, %arg3: memref<1x512xf32, #tpu.memory_space<vmem>>, %arg4: memref<512x1024xbf16, #tpu.memory_space<vmem>>, %arg5: memref<1x1024xf32, #tpu.memory_space<vmem>>, %arg6: memref<1024x1024xbf16, #tpu.memory_space<vmem>>, %arg7: memref<1x1024xf32, #tpu.memory_space<vmem>>, %arg8: memref<1024x896xbf16, #tpu.memory_space<vmem>>, %arg9: memref<8x896xbf16, #tpu.memory_space<vmem>>) attributes {dimension_semantics = [#tpu.dimension_semantics<parallel>], iteration_bounds = array<i64: 1>, scalar_prefetch = 0 : i64, scratch_operands = 0 : i64, tpu.core_type = #tpu.core_type<tc>, window_params = [{transform_indices = @transform_0, window_bounds = array<i64: 8, 128>}, {pipeline_mode = #tpu.pipeline_mode<synchronous>, transform_indices = @transform_1, window_bounds = array<i64: 128, 512>}, {pipeline_mode = #tpu.pipeline_mode<synchronous>, transform_indices = @transform_2, window_bounds = array<i64: 1, 512>}, {pipeline_mode = #tpu.pipeline_mode<synchronous>, transform_indices = @transform_3, window_bounds = array<i64: 512, 1024>}, {pipeline_mode = #tpu.pipeline_mode<synchronous>, transform_indices = @transform_4, window_bounds = array<i64: 1, 1024>}, {pipeline_mode = #tpu.pipeline_mode<synchronous>, transform_indices = @transform_5, window_bounds = array<i64: 1024, 1024>}, {pipeline_mode = #tpu.pipeline_mode<synchronous>, transform_indices = @transform_6, window_bounds = array<i64: 1, 1024>}, {pipeline_mode = #tpu.pipeline_mode<synchronous>, transform_indices = @transform_7, window_bounds = array<i64: 1024, 896>}, {transform_indices = @transform_8, window_bounds = array<i64: 8, 896>}]} {
    %c0 = arith.constant 0 : index
    %c0_0 = arith.constant 0 : index
    %0 = vector.load %arg1[%c0, %c0_0] : memref<8x128xbf16, #tpu.memory_space<vmem>>, vector<8x128xbf16>
    %c0_1 = arith.constant 0 : index
    %c0_2 = arith.constant 0 : index
    %1 = vector.load %arg2[%c0_1, %c0_2] : memref<128x512xbf16, #tpu.memory_space<vmem>>, vector<128x512xbf16>
    %cst = arith.constant dense<0.000000e+00> : vector<8x512xf32>
    %2 = tpu.matmul %0, %1, %cst {dimension_numbers = #tpu.dot_dimension_numbers<[1], [0], [0], [1], [0, 0, 1, 1], [], []>} : vector<8x128xbf16>, vector<128x512xbf16>, vector<8x512xf32> -> vector<8x512xf32>
    %c0_3 = arith.constant 0 : index
    %c0_4 = arith.constant 0 : index
    %3 = vector.load %arg3[%c0_3, %c0_4] : memref<1x512xf32, #tpu.memory_space<vmem>>, vector<1x512xf32>
    %4 = vector.broadcast %3 : vector<1x512xf32> to vector<8x512xf32>
    %5 = arith.addf %2, %4 : vector<8x512xf32>
    %6 = math.exp %5 : vector<8x512xf32>
    %cst_5 = arith.constant 0.000000e+00 : f32
    %7 = vector.broadcast %cst_5 : f32 to vector<8x512xf32>
    %8 = arith.cmpf ogt, %5, %7 : vector<8x512xf32>
    %cst_6 = arith.constant 1.000000e+00 : f32
    %9 = vector.broadcast %cst_6 : f32 to vector<8x512xf32>
    %10 = arith.subf %6, %9 : vector<8x512xf32>
    %11 = arith.select %8, %5, %10 : vector<8x512xi1>, vector<8x512xf32>
    %12 = arith.truncf %11 : vector<8x512xf32> to vector<8x512xbf16>
    %c0_7 = arith.constant 0 : index
    %c0_8 = arith.constant 0 : index
    %13 = vector.load %arg4[%c0_7, %c0_8] : memref<512x1024xbf16, #tpu.memory_space<vmem>>, vector<512x1024xbf16>
    %cst_9 = arith.constant dense<0.000000e+00> : vector<8x1024xf32>
    %14 = tpu.matmul %12, %13, %cst_9 {dimension_numbers = #tpu.dot_dimension_numbers<[1], [0], [0], [1], [0, 0, 1, 1], [], []>} : vector<8x512xbf16>, vector<512x1024xbf16>, vector<8x1024xf32> -> vector<8x1024xf32>
    %c0_10 = arith.constant 0 : index
    %c0_11 = arith.constant 0 : index
    %15 = vector.load %arg5[%c0_10, %c0_11] : memref<1x1024xf32, #tpu.memory_space<vmem>>, vector<1x1024xf32>
    %16 = vector.broadcast %15 : vector<1x1024xf32> to vector<8x1024xf32>
    %17 = arith.addf %14, %16 : vector<8x1024xf32>
    %18 = math.exp %17 : vector<8x1024xf32>
    %cst_12 = arith.constant 0.000000e+00 : f32
    %19 = vector.broadcast %cst_12 : f32 to vector<8x1024xf32>
    %20 = arith.cmpf ogt, %17, %19 : vector<8x1024xf32>
    %cst_13 = arith.constant 1.000000e+00 : f32
    %21 = vector.broadcast %cst_13 : f32 to vector<8x1024xf32>
    %22 = arith.subf %18, %21 : vector<8x1024xf32>
    %23 = arith.select %20, %17, %22 : vector<8x1024xi1>, vector<8x1024xf32>
    %24 = arith.truncf %23 : vector<8x1024xf32> to vector<8x1024xbf16>
    %c0_14 = arith.constant 0 : index
    %c0_15 = arith.constant 0 : index
    %25 = vector.load %arg6[%c0_14, %c0_15] : memref<1024x1024xbf16, #tpu.memory_space<vmem>>, vector<1024x1024xbf16>
    %cst_16 = arith.constant dense<0.000000e+00> : vector<8x1024xf32>
    %26 = tpu.matmul %24, %25, %cst_16 {dimension_numbers = #tpu.dot_dimension_numbers<[1], [0], [0], [1], [0, 0, 1, 1], [], []>} : vector<8x1024xbf16>, vector<1024x1024xbf16>, vector<8x1024xf32> -> vector<8x1024xf32>
    %c0_17 = arith.constant 0 : index
    %c0_18 = arith.constant 0 : index
    %27 = vector.load %arg7[%c0_17, %c0_18] : memref<1x1024xf32, #tpu.memory_space<vmem>>, vector<1x1024xf32>
    %28 = vector.broadcast %27 : vector<1x1024xf32> to vector<8x1024xf32>
    %29 = arith.addf %26, %28 : vector<8x1024xf32>
    %30 = math.exp %29 : vector<8x1024xf32>
    %cst_19 = arith.constant 0.000000e+00 : f32
    %31 = vector.broadcast %cst_19 : f32 to vector<8x1024xf32>
    %32 = arith.cmpf ogt, %29, %31 : vector<8x1024xf32>
    %cst_20 = arith.constant 1.000000e+00 : f32
    %33 = vector.broadcast %cst_20 : f32 to vector<8x1024xf32>
    %34 = arith.subf %30, %33 : vector<8x1024xf32>
    %35 = arith.select %32, %29, %34 : vector<8x1024xi1>, vector<8x1024xf32>
    %36 = arith.truncf %35 : vector<8x1024xf32> to vector<8x1024xbf16>
    %c0_21 = arith.constant 0 : index
    %c0_22 = arith.constant 0 : index
    %37 = vector.load %arg8[%c0_21, %c0_22] : memref<1024x896xbf16, #tpu.memory_space<vmem>>, vector<1024x896xbf16>
    %cst_23 = arith.constant dense<0.000000e+00> : vector<8x896xf32>
    %38 = tpu.matmul %36, %37, %cst_23 {dimension_numbers = #tpu.dot_dimension_numbers<[1], [0], [0], [1], [0, 0, 1, 1], [], []>} : vector<8x1024xbf16>, vector<1024x896xbf16>, vector<8x896xf32> -> vector<8x896xf32>
    %cst_24 = arith.constant 5.000000e-01 : f32
    %39 = vector.broadcast %cst_24 : f32 to vector<8x896xf32>
    %40 = arith.mulf %39, %38 : vector<8x896xf32>
    %41 = math.tanh %40 : vector<8x896xf32>
    %cst_25 = arith.constant 5.000000e-01 : f32
    %42 = vector.broadcast %cst_25 : f32 to vector<8x896xf32>
    %43 = arith.mulf %42, %41 : vector<8x896xf32>
    %cst_26 = arith.constant 5.000000e-01 : f32
    %44 = vector.broadcast %cst_26 : f32 to vector<8x896xf32>
    %45 = arith.addf %43, %44 : vector<8x896xf32>
    %46 = arith.truncf %45 : vector<8x896xf32> to vector<8x896xbf16>
    %c0_27 = arith.constant 0 : index
    %c0_28 = arith.constant 0 : index
    %47 = vector.load %arg9[%c0_27, %c0_28] : memref<8x896xbf16, #tpu.memory_space<vmem>>, vector<8x896xbf16>
    tpu.vector_store %arg9[%c0_27, %c0_28], %46 {strides = array<i32>} : memref<8x896xbf16, #tpu.memory_space<vmem>>, vector<8x896xbf16>,
    return
  }
  func.func @transform_0(%arg0: i32) -> (i32, i32) {
    %c0_i32 = arith.constant 0 : i32
    %c0_i32_0 = arith.constant 0 : i32
    return %arg0, %c0_i32 : i32, i32
  }
  func.func @transform_1(%arg0: i32) -> (i32, i32) {
    %c0_i32 = arith.constant 0 : i32
    %c0_i32_0 = arith.constant 0 : i32
    %c0_i32_1 = arith.constant 0 : i32
    return %c0_i32, %c0_i32_0 : i32, i32
  }
  func.func @transform_2(%arg0: i32) -> (i32, i32) {
    %c0_i32 = arith.constant 0 : i32
    %c0_i32_0 = arith.constant 0 : i32
    %c0_i32_1 = arith.constant 0 : i32
    return %c0_i32, %c0_i32_0 : i32, i32
  }
  func.func @transform_3(%arg0: i32) -> (i32, i32) {
    %c0_i32 = arith.constant 0 : i32
    %c0_i32_0 = arith.constant 0 : i32
    %c0_i32_1 = arith.constant 0 : i32
    return %c0_i32, %c0_i32_0 : i32, i32
  }
  func.func @transform_4(%arg0: i32) -> (i32, i32) {
    %c0_i32 = arith.constant 0 : i32
    %c0_i32_0 = arith.constant 0 : i32
    %c0_i32_1 = arith.constant 0 : i32
    return %c0_i32, %c0_i32_0 : i32, i32
  }
  func.func @transform_5(%arg0: i32) -> (i32, i32) {
    %c0_i32 = arith.constant 0 : i32
    %c0_i32_0 = arith.constant 0 : i32
    %c0_i32_1 = arith.constant 0 : i32
    return %c0_i32, %c0_i32_0 : i32, i32
  }
  func.func @transform_6(%arg0: i32) -> (i32, i32) {
    %c0_i32 = arith.constant 0 : i32
    %c0_i32_0 = arith.constant 0 : i32
    %c0_i32_1 = arith.constant 0 : i32
    return %c0_i32, %c0_i32_0 : i32, i32
  }
  func.func @transform_7(%arg0: i32) -> (i32, i32) {
    %c0_i32 = arith.constant 0 : i32
    %c0_i32_0 = arith.constant 0 : i32
    %c0_i32_1 = arith.constant 0 : i32
    return %c0_i32, %c0_i32_0 : i32, i32
  }
  func.func @transform_8(%arg0: i32) -> (i32, i32) {
    %c0_i32 = arith.constant 0 : i32
    %c0_i32_0 = arith.constant 0 : i32
    return %arg0, %c0_i32 : i32, i32
  }
}

</mosaic_0001>

<bundles_post_ra>
// kernel: tpu_custom_call.1
= control target key start
LH: loop header
LB: loop body
LE: loop exit
PB: predicated region body
PF: predicated region fallthrough
CT: control target
= control target key end

     0   :  { %13 = vsyncpa [#allocation3], 0  ;;  %s12669_s0 = inlined_call_operand.hbm [shape: bf16[8,128], index: 0, kind: input, shape index: {}]   ;;  %s12670_s1 = inlined_call_operand.hbm [shape: bf16[128,512], index: 1, kind: input, shape index: {}]   ;;  %s12671_s2 = inlined_call_operand.hbm [shape: f32[1,512], index: 2, kind: input, shape index: {}]   ;;  %s12672_s3 = inlined_call_operand.hbm [shape: bf16[512,1024], index: 3, kind: input, shape index: {}]   ;;  %s12673_s4 = inlined_call_operand.hbm [shape: f32[1,1024], index: 4, kind: input, shape index: {}]   ;;  %s12674_s5 = inlined_call_operand.hbm [shape: bf16[1024,1024], index: 5, kind: input, shape index: {}]   ;;  %s12675_s6 = inlined_call_operand.hbm [shape: f32[1,1024], index: 6, kind: input, shape index: {}]   ;;  %s12676_s7 = inlined_call_operand.hbm [shape: bf16[1024,896], index: 7, kind: input, shape index: {}]   ;;  %s12677_s8 = inlined_call_operand.hbm [shape: bf16[8,896], index: 8, kind: output, shape index: {}]  }
   0x1   :  { %14 = vsyncpa [#allocation6], 0 }
   0x2   :  { %15 = vsyncpa [#allocation9], 0 }
   0x3   :  { %16 = vsyncpa [#allocation12], 0 }
   0x4   :  { %17 = vsyncpa [#allocation15], 0 }
   0x5   :  { %18 = vsyncpa [#allocation4], 0  ;;  %s12221_s27 = smov [#allocation5]   ;;  %s12011_s9 = scalar_lea.hbm %s12670_s1, 4096 }
   0x6   :  { %s34_s28 = sshll.u32 %s12221_s27, 4  ;;  %p12012_p0 = scmp.ne.s32.totalorder %s12670_s1, %s12011_s9  ;;  %s35_s28 = int_to_ptr.vmem [resolvable:$true] %s34_s28 }
   0x7   :  { %p12015_p1 = scmp.lt.u32.totalorder %s12011_s9, %s12670_s1 }
   0x9   :  { %p12017_p2 = pnand %p12015_p1, %p12012_p0 }
   0xb   :  { %12020 = shalt.err (!%p12017_p2)
}
   0xc   :  { %s12021_s14 = scalar_lea.vmem %s35_s28, 4096  ;;  %p12026_p4 = scmp.lt.s32.totalorder %s35_s28, %s35_s28 }
   0xd   :  { %p12022_p3 = scmp.ne.s32.totalorder %s35_s28, %s12021_s14  ;;  %p12027_p5 = scmp.lt.s32.totalorder %s12021_s14, %s12021_s14 }
   0xf   :  { %p12028_p6 = por %p12027_p5, %p12026_p4 }
  0x11   :  { %p12029_p7 = pnand %p12028_p6, %p12022_p3 }
  0x13   :  { %12032 = shalt.err (!%p12029_p7)
}
  0x14   :  { %s12222_s15 = smov 256   ;;  %s12223_s16 = smov 16  }
  0x15   :  { %40 = dma.hbm_to_vmem [thread:$0]  %s12670_s1, 4096, %s35_s28, [#allocation6], %s12222_s15, %s12222_s15, %s12223_s16  }
  0x16   :  { %s12224_s19 = smov [#allocation8]   ;;  %s12033_s23 = scalar_lea.hbm %s12672_s3, 32768 }
  0x17   :  { %s56_s20 = sshll.u32 %s12224_s19, 4  ;;  %p12034_p8 = scmp.ne.s32.totalorder %s12672_s3, %s12033_s23  ;;  %s57_s20 = int_to_ptr.vmem [resolvable:$true] %s56_s20 }
  0x18   :  { %p12037_p9 = scmp.lt.u32.totalorder %s12033_s23, %s12672_s3 }
  0x1a   :  { %p12039_p10 = pnand %p12037_p9, %p12034_p8 }
  0x1c   :  { %12042 = shalt.err (!%p12039_p10)
}
  0x1d   :  { %s12043_s29 = scalar_lea.vmem %s57_s20, 32768  ;;  %p12048_p12 = scmp.lt.s32.totalorder %s57_s20, %s57_s20 }
  0x1e   :  { %p12044_p11 = scmp.ne.s32.totalorder %s57_s20, %s12043_s29  ;;  %p12049_p13 = scmp.lt.s32.totalorder %s12043_s29, %s12043_s29 }
  0x20   :  { %p12050_p0 = por %p12049_p13, %p12048_p12 }
  0x22   :  { %p12051_p1 = pnand %p12050_p0, %p12044_p11 }
  0x24   :  { %12054 = shalt.err (!%p12051_p1)
}
  0x25   :  { %s12225_s1 = smov 512   ;;  %s12226_s28 = smov 32  }
  0x26   :  { %62 = dma.hbm_to_vmem [thread:$0]  %s12672_s3, 32768, %s57_s20, [#allocation9], %s12225_s1, %s12225_s1, %s12226_s28  }
  0x27   :  { %s12227_s10 = smov [#allocation11]   ;;  %s12228_s12 = smov [#allocation2]  }
  0x28   :  { %s78_s11 = sshll.u32 %s12227_s10, 4  ;;  %s25_s13 = sshll.u32 %s12228_s12, 4  ;;  %s79_s11 = int_to_ptr.vmem [resolvable:$true] %s78_s11  ;;  %s26_s13 = int_to_ptr.vmem [resolvable:$true] %s25_s13 }
  0x29   :  { %s12055_s16 = scalar_lea.hbm %s12674_s5, 65536 }
  0x2a   :  { %p12056_p2 = scmp.ne.s32.totalorder %s12674_s5, %s12055_s16  ;;  %p12059_p3 = scmp.lt.u32.totalorder %s12055_s16, %s12674_s5 }
  0x2c   :  { %p12061_p4 = pnand %p12059_p3, %p12056_p2 }
  0x2e   :  { %12064 = shalt.err (!%p12061_p4)
}
  0x2f   :  { %s12065_s3 = scalar_lea.vmem %s79_s11, 65536  ;;  %p12070_p6 = scmp.lt.s32.totalorder %s79_s11, %s79_s11 }
  0x30   :  { %p12066_p5 = scmp.ne.s32.totalorder %s79_s11, %s12065_s3  ;;  %p12071_p7 = scmp.lt.s32.totalorder %s12065_s3, %s12065_s3 }
  0x32   :  { %p12072_p8 = por %p12071_p7, %p12070_p6 }
  0x34   :  { %p12073_p9 = pnand %p12072_p8, %p12066_p5 }
  0x36   :  { %12076 = shalt.err (!%p12073_p9)
}
  0x37   :  { %84 = dma.hbm_to_vmem [thread:$0]  %s12674_s5, 65536, %s79_s11, [#allocation12], %s12225_s1, %s12225_s1, %s12226_s28  }
  0x38   :  { %s12077_s25 = scalar_lea.hbm %s12669_s0, 64 }
  0x39   :  { %p12078_p10 = scmp.ne.s32.totalorder %s12669_s0, %s12077_s25  ;;  %p12081_p11 = scmp.lt.u32.totalorder %s12077_s25, %s12669_s0 }
  0x3b   :  { %p12083_p12 = pnand %p12081_p11, %p12078_p10 }
  0x3d   :  { %12086 = shalt.err (!%p12083_p12)
}
  0x3e   :  { %s12087_s9 = scalar_lea.vmem %s26_s13, 64  ;;  %p12092_p0 = scmp.lt.s32.totalorder %s26_s13, %s26_s13 }
  0x3f   :  { %p12088_p13 = scmp.ne.s32.totalorder %s26_s13, %s12087_s9  ;;  %p12093_p1 = scmp.lt.s32.totalorder %s12087_s9, %s12087_s9 }
  0x41   :  { %p12094_p2 = por %p12093_p1, %p12092_p0 }
  0x43   :  { %p12095_p3 = pnand %p12094_p2, %p12088_p13 }
  0x45   :  { %12098 = shalt.err (!%p12095_p3)
}
  0x46   :  { %28 = dma.hbm_to_vmem [thread:$0]  %s12669_s0, 64, %s26_s13, [#allocation3]  }
  0x47   :  { %s12229_s28 = smov [#allocation7]   ;;  %s12230_s11 = smov [#allocation10]  }
  0x48   :  { %s47_s10 = sshll.u32 %s12229_s28, 4  ;;  %s69_s12 = sshll.u32 %s12230_s11, 4  ;;  %s48_s10 = int_to_ptr.vmem [resolvable:$true] %s47_s10  ;;  %s70_s12 = int_to_ptr.vmem [resolvable:$true] %s69_s12 }
  0x49   :  { %s12099_s16 = scalar_lea.hbm %s12671_s2, 64 }
  0x4a   :  { %p12100_p4 = scmp.ne.s32.totalorder %s12671_s2, %s12099_s16  ;;  %p12103_p5 = scmp.lt.u32.totalorder %s12099_s16, %s12671_s2 }
  0x4c   :  { %p12105_p6 = pnand %p12103_p5, %p12100_p4 }
  0x4e   :  { %12108 = shalt.err (!%p12105_p6)
}
  0x4f   :  { %s12109_s0 = scalar_lea.vmem %s48_s10, 64  ;;  %p12114_p8 = scmp.lt.s32.totalorder %s48_s10, %s48_s10 }
  0x50   :  { %p12110_p7 = scmp.ne.s32.totalorder %s48_s10, %s12109_s0  ;;  %p12115_p9 = scmp.lt.s32.totalorder %s12109_s0, %s12109_s0 }
  0x52   :  { %p12116_p10 = por %p12115_p9, %p12114_p8 }
  0x54   :  { %p12117_p11 = pnand %p12116_p10, %p12110_p7 }
  0x56   :  { %12120 = shalt.err (!%p12117_p11)
}
  0x57   :  { %50 = dma.hbm_to_vmem [thread:$0]  %s12671_s2, 64, %s48_s10, [#allocation6]  }
  0x58   :  { %s12121_s23 = scalar_lea.hbm %s12673_s4, 128 }
  0x59   :  { %p12122_p12 = scmp.ne.s32.totalorder %s12673_s4, %s12121_s23  ;;  %p12125_p13 = scmp.lt.u32.totalorder %s12121_s23, %s12673_s4 }
  0x5b   :  { %p12127_p0 = pnand %p12125_p13, %p12122_p12 }
  0x5d   :  { %12130 = shalt.err (!%p12127_p0)
}
  0x5e   :  { %s12131_s29 = scalar_lea.vmem %s70_s12, 128  ;;  %p12136_p2 = scmp.lt.s32.totalorder %s70_s12, %s70_s12 }
  0x5f   :  { %p12132_p1 = scmp.ne.s32.totalorder %s70_s12, %s12131_s29  ;;  %p12137_p3 = scmp.lt.s32.totalorder %s12131_s29, %s12131_s29 }
  0x61   :  { %p12138_p4 = por %p12137_p3, %p12136_p2 }
  0x63   :  { %p12139_p5 = pnand %p12138_p4, %p12132_p1 }
  0x65   :  { %12142 = shalt.err (!%p12139_p5)
}
  0x66   :  { %72 = dma.hbm_to_vmem [thread:$0]  %s12673_s4, 128, %s70_s12, [#allocation9]  }
  0x67   :  { %s12231_s9 = smov [#allocation13]   ;;  %s12232_s1 = smov [#allocation14]  }
  0x68   :  { %s91_s5 = sshll.u32 %s12231_s9, 4  ;;  %s100_s28 = sshll.u32 %s12232_s1, 4  ;;  %s92_s5 = int_to_ptr.vmem [resolvable:$true] %s91_s5  ;;  %s12354_s28 = int_to_ptr.vmem [resolvable:$true] %s100_s28 }
  0x69   :  { %s12143_s14 = scalar_lea.hbm %s12675_s6, 128 }
  0x6a   :  { %p12144_p6 = scmp.ne.s32.totalorder %s12675_s6, %s12143_s14  ;;  %p12147_p7 = scmp.lt.u32.totalorder %s12143_s14, %s12675_s6 }
  0x6c   :  { %p12149_p8 = pnand %p12147_p7, %p12144_p6 }
  0x6e   :  { %12152 = shalt.err (!%p12149_p8)
}
  0x6f   :  { %s12153_s4 = scalar_lea.vmem %s92_s5, 128  ;;  %p12158_p10 = scmp.lt.s32.totalorder %s92_s5, %s92_s5 }
  0x70   :  { %p12154_p9 = scmp.ne.s32.totalorder %s92_s5, %s12153_s4  ;;  %p12159_p11 = scmp.lt.s32.totalorder %s12153_s4, %s12153_s4 }
  0x72   :  { %p12160_p12 = por %p12159_p11, %p12158_p10 }
  0x74   :  { %p12161_p13 = pnand %p12160_p12, %p12154_p9 }
  0x76   :  { %12164 = shalt.err (!%p12161_p13)
}
  0x77   :  { %94 = dma.hbm_to_vmem [thread:$0]  %s12675_s6, 128, %s92_s5, [#allocation12]  }
  0x78   :  { %s12165_s13 = scalar_lea.hbm %s12676_s7, 57344 }
  0x79   :  { %p12166_p0 = scmp.ne.s32.totalorder %s12676_s7, %s12165_s13  ;;  %p12169_p1 = scmp.lt.u32.totalorder %s12165_s13, %s12676_s7 }
  0x7b   :  { %p12171_p2 = pnand %p12169_p1, %p12166_p0 }
  0x7d   :  { %12174 = shalt.err (!%p12171_p2)
}
  0x7e   :  { %s12175_s24 = scalar_lea.vmem %s12354_s28, 57344  ;;  %p12180_p4 = scmp.lt.s32.totalorder %s12354_s28, %s12354_s28 }
  0x7f   :  { %p12176_p3 = scmp.ne.s32.totalorder %s12354_s28, %s12175_s24  ;;  %p12181_p5 = scmp.lt.s32.totalorder %s12175_s24, %s12175_s24 }
  0x81   :  { %p12182_p6 = por %p12181_p5, %p12180_p4 }
  0x83   :  { %p12183_p7 = pnand %p12182_p6, %p12176_p3 }
  0x85   :  { %12186 = shalt.err (!%p12183_p7)
}
  0x86   :  { %s12233_s6 = smov 448   ;;  %s12234_s25 = smov 28  }
  0x87   :  { %106 = dma.hbm_to_vmem [thread:$0]  %s12676_s7, 57344, %s12354_s28, [#allocation15], %s12233_s6, %s12233_s6, %s12234_s25  }
  0x88   :  { %12209 = dma.done.wait [#allocation3], 64  }
  0x89   :  { %12210 = vsyncadd [#allocation3], 4294967232 }
  0x8a   :  { %12211 = dma.done.wait [#allocation6], 4160  }
  0x8b   :  { %12212 = vsyncadd [#allocation6], 4294963136 }
  0x8c   :  { %12213 = dma.done.wait [#allocation9], 32896  }
  0x8d   :  { %12214 = vsyncadd [#allocation9], 4294934400 }
  0x8e   :  { %12215 = dma.done.wait [#allocation12], 65664  }
  0x8f   :  { %12216 = vsyncadd [#allocation12], 4294901632 }
  0x90   :  { %12217 = dma.done.wait [#allocation15], 57344  }
  0x91   :  { %12218 = vsyncadd [#allocation15], 4294909952  ;;  %v12235_v0 = vmov 0   ;;  %v11267_v1 = vld [vmem:[#allocation5 + $0x4] ss:$16 sps:$4 sm:$0xff]   ;;  %s12236_s7 = smov [#allocation16]  }
  0x92   :  { %379 = vmatprep.mubr.bf16.mxu0 %v12235_v0  ;;  %420 = vmatprep.mubr.bf16.mxu1 %v12235_v0  ;;  %v11269_v2 = vld [vmem:[#allocation5 + $0xc] ss:$16 sps:$4 sm:$0xff]   ;;  %v11271_v3 = vld [vmem:[#allocation5] ss:$16 sps:$4 sm:$0xff]   ;;  %v11272_v4 = vld [vmem:[#allocation5 + $0x8] ss:$16 sps:$4 sm:$0xff]  }
  0x93   :  { %347 = vmatprep.subr.bf16.mxu0 %v11267_v1  ;;  %388 = vmatprep.subr.bf16.mxu1 %v11269_v2  ;;  %v11273_v5 = vld [vmem:[#allocation5 + $0x24] ss:$16 sps:$4 sm:$0xff]   ;;  %v11275_v6 = vld [vmem:[#allocation5 + $0x2c] ss:$16 sps:$4 sm:$0xff]   ;;  %v11277_v7 = vld [vmem:[#allocation5 + $0x20] ss:$16 sps:$4 sm:$0xff]  }
  0x94   :  { %348 = vmatpush1.bf16.msra.mxu0 %v11271_v3  ;;  %389 = vmatpush1.bf16.msra.mxu1 %v11272_v4  ;;  %v11278_v8 = vld [vmem:[#allocation5 + $0x28] ss:$16 sps:$4 sm:$0xff]   ;;  %v11279_v9 = vld [vmem:[#allocation5 + $0x44] ss:$16 sps:$4 sm:$0xff]   ;;  %v11281_v10 = vld [vmem:[#allocation5 + $0x4c] ss:$16 sps:$4 sm:$0xff]  }
  0x95   :  { %349 = vmatprep.subr.bf16.mxu0 %v11273_v5  ;;  %390 = vmatprep.subr.bf16.mxu1 %v11275_v6  ;;  %v11283_v11 = vld [vmem:[#allocation5 + $0x40] ss:$16 sps:$4 sm:$0xff]   ;;  %v11284_v12 = vld [vmem:[#allocation5 + $0x48] ss:$16 sps:$4 sm:$0xff]   ;;  %v11285_v13 = vld [vmem:[#allocation5 + $0x64] ss:$16 sps:$4 sm:$0xff]  }
  0x96   :  { %v11287_v14 = vld [vmem:[#allocation5 + $0x6c] ss:$16 sps:$4 sm:$0xff]   ;;  %v11289_v15 = vld [vmem:[#allocation5 + $0x60] ss:$16 sps:$4 sm:$0xff]   ;;  %v11290_v16 = vld [vmem:[#allocation5 + $0x68] ss:$16 sps:$4 sm:$0xff]  }
  0x97   :  { %v11291_v17 = vld [vmem:[#allocation5 + $0x84] ss:$16 sps:$4 sm:$0xff]   ;;  %v11293_v18 = vld [vmem:[#allocation5 + $0x8c] ss:$16 sps:$4 sm:$0xff]   ;;  %v11295_v19 = vld [vmem:[#allocation5 + $0x80] ss:$16 sps:$4 sm:$0xff]  }
  0x98   :  { %350 = vmatpush1.bf16.msra.mxu0 %v11277_v7  ;;  %391 = vmatpush1.bf16.msra.mxu1 %v11278_v8  ;;  %v11296_v20 = vld [vmem:[#allocation5 + $0x88] ss:$16 sps:$4 sm:$0xff]   ;;  %v11297_v21 = vld [vmem:[#allocation5 + $0xa4] ss:$16 sps:$4 sm:$0xff]   ;;  %v11299_v22 = vld [vmem:[#allocation5 + $0xac] ss:$16 sps:$4 sm:$0xff]  }
  0x99   :  { %351 = vmatprep.subr.bf16.mxu0 %v11279_v9  ;;  %392 = vmatprep.subr.bf16.mxu1 %v11281_v10  ;;  %v11301_v23 = vld [vmem:[#allocation5 + $0xa0] ss:$16 sps:$4 sm:$0xff]   ;;  %v11302_v24 = vld [vmem:[#allocation5 + $0xa8] ss:$16 sps:$4 sm:$0xff]   ;;  %v11303_v25 = vld [vmem:[#allocation5 + $0xc4] ss:$16 sps:$4 sm:$0xff]  }
  0x9a   :  { %v11305_v26 = vld [vmem:[#allocation5 + $0xcc] ss:$16 sps:$4 sm:$0xff]   ;;  %v11307_v27 = vld [vmem:[#allocation5 + $0xc0] ss:$16 sps:$4 sm:$0xff]   ;;  %v11308_v28 = vld [vmem:[#allocation5 + $0xc8] ss:$16 sps:$4 sm:$0xff]  }
  0x9b   :  { %v11309_v29 = vld [vmem:[#allocation5 + $0xe4] ss:$16 sps:$4 sm:$0xff]   ;;  %v11311_v30 = vld [vmem:[#allocation5 + $0xec] ss:$16 sps:$4 sm:$0xff]   ;;  %v11313_v35 = vld [vmem:[#allocation5 + $0xe0] ss:$16 sps:$4 sm:$0xff]  }
  0x9c   :  { %352 = vmatpush1.bf16.msra.mxu0 %v11283_v11  ;;  %393 = vmatpush1.bf16.msra.mxu1 %v11284_v12  ;;  %v453_v31 = vld [vmem:[#allocation8] sm:$0xff]  ;;  %v132_v43 = vld [vmem:[#allocation2] sm:$0xf]  ;;  %s9760_s29 = sshll.u32 %s12236_s7, 4  ;;  %s9761_s29 = int_to_ptr.vmem [resolvable:$true] %s9760_s29 }
  0x9d   :  { %353 = vmatprep.subr.bf16.mxu0 %v11285_v13  ;;  %394 = vmatprep.subr.bf16.mxu1 %v11287_v14  ;;  %v457_v32 = vld [vmem:[#allocation8 + $0x20] sm:$0xff]  ;;  %s12187_s2 = scalar_lea.vmem %s9761_s29, 448  ;;  %p12192_p9 = scmp.lt.s32.totalorder %s9761_s29, %s9761_s29 }
  0x9e   :  { %v581_v33 = vld [vmem:[#allocation8 + $0x400] sm:$0xff]  ;;  %v9810_v37 = vcombine.high %v453_v31, %v457_v32  ;;  %v9809_v44 = vcombine.low %v453_v31, %v457_v32  ;;  %p12188_p8 = scmp.ne.s32.totalorder %s9761_s29, %s12187_s2  ;;  %p12193_p10 = scmp.lt.s32.totalorder %s12187_s2, %s12187_s2 }
  0x9f   :  { %v585_v34 = vld [vmem:[#allocation8 + $0x420] sm:$0xff] }
  0xa0   :  { %354 = vmatpush1.bf16.msra.mxu0 %v11289_v15  ;;  %395 = vmatpush1.bf16.msra.mxu1 %v11290_v16  ;;  %v11314_v36 = vld [vmem:[#allocation5 + $0xe8] ss:$16 sps:$4 sm:$0xff]   ;;  %v9938_v38 = vcombine.high %v581_v33, %v585_v34  ;;  %v9937_v45 = vcombine.low %v581_v33, %v585_v34  ;;  %p12194_p11 = por %p12193_p10, %p12192_p9 }
  0xa1   :  { %355 = vmatprep.subr.bf16.mxu0 %v11291_v17  ;;  %396 = vmatprep.subr.bf16.mxu1 %v11293_v18  ;;  %v461_v39 = vld [vmem:[#allocation8 + $0x40] sm:$0xff] }
  0xa2   :  { %v465_v40 = vld [vmem:[#allocation8 + $0x60] sm:$0xff]  ;;  %p12195_p12 = pnand %p12194_p11, %p12188_p8 }
  0xa3   :  { %v589_v41 = vld [vmem:[#allocation8 + $0x440] sm:$0xff]  ;;  %v9818_v46 = vcombine.high %v461_v39, %v465_v40  ;;  %v9817_v52 = vcombine.low %v461_v39, %v465_v40 }
  0xa4   :  { %356 = vmatpush1.bf16.msra.mxu0 %v11295_v19  ;;  %397 = vmatpush1.bf16.msra.mxu1 %v11296_v20  ;;  %v593_v42 = vld [vmem:[#allocation8 + $0x460] sm:$0xff] }
  0xa5   :  { %357 = vmatprep.subr.bf16.mxu0 %v11297_v21  ;;  %398 = vmatprep.subr.bf16.mxu1 %v11299_v22  ;;  %v9946_v47 = vcombine.high %v589_v41, %v593_v42  ;;  %v469_v48 = vld [vmem:[#allocation8 + $0x80] sm:$0xff]  ;;  %v9945_v53 = vcombine.low %v589_v41, %v593_v42 }
  0xa6   :  { %v473_v49 = vld [vmem:[#allocation8 + $0xa0] sm:$0xff] }
  0xa7   :  { %v597_v50 = vld [vmem:[#allocation8 + $0x480] sm:$0xff]  ;;  %v9826_v58 = vcombine.high %v469_v48, %v473_v49  ;;  %v9825_v60 = vcombine.low %v469_v48, %v473_v49 }
  0xa8   :  { %358 = vmatpush1.bf16.msra.mxu0 %v11301_v23  ;;  %399 = vmatpush1.bf16.msra.mxu1 %v11302_v24  ;;  %v601_v51 = vld [vmem:[#allocation8 + $0x4a0] sm:$0xff] }
  0xa9   :  { %359 = vmatprep.subr.bf16.mxu0 %v11303_v25  ;;  %400 = vmatprep.subr.bf16.mxu1 %v11305_v26  ;;  %v477_v54 = vld [vmem:[#allocation8 + $0xc0] sm:$0xff]  ;;  %v9954_v59 = vcombine.high %v597_v50, %v601_v51  ;;  %v9953_v61 = vcombine.low %v597_v50, %v601_v51 }
  0xaa   :  { %v481_v55 = vld [vmem:[#allocation8 + $0xe0] sm:$0xff] }
  0xab   :  { %v605_v56 = vld [vmem:[#allocation8 + $0x4c0] sm:$0xff]  ;;  %v9834_v2 = vcombine.high %v477_v54, %v481_v55  ;;  %v9833_v4 = vcombine.low %v477_v54, %v481_v55 }
  0xac   :  { %360 = vmatpush1.bf16.msra.mxu0 %v11307_v27  ;;  %401 = vmatpush1.bf16.msra.mxu1 %v11308_v28  ;;  %v609_v57 = vld [vmem:[#allocation8 + $0x4e0] sm:$0xff] }
  0xad   :  { %361 = vmatprep.subr.bf16.mxu0 %v11309_v29  ;;  %402 = vmatprep.subr.bf16.mxu1 %v11311_v30  ;;  %v485_v62 = vld [vmem:[#allocation8 + $0x100] sm:$0xff]  ;;  %v9962_v3 = vcombine.high %v605_v56, %v609_v57  ;;  %v9961_v5 = vcombine.low %v605_v56, %v609_v57 }
  0xae   :  { %v489_v63 = vld [vmem:[#allocation8 + $0x120] sm:$0xff] }
  0xaf   :  { %v613_v0 = vld [vmem:[#allocation8 + $0x500] sm:$0xff]  ;;  %v9842_v10 = vcombine.high %v485_v62, %v489_v63  ;;  %v9841_v12 = vcombine.low %v485_v62, %v489_v63 }
  0xb0   :  { %362 = vmatpush1.bf16.msra.mxu0 %v11313_v35  ;;  %403 = vmatpush1.bf16.msra.mxu1 %v11314_v36  ;;  %v617_v1 = vld [vmem:[#allocation8 + $0x520] sm:$0xff] }
  0xb1   :  { %2031 = vmatprep.subr.bf16.mxu1 %v9810_v37  ;;  %2072 = vmatprep.subr.bf16.mxu0 %v9938_v38  ;;  %v493_v6 = vld [vmem:[#allocation8 + $0x140] sm:$0xff]  ;;  %v9970_v11 = vcombine.high %v613_v0, %v617_v1  ;;  %v9969_v13 = vcombine.low %v613_v0, %v617_v1 }
  0xb2   :  { %v497_v7 = vld [vmem:[#allocation8 + $0x160] sm:$0xff] }
  0xb3   :  { %380 = vmatmul.mubr.bf16.vlgmr.msra.gmra.mrb[0].mxu0 %v132_v43  ;;  %421 = vmatmul.mubr.bf16.vlgmr.msra.gmra.mrb[0].mxu1 %v132_v43  ;;  %v621_v8 = vld [vmem:[#allocation8 + $0x540] sm:$0xff]  ;;  %v9850_v18 = vcombine.high %v493_v6, %v497_v7  ;;  %v9849_v20 = vcombine.low %v493_v6, %v497_v7 }
  0xb4   :  { %2032 = vmatpush1.bf16.msra.mxu1 %v9809_v44  ;;  %2073 = vmatpush1.bf16.msra.mxu0 %v9937_v45  ;;  %v625_v9 = vld [vmem:[#allocation8 + $0x560] sm:$0xff] }
  0xb5   :  { %2033 = vmatprep.subr.bf16.mxu1 %v9818_v46  ;;  %2074 = vmatprep.subr.bf16.mxu0 %v9946_v47  ;;  %v501_v14 = vld [vmem:[#allocation8 + $0x180] sm:$0xff]  ;;  %v9978_v19 = vcombine.high %v621_v8, %v625_v9  ;;  %v9977_v21 = vcombine.low %v621_v8, %v625_v9 }
  0xb6   :  { %v505_v15 = vld [vmem:[#allocation8 + $0x1a0] sm:$0xff] }
  0xb7   :  { %v629_v16 = vld [vmem:[#allocation8 + $0x580] sm:$0xff]  ;;  %v9858_v26 = vcombine.high %v501_v14, %v505_v15  ;;  %v9857_v28 = vcombine.low %v501_v14, %v505_v15 }
  0xb8   :  { %2034 = vmatpush1.bf16.msra.mxu1 %v9817_v52  ;;  %2075 = vmatpush1.bf16.msra.mxu0 %v9945_v53  ;;  %v633_v17 = vld [vmem:[#allocation8 + $0x5a0] sm:$0xff] }
  0xb9   :  { %2035 = vmatprep.subr.bf16.mxu1 %v9826_v58  ;;  %2076 = vmatprep.subr.bf16.mxu0 %v9954_v59  ;;  %v509_v22 = vld [vmem:[#allocation8 + $0x1c0] sm:$0xff]  ;;  %v9986_v27 = vcombine.high %v629_v16, %v633_v17  ;;  %v9985_v29 = vcombine.low %v629_v16, %v633_v17 }
  0xba   :  { %v513_v23 = vld [vmem:[#allocation8 + $0x1e0] sm:$0xff] }
  0xbb   :  { %v637_v24 = vld [vmem:[#allocation8 + $0x5c0] sm:$0xff]  ;;  %v9866_v34 = vcombine.high %v509_v22, %v513_v23  ;;  %v9865_v36 = vcombine.low %v509_v22, %v513_v23 }
  0xbc   :  { %2036 = vmatpush1.bf16.msra.mxu1 %v9825_v60  ;;  %2077 = vmatpush1.bf16.msra.mxu0 %v9953_v61  ;;  %v641_v25 = vld [vmem:[#allocation8 + $0x5e0] sm:$0xff] }
  0xbd   :  { %2037 = vmatprep.subr.bf16.mxu1 %v9834_v2  ;;  %2078 = vmatprep.subr.bf16.mxu0 %v9962_v3  ;;  %v517_v30 = vld [vmem:[#allocation8 + $0x200] sm:$0xff]  ;;  %v9994_v35 = vcombine.high %v637_v24, %v641_v25  ;;  %v9993_v37 = vcombine.low %v637_v24, %v641_v25 }
  0xbe   :  { %v521_v31 = vld [vmem:[#allocation8 + $0x220] sm:$0xff] }
  0xbf   :  { %v645_v32 = vld [vmem:[#allocation8 + $0x600] sm:$0xff]  ;;  %v9874_v42 = vcombine.high %v517_v30, %v521_v31  ;;  %v9873_v44 = vcombine.low %v517_v30, %v521_v31 }
  0xc0   :  { %2038 = vmatpush1.bf16.msra.mxu1 %v9833_v4  ;;  %2079 = vmatpush1.bf16.msra.mxu0 %v9961_v5  ;;  %v649_v33 = vld [vmem:[#allocation8 + $0x620] sm:$0xff] }
  0xc1   :  { %2039 = vmatprep.subr.bf16.mxu1 %v9842_v10  ;;  %2080 = vmatprep.subr.bf16.mxu0 %v9970_v11  ;;  %v525_v38 = vld [vmem:[#allocation8 + $0x240] sm:$0xff]  ;;  %v10002_v43 = vcombine.high %v645_v32, %v649_v33  ;;  %v10001_v45 = vcombine.low %v645_v32, %v649_v33 }
  0xc2   :  { %v529_v39 = vld [vmem:[#allocation8 + $0x260] sm:$0xff] }
  0xc3   :  { %v653_v40 = vld [vmem:[#allocation8 + $0x640] sm:$0xff]  ;;  %v9882_v50 = vcombine.high %v525_v38, %v529_v39  ;;  %v9881_v52 = vcombine.low %v525_v38, %v529_v39  ;;  %v12393_v38 = vld [vmem:[#allocation8 + $0x30] sm:$0xff] }
  0xc4   :  { %2040 = vmatpush1.bf16.msra.mxu1 %v9841_v12  ;;  %2081 = vmatpush1.bf16.msra.mxu0 %v9969_v13  ;;  %v657_v41 = vld [vmem:[#allocation8 + $0x660] sm:$0xff] }
  0xc5   :  { %2041 = vmatprep.subr.bf16.mxu1 %v9850_v18  ;;  %2082 = vmatprep.subr.bf16.mxu0 %v9978_v19  ;;  %v533_v46 = vld [vmem:[#allocation8 + $0x280] sm:$0xff]  ;;  %v10010_v51 = vcombine.high %v653_v40, %v657_v41  ;;  %v10009_v53 = vcombine.low %v653_v40, %v657_v41 }
  0xc6   :  { %v537_v47 = vld [vmem:[#allocation8 + $0x2a0] sm:$0xff] }
  0xc7   :  { %v661_v48 = vld [vmem:[#allocation8 + $0x680] sm:$0xff]  ;;  %v9890_v54 = vcombine.high %v533_v46, %v537_v47  ;;  %v9889_v56 = vcombine.low %v533_v46, %v537_v47  ;;  %v165_v46 = vld [vmem:[#allocation7] sm:$0xf] }
  0xc8   :  { %2042 = vmatpush1.bf16.msra.mxu1 %v9849_v20  ;;  %2083 = vmatpush1.bf16.msra.mxu0 %v9977_v21  ;;  %v665_v49 = vld [vmem:[#allocation8 + $0x6a0] sm:$0xff] }
  0xc9   :  { %2043 = vmatprep.subr.bf16.mxu1 %v9858_v26  ;;  %2084 = vmatprep.subr.bf16.mxu0 %v9986_v27  ;;  %v10018_v55 = vcombine.high %v661_v48, %v665_v49  ;;  %v10017_v57 = vcombine.low %v661_v48, %v665_v49  ;;  %v541_v58 = vld [vmem:[#allocation8 + $0x2c0] sm:$0xff] }
  0xca   :  { %v545_v59 = vld [vmem:[#allocation8 + $0x2e0] sm:$0xff] }
  0xcb   :  { %v669_v60 = vld [vmem:[#allocation8 + $0x6c0] sm:$0xff]  ;;  %v9898_v61 = vcombine.high %v541_v58, %v545_v59  ;;  %v9897_v63 = vcombine.low %v541_v58, %v545_v59 }
  0xcc   :  { %2044 = vmatpush1.bf16.msra.mxu1 %v9857_v28  ;;  %2085 = vmatpush1.bf16.msra.mxu0 %v9985_v29  ;;  %v673_v62 = vld [vmem:[#allocation8 + $0x6e0] sm:$0xff] }
  0xcd   :  { %2045 = vmatprep.subr.bf16.mxu1 %v9866_v34  ;;  %2086 = vmatprep.subr.bf16.mxu0 %v9994_v35  ;;  %v10025_v0 = vcombine.low %v669_v60, %v673_v62  ;;  %v10026_v1 = vcombine.high %v669_v60, %v673_v62  ;;  %v549_v2 = vld [vmem:[#allocation8 + $0x300] sm:$0xff]  ;;  %v12385_v34 = vld [vmem:[#allocation8 + $0x8] sm:$0xff] }
  0xce   :  { %v553_v3 = vld [vmem:[#allocation8 + $0x320] sm:$0xff]  ;;  %v12387_v35 = vld [vmem:[#allocation8 + $0x28] sm:$0xff] }
  0xcf   :  { %v677_v4 = vld [vmem:[#allocation8 + $0x700] sm:$0xff]  ;;  %v9906_v5 = vcombine.high %v549_v2, %v553_v3  ;;  %v9905_v7 = vcombine.low %v549_v2, %v553_v3  ;;  %v9811_v39 = vcombine.low %v12385_v34, %v12387_v35 }
  0xd0   :  { %2046 = vmatpush1.bf16.msra.mxu1 %v9865_v36  ;;  %2087 = vmatpush1.bf16.msra.mxu0 %v9993_v37  ;;  %v681_v6 = vld [vmem:[#allocation8 + $0x720] sm:$0xff]  ;;  %v12389_v36 = vld [vmem:[#allocation8 + $0x10] sm:$0xff]  ;;  %v9812_v37 = vcombine.high %v12385_v34, %v12387_v35 }
  0xd1   :  { %2047 = vmatprep.subr.bf16.mxu1 %v9874_v42  ;;  %2088 = vmatprep.subr.bf16.mxu0 %v10002_v43  ;;  %v10033_v8 = vcombine.low %v677_v4, %v681_v6  ;;  %v10034_v9 = vcombine.high %v677_v4, %v681_v6  ;;  %v557_v10 = vld [vmem:[#allocation8 + $0x340] sm:$0xff]  ;;  %v9813_v40 = vcombine.low %v12389_v36, %v12393_v38  ;;  %v167_v42 = vlaneseq }
  0xd2   :  { %v561_v11 = vld [vmem:[#allocation8 + $0x360] sm:$0xff]  ;;  %v9814_v41 = vcombine.high %v12389_v36, %v12393_v38 }
  0xd3   :  { %v685_v12 = vld [vmem:[#allocation8 + $0x740] sm:$0xff]  ;;  %v9914_v13 = vcombine.high %v557_v10, %v561_v11  ;;  %v9913_v15 = vcombine.low %v557_v10, %v561_v11  ;;  %v12401_v43 = vshrl.u32 %v167_v42, 7  ;;  %v482_v42 = vld [vmem:[#allocation8 + $0xe8] sm:$0xff] }
  0xd4   :  { %2048 = vmatpush1.bf16.msra.mxu1 %v9873_v44  ;;  %2089 = vmatpush1.bf16.msra.mxu0 %v10001_v45  ;;  %v689_v14 = vld [vmem:[#allocation8 + $0x760] sm:$0xff] }
  0xd5   :  { %2049 = vmatprep.subr.bf16.mxu1 %v9882_v50  ;;  %2090 = vmatprep.subr.bf16.mxu0 %v10010_v51  ;;  %v10041_v16 = vcombine.low %v685_v12, %v689_v14  ;;  %v10042_v17 = vcombine.high %v685_v12, %v689_v14  ;;  %v565_v18 = vld [vmem:[#allocation8 + $0x380] sm:$0xff]  ;;  %v12404_v44 = vsub.s32 0, %v12401_v43  ;;  %v12407_v45 = vsub.s32 2, %v12401_v43 }
  0xd6   :  { %v569_v19 = vld [vmem:[#allocation8 + $0x3a0] sm:$0xff]  ;;  %v12410_v47 = vsub.s32 1, %v12401_v43  ;;  %v12413_v48 = vsub.s32 3, %v12401_v43 }
  0xd7   :  { %v693_v20 = vld [vmem:[#allocation8 + $0x780] sm:$0xff]  ;;  %v9922_v21 = vcombine.high %v565_v18, %v569_v19  ;;  %v9921_v23 = vcombine.low %v565_v18, %v569_v19  ;;  %v170_v49 = vrot.slane %v165_v46, %v12404_v44  ;;  %v178_v50 = vrot.slane %v165_v46, %v12407_v45 }
  0xd8   :  { %2050 = vmatpush1.bf16.msra.mxu1 %v9881_v52  ;;  %2091 = vmatpush1.bf16.msra.mxu0 %v10009_v53  ;;  %v697_v22 = vld [vmem:[#allocation8 + $0x7a0] sm:$0xff]  ;;  %v174_v51 = vrot.slane %v165_v46, %v12410_v47  ;;  %v182_v52 = vrot.slane %v165_v46, %v12413_v48  ;;  %v479_v46 = vld [vmem:[#allocation8 + $0xd0] sm:$0xff] }
  0xd9   :  { %2051 = vmatprep.subr.bf16.mxu1 %v9890_v54  ;;  %2092 = vmatprep.subr.bf16.mxu0 %v10018_v55  ;;  %v10049_v24 = vcombine.low %v693_v20, %v697_v22  ;;  %v10050_v25 = vcombine.high %v693_v20, %v697_v22  ;;  %v573_v26 = vld [vmem:[#allocation8 + $0x3c0] sm:$0xff]  ;;  %v467_v22 = vld [vmem:[#allocation8 + $0x70] sm:$0xff] }
  0xda   :  { %v577_v27 = vld [vmem:[#allocation8 + $0x3e0] sm:$0xff] }
  0xdb   :  { %v701_v28 = vld [vmem:[#allocation8 + $0x7c0] sm:$0xff]  ;;  %v9930_v29 = vcombine.high %v573_v26, %v577_v27  ;;  %v9929_v31 = vcombine.low %v573_v26, %v577_v27  ;;  %v470_v26 = vld [vmem:[#allocation8 + $0x88] sm:$0xff] }
  0xdc   :  { %2052 = vmatpush1.bf16.msra.mxu1 %v9889_v56  ;;  %2093 = vmatpush1.bf16.msra.mxu0 %v10017_v57  ;;  %v705_v30 = vld [vmem:[#allocation8 + $0x7e0] sm:$0xff]  ;;  %v474_v27 = vld [vmem:[#allocation8 + $0xa8] sm:$0xff] }
  0xdd   :  { %2053 = vmatprep.subr.bf16.mxu1 %v9898_v61  ;;  %2094 = vmatprep.subr.bf16.mxu0 %v10026_v1  ;;  %v10057_v32 = vcombine.low %v701_v28, %v705_v30  ;;  %v10058_v33 = vcombine.high %v701_v28, %v705_v30  ;;  %v475_v30 = vld [vmem:[#allocation8 + $0xb0] sm:$0xff]  ;;  %v9827_v34 = vcombine.low %v470_v26, %v474_v27 }
  0xe0   :  { %2054 = vmatpush1.bf16.msra.mxu1 %v9897_v63  ;;  %2095 = vmatpush1.bf16.msra.mxu0 %v10025_v0 }
  0xe1   :  { %2055 = vmatprep.subr.bf16.mxu1 %v9906_v5  ;;  %2096 = vmatprep.subr.bf16.mxu0 %v10034_v9 }
  0xe4   :  { %2056 = vmatpush1.bf16.msra.mxu1 %v9905_v7  ;;  %2097 = vmatpush1.bf16.msra.mxu0 %v10033_v8 }
  0xe5   :  { %2057 = vmatprep.subr.bf16.mxu1 %v9914_v13  ;;  %2098 = vmatprep.subr.bf16.mxu0 %v10042_v17  ;;  %v466_v17 = vld [vmem:[#allocation8 + $0x68] sm:$0xff] }
  0xe8   :  { %2058 = vmatpush1.bf16.msra.mxu1 %v9913_v15  ;;  %2099 = vmatpush1.bf16.msra.mxu0 %v10041_v16  ;;  %v462_v16 = vld [vmem:[#allocation8 + $0x48] sm:$0xff] }
  0xe9   :  { %2059 = vmatprep.subr.bf16.mxu1 %v9922_v21  ;;  %2100 = vmatprep.subr.bf16.mxu0 %v10050_v25  ;;  %v463_v21 = vld [vmem:[#allocation8 + $0x50] sm:$0xff]  ;;  %v9820_v25 = vcombine.high %v462_v16, %v466_v17 }
  0xea   :  { %v9822_v28 = vcombine.high %v463_v21, %v467_v22 }
  0xec   :  { %2060 = vmatpush1.bf16.msra.mxu1 %v9921_v23  ;;  %2101 = vmatpush1.bf16.msra.mxu0 %v10049_v24 }
  0xed   :  { %2061 = vmatprep.subr.bf16.mxu1 %v9930_v29  ;;  %2102 = vmatprep.subr.bf16.mxu0 %v10058_v33  ;;  %v471_v29 = vld [vmem:[#allocation8 + $0x90] sm:$0xff]  ;;  %v9828_v33 = vcombine.high %v470_v26, %v474_v27 }
  0xee   :  { %v9829_v35 = vcombine.low %v471_v29, %v475_v30 }
  0xf0   :  { %2062 = vmatpush1.bf16.msra.mxu1 %v9929_v31  ;;  %2103 = vmatpush1.bf16.msra.mxu0 %v10057_v32  ;;  %v9819_v31 = vcombine.low %v462_v16, %v466_v17  ;;  %v9821_v32 = vcombine.low %v463_v21, %v467_v22  ;;  %v518_v16 = vld [vmem:[#allocation8 + $0x208] sm:$0xff]  ;;  %v523_v21 = vld [vmem:[#allocation8 + $0x230] sm:$0xff] }
  0xf1   :  { %2113 = vmatprep.subr.bf16.mxu1 %v9812_v37  ;;  %2195 = vmatprep.subr.bf16.mxu0 %v9814_v41  ;;  %v9830_v37 = vcombine.high %v471_v29, %v475_v30  ;;  %v478_v41 = vld [vmem:[#allocation8 + $0xc8] sm:$0xff]  ;;  %v527_v30 = vld [vmem:[#allocation8 + $0x250] sm:$0xff] }
  0xf2   :  { %v9836_v36 = vcombine.high %v478_v41, %v482_v42  ;;  %v522_v17 = vld [vmem:[#allocation8 + $0x228] sm:$0xff] }
  0xf3   :  { %v9876_v26 = vcombine.high %v518_v16, %v522_v17  ;;  %v530_v29 = vld [vmem:[#allocation8 + $0x268] sm:$0xff] }
 0x186   :  { %v381_v53 = vpop.f32.mrb[0].mxu0  ;;  %v422_v54 = vpop.f32.mrb[0].mxu1 }
 0x187   :  { %v382_v55 = vadd.f32 %v381_v53, %v170_v49  ;;  %v423_v56 = vadd.f32 %v422_v54, %v178_v50  ;;  %v383_v57 = vpop.f32.mrb[1].mxu0  ;;  %v424_v58 = vpop.f32.mrb[1].mxu1  ;;  %v483_v49 = vld [vmem:[#allocation8 + $0xf0] sm:$0xff] }
 0x188   :  { %v384_v59 = vadd.f32 %v383_v57, %v174_v51  ;;  %v425_v60 = vadd.f32 %v424_v58, %v182_v52  ;;  %v385_v61 = vpop.f32.mrb[2].mxu0  ;;  %v426_v62 = vpop.f32.mrb[2].mxu1  ;;  %v9838_v38 = vcombine.high %v479_v46, %v483_v49  ;;  %v487_v50 = vld [vmem:[#allocation8 + $0x110] sm:$0xff]  ;;  %v9835_v52 = vcombine.low %v478_v41, %v482_v42  ;;  %v498_v57 = vld [vmem:[#allocation8 + $0x168] sm:$0xff] }
 0x189   :  { %v429_v63 = vmul.f32 1.442695, %v382_v55  ;;  %v433_v0 = vmul.f32 1.442695, %v423_v56  ;;  %v386_v3 = vpop.f32.mrb[3].mxu0  ;;  %v427_v4 = vpop.f32.mrb[3].mxu1  ;;  %v9837_v53 = vcombine.low %v479_v46, %v483_v49 }
 0x18a   :  { %v431_v1 = vmul.f32 1.442695, %v384_v59  ;;  %v435_v2 = vmul.f32 1.442695, %v425_v60  ;;  %vm439_vm0 = vcmp.gt.f32.partialorder %v423_v56, 0.0  ;;  %vm437_vm1 = vcmp.gt.f32.partialorder %v382_v55, 0.0 }
 0x18b   :  { %11955 = vpow2.f32 %v429_v63  ;;  %vm440_vm2 = vcmp.gt.f32.partialorder %v425_v60, 0.0  ;;  %vm438_vm3 = vcmp.gt.f32.partialorder %v384_v59, 0.0  ;;  %v491_v51 = vld [vmem:[#allocation8 + $0x130] sm:$0xff]  ;;  %v534_v42 = vld [vmem:[#allocation8 + $0x288] sm:$0xff] }
 0x18c   :  { %11957 = vpow2.f32 %v433_v0  ;;  %v495_v58 = vld [vmem:[#allocation8 + $0x150] sm:$0xff]  ;;  %v9845_v61 = vcombine.low %v487_v50, %v491_v51  ;;  %v502_v0 = vld [vmem:[#allocation8 + $0x188] sm:$0xff] }
 0x18d   :  { %11959 = vpow2.f32 %v431_v1  ;;  %v506_v1 = vld [vmem:[#allocation8 + $0x1a8] sm:$0xff]  ;;  %v507_v3 = vld [vmem:[#allocation8 + $0x1b0] sm:$0xff] }
 0x18e   :  { %11961 = vpow2.f32 %v435_v2  ;;  %v503_v2 = vld [vmem:[#allocation8 + $0x190] sm:$0xff]  ;;  %v538_v46 = vld [vmem:[#allocation8 + $0x2a8] sm:$0xff] }
 0x18f   :  { %v535_v49 = vld [vmem:[#allocation8 + $0x290] sm:$0xff] }
 0x195   :  { %v11956_v5 = vpop.eup %11955 }
 0x196   :  { %v11958_v6 = vpop.eup %11957  ;;  %v9805_v7 = vadd.f32 -1.0, %v11956_v5 }
 0x197   :  { %v11960_v8 = vpop.eup %11959  ;;  %v9807_v9 = vadd.f32 -1.0, %v11958_v6  ;;  %v9860_v6 = vcombine.high %v502_v0, %v506_v1 }
 0x198   :  { %v11962_v10 = vpop.eup %11961  ;;  %v9806_v11 = vadd.f32 -1.0, %v11960_v8  ;;  %v445_v12 = vsel %vm437_vm1, %v382_v55, %v9805_v7  ;;  %v9846_v55 = vcombine.high %v487_v50, %v491_v51  ;;  %v9862_v7 = vcombine.high %v503_v2, %v507_v3  ;;  %v510_v8 = vld [vmem:[#allocation8 + $0x1c8] sm:$0xff]  ;;  %v543_v51 = vld [vmem:[#allocation8 + $0x2d0] sm:$0xff] }
 0x199   :  { %v447_v13 = vsel %vm439_vm0, %v423_v56, %v9807_v9  ;;  %v9808_v14 = vadd.f32 -1.0, %v11962_v10  ;;  %v12423_v23 = vpack.c.bf16 %v445_v12, %v445_v12  ;;  %v494_v56 = vld [vmem:[#allocation8 + $0x148] sm:$0xff]  ;;  %v511_v10 = vld [vmem:[#allocation8 + $0x1d0] sm:$0xff]  ;;  %v9859_v12 = vcombine.low %v502_v0, %v506_v1 }
 0x19a   :  { %v446_v15 = vsel %vm438_vm3, %v384_v59, %v9806_v11  ;;  %v12419_v18 = vpack.c.bf16 %v447_v13, %v447_v13  ;;  %v499_v59 = vld [vmem:[#allocation8 + $0x170] sm:$0xff]  ;;  %v9852_v62 = vcombine.high %v494_v56, %v498_v57  ;;  %v9851_v4 = vcombine.low %v494_v56, %v498_v57  ;;  %v514_v9 = vld [vmem:[#allocation8 + $0x1e8] sm:$0xff] }
 0x19b   :  { %v12421_v19 = vpack.c.bf16 %v446_v15, %v446_v15  ;;  %v448_v20 = vsel %vm440_vm2, %v425_v60, %v9808_v14  ;;  %v9854_v63 = vcombine.high %v495_v58, %v499_v59  ;;  %v9853_v5 = vcombine.low %v495_v58, %v499_v59  ;;  %v515_v11 = vld [vmem:[#allocation8 + $0x1f0] sm:$0xff]  ;;  %v546_v50 = vld [vmem:[#allocation8 + $0x2e8] sm:$0xff] }
 0x19c   :  { %v12425_v24 = vpack.c.bf16 %v448_v20, %v448_v20  ;;  %v9861_v13 = vcombine.low %v503_v2, %v507_v3  ;;  %v9868_v14 = vcombine.high %v510_v8, %v514_v9  ;;  %v9870_v15 = vcombine.high %v511_v10, %v515_v11  ;;  %v519_v20 = vld [vmem:[#allocation8 + $0x210] sm:$0xff]  ;;  %v550_v57 = vld [vmem:[#allocation8 + $0x308] sm:$0xff] }
 0x19d   :  { %2063 = vmatprep.mubr.bf16.mxu1 %v12421_v19  ;;  %v9867_v22 = vcombine.low %v510_v8, %v514_v9  ;;  %v9878_v27 = vcombine.high %v519_v20, %v523_v21  ;;  %v554_v58 = vld [vmem:[#allocation8 + $0x328] sm:$0xff]  ;;  %v551_v59 = vld [vmem:[#allocation8 + $0x310] sm:$0xff] }
 0x19e   :  { %2104 = vmatprep.mubr.bf16.mxu0 %v12425_v24  ;;  %2064 = vmatmul.mubr.bf16.vlgmr.msra.gmra.mrb[4].mxu1 %v12423_v23  ;;  %v558_v1 = vld [vmem:[#allocation8 + $0x348] sm:$0xff]  ;;  %v559_v3 = vld [vmem:[#allocation8 + $0x350] sm:$0xff] }
 0x19f   :  { %2105 = vmatmul.mubr.bf16.vlgmr.msra.gmra.mrb[4].mxu0 %v12419_v18  ;;  %2114 = vmatpush1.bf16.msra.mxu1 %v9811_v39  ;;  %v486_v39 = vld [vmem:[#allocation8 + $0x108] sm:$0xff] }
 0x1a0   :  { %2196 = vmatpush1.bf16.msra.mxu0 %v9813_v40  ;;  %2145 = vmatprep.mubr.bf16.mxu1 %v12421_v19  ;;  %v490_v40 = vld [vmem:[#allocation8 + $0x128] sm:$0xff] }
 0x1a1   :  { %2227 = vmatprep.mubr.bf16.mxu0 %v12421_v19  ;;  %2115 = vmatprep.subr.bf16.mxu1 %v9820_v25  ;;  %v9844_v54 = vcombine.high %v486_v39, %v490_v40  ;;  %v9843_v60 = vcombine.low %v486_v39, %v490_v40  ;;  %v9869_v25 = vcombine.low %v511_v10, %v515_v11  ;;  %v542_v40 = vld [vmem:[#allocation8 + $0x2c8] sm:$0xff]  ;;  %v567_v11 = vld [vmem:[#allocation8 + $0x390] sm:$0xff] }
 0x1a2   :  { %2197 = vmatprep.subr.bf16.mxu0 %v9822_v28  ;;  %v526_v28 = vld [vmem:[#allocation8 + $0x248] sm:$0xff] }
 0x1a3   :  { %2116 = vmatpush1.bf16.msra.mxu1 %v9819_v31  ;;  %v531_v31 = vld [vmem:[#allocation8 + $0x270] sm:$0xff]  ;;  %v562_v2 = vld [vmem:[#allocation8 + $0x368] sm:$0xff] }
 0x1a4   :  { %2198 = vmatpush1.bf16.msra.mxu0 %v9821_v32  ;;  %2117 = vmatprep.subr.bf16.mxu1 %v9828_v33  ;;  %v9875_v32 = vcombine.low %v518_v16, %v522_v17  ;;  %v9877_v33 = vcombine.low %v519_v20, %v523_v21  ;;  %v9886_v41 = vcombine.high %v527_v30, %v531_v31  ;;  %v566_v9 = vld [vmem:[#allocation8 + $0x388] sm:$0xff]  ;;  %v575_v21 = vld [vmem:[#allocation8 + $0x3d0] sm:$0xff] }
 0x1a5   :  { %2199 = vmatprep.subr.bf16.mxu0 %v9830_v37  ;;  %v9884_v37 = vcombine.high %v526_v28, %v530_v29  ;;  %v570_v10 = vld [vmem:[#allocation8 + $0x3a8] sm:$0xff] }
 0x1a6   :  { %v574_v17 = vld [vmem:[#allocation8 + $0x3c8] sm:$0xff] }
 0x1a7   :  { %2118 = vmatpush1.bf16.msra.mxu1 %v9827_v34  ;;  %v539_v34 = vld [vmem:[#allocation8 + $0x2b0] sm:$0xff]  ;;  %v578_v20 = vld [vmem:[#allocation8 + $0x3e8] sm:$0xff] }
 0x1a8   :  { %2200 = vmatpush1.bf16.msra.mxu0 %v9829_v35  ;;  %2119 = vmatprep.subr.bf16.mxu1 %v9836_v36  ;;  %v9883_v35 = vcombine.low %v526_v28, %v530_v29  ;;  %v9885_v36 = vcombine.low %v527_v30, %v531_v31  ;;  %v9894_v39 = vcombine.high %v535_v49, %v539_v34  ;;  %v582_v29 = vld [vmem:[#allocation8 + $0x408] sm:$0xff]  ;;  %v583_v31 = vld [vmem:[#allocation8 + $0x410] sm:$0xff] }
 0x1a9   :  { %2201 = vmatprep.subr.bf16.mxu0 %v9838_v38  ;;  %v9892_v38 = vcombine.high %v534_v42, %v538_v46  ;;  %v586_v30 = vld [vmem:[#allocation8 + $0x428] sm:$0xff] }
 0x1ab   :  { %2120 = vmatpush1.bf16.msra.mxu1 %v9835_v52  ;;  %v547_v52 = vld [vmem:[#allocation8 + $0x2f0] sm:$0xff] }
 0x1ac   :  { %2202 = vmatpush1.bf16.msra.mxu0 %v9837_v53  ;;  %2121 = vmatprep.subr.bf16.mxu1 %v9844_v54  ;;  %v9891_v53 = vcombine.low %v534_v42, %v538_v46  ;;  %v9893_v54 = vcombine.low %v535_v49, %v539_v34  ;;  %v9902_v56 = vcombine.high %v543_v51, %v547_v52  ;;  %v590_v46 = vld [vmem:[#allocation8 + $0x448] sm:$0xff] }
 0x1ad   :  { %2203 = vmatprep.subr.bf16.mxu0 %v9846_v55  ;;  %v9900_v55 = vcombine.high %v542_v40, %v546_v50  ;;  %v594_v49 = vld [vmem:[#allocation8 + $0x468] sm:$0xff]  ;;  %v9939_v34 = vcombine.low %v582_v29, %v586_v30 }
 0x1af   :  { %2122 = vmatpush1.bf16.msra.mxu1 %v9843_v60  ;;  %v555_v60 = vld [vmem:[#allocation8 + $0x330] sm:$0xff] }
 0x1b0   :  { %2204 = vmatpush1.bf16.msra.mxu0 %v9845_v61  ;;  %2123 = vmatprep.subr.bf16.mxu1 %v9852_v62  ;;  %v9899_v61 = vcombine.low %v542_v40, %v546_v50  ;;  %v9901_v62 = vcombine.low %v543_v51, %v547_v52  ;;  %v9910_v0 = vcombine.high %v551_v59, %v555_v60  ;;  %v598_v40 = vld [vmem:[#allocation8 + $0x488] sm:$0xff]  ;;  %v599_v52 = vld [vmem:[#allocation8 + $0x490] sm:$0xff] }
 0x1b1   :  { %2205 = vmatprep.subr.bf16.mxu0 %v9854_v63  ;;  %v9908_v63 = vcombine.high %v550_v57, %v554_v58  ;;  %v602_v50 = vld [vmem:[#allocation8 + $0x4a8] sm:$0xff] }
 0x1b3   :  { %2124 = vmatpush1.bf16.msra.mxu1 %v9851_v4  ;;  %v563_v4 = vld [vmem:[#allocation8 + $0x370] sm:$0xff] }
 0x1b4   :  { %2206 = vmatpush1.bf16.msra.mxu0 %v9853_v5  ;;  %2125 = vmatprep.subr.bf16.mxu1 %v9860_v6  ;;  %v9907_v5 = vcombine.low %v550_v57, %v554_v58  ;;  %v9909_v6 = vcombine.low %v551_v59, %v555_v60  ;;  %v9918_v8 = vcombine.high %v559_v3, %v563_v4  ;;  %v606_v58 = vld [vmem:[#allocation8 + $0x4c8] sm:$0xff]  ;;  %v607_v60 = vld [vmem:[#allocation8 + $0x4d0] sm:$0xff] }
 0x1b5   :  { %2207 = vmatprep.subr.bf16.mxu0 %v9862_v7  ;;  %v9916_v7 = vcombine.high %v558_v1, %v562_v2  ;;  %v610_v59 = vld [vmem:[#allocation8 + $0x4e8] sm:$0xff] }
 0x1b7   :  { %2126 = vmatpush1.bf16.msra.mxu1 %v9859_v12  ;;  %v571_v12 = vld [vmem:[#allocation8 + $0x3b0] sm:$0xff] }
 0x1b8   :  { %2208 = vmatpush1.bf16.msra.mxu0 %v9861_v13  ;;  %2127 = vmatprep.subr.bf16.mxu1 %v9868_v14  ;;  %v9915_v13 = vcombine.low %v558_v1, %v562_v2  ;;  %v9917_v14 = vcombine.low %v559_v3, %v563_v4  ;;  %v9926_v16 = vcombine.high %v567_v11, %v571_v12  ;;  %v614_v2 = vld [vmem:[#allocation8 + $0x508] sm:$0xff]  ;;  %v615_v4 = vld [vmem:[#allocation8 + $0x510] sm:$0xff] }
 0x1b9   :  { %2209 = vmatprep.subr.bf16.mxu0 %v9870_v15  ;;  %v9924_v15 = vcombine.high %v566_v9, %v570_v10  ;;  %v618_v3 = vld [vmem:[#allocation8 + $0x528] sm:$0xff] }
 0x1bb   :  { %2128 = vmatpush1.bf16.msra.mxu1 %v9867_v22  ;;  %v579_v22 = vld [vmem:[#allocation8 + $0x3f0] sm:$0xff] }
 0x1bc   :  { %2210 = vmatpush1.bf16.msra.mxu0 %v9869_v25  ;;  %2129 = vmatprep.subr.bf16.mxu1 %v9876_v26  ;;  %v9923_v25 = vcombine.low %v566_v9, %v570_v10  ;;  %v9925_v26 = vcombine.low %v567_v11, %v571_v12  ;;  %v9934_v28 = vcombine.high %v575_v21, %v579_v22  ;;  %v622_v10 = vld [vmem:[#allocation8 + $0x548] sm:$0xff]  ;;  %v623_v12 = vld [vmem:[#allocation8 + $0x550] sm:$0xff] }
 0x1bd   :  { %2211 = vmatprep.subr.bf16.mxu0 %v9878_v27  ;;  %v9932_v27 = vcombine.high %v574_v17, %v578_v20  ;;  %v626_v11 = vld [vmem:[#allocation8 + $0x568] sm:$0xff] }
 0x1bf   :  { %2130 = vmatpush1.bf16.msra.mxu1 %v9875_v32  ;;  %v587_v32 = vld [vmem:[#allocation8 + $0x430] sm:$0xff] }
 0x1c0   :  { %2212 = vmatpush1.bf16.msra.mxu0 %v9877_v33  ;;  %2131 = vmatprep.subr.bf16.mxu1 %v9884_v37  ;;  %v9931_v33 = vcombine.low %v574_v17, %v578_v20  ;;  %v9933_v37 = vcombine.low %v575_v21, %v579_v22  ;;  %v9942_v42 = vcombine.high %v583_v31, %v587_v32  ;;  %v630_v20 = vld [vmem:[#allocation8 + $0x588] sm:$0xff]  ;;  %v631_v22 = vld [vmem:[#allocation8 + $0x590] sm:$0xff] }
 0x1c1   :  { %2213 = vmatprep.subr.bf16.mxu0 %v9886_v41  ;;  %v9940_v41 = vcombine.high %v582_v29, %v586_v30  ;;  %v634_v21 = vld [vmem:[#allocation8 + $0x5a8] sm:$0xff] }
 0x1c2   :  { %v638_v30 = vld [vmem:[#allocation8 + $0x5c8] sm:$0xff] }
 0x1c3   :  { %2132 = vmatpush1.bf16.msra.mxu1 %v9883_v35  ;;  %v591_v35 = vld [vmem:[#allocation8 + $0x450] sm:$0xff] }
 0x1c4   :  { %2214 = vmatpush1.bf16.msra.mxu0 %v9885_v36  ;;  %2133 = vmatprep.subr.bf16.mxu1 %v9892_v38  ;;  %v595_v36 = vld [vmem:[#allocation8 + $0x470] sm:$0xff]  ;;  %v9941_v38 = vcombine.low %v583_v31, %v587_v32  ;;  %v642_v31 = vld [vmem:[#allocation8 + $0x5e8] sm:$0xff] }
 0x1c5   :  { %2215 = vmatprep.subr.bf16.mxu0 %v9894_v39  ;;  %v9948_v39 = vcombine.high %v590_v46, %v594_v49  ;;  %v9950_v51 = vcombine.high %v591_v35, %v595_v36  ;;  %v639_v32 = vld [vmem:[#allocation8 + $0x5d0] sm:$0xff] }
 0x1c7   :  { %2134 = vmatpush1.bf16.msra.mxu1 %v9891_v53  ;;  %v603_v53 = vld [vmem:[#allocation8 + $0x4b0] sm:$0xff] }
 0x1c8   :  { %2216 = vmatpush1.bf16.msra.mxu0 %v9893_v54  ;;  %2135 = vmatprep.subr.bf16.mxu1 %v9900_v55  ;;  %v9947_v54 = vcombine.low %v590_v46, %v594_v49  ;;  %v9949_v55 = vcombine.low %v591_v35, %v595_v36  ;;  %v9958_v57 = vcombine.high %v599_v52, %v603_v53  ;;  %v646_v49 = vld [vmem:[#allocation8 + $0x608] sm:$0xff]  ;;  %v647_v35 = vld [vmem:[#allocation8 + $0x610] sm:$0xff] }
 0x1c9   :  { %2217 = vmatprep.subr.bf16.mxu0 %v9902_v56  ;;  %v9956_v56 = vcombine.high %v598_v40, %v602_v50  ;;  %v651_v36 = vld [vmem:[#allocation8 + $0x630] sm:$0xff] }
 0x1cb   :  { %2136 = vmatpush1.bf16.msra.mxu1 %v9899_v61  ;;  %v611_v61 = vld [vmem:[#allocation8 + $0x4f0] sm:$0xff] }
 0x1cc   :  { %2218 = vmatpush1.bf16.msra.mxu0 %v9901_v62  ;;  %2137 = vmatprep.subr.bf16.mxu1 %v9908_v63  ;;  %v9955_v62 = vcombine.low %v598_v40, %v602_v50  ;;  %v9957_v63 = vcombine.low %v599_v52, %v603_v53  ;;  %v9966_v1 = vcombine.high %v607_v60, %v611_v61  ;;  %v658_v52 = vld [vmem:[#allocation8 + $0x668] sm:$0xff]  ;;  %v655_v53 = vld [vmem:[#allocation8 + $0x650] sm:$0xff] }
 0x1cd   :  { %2219 = vmatprep.subr.bf16.mxu0 %v9910_v0  ;;  %v9964_v0 = vcombine.high %v606_v58, %v610_v59  ;;  %v10006_v50 = vcombine.high %v647_v35, %v651_v36 }
 0x1cf   :  { %2138 = vmatpush1.bf16.msra.mxu1 %v9907_v5  ;;  %v619_v5 = vld [vmem:[#allocation8 + $0x530] sm:$0xff] }
 0x1d0   :  { %2220 = vmatpush1.bf16.msra.mxu0 %v9909_v6  ;;  %2139 = vmatprep.subr.bf16.mxu1 %v9916_v7  ;;  %v9963_v6 = vcombine.low %v606_v58, %v610_v59  ;;  %v9965_v7 = vcombine.low %v607_v60, %v611_v61  ;;  %v9974_v9 = vcombine.high %v615_v4, %v619_v5  ;;  %v662_v59 = vld [vmem:[#allocation8 + $0x688] sm:$0xff]  ;;  %v663_v61 = vld [vmem:[#allocation8 + $0x690] sm:$0xff] }
 0x1d1   :  { %2221 = vmatprep.subr.bf16.mxu0 %v9918_v8  ;;  %v9972_v8 = vcombine.high %v614_v2, %v618_v3  ;;  %v666_v60 = vld [vmem:[#allocation8 + $0x6a8] sm:$0xff] }
 0x1d3   :  { %2140 = vmatpush1.bf16.msra.mxu1 %v9915_v13  ;;  %v627_v13 = vld [vmem:[#allocation8 + $0x570] sm:$0xff] }
 0x1d4   :  { %2222 = vmatpush1.bf16.msra.mxu0 %v9917_v14  ;;  %2141 = vmatprep.subr.bf16.mxu1 %v9924_v15  ;;  %v9971_v14 = vcombine.low %v614_v2, %v618_v3  ;;  %v9973_v15 = vcombine.low %v615_v4, %v619_v5  ;;  %v9982_v17 = vcombine.high %v623_v12, %v627_v13  ;;  %v670_v3 = vld [vmem:[#allocation8 + $0x6c8] sm:$0xff]  ;;  %v671_v5 = vld [vmem:[#allocation8 + $0x6d0] sm:$0xff] }
 0x1d5   :  { %2223 = vmatprep.subr.bf16.mxu0 %v9926_v16  ;;  %v9980_v16 = vcombine.high %v622_v10, %v626_v11  ;;  %v674_v4 = vld [vmem:[#allocation8 + $0x6e8] sm:$0xff] }
 0x1d7   :  { %2142 = vmatpush1.bf16.msra.mxu1 %v9923_v25  ;;  %v635_v25 = vld [vmem:[#allocation8 + $0x5b0] sm:$0xff] }
 0x1d8   :  { %2224 = vmatpush1.bf16.msra.mxu0 %v9925_v26  ;;  %2143 = vmatprep.subr.bf16.mxu1 %v9932_v27  ;;  %v9979_v26 = vcombine.low %v622_v10, %v626_v11  ;;  %v9981_v27 = vcombine.low %v623_v12, %v627_v13  ;;  %v9990_v29 = vcombine.high %v631_v22, %v635_v25  ;;  %v678_v11 = vld [vmem:[#allocation8 + $0x708] sm:$0xff]  ;;  %v679_v13 = vld [vmem:[#allocation8 + $0x710] sm:$0xff] }
 0x1d9   :  { %2225 = vmatprep.subr.bf16.mxu0 %v9934_v28  ;;  %v9988_v28 = vcombine.high %v630_v20, %v634_v21  ;;  %v682_v12 = vld [vmem:[#allocation8 + $0x728] sm:$0xff] }
 0x1db   :  { %2144 = vmatpush1.bf16.msra.mxu1 %v9931_v33  ;;  %v643_v33 = vld [vmem:[#allocation8 + $0x5f0] sm:$0xff] }
 0x1dc   :  { %2226 = vmatpush1.bf16.msra.mxu0 %v9933_v37  ;;  %2154 = vmatprep.subr.bf16.mxu1 %v9940_v41  ;;  %v9987_v37 = vcombine.low %v630_v20, %v634_v21  ;;  %v9989_v41 = vcombine.low %v631_v22, %v635_v25  ;;  %v9998_v46 = vcombine.high %v639_v32, %v643_v33  ;;  %v686_v21 = vld [vmem:[#allocation8 + $0x748] sm:$0xff]  ;;  %v687_v25 = vld [vmem:[#allocation8 + $0x750] sm:$0xff] }
 0x1dd   :  { %2236 = vmatprep.subr.bf16.mxu0 %v9942_v42  ;;  %v9996_v42 = vcombine.high %v638_v30, %v642_v31  ;;  %v690_v22 = vld [vmem:[#allocation8 + $0x768] sm:$0xff] }
 0x1de   :  { %2146 = vmatmul.mubr.bf16.vlgmr.msra.gmra.mrb[8].mxu1 %v12423_v23 }
 0x1df   :  { %2228 = vmatmul.mubr.bf16.vlgmr.msra.gmra.mrb[8].mxu0 %v12423_v23  ;;  %2155 = vmatpush1.bf16.msra.mxu1 %v9939_v34  ;;  %v650_v34 = vld [vmem:[#allocation8 + $0x628] sm:$0xff] }
 0x1e0   :  { %2186 = vmatprep.mubr.bf16.mxu1 %v12425_v24  ;;  %2237 = vmatpush1.bf16.msra.mxu0 %v9941_v38  ;;  %v9995_v38 = vcombine.low %v638_v30, %v642_v31  ;;  %v10004_v40 = vcombine.high %v646_v49, %v650_v34  ;;  %v694_v31 = vld [vmem:[#allocation8 + $0x788] sm:$0xff] }
 0x1e1   :  { %2268 = vmatprep.mubr.bf16.mxu0 %v12425_v24  ;;  %2156 = vmatprep.subr.bf16.mxu1 %v9948_v39  ;;  %v9997_v39 = vcombine.low %v639_v32, %v643_v33  ;;  %v698_v32 = vld [vmem:[#allocation8 + $0x7a8] sm:$0xff]  ;;  %v695_v33 = vld [vmem:[#allocation8 + $0x790] sm:$0xff] }
 0x1e2   :  { %2238 = vmatprep.subr.bf16.mxu0 %v9950_v51  ;;  %v654_v51 = vld [vmem:[#allocation8 + $0x648] sm:$0xff] }
 0x1e3   :  { %2157 = vmatpush1.bf16.msra.mxu1 %v9947_v54  ;;  %v659_v54 = vld [vmem:[#allocation8 + $0x670] sm:$0xff] }
 0x1e4   :  { %2239 = vmatpush1.bf16.msra.mxu0 %v9949_v55  ;;  %2158 = vmatprep.subr.bf16.mxu1 %v9956_v56  ;;  %v10003_v55 = vcombine.low %v646_v49, %v650_v34  ;;  %v10005_v56 = vcombine.low %v647_v35, %v651_v36  ;;  %v10014_v58 = vcombine.high %v655_v53, %v659_v54  ;;  %v702_v34 = vld [vmem:[#allocation8 + $0x7c8] sm:$0xff]  ;;  %v703_v36 = vld [vmem:[#allocation8 + $0x7d0] sm:$0xff] }
 0x1e5   :  { %2240 = vmatprep.subr.bf16.mxu0 %v9958_v57  ;;  %v10012_v57 = vcombine.high %v654_v51, %v658_v52  ;;  %v706_v35 = vld [vmem:[#allocation8 + $0x7e8] sm:$0xff] }
 0x1e7   :  { %2159 = vmatpush1.bf16.msra.mxu1 %v9955_v62  ;;  %v667_v62 = vld [vmem:[#allocation8 + $0x6b0] sm:$0xff] }
 0x1e8   :  { %2241 = vmatpush1.bf16.msra.mxu0 %v9957_v63  ;;  %2160 = vmatprep.subr.bf16.mxu1 %v9964_v0  ;;  %v10011_v63 = vcombine.low %v654_v51, %v658_v52  ;;  %v10013_v0 = vcombine.low %v655_v53, %v659_v54  ;;  %v10022_v2 = vcombine.high %v663_v61, %v667_v62  ;;  %v456_v52 = vld [vmem:[#allocation8 + $0x18] sm:$0xff]  ;;  %v2407_v54 = vld [vmem:[#allocation11] sm:$0xff] }
 0x1e9   :  { %2242 = vmatprep.subr.bf16.mxu0 %v9966_v1  ;;  %v10020_v1 = vcombine.high %v662_v59, %v666_v60  ;;  %v460_v53 = vld [vmem:[#allocation8 + $0x38] sm:$0xff] }
 0x1eb   :  { %2161 = vmatpush1.bf16.msra.mxu1 %v9963_v6  ;;  %v675_v6 = vld [vmem:[#allocation8 + $0x6f0] sm:$0xff] }
 0x1ec   :  { %2243 = vmatpush1.bf16.msra.mxu0 %v9965_v7  ;;  %2162 = vmatprep.subr.bf16.mxu1 %v9972_v8  ;;  %v10019_v7 = vcombine.low %v662_v59, %v666_v60  ;;  %v10021_v8 = vcombine.low %v663_v61, %v667_v62  ;;  %v10030_v10 = vcombine.high %v671_v5, %v675_v6  ;;  %v464_v59 = vld [vmem:[#allocation8 + $0x58] sm:$0xff] }
 0x1ed   :  { %2244 = vmatprep.subr.bf16.mxu0 %v9974_v9  ;;  %v10028_v9 = vcombine.high %v670_v3, %v674_v4  ;;  %v468_v60 = vld [vmem:[#allocation8 + $0x78] sm:$0xff]  ;;  %v9815_v62 = vcombine.low %v456_v52, %v460_v53 }
 0x1ef   :  { %2163 = vmatpush1.bf16.msra.mxu1 %v9971_v14  ;;  %v683_v14 = vld [vmem:[#allocation8 + $0x730] sm:$0xff] }
 0x1f0   :  { %2245 = vmatpush1.bf16.msra.mxu0 %v9973_v15  ;;  %2164 = vmatprep.subr.bf16.mxu1 %v9980_v16  ;;  %v10027_v15 = vcombine.low %v670_v3, %v674_v4  ;;  %v10029_v16 = vcombine.low %v671_v5, %v675_v6  ;;  %v10038_v20 = vcombine.high %v679_v13, %v683_v14  ;;  %v476_v3 = vld [vmem:[#allocation8 + $0xb8] sm:$0xff] }
 0x1f1   :  { %2246 = vmatprep.subr.bf16.mxu0 %v9982_v17  ;;  %v10036_v17 = vcombine.high %v678_v11, %v682_v12  ;;  %v9823_v6 = vcombine.low %v464_v59, %v468_v60 }
 0x1f3   :  { %2165 = vmatpush1.bf16.msra.mxu1 %v9979_v26  ;;  %v691_v26 = vld [vmem:[#allocation8 + $0x770] sm:$0xff] }
 0x1f4   :  { %2247 = vmatpush1.bf16.msra.mxu0 %v9981_v27  ;;  %2166 = vmatprep.subr.bf16.mxu1 %v9988_v28  ;;  %v10035_v27 = vcombine.low %v678_v11, %v682_v12  ;;  %v10037_v28 = vcombine.low %v679_v13, %v683_v14  ;;  %v10046_v30 = vcombine.high %v687_v25, %v691_v26  ;;  %v484_v11 = vld [vmem:[#allocation8 + $0xf8] sm:$0xff] }
 0x1f5   :  { %2248 = vmatprep.subr.bf16.mxu0 %v9990_v29  ;;  %v10044_v29 = vcombine.high %v686_v21, %v690_v22 }
 0x1f7   :  { %2167 = vmatpush1.bf16.msra.mxu1 %v9987_v37  ;;  %v699_v37 = vld [vmem:[#allocation8 + $0x7b0] sm:$0xff] }
 0x1f8   :  { %2249 = vmatpush1.bf16.msra.mxu0 %v9989_v41  ;;  %2168 = vmatprep.subr.bf16.mxu1 %v9996_v42  ;;  %v10043_v41 = vcombine.low %v686_v21, %v690_v22  ;;  %v10045_v42 = vcombine.low %v687_v25, %v691_v26  ;;  %v10054_v49 = vcombine.high %v695_v33, %v699_v37  ;;  %v492_v21 = vld [vmem:[#allocation8 + $0x138] sm:$0xff]  ;;  %v2439_v26 = vld [vmem:[#allocation11 + $0x100] sm:$0xff] }
 0x1f9   :  { %2250 = vmatprep.subr.bf16.mxu0 %v9998_v46  ;;  %v10052_v46 = vcombine.high %v694_v31, %v698_v32 }
 0x1fb   :  { %2169 = vmatpush1.bf16.msra.mxu1 %v9995_v38  ;;  %v707_v38 = vld [vmem:[#allocation8 + $0x7f0] sm:$0xff] }
 0x1fc   :  { %2251 = vmatpush1.bf16.msra.mxu0 %v9997_v39  ;;  %2170 = vmatprep.subr.bf16.mxu1 %v10004_v40  ;;  %v10051_v39 = vcombine.low %v694_v31, %v698_v32  ;;  %v10053_v40 = vcombine.low %v695_v33, %v699_v37  ;;  %v10062_v51 = vcombine.high %v703_v36, %v707_v38  ;;  %v2447_v37 = vld [vmem:[#allocation11 + $0x140] sm:$0xff] }
 0x1fd   :  { %2252 = vmatprep.subr.bf16.mxu0 %v10006_v50  ;;  %v10060_v50 = vcombine.high %v702_v34, %v706_v35 }
 0x1ff   :  { %2171 = vmatpush1.bf16.msra.mxu1 %v10003_v55  ;;  %v2411_v55 = vld [vmem:[#allocation11 + $0x20] sm:$0xff] }
 0x200   :  { %2253 = vmatpush1.bf16.msra.mxu0 %v10005_v56  ;;  %2172 = vmatprep.subr.bf16.mxu1 %v10012_v57  ;;  %v10059_v56 = vcombine.low %v702_v34, %v706_v35  ;;  %v10061_v57 = vcombine.low %v703_v36, %v707_v38  ;;  %v10074_v61 = vcombine.high %v2407_v54, %v2411_v55  ;;  %v2455_v38 = vld [vmem:[#allocation11 + $0x180] sm:$0xff] }
 0x201   :  { %2254 = vmatprep.subr.bf16.mxu0 %v10014_v58  ;;  %v9816_v58 = vcombine.high %v456_v52, %v460_v53  ;;  %v10073_v4 = vcombine.low %v2407_v54, %v2411_v55  ;;  %v2463_v55 = vld [vmem:[#allocation11 + $0x1c0] sm:$0xff] }
 0x203   :  { %2173 = vmatpush1.bf16.msra.mxu1 %v10011_v63  ;;  %v2415_v63 = vld [vmem:[#allocation11 + $0x40] sm:$0xff] }
 0x204   :  { %2255 = vmatpush1.bf16.msra.mxu0 %v10013_v0  ;;  %2174 = vmatprep.subr.bf16.mxu1 %v10020_v1  ;;  %v2419_v0 = vld [vmem:[#allocation11 + $0x60] sm:$0xff]  ;;  %v9824_v1 = vcombine.high %v464_v59, %v468_v60  ;;  %v524_v59 = vld [vmem:[#allocation8 + $0x238] sm:$0xff] }
 0x205   :  { %2256 = vmatprep.subr.bf16.mxu0 %v10022_v2  ;;  %v472_v2 = vld [vmem:[#allocation8 + $0x98] sm:$0xff]  ;;  %v10082_v5 = vcombine.high %v2415_v63, %v2419_v0  ;;  %v10081_v12 = vcombine.low %v2415_v63, %v2419_v0  ;;  %v2471_v63 = vld [vmem:[#allocation11 + $0x200] sm:$0xff] }
 0x206   :  { %v9831_v14 = vcombine.low %v472_v2, %v476_v3  ;;  %v2475_v0 = vld [vmem:[#allocation11 + $0x220] sm:$0xff] }
 0x207   :  { %2175 = vmatpush1.bf16.msra.mxu1 %v10019_v7  ;;  %v2423_v7 = vld [vmem:[#allocation11 + $0x80] sm:$0xff] }
 0x208   :  { %2257 = vmatpush1.bf16.msra.mxu0 %v10021_v8  ;;  %2176 = vmatprep.subr.bf16.mxu1 %v10028_v9  ;;  %v2427_v8 = vld [vmem:[#allocation11 + $0xa0] sm:$0xff]  ;;  %v9832_v9 = vcombine.high %v472_v2, %v476_v3  ;;  %v528_v2 = vld [vmem:[#allocation8 + $0x258] sm:$0xff] }
 0x209   :  { %2258 = vmatprep.subr.bf16.mxu0 %v10030_v10  ;;  %v480_v10 = vld [vmem:[#allocation8 + $0xd8] sm:$0xff]  ;;  %v10090_v13 = vcombine.high %v2423_v7, %v2427_v8  ;;  %v10089_v22 = vcombine.low %v2423_v7, %v2427_v8  ;;  %v2479_v7 = vld [vmem:[#allocation11 + $0x240] sm:$0xff] }
 0x20a   :  { %v9839_v25 = vcombine.low %v480_v10, %v484_v11  ;;  %v532_v3 = vld [vmem:[#allocation8 + $0x278] sm:$0xff]  ;;  %v2483_v8 = vld [vmem:[#allocation11 + $0x260] sm:$0xff] }
 0x20b   :  { %2177 = vmatpush1.bf16.msra.mxu1 %v10027_v15  ;;  %v2431_v15 = vld [vmem:[#allocation11 + $0xc0] sm:$0xff] }
 0x20c   :  { %2259 = vmatpush1.bf16.msra.mxu0 %v10029_v16  ;;  %2178 = vmatprep.subr.bf16.mxu1 %v10036_v17  ;;  %v2435_v16 = vld [vmem:[#allocation11 + $0xe0] sm:$0xff]  ;;  %v9840_v17 = vcombine.high %v480_v10, %v484_v11  ;;  %v536_v10 = vld [vmem:[#allocation8 + $0x298] sm:$0xff] }
 0x20d   :  { %2260 = vmatprep.subr.bf16.mxu0 %v10038_v20  ;;  %v488_v20 = vld [vmem:[#allocation8 + $0x118] sm:$0xff]  ;;  %v10097_v31 = vcombine.low %v2431_v15, %v2435_v16 }
 0x20e   :  { %v9847_v33 = vcombine.low %v488_v20, %v492_v21  ;;  %v540_v11 = vld [vmem:[#allocation8 + $0x2b8] sm:$0xff] }
 0x20f   :  { %2179 = vmatpush1.bf16.msra.mxu1 %v10035_v27  ;;  %v2443_v27 = vld [vmem:[#allocation11 + $0x120] sm:$0xff] }
 0x210   :  { %2261 = vmatpush1.bf16.msra.mxu0 %v10037_v28  ;;  %2180 = vmatprep.subr.bf16.mxu1 %v10044_v29  ;;  %v9848_v28 = vcombine.high %v488_v20, %v492_v21  ;;  %v496_v29 = vld [vmem:[#allocation8 + $0x158] sm:$0xff]  ;;  %v10106_v32 = vcombine.high %v2439_v26, %v2443_v27  ;;  %v10105_v34 = vcombine.low %v2439_v26, %v2443_v27  ;;  %v2495_v26 = vld [vmem:[#allocation11 + $0x2c0] sm:$0xff] }
 0x211   :  { %2262 = vmatprep.subr.bf16.mxu0 %v10046_v30  ;;  %v500_v30 = vld [vmem:[#allocation8 + $0x178] sm:$0xff]  ;;  %v2499_v27 = vld [vmem:[#allocation11 + $0x2e0] sm:$0xff] }
 0x212   :  { %v9855_v36 = vcombine.low %v496_v29, %v500_v30  ;;  %v544_v20 = vld [vmem:[#allocation8 + $0x2d8] sm:$0xff] }
 0x213   :  { %2181 = vmatpush1.bf16.msra.mxu1 %v10043_v41  ;;  %v2451_v41 = vld [vmem:[#allocation11 + $0x160] sm:$0xff]  ;;  %v548_v21 = vld [vmem:[#allocation8 + $0x2f8] sm:$0xff] }
 0x214   :  { %2263 = vmatpush1.bf16.msra.mxu0 %v10045_v42  ;;  %2182 = vmatprep.subr.bf16.mxu1 %v10052_v46  ;;  %v9856_v42 = vcombine.high %v496_v29, %v500_v30  ;;  %v504_v46 = vld [vmem:[#allocation8 + $0x198] sm:$0xff]  ;;  %v10114_v35 = vcombine.high %v2447_v37, %v2451_v41  ;;  %v10113_v52 = vcombine.low %v2447_v37, %v2451_v41  ;;  %v2503_v37 = vld [vmem:[#allocation11 + $0x300] sm:$0xff] }
 0x215   :  { %2264 = vmatprep.subr.bf16.mxu0 %v10054_v49  ;;  %v508_v49 = vld [vmem:[#allocation8 + $0x1b8] sm:$0xff]  ;;  %v2507_v41 = vld [vmem:[#allocation11 + $0x320] sm:$0xff] }
 0x216   :  { %v9863_v54 = vcombine.low %v504_v46, %v508_v49  ;;  %v552_v29 = vld [vmem:[#allocation8 + $0x318] sm:$0xff] }
 0x217   :  { %2183 = vmatpush1.bf16.msra.mxu1 %v10051_v39  ;;  %v2459_v39 = vld [vmem:[#allocation11 + $0x1a0] sm:$0xff]  ;;  %v556_v30 = vld [vmem:[#allocation8 + $0x338] sm:$0xff] }
 0x218   :  { %2265 = vmatpush1.bf16.msra.mxu0 %v10053_v40  ;;  %2184 = vmatprep.subr.bf16.mxu1 %v10060_v50  ;;  %v9864_v40 = vcombine.high %v504_v46, %v508_v49  ;;  %v512_v50 = vld [vmem:[#allocation8 + $0x1d8] sm:$0xff]  ;;  %v10122_v53 = vcombine.high %v2455_v38, %v2459_v39  ;;  %v10121_v60 = vcombine.low %v2455_v38, %v2459_v39  ;;  %v2511_v38 = vld [vmem:[#allocation11 + $0x340] sm:$0xff] }
 0x219   :  { %2266 = vmatprep.subr.bf16.mxu0 %v10062_v51  ;;  %v516_v51 = vld [vmem:[#allocation8 + $0x1f8] sm:$0xff]  ;;  %v2515_v39 = vld [vmem:[#allocation11 + $0x360] sm:$0xff] }
 0x21a   :  { %v560_v46 = vld [vmem:[#allocation8 + $0x358] sm:$0xff] }
 0x21b   :  { %2185 = vmatpush1.bf16.msra.mxu1 %v10059_v56  ;;  %v2467_v56 = vld [vmem:[#allocation11 + $0x1e0] sm:$0xff]  ;;  %v564_v49 = vld [vmem:[#allocation8 + $0x378] sm:$0xff] }
 0x21c   :  { %2267 = vmatpush1.bf16.msra.mxu0 %v10061_v57  ;;  %2277 = vmatprep.subr.bf16.mxu1 %v9816_v58  ;;  %v9872_v57 = vcombine.high %v512_v50, %v516_v51  ;;  %v520_v58 = vld [vmem:[#allocation8 + $0x218] sm:$0xff] }
 0x21d   :  { %5521 = vmatprep.subr.bf16.mxu0 %v10074_v61  ;;  %v10130_v61 = vcombine.high %v2463_v55, %v2467_v56 }
 0x21e   :  { %2187 = vmatmul.mubr.bf16.vlgmr.msra.gmra.mrb[8].mxu1 %v12419_v18 }
 0x21f   :  { %2269 = vmatmul.mubr.bf16.vlgmr.msra.gmra.mrb[8].mxu0 %v12419_v18  ;;  %2278 = vmatpush1.bf16.msra.mxu1 %v9815_v62  ;;  %v9871_v62 = vcombine.low %v512_v50, %v516_v51  ;;  %v568_v50 = vld [vmem:[#allocation8 + $0x398] sm:$0xff] }
 0x220   :  { %2309 = vmatprep.mubr.bf16.mxu1 %v12421_v19  ;;  %2279 = vmatprep.subr.bf16.mxu1 %v9824_v1  ;;  %v10098_v19 = vcombine.high %v2431_v15, %v2435_v16  ;;  %v9880_v1 = vcombine.high %v520_v58, %v524_v59  ;;  %v2487_v15 = vld [vmem:[#allocation11 + $0x280] sm:$0xff]  ;;  %v572_v51 = vld [vmem:[#allocation8 + $0x3b8] sm:$0xff] }
 0x221   :  { %5522 = vmatpush1.bf16.msra.mxu0 %v10073_v4  ;;  %v10129_v4 = vcombine.low %v2463_v55, %v2467_v56  ;;  %v2491_v16 = vld [vmem:[#allocation11 + $0x2a0] sm:$0xff] }
 0x222   :  { %5523 = vmatprep.subr.bf16.mxu0 %v10082_v5  ;;  %v10138_v5 = vcombine.high %v2471_v63, %v2475_v0  ;;  %v2519_v55 = vld [vmem:[#allocation11 + $0x380] sm:$0xff] }
 0x223   :  { %2280 = vmatpush1.bf16.msra.mxu1 %v9823_v6  ;;  %v9879_v6 = vcombine.low %v520_v58, %v524_v59  ;;  %v2523_v56 = vld [vmem:[#allocation11 + $0x3a0] sm:$0xff]  ;;  %v576_v58 = vld [vmem:[#allocation8 + $0x3d8] sm:$0xff] }
 0x224   :  { %2281 = vmatprep.subr.bf16.mxu1 %v9832_v9  ;;  %v9888_v9 = vcombine.high %v528_v2, %v532_v3  ;;  %v580_v59 = vld [vmem:[#allocation8 + $0x3f8] sm:$0xff] }
 0x225   :  { %5524 = vmatpush1.bf16.msra.mxu0 %v10081_v12  ;;  %v10137_v12 = vcombine.low %v2471_v63, %v2475_v0  ;;  %v2527_v63 = vld [vmem:[#allocation11 + $0x3c0] sm:$0xff] }
 0x226   :  { %5525 = vmatprep.subr.bf16.mxu0 %v10090_v13  ;;  %v10146_v13 = vcombine.high %v2479_v7, %v2483_v8  ;;  %v2531_v0 = vld [vmem:[#allocation11 + $0x3e0] sm:$0xff] }
 0x227   :  { %2282 = vmatpush1.bf16.msra.mxu1 %v9831_v14  ;;  %v9887_v14 = vcombine.low %v528_v2, %v532_v3  ;;  %v584_v2 = vld [vmem:[#allocation8 + $0x418] sm:$0xff] }
 0x228   :  { %2283 = vmatprep.subr.bf16.mxu1 %v9840_v17  ;;  %v9896_v17 = vcombine.high %v536_v10, %v540_v11  ;;  %v588_v3 = vld [vmem:[#allocation8 + $0x438] sm:$0xff] }
 0x229   :  { %5526 = vmatpush1.bf16.msra.mxu0 %v10089_v22  ;;  %v10145_v22 = vcombine.low %v2479_v7, %v2483_v8  ;;  %v12446_v7 = vld [vmem:[#allocation11 + $0x400] sm:$0xff] }
 0x22a   :  { %5527 = vmatprep.subr.bf16.mxu0 %v10098_v19  ;;  %v10154_v19 = vcombine.high %v2487_v15, %v2491_v16  ;;  %v12448_v8 = vld [vmem:[#allocation11 + $0x420] sm:$0xff] }
 0x22b   :  { %2284 = vmatpush1.bf16.msra.mxu1 %v9839_v25  ;;  %v9895_v25 = vcombine.low %v536_v10, %v540_v11  ;;  %v592_v10 = vld [vmem:[#allocation8 + $0x458] sm:$0xff] }
 0x22c   :  { %2285 = vmatprep.subr.bf16.mxu1 %v9848_v28  ;;  %v9904_v28 = vcombine.high %v544_v20, %v548_v21  ;;  %v596_v11 = vld [vmem:[#allocation8 + $0x478] sm:$0xff] }
 0x22d   :  { %5528 = vmatpush1.bf16.msra.mxu0 %v10097_v31  ;;  %v10153_v31 = vcombine.low %v2487_v15, %v2491_v16  ;;  %v9952_v15 = vcombine.high %v592_v10, %v596_v11  ;;  %v600_v16 = vld [vmem:[#allocation8 + $0x498] sm:$0xff] }
 0x22e   :  { %5529 = vmatprep.subr.bf16.mxu0 %v10106_v32  ;;  %v10162_v32 = vcombine.high %v2495_v26, %v2499_v27 }
 0x22f   :  { %2286 = vmatpush1.bf16.msra.mxu1 %v9847_v33  ;;  %v9903_v33 = vcombine.low %v544_v20, %v548_v21  ;;  %v9951_v20 = vcombine.low %v592_v10, %v596_v11  ;;  %v668_v10 = vld [vmem:[#allocation8 + $0x6b8] sm:$0xff] }
 0x230   :  { %2287 = vmatprep.subr.bf16.mxu1 %v9856_v42  ;;  %v9912_v42 = vcombine.high %v552_v29, %v556_v30 }
 0x231   :  { %5530 = vmatpush1.bf16.msra.mxu0 %v10105_v34  ;;  %v10161_v34 = vcombine.low %v2495_v26, %v2499_v27  ;;  %v616_v27 = vld [vmem:[#allocation8 + $0x518] sm:$0xff] }
 0x232   :  { %5531 = vmatprep.subr.bf16.mxu0 %v10114_v35  ;;  %v10170_v35 = vcombine.high %v2503_v37, %v2507_v41 }
 0x233   :  { %2288 = vmatpush1.bf16.msra.mxu1 %v9855_v36  ;;  %v9911_v36 = vcombine.low %v552_v29, %v556_v30 }
 0x234   :  { %2289 = vmatprep.subr.bf16.mxu1 %v9864_v40  ;;  %v9920_v40 = vcombine.high %v560_v46, %v564_v49 }
 0x235   :  { %5532 = vmatpush1.bf16.msra.mxu0 %v10113_v52  ;;  %v10169_v52 = vcombine.low %v2503_v37, %v2507_v41  ;;  %v632_v37 = vld [vmem:[#allocation8 + $0x598] sm:$0xff] }
 0x236   :  { %5533 = vmatprep.subr.bf16.mxu0 %v10122_v53  ;;  %v10178_v53 = vcombine.high %v2511_v38, %v2515_v39  ;;  %v636_v41 = vld [vmem:[#allocation8 + $0x5b8] sm:$0xff] }
 0x237   :  { %2290 = vmatpush1.bf16.msra.mxu1 %v9863_v54  ;;  %v9919_v54 = vcombine.low %v560_v46, %v564_v49 }
 0x238   :  { %2291 = vmatprep.subr.bf16.mxu1 %v9872_v57  ;;  %v9928_v57 = vcombine.high %v568_v50, %v572_v51 }
 0x239   :  { %5534 = vmatpush1.bf16.msra.mxu0 %v10121_v60  ;;  %v10177_v60 = vcombine.low %v2511_v38, %v2515_v39  ;;  %v644_v38 = vld [vmem:[#allocation8 + $0x5f8] sm:$0xff] }
 0x23a   :  { %5535 = vmatprep.subr.bf16.mxu0 %v10130_v61  ;;  %v10186_v61 = vcombine.high %v2519_v55, %v2523_v56 }
 0x23b   :  { %2292 = vmatpush1.bf16.msra.mxu1 %v9871_v62  ;;  %v9927_v62 = vcombine.low %v568_v50, %v572_v51 }
 0x23c   :  { %2293 = vmatprep.subr.bf16.mxu1 %v9880_v1  ;;  %v9936_v1 = vcombine.high %v576_v58, %v580_v59 }
 0x23d   :  { %5536 = vmatpush1.bf16.msra.mxu0 %v10129_v4  ;;  %v10185_v4 = vcombine.low %v2519_v55, %v2523_v56 }
 0x23e   :  { %5537 = vmatprep.subr.bf16.mxu0 %v10138_v5  ;;  %v10194_v5 = vcombine.high %v2527_v63, %v2531_v0 }
 0x23f   :  { %2294 = vmatpush1.bf16.msra.mxu1 %v9879_v6  ;;  %v9935_v6 = vcombine.low %v576_v58, %v580_v59 }
 0x240   :  { %2295 = vmatprep.subr.bf16.mxu1 %v9888_v9  ;;  %v9944_v9 = vcombine.high %v584_v2, %v588_v3 }
 0x241   :  { %5538 = vmatpush1.bf16.msra.mxu0 %v10137_v12  ;;  %v10193_v12 = vcombine.low %v2527_v63, %v2531_v0 }
 0x242   :  { %5539 = vmatprep.subr.bf16.mxu0 %v10146_v13  ;;  %v10202_v13 = vcombine.high %v12446_v7, %v12448_v8 }
 0x243   :  { %2296 = vmatpush1.bf16.msra.mxu1 %v9887_v14  ;;  %v9943_v14 = vcombine.low %v584_v2, %v588_v3  ;;  %v656_v3 = vld [vmem:[#allocation8 + $0x658] sm:$0xff] }
 0x244   :  { %2297 = vmatprep.subr.bf16.mxu1 %v9896_v17  ;;  %v604_v17 = vld [vmem:[#allocation8 + $0x4b8] sm:$0xff] }
 0x245   :  { %5540 = vmatpush1.bf16.msra.mxu0 %v10145_v22  ;;  %v9960_v21 = vcombine.high %v600_v16, %v604_v17  ;;  %v608_v22 = vld [vmem:[#allocation8 + $0x4d8] sm:$0xff] }
 0x246   :  { %5541 = vmatprep.subr.bf16.mxu0 %v10154_v19  ;;  %v612_v19 = vld [vmem:[#allocation8 + $0x4f8] sm:$0xff] }
 0x247   :  { %2298 = vmatpush1.bf16.msra.mxu1 %v9895_v25  ;;  %v9959_v25 = vcombine.low %v600_v16, %v604_v17  ;;  %v9968_v26 = vcombine.high %v608_v22, %v612_v19  ;;  %v9967_v29 = vcombine.low %v608_v22, %v612_v19  ;;  %v680_v19 = vld [vmem:[#allocation8 + $0x718] sm:$0xff] }
 0x248   :  { %2299 = vmatprep.subr.bf16.mxu1 %v9904_v28  ;;  %v620_v28 = vld [vmem:[#allocation8 + $0x538] sm:$0xff] }
 0x249   :  { %5542 = vmatpush1.bf16.msra.mxu0 %v10153_v31  ;;  %v9976_v30 = vcombine.high %v616_v27, %v620_v28  ;;  %v628_v31 = vld [vmem:[#allocation8 + $0x578] sm:$0xff] }
 0x24a   :  { %5543 = vmatprep.subr.bf16.mxu0 %v10162_v32  ;;  %v9975_v32 = vcombine.low %v616_v27, %v620_v28  ;;  %v2543_v27 = vld [vmem:[#allocation11 + $0x440] sm:$0xff] }
 0x24b   :  { %2300 = vmatpush1.bf16.msra.mxu1 %v9903_v33  ;;  %v2547_v28 = vld [vmem:[#allocation11 + $0x460] sm:$0xff] }
 0x24c   :  { %2301 = vmatprep.subr.bf16.mxu1 %v9912_v42 }
 0x24d   :  { %5544 = vmatpush1.bf16.msra.mxu0 %v10161_v34  ;;  %v9992_v34 = vcombine.high %v632_v37, %v636_v41 }
 0x24e   :  { %5545 = vmatprep.subr.bf16.mxu0 %v10170_v35 }
 0x24f   :  { %2302 = vmatpush1.bf16.msra.mxu1 %v9911_v36  ;;  %v640_v36 = vld [vmem:[#allocation8 + $0x5d8] sm:$0xff] }
 0x250   :  { %2303 = vmatprep.subr.bf16.mxu1 %v9920_v40 }
 0x251   :  { %5546 = vmatpush1.bf16.msra.mxu0 %v10169_v52 }
 0x252   :  { %5547 = vmatprep.subr.bf16.mxu0 %v10178_v53 }
 0x253   :  { %2304 = vmatpush1.bf16.msra.mxu1 %v9919_v54  ;;  %v9991_v54 = vcombine.low %v632_v37, %v636_v41 }
 0x254   :  { %2305 = vmatprep.subr.bf16.mxu1 %v9928_v57  ;;  %v10000_v57 = vcombine.high %v640_v36, %v644_v38 }
 0x255   :  { %5548 = vmatpush1.bf16.msra.mxu0 %v10177_v60  ;;  %v648_v60 = vld [vmem:[#allocation8 + $0x618] sm:$0xff] }
 0x256   :  { %5549 = vmatprep.subr.bf16.mxu0 %v10186_v61  ;;  %v652_v61 = vld [vmem:[#allocation8 + $0x638] sm:$0xff] }
 0x257   :  { %2306 = vmatpush1.bf16.msra.mxu1 %v9927_v62  ;;  %v10008_v2 = vcombine.high %v648_v60, %v652_v61 }
 0x258   :  { %2307 = vmatprep.subr.bf16.mxu1 %v9936_v1  ;;  %v9999_v1 = vcombine.low %v640_v36, %v644_v38  ;;  %v2555_v36 = vld [vmem:[#allocation11 + $0x4a0] sm:$0xff] }
 0x259   :  { %5550 = vmatpush1.bf16.msra.mxu0 %v10185_v4  ;;  %v660_v4 = vld [vmem:[#allocation8 + $0x678] sm:$0xff] }
 0x25a   :  { %5551 = vmatprep.subr.bf16.mxu0 %v10194_v5  ;;  %v10007_v5 = vcombine.low %v648_v60, %v652_v61  ;;  %v10015_v11 = vcombine.low %v656_v3, %v660_v4  ;;  %v2571_v60 = vld [vmem:[#allocation11 + $0x520] sm:$0xff] }
 0x25b   :  { %2308 = vmatpush1.bf16.msra.mxu1 %v9935_v6  ;;  %v10016_v6 = vcombine.high %v656_v3, %v660_v4  ;;  %v2575_v3 = vld [vmem:[#allocation11 + $0x540] sm:$0xff] }
 0x25c   :  { %2318 = vmatprep.subr.bf16.mxu1 %v9944_v9  ;;  %v664_v9 = vld [vmem:[#allocation8 + $0x698] sm:$0xff]  ;;  %v2579_v4 = vld [vmem:[#allocation11 + $0x560] sm:$0xff] }
 0x25d   :  { %5552 = vmatpush1.bf16.msra.mxu0 %v10193_v12  ;;  %v10024_v12 = vcombine.high %v664_v9, %v668_v10 }
 0x25e   :  { %2310 = vmatmul.mubr.bf16.vlgmr.msra.gmra.mrb[12].mxu1 %v12423_v23  ;;  %5562 = vmatprep.subr.bf16.mxu0 %v10202_v13  ;;  %v624_v23 = vld [vmem:[#allocation8 + $0x558] sm:$0xff] }
 0x25f   :  { %2319 = vmatpush1.bf16.msra.mxu1 %v9943_v14  ;;  %2350 = vmatprep.mubr.bf16.mxu1 %v12425_v24  ;;  %v12454_v24 = vld [vmem:[#allocation10] sm:$0xff]  ;;  %v9984_v33 = vcombine.high %v624_v23, %v628_v31  ;;  %v9983_v46 = vcombine.low %v624_v23, %v628_v31  ;;  %v672_v13 = vld [vmem:[#allocation8 + $0x6d8] sm:$0xff]  ;;  %v12462_v23 = vld [vmem:[#allocation11 + $0x820] sm:$0xff] }
 0x260   :  { %2320 = vmatprep.subr.bf16.mxu1 %v9952_v15  ;;  %v714_v42 = vrot.slane %v12454_v24, %v12404_v44  ;;  %v718_v49 = vrot.slane %v12454_v24, %v12410_v47  ;;  %v676_v14 = vld [vmem:[#allocation8 + $0x6f8] sm:$0xff] }
 0x261   :  { %v10032_v22 = vcombine.high %v672_v13, %v676_v14 }
 0x263   :  { %2321 = vmatpush1.bf16.msra.mxu1 %v9951_v20  ;;  %v10023_v20 = vcombine.low %v664_v9, %v668_v10  ;;  %v10242_v10 = vcombine.high %v2575_v3, %v2579_v4 }
 0x264   :  { %2322 = vmatprep.subr.bf16.mxu1 %v9960_v21 }
 0x267   :  { %2323 = vmatpush1.bf16.msra.mxu1 %v9959_v25 }
 0x268   :  { %2324 = vmatprep.subr.bf16.mxu1 %v9968_v26  ;;  %v684_v26 = vld [vmem:[#allocation8 + $0x738] sm:$0xff] }
 0x269   :  { %v10040_v41 = vcombine.high %v680_v19, %v684_v26  ;;  %v10039_v38 = vcombine.low %v680_v19, %v684_v26  ;;  %v2591_v19 = vld [vmem:[#allocation11 + $0x5c0] sm:$0xff] }
 0x26b   :  { %2325 = vmatpush1.bf16.msra.mxu1 %v9967_v29 }
 0x26c   :  { %2326 = vmatprep.subr.bf16.mxu1 %v9976_v30  ;;  %v12460_v30 = vld [vmem:[#allocation11 + $0x800] sm:$0xff] }
 0x26f   :  { %2327 = vmatpush1.bf16.msra.mxu1 %v9975_v32  ;;  %v10031_v32 = vcombine.low %v672_v13, %v676_v14  ;;  %v2583_v13 = vld [vmem:[#allocation11 + $0x580] sm:$0xff] }
 0x270   :  { %2328 = vmatprep.subr.bf16.mxu1 %v9984_v33  ;;  %v10201_v33 = vcombine.low %v12446_v7, %v12448_v8  ;;  %v10209_v7 = vcombine.low %v2543_v27, %v2547_v28  ;;  %v2587_v14 = vld [vmem:[#allocation11 + $0x5a0] sm:$0xff] }
 0x271   :  { %v2065_v35 = vpop.f32.mrb[4].mxu1 }
 0x272   :  { %v2066_v39 = vadd.f32 %v2065_v35, %v714_v42  ;;  %v2067_v40 = vpop.f32.mrb[5].mxu1  ;;  %v2106_v50 = vpop.f32.mrb[4].mxu0  ;;  %v688_v42 = vld [vmem:[#allocation8 + $0x758] sm:$0xff]  ;;  %v2551_v35 = vld [vmem:[#allocation11 + $0x480] sm:$0xff] }
 0x273   :  { %v2068_v51 = vadd.f32 %v2067_v40, %v718_v49  ;;  %2329 = vmatpush1.bf16.msra.mxu1 %v9983_v46  ;;  %v2069_v52 = vpop.f32.mrb[6].mxu1  ;;  %v2108_v53 = vpop.f32.mrb[5].mxu0  ;;  %v10210_v46 = vcombine.high %v2543_v27, %v2547_v28  ;;  %v10329_v49 = vcombine.low %v12460_v30, %v12462_v23  ;;  %v10218_v40 = vcombine.high %v2551_v35, %v2555_v36 }
 0x274   :  { %v2107_v55 = vadd.f32 %v2106_v50, %v2066_v39  ;;  %v2070_v56 = vpop.f32.mrb[7].mxu1  ;;  %2330 = vmatprep.subr.bf16.mxu1 %v9992_v34  ;;  %v2110_v58 = vpop.f32.mrb[6].mxu0  ;;  %v692_v34 = vld [vmem:[#allocation8 + $0x778] sm:$0xff]  ;;  %v2563_v52 = vld [vmem:[#allocation11 + $0x4e0] sm:$0xff]  ;;  %v10249_v28 = vcombine.low %v2583_v13, %v2587_v14 }
 0x275   :  { %v2109_v59 = vadd.f32 %v2108_v53, %v2068_v51  ;;  %v2111_v62 = vpop.f32.mrb[7].mxu0  ;;  %v10048_v8 = vcombine.high %v688_v42, %v692_v34  ;;  %v696_v39 = vld [vmem:[#allocation8 + $0x798] sm:$0xff]  ;;  %v2559_v51 = vld [vmem:[#allocation11 + $0x4c0] sm:$0xff]  ;;  %v10047_v53 = vcombine.low %v688_v42, %v692_v34 }
 0x276   :  { %v2359_v63 = vmul.f32 1.442695, %v2107_v55  ;;  %vm2375_vm4 = vcmp.gt.f32.partialorder %v2107_v55, 0.0  ;;  %v700_v50 = vld [vmem:[#allocation8 + $0x7b8] sm:$0xff]  ;;  %v10225_v62 = vcombine.low %v2559_v51, %v2563_v52  ;;  %v2603_v42 = vld [vmem:[#allocation11 + $0x620] sm:$0xff] }
 0x277   :  { %v2361_v0 = vmul.f32 1.442695, %v2109_v59  ;;  %2331 = vmatpush1.bf16.msra.mxu1 %v9991_v54  ;;  %vm2376_vm5 = vcmp.gt.f32.partialorder %v2109_v59, 0.0  ;;  %v10217_v54 = vcombine.low %v2551_v35, %v2555_v36  ;;  %v704_v56 = vld [vmem:[#allocation8 + $0x7d8] sm:$0xff]  ;;  %v10055_v61 = vcombine.low %v696_v39, %v700_v50  ;;  %v2440_v35 = vld [vmem:[#allocation11 + $0x108] sm:$0xff] }
 0x278   :  { %11963 = vpow2.f32 %v2359_v63  ;;  %2332 = vmatprep.subr.bf16.mxu1 %v10000_v57  ;;  %v10226_v57 = vcombine.high %v2559_v51, %v2563_v52  ;;  %v708_v58 = vld [vmem:[#allocation8 + $0x7f8] sm:$0xff]  ;;  %v2444_v36 = vld [vmem:[#allocation11 + $0x128] sm:$0xff] }
 0x279   :  { %11965 = vpow2.f32 %v2361_v0  ;;  %v10064_v63 = vcombine.high %v704_v56, %v708_v58  ;;  %v2408_v0 = vld [vmem:[#allocation11 + $0x8] sm:$0xff] }
 0x27a   :  { %v2448_v51 = vld [vmem:[#allocation11 + $0x148] sm:$0xff] }
 0x27b   :  { %2333 = vmatpush1.bf16.msra.mxu1 %v9999_v1  ;;  %v2452_v52 = vld [vmem:[#allocation11 + $0x168] sm:$0xff] }
 0x27c   :  { %2334 = vmatprep.subr.bf16.mxu1 %v10008_v2  ;;  %v2412_v2 = vld [vmem:[#allocation11 + $0x28] sm:$0xff] }
 0x27d   :  { %v10076_v9 = vcombine.high %v2408_v0, %v2412_v2 }
 0x27f   :  { %2335 = vmatpush1.bf16.msra.mxu1 %v10007_v5  ;;  %v10063_v5 = vcombine.low %v704_v56, %v708_v58  ;;  %v10107_v56 = vcombine.low %v2440_v35, %v2444_v36 }
 0x280   :  { %2336 = vmatprep.subr.bf16.mxu1 %v10016_v6 }
 0x282   :  { %v11964_v15 = vpop.eup %11963 }
 0x283   :  { %v11966_v16 = vpop.eup %11965  ;;  %v10065_v17 = vadd.f32 -1.0, %v11964_v15  ;;  %2337 = vmatpush1.bf16.msra.mxu1 %v10015_v11  ;;  %v2416_v11 = vld [vmem:[#allocation11 + $0x48] sm:$0xff]  ;;  %v10075_v15 = vcombine.low %v2408_v0, %v2412_v2  ;;  %v10115_v0 = vcombine.low %v2448_v51, %v2452_v52 }
 0x284   :  { %v10066_v21 = vadd.f32 -1.0, %v11966_v16  ;;  %2338 = vmatprep.subr.bf16.mxu1 %v10024_v12  ;;  %v2420_v12 = vld [vmem:[#allocation11 + $0x68] sm:$0xff] }
 0x285   :  { %v2391_v25 = vsel %vm2375_vm4, %v2107_v55, %v10065_v17  ;;  %v10056_v55 = vcombine.high %v696_v39, %v700_v50  ;;  %v10084_v16 = vcombine.high %v2416_v11, %v2420_v12  ;;  %v10241_v17 = vcombine.low %v2575_v3, %v2579_v4  ;;  %v2464_v3 = vld [vmem:[#allocation11 + $0x1c8] sm:$0xff] }
 0x286   :  { %v2392_v29 = vsel %vm2376_vm5, %v2109_v59, %v10066_v21  ;;  %v12468_v37 = vpack.c.bf16 %v2391_v25, %v2391_v25  ;;  %v2567_v59 = vld [vmem:[#allocation11 + $0x500] sm:$0xff]  ;;  %v2428_v21 = vld [vmem:[#allocation11 + $0xa8] sm:$0xff]  ;;  %v10083_v26 = vcombine.low %v2416_v11, %v2420_v12 }
 0x287   :  { %v12464_v31 = vpack.c.bf16 %v2392_v29, %v2392_v29  ;;  %2339 = vmatpush1.bf16.msra.mxu1 %v10023_v20  ;;  %v10234_v1 = vcombine.high %v2567_v59, %v2571_v60  ;;  %v10233_v6 = vcombine.low %v2567_v59, %v2571_v60  ;;  %v2424_v20 = vld [vmem:[#allocation11 + $0x88] sm:$0xff]  ;;  %v2595_v25 = vld [vmem:[#allocation11 + $0x5e0] sm:$0xff] }
 0x288   :  { %2340 = vmatprep.subr.bf16.mxu1 %v10032_v22  ;;  %v10250_v22 = vcombine.high %v2583_v13, %v2587_v14  ;;  %v10092_v27 = vcombine.high %v2424_v20, %v2428_v21  ;;  %v2432_v29 = vld [vmem:[#allocation11 + $0xc8] sm:$0xff]  ;;  %v10257_v34 = vcombine.low %v2591_v19, %v2595_v25 }
 0x289   :  { %5553 = vmatprep.mubr.bf16.mxu0 %v12464_v31  ;;  %v2456_v59 = vld [vmem:[#allocation11 + $0x188] sm:$0xff] }
 0x28a   :  { %5554 = vmatmul.mubr.bf16.vlgmr.msra.gmra.mrb[12].mxu0 %v12468_v37  ;;  %v2460_v60 = vld [vmem:[#allocation11 + $0x1a8] sm:$0xff] }
 0x28b   :  { %2341 = vmatpush1.bf16.msra.mxu1 %v10031_v32  ;;  %5563 = vmatpush1.bf16.msra.mxu0 %v10201_v33  ;;  %v2436_v32 = vld [vmem:[#allocation11 + $0xe8] sm:$0xff]  ;;  %v10258_v33 = vcombine.high %v2591_v19, %v2595_v25 }
 0x28c   :  { %2342 = vmatprep.subr.bf16.mxu1 %v10040_v41  ;;  %5564 = vmatprep.subr.bf16.mxu0 %v10210_v46  ;;  %v2599_v41 = vld [vmem:[#allocation11 + $0x600] sm:$0xff]  ;;  %v10091_v46 = vcombine.low %v2424_v20, %v2428_v21  ;;  %v10099_v39 = vcombine.low %v2432_v29, %v2436_v32  ;;  %v2468_v4 = vld [vmem:[#allocation11 + $0x1e8] sm:$0xff] }
 0x28d   :  { %v10265_v50 = vcombine.low %v2599_v41, %v2603_v42  ;;  %v10132_v11 = vcombine.high %v2464_v3, %v2468_v4  ;;  %v2472_v13 = vld [vmem:[#allocation11 + $0x208] sm:$0xff]  ;;  %v10131_v20 = vcombine.low %v2464_v3, %v2468_v4 }
 0x28e   :  { %v2476_v14 = vld [vmem:[#allocation11 + $0x228] sm:$0xff] }
 0x28f   :  { %2343 = vmatpush1.bf16.msra.mxu1 %v10039_v38  ;;  %5565 = vmatpush1.bf16.msra.mxu0 %v10209_v7  ;;  %v10266_v38 = vcombine.high %v2599_v41, %v2603_v42  ;;  %v2607_v7 = vld [vmem:[#allocation11 + $0x640] sm:$0xff]  ;;  %v10140_v21 = vcombine.high %v2472_v13, %v2476_v14  ;;  %v2480_v19 = vld [vmem:[#allocation11 + $0x248] sm:$0xff] }
 0x290   :  { %2344 = vmatprep.subr.bf16.mxu1 %v10048_v8  ;;  %5566 = vmatprep.subr.bf16.mxu0 %v10218_v40  ;;  %v2611_v8 = vld [vmem:[#allocation11 + $0x660] sm:$0xff]  ;;  %v10108_v40 = vcombine.high %v2440_v35, %v2444_v36  ;;  %v2484_v25 = vld [vmem:[#allocation11 + $0x268] sm:$0xff] }
 0x291   :  { %v10273_v58 = vcombine.low %v2607_v7, %v2611_v8  ;;  %v2488_v41 = vld [vmem:[#allocation11 + $0x288] sm:$0xff]  ;;  %v10147_v35 = vcombine.low %v2480_v19, %v2484_v25 }
 0x292   :  { %v2492_v42 = vld [vmem:[#allocation11 + $0x2a8] sm:$0xff] }
 0x293   :  { %2345 = vmatpush1.bf16.msra.mxu1 %v10047_v53  ;;  %5567 = vmatpush1.bf16.msra.mxu0 %v10217_v54  ;;  %v10274_v53 = vcombine.high %v2607_v7, %v2611_v8  ;;  %v2615_v54 = vld [vmem:[#allocation11 + $0x680] sm:$0xff]  ;;  %v10156_v36 = vcombine.high %v2488_v41, %v2492_v42  ;;  %v2496_v7 = vld [vmem:[#allocation11 + $0x2c8] sm:$0xff] }
 0x294   :  { %2346 = vmatprep.subr.bf16.mxu1 %v10056_v55  ;;  %5568 = vmatprep.subr.bf16.mxu0 %v10226_v57  ;;  %v2619_v55 = vld [vmem:[#allocation11 + $0x6a0] sm:$0xff]  ;;  %v10116_v57 = vcombine.high %v2448_v51, %v2452_v52  ;;  %v2500_v8 = vld [vmem:[#allocation11 + $0x2e8] sm:$0xff] }
 0x295   :  { %v10281_v2 = vcombine.low %v2615_v54, %v2619_v55  ;;  %v2504_v52 = vld [vmem:[#allocation11 + $0x308] sm:$0xff] }
 0x297   :  { %2347 = vmatpush1.bf16.msra.mxu1 %v10055_v61  ;;  %5569 = vmatpush1.bf16.msra.mxu0 %v10225_v62  ;;  %v10282_v61 = vcombine.high %v2615_v54, %v2619_v55  ;;  %v2623_v62 = vld [vmem:[#allocation11 + $0x6c0] sm:$0xff]  ;;  %v10330_v54 = vcombine.high %v12460_v30, %v12462_v23  ;;  %v10163_v55 = vcombine.low %v2496_v7, %v2500_v8 }
 0x298   :  { %2348 = vmatprep.subr.bf16.mxu1 %v10064_v63  ;;  %5570 = vmatprep.subr.bf16.mxu0 %v10234_v1  ;;  %v2627_v63 = vld [vmem:[#allocation11 + $0x6e0] sm:$0xff]  ;;  %v10124_v1 = vcombine.high %v2456_v59, %v2460_v60 }
 0x299   :  { %v10289_v12 = vcombine.low %v2623_v62, %v2627_v63 }
 0x29b   :  { %2349 = vmatpush1.bf16.msra.mxu1 %v10063_v5  ;;  %5571 = vmatpush1.bf16.msra.mxu0 %v10233_v6  ;;  %v10290_v5 = vcombine.high %v2623_v62, %v2627_v63  ;;  %v2631_v6 = vld [vmem:[#allocation11 + $0x700] sm:$0xff]  ;;  %v2524_v62 = vld [vmem:[#allocation11 + $0x3a8] sm:$0xff] }
 0x29c   :  { %5685 = vmatprep.subr.bf16.mxu1 %v10076_v9  ;;  %5572 = vmatprep.subr.bf16.mxu0 %v10242_v10  ;;  %v2635_v9 = vld [vmem:[#allocation11 + $0x720] sm:$0xff]  ;;  %v10123_v10 = vcombine.low %v2456_v59, %v2460_v60 }
 0x29e   :  { %2351 = vmatmul.mubr.bf16.vlgmr.msra.gmra.mrb[12].mxu1 %v12419_v18  ;;  %v10100_v18 = vcombine.high %v2432_v29, %v2436_v32  ;;  %v10139_v29 = vcombine.low %v2472_v13, %v2476_v14  ;;  %v10148_v32 = vcombine.high %v2480_v19, %v2484_v25 }
 0x29f   :  { %5686 = vmatpush1.bf16.msra.mxu1 %v10075_v15  ;;  %5717 = vmatprep.mubr.bf16.mxu1 %v12464_v31  ;;  %v10298_v15 = vcombine.high %v2631_v6, %v2635_v9 }
 0x2a0   :  { %5687 = vmatprep.subr.bf16.mxu1 %v10084_v16  ;;  %5573 = vmatpush1.bf16.msra.mxu0 %v10241_v17  ;;  %v2639_v16 = vld [vmem:[#allocation11 + $0x740] sm:$0xff] }
 0x2a1   :  { %5574 = vmatprep.subr.bf16.mxu0 %v10250_v22  ;;  %v2643_v17 = vld [vmem:[#allocation11 + $0x760] sm:$0xff]  ;;  %v10297_v22 = vcombine.low %v2631_v6, %v2635_v9  ;;  %v2540_v6 = vld [vmem:[#allocation11 + $0x428] sm:$0xff] }
 0x2a3   :  { %5688 = vmatpush1.bf16.msra.mxu1 %v10083_v26  ;;  %v10306_v26 = vcombine.high %v2639_v16, %v2643_v17 }
 0x2a4   :  { %5689 = vmatprep.subr.bf16.mxu1 %v10092_v27  ;;  %5575 = vmatpush1.bf16.msra.mxu0 %v10249_v28  ;;  %v2647_v27 = vld [vmem:[#allocation11 + $0x780] sm:$0xff] }
 0x2a5   :  { %5576 = vmatprep.subr.bf16.mxu0 %v10258_v33  ;;  %v2651_v28 = vld [vmem:[#allocation11 + $0x7a0] sm:$0xff]  ;;  %v10305_v33 = vcombine.low %v2639_v16, %v2643_v17  ;;  %v2556_v16 = vld [vmem:[#allocation11 + $0x4a8] sm:$0xff] }
 0x2a7   :  { %5690 = vmatpush1.bf16.msra.mxu1 %v10091_v46  ;;  %v10314_v46 = vcombine.high %v2647_v27, %v2651_v28 }
 0x2a8   :  { %5691 = vmatprep.subr.bf16.mxu1 %v10100_v18  ;;  %5577 = vmatpush1.bf16.msra.mxu0 %v10257_v34  ;;  %v2655_v18 = vld [vmem:[#allocation11 + $0x7c0] sm:$0xff] }
 0x2a9   :  { %5578 = vmatprep.subr.bf16.mxu0 %v10266_v38  ;;  %v2659_v34 = vld [vmem:[#allocation11 + $0x7e0] sm:$0xff]  ;;  %v10313_v38 = vcombine.low %v2647_v27, %v2651_v28  ;;  %v2572_v27 = vld [vmem:[#allocation11 + $0x528] sm:$0xff] }
 0x2aa   :  { %v10321_v51 = vcombine.low %v2655_v18, %v2659_v34 }
 0x2ab   :  { %5692 = vmatpush1.bf16.msra.mxu1 %v10099_v39  ;;  %v10322_v39 = vcombine.high %v2655_v18, %v2659_v34  ;;  %v2584_v18 = vld [vmem:[#allocation11 + $0x588] sm:$0xff] }
 0x2ac   :  { %5693 = vmatprep.subr.bf16.mxu1 %v10108_v40  ;;  %5579 = vmatpush1.bf16.msra.mxu0 %v10265_v50  ;;  %v10155_v40 = vcombine.low %v2488_v41, %v2492_v42  ;;  %v10164_v50 = vcombine.high %v2496_v7, %v2500_v8  ;;  %v733_v42 = vsub.s32 5, %v12401_v43  ;;  %v2588_v34 = vld [vmem:[#allocation11 + $0x5a8] sm:$0xff] }
 0x2ad   :  { %5580 = vmatprep.subr.bf16.mxu0 %v10274_v53  ;;  %v2508_v53 = vld [vmem:[#allocation11 + $0x328] sm:$0xff]  ;;  %v10252_v8 = vcombine.high %v2584_v18, %v2588_v34 }
 0x2ae   :  { %v10171_v59 = vcombine.low %v2504_v52, %v2508_v53  ;;  %v734_v7 = vrot.slane %v12454_v24, %v733_v42 }
 0x2af   :  { %5694 = vmatpush1.bf16.msra.mxu1 %v10107_v56  ;;  %v10172_v56 = vcombine.high %v2504_v52, %v2508_v53 }
 0x2b0   :  { %5695 = vmatprep.subr.bf16.mxu1 %v10116_v57  ;;  %5581 = vmatpush1.bf16.msra.mxu0 %v10273_v58  ;;  %v2512_v57 = vld [vmem:[#allocation11 + $0x348] sm:$0xff] }
 0x2b1   :  { %5582 = vmatprep.subr.bf16.mxu0 %v10282_v61  ;;  %v2516_v58 = vld [vmem:[#allocation11 + $0x368] sm:$0xff] }
 0x2b2   :  { %v10180_v60 = vcombine.high %v2512_v57, %v2516_v58  ;;  %v2520_v61 = vld [vmem:[#allocation11 + $0x388] sm:$0xff]  ;;  %v10179_v63 = vcombine.low %v2512_v57, %v2516_v58  ;;  %v10251_v57 = vcombine.low %v2584_v18, %v2588_v34 }
 0x2b3   :  { %5696 = vmatpush1.bf16.msra.mxu1 %v10115_v0  ;;  %v10188_v0 = vcombine.high %v2520_v61, %v2524_v62  ;;  %v10187_v3 = vcombine.low %v2520_v61, %v2524_v62  ;;  %v2636_v18 = vld [vmem:[#allocation11 + $0x728] sm:$0xff] }
 0x2b4   :  { %5697 = vmatprep.subr.bf16.mxu1 %v10124_v1  ;;  %5583 = vmatpush1.bf16.msra.mxu0 %v10281_v2  ;;  %v2528_v1 = vld [vmem:[#allocation11 + $0x3c8] sm:$0xff] }
 0x2b5   :  { %5584 = vmatprep.subr.bf16.mxu0 %v10290_v5  ;;  %v2532_v2 = vld [vmem:[#allocation11 + $0x3e8] sm:$0xff] }
 0x2b6   :  { %v10196_v4 = vcombine.high %v2528_v1, %v2532_v2  ;;  %v2536_v5 = vld [vmem:[#allocation11 + $0x408] sm:$0xff]  ;;  %v10195_v9 = vcombine.low %v2528_v1, %v2532_v2 }
 0x2b7   :  { %5698 = vmatpush1.bf16.msra.mxu1 %v10123_v10  ;;  %v10204_v10 = vcombine.high %v2536_v5, %v2540_v6  ;;  %v10203_v13 = vcombine.low %v2536_v5, %v2540_v6  ;;  %v2604_v1 = vld [vmem:[#allocation11 + $0x628] sm:$0xff] }
 0x2b8   :  { %5699 = vmatprep.subr.bf16.mxu1 %v10132_v11  ;;  %5585 = vmatpush1.bf16.msra.mxu0 %v10289_v12  ;;  %v2544_v11 = vld [vmem:[#allocation11 + $0x448] sm:$0xff] }
 0x2b9   :  { %5586 = vmatprep.subr.bf16.mxu0 %v10298_v15  ;;  %v2548_v12 = vld [vmem:[#allocation11 + $0x468] sm:$0xff] }
 0x2ba   :  { %v10212_v14 = vcombine.high %v2544_v11, %v2548_v12  ;;  %v2552_v15 = vld [vmem:[#allocation11 + $0x488] sm:$0xff]  ;;  %v10211_v17 = vcombine.low %v2544_v11, %v2548_v12 }
 0x2bb   :  { %5700 = vmatpush1.bf16.msra.mxu1 %v10131_v20  ;;  %v10220_v20 = vcombine.high %v2552_v15, %v2556_v16  ;;  %v10219_v19 = vcombine.low %v2552_v15, %v2556_v16  ;;  %v2608_v6 = vld [vmem:[#allocation11 + $0x648] sm:$0xff] }
 0x2bc   :  { %5701 = vmatprep.subr.bf16.mxu1 %v10140_v21  ;;  %5587 = vmatpush1.bf16.msra.mxu0 %v10297_v22  ;;  %v2560_v21 = vld [vmem:[#allocation11 + $0x4c8] sm:$0xff] }
 0x2bd   :  { %5588 = vmatprep.subr.bf16.mxu0 %v10306_v26  ;;  %v2564_v22 = vld [vmem:[#allocation11 + $0x4e8] sm:$0xff] }
 0x2be   :  { %v10228_v25 = vcombine.high %v2560_v21, %v2564_v22  ;;  %v2568_v26 = vld [vmem:[#allocation11 + $0x508] sm:$0xff]  ;;  %v10227_v28 = vcombine.low %v2560_v21, %v2564_v22 }
 0x2bf   :  { %5702 = vmatpush1.bf16.msra.mxu1 %v10139_v29  ;;  %v10236_v29 = vcombine.high %v2568_v26, %v2572_v27  ;;  %v10235_v41 = vcombine.low %v2568_v26, %v2572_v27  ;;  %v2616_v12 = vld [vmem:[#allocation11 + $0x688] sm:$0xff] }
 0x2c0   :  { %5703 = vmatprep.subr.bf16.mxu1 %v10148_v32  ;;  %5589 = vmatpush1.bf16.msra.mxu0 %v10305_v33  ;;  %v2576_v32 = vld [vmem:[#allocation11 + $0x548] sm:$0xff] }
 0x2c1   :  { %5590 = vmatprep.subr.bf16.mxu0 %v10314_v46  ;;  %v2580_v33 = vld [vmem:[#allocation11 + $0x568] sm:$0xff] }
 0x2c2   :  { %v10244_v46 = vcombine.high %v2576_v32, %v2580_v33  ;;  %v2624_v21 = vld [vmem:[#allocation11 + $0x6c8] sm:$0xff] }
 0x2c3   :  { %5704 = vmatpush1.bf16.msra.mxu1 %v10147_v35  ;;  %v722_v35 = vrot.slane %v12454_v24, %v12407_v45  ;;  %v2628_v22 = vld [vmem:[#allocation11 + $0x6e8] sm:$0xff] }
 0x2c4   :  { %5705 = vmatprep.subr.bf16.mxu1 %v10156_v36  ;;  %5591 = vmatpush1.bf16.msra.mxu0 %v10313_v38  ;;  %v726_v36 = vrot.slane %v12454_v24, %v12413_v48  ;;  %v10243_v38 = vcombine.low %v2576_v32, %v2580_v33  ;;  %v2675_v32 = vld [vmem:[#allocation11 + $0x860] sm:$0xff] }
 0x2c5   :  { %5592 = vmatprep.subr.bf16.mxu0 %v10322_v39 }
 0x2c7   :  { %5706 = vmatpush1.bf16.msra.mxu1 %v10155_v40  ;;  %v2592_v40 = vld [vmem:[#allocation11 + $0x5c8] sm:$0xff] }
 0x2c8   :  { %5707 = vmatprep.subr.bf16.mxu1 %v10164_v50  ;;  %5593 = vmatpush1.bf16.msra.mxu0 %v10321_v51  ;;  %v2596_v50 = vld [vmem:[#allocation11 + $0x5e8] sm:$0xff] }
 0x2c9   :  { %5603 = vmatprep.subr.bf16.mxu0 %v10330_v54  ;;  %v10260_v62 = vcombine.high %v2592_v40, %v2596_v50 }
 0x2cb   :  { %5708 = vmatpush1.bf16.msra.mxu1 %v10163_v55 }
 0x2cc   :  { %5709 = vmatprep.subr.bf16.mxu1 %v10172_v56 }
 0x2cf   :  { %5710 = vmatpush1.bf16.msra.mxu1 %v10171_v59 }
 0x2d0   :  { %5711 = vmatprep.subr.bf16.mxu1 %v10180_v60 }
 0x2d3   :  { %5712 = vmatpush1.bf16.msra.mxu1 %v10179_v63 }
 0x2d4   :  { %5713 = vmatprep.subr.bf16.mxu1 %v10188_v0  ;;  %v2600_v0 = vld [vmem:[#allocation11 + $0x608] sm:$0xff] }
 0x2d5   :  { %v10268_v5 = vcombine.high %v2600_v0, %v2604_v1 }
 0x2d7   :  { %5714 = vmatpush1.bf16.msra.mxu1 %v10187_v3 }
 0x2d8   :  { %5715 = vmatprep.subr.bf16.mxu1 %v10196_v4  ;;  %v10259_v4 = vcombine.low %v2592_v40, %v2596_v50  ;;  %v2679_v40 = vld [vmem:[#allocation11 + $0x880] sm:$0xff] }
 0x2d9   :  { %v2683_v50 = vld [vmem:[#allocation11 + $0x8a0] sm:$0xff] }
 0x2db   :  { %5716 = vmatpush1.bf16.msra.mxu1 %v10195_v9  ;;  %v2612_v9 = vld [vmem:[#allocation11 + $0x668] sm:$0xff] }
 0x2dc   :  { %5726 = vmatprep.subr.bf16.mxu1 %v10204_v10  ;;  %v10267_v10 = vcombine.low %v2600_v0, %v2604_v1  ;;  %v10276_v11 = vcombine.high %v2608_v6, %v2612_v9  ;;  %v2699_v0 = vld [vmem:[#allocation11 + $0x920] sm:$0xff]  ;;  %v2656_v1 = vld [vmem:[#allocation11 + $0x7c8] sm:$0xff] }
 0x2de   :  { %5718 = vmatmul.mubr.bf16.vlgmr.msra.gmra.mrb[16].mxu1 %v12468_v37 }
 0x2df   :  { %5727 = vmatpush1.bf16.msra.mxu1 %v10203_v13  ;;  %v2620_v13 = vld [vmem:[#allocation11 + $0x6a8] sm:$0xff] }
 0x2e0   :  { %5728 = vmatprep.subr.bf16.mxu1 %v10212_v14  ;;  %v10275_v14 = vcombine.low %v2608_v6, %v2612_v9  ;;  %v10284_v16 = vcombine.high %v2616_v12, %v2620_v13  ;;  %v10283_v26 = vcombine.low %v2616_v12, %v2620_v13  ;;  %v2703_v9 = vld [vmem:[#allocation11 + $0x940] sm:$0xff]  ;;  %v2668_v12 = vld [vmem:[#allocation11 + $0x828] sm:$0xff] }
 0x2e3   :  { %5729 = vmatpush1.bf16.msra.mxu1 %v10211_v17 }
 0x2e4   :  { %5730 = vmatprep.subr.bf16.mxu1 %v10220_v20 }
 0x2e7   :  { %5731 = vmatpush1.bf16.msra.mxu1 %v10219_v19 }
 0x2e8   :  { %5732 = vmatprep.subr.bf16.mxu1 %v10228_v25 }
 0x2eb   :  { %5733 = vmatpush1.bf16.msra.mxu1 %v10227_v28 }
 0x2ec   :  { %5734 = vmatprep.subr.bf16.mxu1 %v10236_v29  ;;  %v2671_v29 = vld [vmem:[#allocation11 + $0x840] sm:$0xff] }
 0x2ef   :  { %5735 = vmatpush1.bf16.msra.mxu1 %v10235_v41  ;;  %v10292_v41 = vcombine.high %v2624_v21, %v2628_v22 }
 0x2f0   :  { %5736 = vmatprep.subr.bf16.mxu1 %v10244_v46  ;;  %v2632_v46 = vld [vmem:[#allocation11 + $0x708] sm:$0xff] }
 0x2f1   :  { %v2188_v39 = vpop.f32.mrb[8].mxu1 }
 0x2f2   :  { %v11141_v51 = vadd.f32 %v2188_v39, %v722_v35  ;;  %v12487_v52 = vpop.f32.mrb[8].mxu0  ;;  %v2190_v53 = vpop.f32.mrb[9].mxu1  ;;  %v10300_v39 = vcombine.high %v2632_v46, %v2636_v18 }
 0x2f3   :  { %v11142_v54 = vadd.f32 %v2190_v53, %v726_v36  ;;  %v2272_v55 = vpop.f32.mrb[9].mxu0  ;;  %v2192_v56 = vpop.f32.mrb[10].mxu1  ;;  %5737 = vmatpush1.bf16.msra.mxu1 %v10243_v38  ;;  %v10291_v38 = vcombine.low %v2624_v21, %v2628_v22  ;;  %v2644_v53 = vld [vmem:[#allocation11 + $0x768] sm:$0xff] }
 0x2f4   :  { %v2363_v58 = vmul.f32 1.442695, %v11141_v51  ;;  %v11144_v59 = vadd.f32 %v2272_v55, %v734_v7  ;;  %v2274_v60 = vpop.f32.mrb[10].mxu0  ;;  %v2193_v61 = vpop.f32.mrb[11].mxu1  ;;  %5738 = vmatprep.subr.bf16.mxu1 %v10252_v8  ;;  %vm2377_vm6 = vcmp.gt.f32.partialorder %v11141_v51, 0.0  ;;  %v10338_v7 = vcombine.high %v2671_v29, %v2675_v32  ;;  %v2672_v21 = vld [vmem:[#allocation11 + $0x848] sm:$0xff] }
 0x2f5   :  { %v2365_v63 = vmul.f32 1.442695, %v11142_v54  ;;  %v2275_v3 = vpop.f32.mrb[11].mxu0  ;;  %vm2378_vm7 = vcmp.gt.f32.partialorder %v11142_v54, 0.0  ;;  %v10299_v55 = vcombine.low %v2632_v46, %v2636_v18  ;;  %v10346_v56 = vcombine.high %v2679_v40, %v2683_v50  ;;  %v2648_v60 = vld [vmem:[#allocation11 + $0x788] sm:$0xff] }
 0x2f6   :  { %11967 = vpow2.f32 %v2363_v58  ;;  %v2369_v2 = vmul.f32 1.442695, %v11144_v59  ;;  %vm2380_vm8 = vcmp.gt.f32.partialorder %v11144_v59, 0.0  ;;  %v2687_v58 = vld [vmem:[#allocation11 + $0x8c0] sm:$0xff]  ;;  %v2652_v61 = vld [vmem:[#allocation11 + $0x7a8] sm:$0xff] }
 0x2f7   :  { %5739 = vmatpush1.bf16.msra.mxu1 %v10251_v57  ;;  %11969 = vpow2.f32 %v2365_v63  ;;  %v10316_v23 = vcombine.high %v2648_v60, %v2652_v61  ;;  %v2676_v22 = vld [vmem:[#allocation11 + $0x868] sm:$0xff] }
 0x2f8   :  { %5740 = vmatprep.subr.bf16.mxu1 %v10260_v62  ;;  %11971 = vpow2.f32 %v2369_v2  ;;  %v10345_v62 = vcombine.low %v2679_v40, %v2683_v50  ;;  %v2660_v2 = vld [vmem:[#allocation11 + $0x7e8] sm:$0xff]  ;;  %v10339_v46 = vcombine.low %v2672_v21, %v2676_v22 }
 0x2f9   :  { %v10324_v6 = vcombine.high %v2656_v1, %v2660_v2  ;;  %v2692_v40 = vld [vmem:[#allocation11 + $0x8e8] sm:$0xff] }
 0x2fb   :  { %5741 = vmatpush1.bf16.msra.mxu1 %v10259_v4  ;;  %v10315_v4 = vcombine.low %v2648_v60, %v2652_v61 }
 0x2fc   :  { %5742 = vmatprep.subr.bf16.mxu1 %v10268_v5 }
 0x2ff   :  { %5743 = vmatpush1.bf16.msra.mxu1 %v10267_v10  ;;  %v2707_v10 = vld [vmem:[#allocation11 + $0x960] sm:$0xff] }
 0x300   :  { %v11968_v15 = vpop.eup %11967  ;;  %5744 = vmatprep.subr.bf16.mxu1 %v10276_v11  ;;  %v2664_v11 = vld [vmem:[#allocation11 + $0x808] sm:$0xff] }
 0x301   :  { %v10067_v17 = vadd.f32 -1.0, %v11968_v15  ;;  %v11970_v20 = vpop.eup %11969  ;;  %v10370_v15 = vcombine.high %v2703_v9, %v2707_v10 }
 0x302   :  { %v11972_v19 = vpop.eup %11971  ;;  %v10068_v25 = vadd.f32 -1.0, %v11970_v20  ;;  %v2715_v20 = vld [vmem:[#allocation11 + $0x9a0] sm:$0xff] }
 0x303   :  { %5745 = vmatpush1.bf16.msra.mxu1 %v10275_v14  ;;  %v2393_v27 = vsel %vm2377_vm6, %v11141_v51, %v10067_v17  ;;  %v10070_v28 = vadd.f32 -1.0, %v11972_v19  ;;  %v2640_v51 = vld [vmem:[#allocation11 + $0x748] sm:$0xff]  ;;  %v10323_v14 = vcombine.low %v2656_v1, %v2660_v2  ;;  %v2711_v17 = vld [vmem:[#allocation11 + $0x980] sm:$0xff]  ;;  %v10369_v19 = vcombine.low %v2703_v9, %v2707_v10 }
 0x304   :  { %5746 = vmatprep.subr.bf16.mxu1 %v10284_v16  ;;  %v2394_v33 = vsel %vm2378_vm7, %v11142_v54, %v10068_v25  ;;  %v12491_v36 = vpack.c.bf16 %v2393_v27, %v2393_v27  ;;  %v10337_v54 = vcombine.low %v2671_v29, %v2675_v32  ;;  %v10308_v57 = vcombine.high %v2640_v51, %v2644_v53  ;;  %v2723_v29 = vld [vmem:[#allocation11 + $0x9e0] sm:$0xff]  ;;  %v2680_v32 = vld [vmem:[#allocation11 + $0x888] sm:$0xff] }
 0x305   :  { %v12489_v34 = vpack.c.bf16 %v2394_v33, %v2394_v33  ;;  %v2396_v35 = vsel %vm2380_vm8, %v11144_v59, %v10070_v28  ;;  %v2691_v59 = vld [vmem:[#allocation11 + $0x8e0] sm:$0xff]  ;;  %v10307_v63 = vcombine.low %v2640_v51, %v2644_v53  ;;  %v10332_v16 = vcombine.high %v2664_v11, %v2668_v12  ;;  %v2684_v33 = vld [vmem:[#allocation11 + $0x8a8] sm:$0xff] }
 0x306   :  { %v12493_v8 = vpack.c.bf16 %v2396_v35, %v2396_v35  ;;  %v10354_v30 = vcombine.high %v2687_v58, %v2691_v59  ;;  %v10353_v3 = vcombine.low %v2687_v58, %v2691_v59  ;;  %v10331_v25 = vcombine.low %v2664_v11, %v2668_v12  ;;  %v2719_v28 = vld [vmem:[#allocation11 + $0x9c0] sm:$0xff]  ;;  %v2696_v58 = vld [vmem:[#allocation11 + $0x908] sm:$0xff] }
 0x307   :  { %5747 = vmatpush1.bf16.msra.mxu1 %v10283_v26  ;;  %5594 = vmatprep.mubr.bf16.mxu0 %v12489_v34  ;;  %v10378_v26 = vcombine.high %v2711_v17, %v2715_v20  ;;  %v10340_v27 = vcombine.high %v2672_v21, %v2676_v22  ;;  %v10386_v18 = vcombine.high %v2719_v28, %v2723_v29  ;;  %v729_v51 = vsub.s32 4, %v12401_v43  ;;  %v2700_v59 = vld [vmem:[#allocation11 + $0x928] sm:$0xff]  ;;  %v2755_v9 = vld [vmem:[#allocation11 + $0xae0] sm:$0xff] }
 0x308   :  { %5758 = vmatprep.mubr.bf16.mxu1 %v12489_v34  ;;  %5595 = vmatmul.mubr.bf16.vlgmr.msra.gmra.mrb[12].mxu0 %v12491_v36  ;;  %v10348_v35 = vcombine.high %v2680_v32, %v2684_v33  ;;  %v10385_v50 = vcombine.low %v2719_v28, %v2723_v29  ;;  %v10347_v53 = vcombine.low %v2680_v32, %v2684_v33  ;;  %v2708_v1 = vld [vmem:[#allocation11 + $0x968] sm:$0xff]  ;;  %v2771_v28 = vld [vmem:[#allocation11 + $0xb60] sm:$0xff] }
 0x309   :  { %5748 = vmatprep.subr.bf16.mxu1 %v10292_v41  ;;  %5604 = vmatpush1.bf16.msra.mxu0 %v10329_v49  ;;  %v2695_v49 = vld [vmem:[#allocation11 + $0x900] sm:$0xff]  ;;  %v10377_v41 = vcombine.low %v2711_v17, %v2715_v20  ;;  %v730_v61 = vrot.slane %v12454_v24, %v729_v51  ;;  %v2712_v10 = vld [vmem:[#allocation11 + $0x988] sm:$0xff] }
 0x30a   :  { %5635 = vmatprep.mubr.bf16.mxu0 %v12493_v8  ;;  %5605 = vmatprep.subr.bf16.mxu0 %v10338_v7  ;;  %v10362_v5 = vcombine.high %v2695_v49, %v2699_v0  ;;  %v10361_v13 = vcombine.low %v2695_v49, %v2699_v0  ;;  %v2731_v7 = vld [vmem:[#allocation11 + $0xa20] sm:$0xff]  ;;  %v2704_v0 = vld [vmem:[#allocation11 + $0x948] sm:$0xff] }
 0x30b   :  { %5749 = vmatpush1.bf16.msra.mxu1 %v10291_v38  ;;  %v2727_v38 = vld [vmem:[#allocation11 + $0xa00] sm:$0xff]  ;;  %v10372_v24 = vcombine.high %v2704_v0, %v2708_v1  ;;  %v2716_v11 = vld [vmem:[#allocation11 + $0x9a8] sm:$0xff] }
 0x30c   :  { %5750 = vmatprep.subr.bf16.mxu1 %v10300_v39  ;;  %v2688_v39 = vld [vmem:[#allocation11 + $0x8c8] sm:$0xff]  ;;  %v10393_v60 = vcombine.low %v2727_v38, %v2731_v7  ;;  %v2747_v49 = vld [vmem:[#allocation11 + $0xaa0] sm:$0xff] }
 0x30d   :  { %5606 = vmatpush1.bf16.msra.mxu0 %v10337_v54  ;;  %v10394_v54 = vcombine.high %v2727_v38, %v2731_v7  ;;  %v2763_v17 = vld [vmem:[#allocation11 + $0xb20] sm:$0xff]  ;;  %v2720_v20 = vld [vmem:[#allocation11 + $0x9c8] sm:$0xff] }
 0x30e   :  { %5607 = vmatprep.subr.bf16.mxu0 %v10346_v56  ;;  %v2735_v56 = vld [vmem:[#allocation11 + $0xa40] sm:$0xff]  ;;  %v2724_v21 = vld [vmem:[#allocation11 + $0x9e8] sm:$0xff] }
 0x30f   :  { %5751 = vmatpush1.bf16.msra.mxu1 %v10299_v55  ;;  %v10356_v55 = vcombine.high %v2688_v39, %v2692_v40  ;;  %v2728_v29 = vld [vmem:[#allocation11 + $0xa08] sm:$0xff]  ;;  %v2779_v38 = vld [vmem:[#allocation11 + $0xba0] sm:$0xff] }
 0x310   :  { %5752 = vmatprep.subr.bf16.mxu1 %v10308_v57  ;;  %v2739_v57 = vld [vmem:[#allocation11 + $0xa60] sm:$0xff]  ;;  %v2732_v32 = vld [vmem:[#allocation11 + $0xa28] sm:$0xff] }
 0x311   :  { %5608 = vmatpush1.bf16.msra.mxu0 %v10345_v62  ;;  %v10355_v62 = vcombine.low %v2688_v39, %v2692_v40  ;;  %v10401_v2 = vcombine.low %v2735_v56, %v2739_v57  ;;  %v2736_v7 = vld [vmem:[#allocation11 + $0xa48] sm:$0xff] }
 0x312   :  { %5609 = vmatprep.subr.bf16.mxu0 %v10354_v30  ;;  %v10364_v30 = vcombine.high %v2696_v58, %v2700_v59  ;;  %v2740_v39 = vld [vmem:[#allocation11 + $0xa68] sm:$0xff] }
 0x313   :  { %5753 = vmatpush1.bf16.msra.mxu1 %v10307_v63  ;;  %v10402_v63 = vcombine.high %v2735_v56, %v2739_v57  ;;  %v2787_v56 = vld [vmem:[#allocation11 + $0xbe0] sm:$0xff] }
 0x314   :  { %5754 = vmatprep.subr.bf16.mxu1 %v10316_v23  ;;  %v2743_v23 = vld [vmem:[#allocation11 + $0xa80] sm:$0xff] }
 0x315   :  { %5610 = vmatpush1.bf16.msra.mxu0 %v10353_v3  ;;  %v12509_v3 = vadd.f32 %v12487_v52, %v730_v61  ;;  %v10409_v12 = vcombine.low %v2743_v23, %v2747_v49  ;;  %v10380_v52 = vcombine.high %v2712_v10, %v2716_v11  ;;  %v10403_v61 = vcombine.low %v2736_v7, %v2740_v39 }
 0x316   :  { %5611 = vmatprep.subr.bf16.mxu0 %v10362_v5  ;;  %v10410_v5 = vcombine.high %v2743_v23, %v2747_v49  ;;  %v2791_v23 = vld [vmem:[#allocation11 + $0xc00] sm:$0xff] }
 0x317   :  { %5755 = vmatpush1.bf16.msra.mxu1 %v10315_v4  ;;  %v10363_v4 = vcombine.low %v2696_v58, %v2700_v59  ;;  %v2744_v58 = vld [vmem:[#allocation11 + $0xa88] sm:$0xff]  ;;  %v2795_v49 = vld [vmem:[#allocation11 + $0xc20] sm:$0xff]  ;;  %vm2379_vm9 = vcmp.gt.f32.partialorder %v12509_v3, 0.0 }
 0x318   :  { %5756 = vmatprep.subr.bf16.mxu1 %v10324_v6  ;;  %v2751_v6 = vld [vmem:[#allocation11 + $0xac0] sm:$0xff]  ;;  %v2748_v59 = vld [vmem:[#allocation11 + $0xaa8] sm:$0xff] }
 0x319   :  { %5612 = vmatpush1.bf16.msra.mxu0 %v10361_v13  ;;  %v2367_v13 = vmul.f32 1.442695, %v12509_v3  ;;  %v10417_v22 = vcombine.low %v2751_v6, %v2755_v9 }
 0x31a   :  { %5613 = vmatprep.subr.bf16.mxu0 %v10370_v15  ;;  %v10418_v15 = vcombine.high %v2751_v6, %v2755_v9  ;;  %v2799_v9 = vld [vmem:[#allocation11 + $0xc40] sm:$0xff] }
 0x31b   :  { %5757 = vmatpush1.bf16.msra.mxu1 %v10323_v14  ;;  %v10371_v14 = vcombine.low %v2704_v0, %v2708_v1  ;;  %11973 = vpow2.f32 %v2367_v13  ;;  %v2752_v0 = vld [vmem:[#allocation11 + $0xac8] sm:$0xff]  ;;  %v10457_v13 = vcombine.low %v2791_v23, %v2795_v49 }
 0x31c   :  { %5767 = vmatprep.subr.bf16.mxu1 %v10332_v16  ;;  %v2759_v16 = vld [vmem:[#allocation11 + $0xb00] sm:$0xff]  ;;  %v2756_v1 = vld [vmem:[#allocation11 + $0xae8] sm:$0xff] }
 0x31d   :  { %5614 = vmatpush1.bf16.msra.mxu0 %v10369_v19  ;;  %v10379_v19 = vcombine.low %v2712_v10, %v2716_v11  ;;  %v10425_v33 = vcombine.low %v2759_v16, %v2763_v17  ;;  %v10420_v6 = vcombine.high %v2752_v0, %v2756_v1  ;;  %v2803_v10 = vld [vmem:[#allocation11 + $0xc60] sm:$0xff]  ;;  %v2760_v11 = vld [vmem:[#allocation11 + $0xb08] sm:$0xff] }
 0x31e   :  { %5759 = vmatmul.mubr.bf16.vlgmr.msra.gmra.mrb[16].mxu1 %v12491_v36  ;;  %5615 = vmatprep.subr.bf16.mxu0 %v10378_v26  ;;  %v10388_v26 = vcombine.high %v2720_v20, %v2724_v21 }
 0x31f   :  { %5768 = vmatpush1.bf16.msra.mxu1 %v10331_v25  ;;  %5799 = vmatprep.mubr.bf16.mxu1 %v12493_v8  ;;  %v10426_v25 = vcombine.high %v2759_v16, %v2763_v17  ;;  %v2807_v17 = vld [vmem:[#allocation11 + $0xc80] sm:$0xff] }
 0x320   :  { %5769 = vmatprep.subr.bf16.mxu1 %v10340_v27  ;;  %v2767_v27 = vld [vmem:[#allocation11 + $0xb40] sm:$0xff] }
 0x321   :  { %5616 = vmatpush1.bf16.msra.mxu0 %v10377_v41  ;;  %v10387_v41 = vcombine.low %v2720_v20, %v2724_v21  ;;  %v10433_v40 = vcombine.low %v2767_v27, %v2771_v28  ;;  %v2811_v20 = vld [vmem:[#allocation11 + $0xca0] sm:$0xff]  ;;  %v2772_v21 = vld [vmem:[#allocation11 + $0xb68] sm:$0xff] }
 0x322   :  { %5617 = vmatprep.subr.bf16.mxu0 %v10386_v18  ;;  %v10396_v18 = vcombine.high %v2728_v29, %v2732_v32 }
 0x323   :  { %5770 = vmatpush1.bf16.msra.mxu1 %v10339_v46  ;;  %v10434_v46 = vcombine.high %v2767_v27, %v2771_v28  ;;  %v2815_v27 = vld [vmem:[#allocation11 + $0xcc0] sm:$0xff] }
 0x324   :  { %5771 = vmatprep.subr.bf16.mxu1 %v10348_v35  ;;  %v2775_v35 = vld [vmem:[#allocation11 + $0xb80] sm:$0xff] }
 0x325   :  { %5618 = vmatpush1.bf16.msra.mxu0 %v10385_v50  ;;  %v10395_v50 = vcombine.low %v2728_v29, %v2732_v32  ;;  %v11974_v57 = vpop.eup %11973  ;;  %v2819_v28 = vld [vmem:[#allocation11 + $0xce0] sm:$0xff]  ;;  %v2776_v29 = vld [vmem:[#allocation11 + $0xb88] sm:$0xff] }
 0x326   :  { %5619 = vmatprep.subr.bf16.mxu0 %v10394_v54  ;;  %v10404_v54 = vcombine.high %v2736_v7, %v2740_v39  ;;  %v2780_v32 = vld [vmem:[#allocation11 + $0xba8] sm:$0xff] }
 0x327   :  { %5772 = vmatpush1.bf16.msra.mxu1 %v10347_v53  ;;  %v10442_v53 = vcombine.high %v2775_v35, %v2779_v38  ;;  %v2784_v7 = vld [vmem:[#allocation11 + $0xbc8] sm:$0xff] }
 0x328   :  { %5773 = vmatprep.subr.bf16.mxu1 %v10356_v55  ;;  %v2783_v55 = vld [vmem:[#allocation11 + $0xbc0] sm:$0xff]  ;;  %v2788_v39 = vld [vmem:[#allocation11 + $0xbe8] sm:$0xff] }
 0x329   :  { %5620 = vmatpush1.bf16.msra.mxu0 %v10393_v60  ;;  %v10441_v60 = vcombine.low %v2775_v35, %v2779_v38  ;;  %v2823_v35 = vld [vmem:[#allocation11 + $0xd00] sm:$0xff] }
 0x32a   :  { %5621 = vmatprep.subr.bf16.mxu0 %v10402_v63  ;;  %v10069_v63 = vadd.f32 -1.0, %v11974_v57  ;;  %v2827_v38 = vld [vmem:[#allocation11 + $0xd20] sm:$0xff]  ;;  %v2792_v57 = vld [vmem:[#allocation11 + $0xc08] sm:$0xff] }
 0x32b   :  { %5774 = vmatpush1.bf16.msra.mxu1 %v10355_v62  ;;  %v10450_v62 = vcombine.high %v2783_v55, %v2787_v56 }
 0x32c   :  { %5775 = vmatprep.subr.bf16.mxu1 %v10364_v30  ;;  %v10412_v30 = vcombine.high %v2744_v58, %v2748_v59 }
 0x32d   :  { %5622 = vmatpush1.bf16.msra.mxu0 %v10401_v2  ;;  %v10449_v2 = vcombine.low %v2783_v55, %v2787_v56  ;;  %v2831_v55 = vld [vmem:[#allocation11 + $0xd40] sm:$0xff] }
 0x32e   :  { %5623 = vmatprep.subr.bf16.mxu0 %v10410_v5  ;;  %v10458_v5 = vcombine.high %v2791_v23, %v2795_v49  ;;  %v2835_v56 = vld [vmem:[#allocation11 + $0xd60] sm:$0xff]  ;;  %v2800_v23 = vld [vmem:[#allocation11 + $0xc48] sm:$0xff] }
 0x32f   :  { %5776 = vmatpush1.bf16.msra.mxu1 %v10363_v4  ;;  %v10411_v4 = vcombine.low %v2744_v58, %v2748_v59  ;;  %v2796_v58 = vld [vmem:[#allocation11 + $0xc28] sm:$0xff]  ;;  %v10489_v59 = vcombine.low %v2823_v35, %v2827_v38 }
 0x330   :  { %5777 = vmatprep.subr.bf16.mxu1 %v10372_v24  ;;  %v2395_v24 = vsel %vm2379_vm9, %v12509_v3, %v10069_v63  ;;  %v2768_v3 = vld [vmem:[#allocation11 + $0xb48] sm:$0xff]  ;;  %v2839_v63 = vld [vmem:[#allocation11 + $0xd80] sm:$0xff] }
 0x331   :  { %5624 = vmatpush1.bf16.msra.mxu0 %v10409_v12  ;;  %v2764_v12 = vld [vmem:[#allocation11 + $0xb28] sm:$0xff] }
 0x332   :  { %5625 = vmatprep.subr.bf16.mxu0 %v10418_v15  ;;  %v10419_v15 = vcombine.low %v2752_v0, %v2756_v1  ;;  %v10428_v16 = vcombine.high %v2760_v11, %v2764_v12  ;;  %v2804_v49 = vld [vmem:[#allocation11 + $0xc68] sm:$0xff]  ;;  %v10497_v0 = vcombine.low %v2831_v55, %v2835_v56  ;;  %v10459_v1 = vcombine.low %v2792_v57, %v2796_v58 }
 0x333   :  { %5778 = vmatpush1.bf16.msra.mxu1 %v10371_v14  ;;  %v12514_v14 = vpack.c.bf16 %v2395_v24, %v2395_v24  ;;  %v2851_v24 = vld [vmem:[#allocation11 + $0xde0] sm:$0xff] }
 0x334   :  { %5779 = vmatprep.subr.bf16.mxu1 %v10380_v52  ;;  %v10466_v52 = vcombine.high %v2799_v9, %v2803_v10 }
 0x335   :  { %5626 = vmatpush1.bf16.msra.mxu0 %v10417_v22  ;;  %v10465_v22 = vcombine.low %v2799_v9, %v2803_v10  ;;  %v2812_v9 = vld [vmem:[#allocation11 + $0xca8] sm:$0xff] }
 0x336   :  { %5627 = vmatprep.subr.bf16.mxu0 %v10426_v25  ;;  %v10474_v25 = vcombine.high %v2807_v17, %v2811_v20 }
 0x337   :  { %5780 = vmatpush1.bf16.msra.mxu1 %v10379_v19  ;;  %v10427_v19 = vcombine.low %v2760_v11, %v2764_v12  ;;  %v10467_v11 = vcombine.low %v2800_v23, %v2804_v49 }
 0x338   :  { %5781 = vmatprep.subr.bf16.mxu1 %v10388_v26  ;;  %v10436_v26 = vcombine.high %v2768_v3, %v2772_v21 }
 0x339   :  { %5628 = vmatpush1.bf16.msra.mxu0 %v10425_v33  ;;  %v10473_v33 = vcombine.low %v2807_v17, %v2811_v20  ;;  %v2820_v17 = vld [vmem:[#allocation11 + $0xce8] sm:$0xff] }
 0x33a   :  { %5629 = vmatprep.subr.bf16.mxu0 %v10434_v46  ;;  %v10482_v46 = vcombine.high %v2815_v27, %v2819_v28 }
 0x33b   :  { %5782 = vmatpush1.bf16.msra.mxu1 %v10387_v41  ;;  %v10435_v41 = vcombine.low %v2768_v3, %v2772_v21 }
 0x33c   :  { %5783 = vmatprep.subr.bf16.mxu1 %v10396_v18  ;;  %v10444_v18 = vcombine.high %v2776_v29, %v2780_v32 }
 0x33d   :  { %5630 = vmatpush1.bf16.msra.mxu0 %v10433_v40  ;;  %v10481_v40 = vcombine.low %v2815_v27, %v2819_v28  ;;  %v2828_v27 = vld [vmem:[#allocation11 + $0xd28] sm:$0xff] }
 0x33e   :  { %5631 = vmatprep.subr.bf16.mxu0 %v10442_v53  ;;  %v10490_v53 = vcombine.high %v2823_v35, %v2827_v38  ;;  %v2836_v35 = vld [vmem:[#allocation11 + $0xd68] sm:$0xff] }
 0x33f   :  { %5784 = vmatpush1.bf16.msra.mxu1 %v10395_v50  ;;  %v10443_v50 = vcombine.low %v2776_v29, %v2780_v32 }
 0x340   :  { %5785 = vmatprep.subr.bf16.mxu1 %v10404_v54  ;;  %v10452_v54 = vcombine.high %v2784_v7, %v2788_v39 }
 0x341   :  { %5632 = vmatpush1.bf16.msra.mxu0 %v10441_v60  ;;  %v10451_v60 = vcombine.low %v2784_v7, %v2788_v39  ;;  %v737_v7 = vsub.s32 6, %v12401_v43 }
 0x342   :  { %5633 = vmatprep.subr.bf16.mxu0 %v10450_v62  ;;  %v10460_v62 = vcombine.high %v2792_v57, %v2796_v58  ;;  %v2844_v57 = vld [vmem:[#allocation11 + $0xda8] sm:$0xff] }
 0x343   :  { %5786 = vmatpush1.bf16.msra.mxu1 %v10403_v61  ;;  %v10498_v61 = vcombine.high %v2831_v55, %v2835_v56  ;;  %v2883_v55 = vld [vmem:[#allocation11 + $0xee0] sm:$0xff]  ;;  %v2840_v56 = vld [vmem:[#allocation11 + $0xd88] sm:$0xff] }
 0x344   :  { %5787 = vmatprep.subr.bf16.mxu1 %v10412_v30  ;;  %v2843_v30 = vld [vmem:[#allocation11 + $0xda0] sm:$0xff] }
 0x345   :  { %5634 = vmatpush1.bf16.msra.mxu0 %v10449_v2  ;;  %v10506_v2 = vcombine.high %v2839_v63, %v2843_v30  ;;  %v10505_v10 = vcombine.low %v2839_v63, %v2843_v30  ;;  %v10508_v30 = vcombine.high %v2840_v56, %v2844_v57 }
 0x346   :  { %5644 = vmatprep.subr.bf16.mxu0 %v10458_v5  ;;  %v2847_v5 = vld [vmem:[#allocation11 + $0xdc0] sm:$0xff] }
 0x347   :  { %5788 = vmatpush1.bf16.msra.mxu1 %v10411_v4  ;;  %v10468_v4 = vcombine.high %v2800_v23, %v2804_v49  ;;  %v10514_v12 = vcombine.high %v2847_v5, %v2851_v24  ;;  %v10513_v20 = vcombine.low %v2847_v5, %v2851_v24  ;;  %v2887_v23 = vld [vmem:[#allocation11 + $0xf00] sm:$0xff] }
 0x348   :  { %5789 = vmatprep.subr.bf16.mxu1 %v10420_v6  ;;  %5636 = vmatmul.mubr.bf16.vlgmr.msra.gmra.mrb[12].mxu0 %v12514_v14  ;;  %v2808_v6 = vld [vmem:[#allocation11 + $0xc88] sm:$0xff]  ;;  %v2891_v49 = vld [vmem:[#allocation11 + $0xf20] sm:$0xff] }
 0x349   :  { %5645 = vmatpush1.bf16.msra.mxu0 %v10457_v13  ;;  %v10476_v13 = vcombine.high %v2808_v6, %v2812_v9  ;;  %v10475_v3 = vcombine.low %v2808_v6, %v2812_v9 }
 0x34a   :  { %5646 = vmatprep.subr.bf16.mxu0 %v10466_v52  ;;  %v2859_v52 = vld [vmem:[#allocation11 + $0xe20] sm:$0xff] }
 0x34b   :  { %5790 = vmatpush1.bf16.msra.mxu1 %v10419_v15  ;;  %v2855_v15 = vld [vmem:[#allocation11 + $0xe00] sm:$0xff] }
 0x34c   :  { %5791 = vmatprep.subr.bf16.mxu1 %v10428_v16  ;;  %v2816_v16 = vld [vmem:[#allocation11 + $0xcc8] sm:$0xff]  ;;  %v10522_v21 = vcombine.high %v2855_v15, %v2859_v52  ;;  %v10521_v28 = vcombine.low %v2855_v15, %v2859_v52  ;;  %v2895_v52 = vld [vmem:[#allocation11 + $0xf40] sm:$0xff] }
 0x34d   :  { %5647 = vmatpush1.bf16.msra.mxu0 %v10465_v22  ;;  %v10484_v22 = vcombine.high %v2816_v16, %v2820_v17  ;;  %v10483_v29 = vcombine.low %v2816_v16, %v2820_v17  ;;  %v2899_v16 = vld [vmem:[#allocation11 + $0xf60] sm:$0xff] }
 0x34e   :  { %5648 = vmatprep.subr.bf16.mxu0 %v10474_v25  ;;  %v2867_v25 = vld [vmem:[#allocation11 + $0xe60] sm:$0xff] }
 0x34f   :  { %5792 = vmatpush1.bf16.msra.mxu1 %v10427_v19  ;;  %v2863_v19 = vld [vmem:[#allocation11 + $0xe40] sm:$0xff] }
 0x350   :  { %5793 = vmatprep.subr.bf16.mxu1 %v10436_v26  ;;  %v2824_v26 = vld [vmem:[#allocation11 + $0xd08] sm:$0xff]  ;;  %v10530_v32 = vcombine.high %v2863_v19, %v2867_v25  ;;  %v10529_v38 = vcombine.low %v2863_v19, %v2867_v25  ;;  %v10562_v19 = vcombine.high %v2895_v52, %v2899_v16 }
 0x351   :  { %5649 = vmatpush1.bf16.msra.mxu0 %v10473_v33  ;;  %v10492_v33 = vcombine.high %v2824_v26, %v2828_v27  ;;  %v10491_v39 = vcombine.low %v2824_v26, %v2828_v27  ;;  %v2903_v26 = vld [vmem:[#allocation11 + $0xf80] sm:$0xff] }
 0x352   :  { %5650 = vmatprep.subr.bf16.mxu0 %v10482_v46  ;;  %v2875_v46 = vld [vmem:[#allocation11 + $0xea0] sm:$0xff] }
 0x353   :  { %5794 = vmatpush1.bf16.msra.mxu1 %v10435_v41  ;;  %v2871_v41 = vld [vmem:[#allocation11 + $0xe80] sm:$0xff] }
 0x354   :  { %5795 = vmatprep.subr.bf16.mxu1 %v10444_v18  ;;  %v2832_v18 = vld [vmem:[#allocation11 + $0xd48] sm:$0xff]  ;;  %v10537_v58 = vcombine.low %v2871_v41, %v2875_v46  ;;  %v2907_v27 = vld [vmem:[#allocation11 + $0xfa0] sm:$0xff] }
 0x355   :  { %5651 = vmatpush1.bf16.msra.mxu0 %v10481_v40  ;;  %v10538_v40 = vcombine.high %v2871_v41, %v2875_v46  ;;  %v10570_v41 = vcombine.high %v2903_v26, %v2907_v27 }
 0x356   :  { %5652 = vmatprep.subr.bf16.mxu0 %v10490_v53  ;;  %v10500_v53 = vcombine.high %v2832_v18, %v2836_v35 }
 0x357   :  { %5796 = vmatpush1.bf16.msra.mxu1 %v10443_v50  ;;  %v741_v50 = vsub.s32 7, %v12401_v43  ;;  %v11666_v43 = vld [vmem:[#allocation14 + $0xcb8] ss:$28 sps:$4 sm:$0xff]  }
 0x358   :  { %5797 = vmatprep.subr.bf16.mxu1 %v10452_v54  ;;  %v2879_v54 = vld [vmem:[#allocation11 + $0xec0] sm:$0xff] }
 0x359   :  { %5653 = vmatpush1.bf16.msra.mxu0 %v10489_v59  ;;  %v12009_v59 = vld [vmem:[#allocation10] sm:$0xff]  ;;  %v10546_v63 = vcombine.high %v2879_v54, %v2883_v55  ;;  %v10545_v24 = vcombine.low %v2879_v54, %v2883_v55 }
 0x35a   :  { %5654 = vmatprep.subr.bf16.mxu0 %v10498_v61  ;;  %v742_v61 = vrot.slane %v12009_v59, %v741_v50 }
 0x35b   :  { %5798 = vmatpush1.bf16.msra.mxu1 %v10451_v60  ;;  %v738_v60 = vrot.slane %v12009_v59, %v737_v7  ;;  %v2409_v59 = vld [vmem:[#allocation11 + $0x10] sm:$0xff] }
 0x35c   :  { %5808 = vmatprep.subr.bf16.mxu1 %v10460_v62  ;;  %v10499_v62 = vcombine.low %v2832_v18, %v2836_v35  ;;  %v2911_v18 = vld [vmem:[#allocation11 + $0xfc0] sm:$0xff] }
 0x35d   :  { %5655 = vmatpush1.bf16.msra.mxu0 %v10497_v0  ;;  %v2915_v35 = vld [vmem:[#allocation11 + $0xfe0] sm:$0xff] }
 0x35e   :  { %5800 = vmatmul.mubr.bf16.vlgmr.msra.gmra.mrb[16].mxu1 %v12514_v14  ;;  %5656 = vmatprep.subr.bf16.mxu0 %v10506_v2  ;;  %v2852_v2 = vld [vmem:[#allocation11 + $0xde8] sm:$0xff]  ;;  %v10578_v54 = vcombine.high %v2911_v18, %v2915_v35 }
 0x35f   :  { %5809 = vmatpush1.bf16.msra.mxu1 %v10459_v1  ;;  %v2848_v1 = vld [vmem:[#allocation11 + $0xdc8] sm:$0xff] }
 0x360   :  { %5810 = vmatprep.subr.bf16.mxu1 %v10468_v4  ;;  %v10516_v15 = vcombine.high %v2848_v1, %v2852_v2 }
 0x361   :  { %5657 = vmatpush1.bf16.msra.mxu0 %v10505_v10  ;;  %v10507_v10 = vcombine.low %v2840_v56, %v2844_v57 }
 0x362   :  { %5658 = vmatprep.subr.bf16.mxu0 %v10514_v12 }
 0x363   :  { %5811 = vmatpush1.bf16.msra.mxu1 %v10467_v11  ;;  %v10554_v11 = vcombine.high %v2887_v23, %v2891_v49 }
 0x364   :  { %5812 = vmatprep.subr.bf16.mxu1 %v10476_v13 }
 0x365   :  { %5659 = vmatpush1.bf16.msra.mxu0 %v10513_v20  ;;  %v2856_v20 = vld [vmem:[#allocation11 + $0xe08] sm:$0xff] }
 0x366   :  { %5660 = vmatprep.subr.bf16.mxu0 %v10522_v21  ;;  %v10553_v21 = vcombine.low %v2887_v23, %v2891_v49 }
 0x367   :  { %5813 = vmatpush1.bf16.msra.mxu1 %v10475_v3  ;;  %v2860_v3 = vld [vmem:[#allocation11 + $0xe28] sm:$0xff] }
 0x368   :  { %5814 = vmatprep.subr.bf16.mxu1 %v10484_v22  ;;  %v10515_v22 = vcombine.low %v2848_v1, %v2852_v2  ;;  %v10524_v25 = vcombine.high %v2856_v20, %v2860_v3  ;;  %v2417_v2 = vld [vmem:[#allocation11 + $0x50] sm:$0xff] }
 0x369   :  { %5661 = vmatpush1.bf16.msra.mxu0 %v10521_v28  ;;  %v2864_v28 = vld [vmem:[#allocation11 + $0xe48] sm:$0xff] }
 0x36a   :  { %5662 = vmatprep.subr.bf16.mxu0 %v10530_v32  ;;  %v10561_v32 = vcombine.low %v2895_v52, %v2899_v16  ;;  %v2425_v52 = vld [vmem:[#allocation11 + $0x90] sm:$0xff] }
 0x36b   :  { %5815 = vmatpush1.bf16.msra.mxu1 %v10483_v29  ;;  %v2868_v29 = vld [vmem:[#allocation11 + $0xe68] sm:$0xff]  ;;  %v2429_v16 = vld [vmem:[#allocation11 + $0xb0] sm:$0xff] }
 0x36c   :  { %5816 = vmatprep.subr.bf16.mxu1 %v10492_v33  ;;  %v10523_v33 = vcombine.low %v2856_v20, %v2860_v3  ;;  %v10532_v46 = vcombine.high %v2864_v28, %v2868_v29  ;;  %v2900_v20 = vld [vmem:[#allocation11 + $0xf68] sm:$0xff] }
 0x36d   :  { %5663 = vmatpush1.bf16.msra.mxu0 %v10529_v38  ;;  %v2872_v38 = vld [vmem:[#allocation11 + $0xe88] sm:$0xff] }
 0x36e   :  { %5664 = vmatprep.subr.bf16.mxu0 %v10538_v40  ;;  %v10569_v40 = vcombine.low %v2903_v26, %v2907_v27  ;;  %v2437_v26 = vld [vmem:[#allocation11 + $0xf0] sm:$0xff]  ;;  %v2904_v27 = vld [vmem:[#allocation11 + $0xf88] sm:$0xff] }
 0x36f   :  { %5817 = vmatpush1.bf16.msra.mxu1 %v10491_v39  ;;  %v2876_v39 = vld [vmem:[#allocation11 + $0xea8] sm:$0xff] }
 0x370   :  { %5818 = vmatprep.subr.bf16.mxu1 %v10500_v53  ;;  %v10531_v53 = vcombine.low %v2864_v28, %v2868_v29  ;;  %v10540_v56 = vcombine.high %v2872_v38, %v2876_v39  ;;  %v10539_v23 = vcombine.low %v2872_v38, %v2876_v39  ;;  %v2908_v28 = vld [vmem:[#allocation11 + $0xfa8] sm:$0xff]  ;;  %v10093_v29 = vcombine.low %v2425_v52, %v2429_v16 }
 0x371   :  { %v2352_v0 = vpop.f32.mrb[12].mxu1  ;;  %5665 = vmatpush1.bf16.msra.mxu0 %v10537_v58  ;;  %v2916_v38 = vld [vmem:[#allocation11 + $0xfe8] sm:$0xff] }
 0x372   :  { %v12524_v4 = vadd.f32 %v2352_v0, %v738_v60  ;;  %v2354_v5 = vpop.f32.mrb[13].mxu1  ;;  %5666 = vmatprep.subr.bf16.mxu0 %v10546_v63  ;;  %v2413_v60 = vld [vmem:[#allocation11 + $0x30] sm:$0xff]  ;;  %v2880_v63 = vld [vmem:[#allocation11 + $0xec8] sm:$0xff] }
 0x373   :  { %v12526_v6 = vadd.f32 %v2354_v5, %v742_v61  ;;  %v2356_v9 = vpop.f32.mrb[14].mxu1  ;;  %5819 = vmatpush1.bf16.msra.mxu1 %v10499_v62  ;;  %v10577_v62 = vcombine.low %v2911_v18, %v2915_v35  ;;  %v10078_v1 = vcombine.high %v2409_v59, %v2413_v60  ;;  %v2421_v5 = vld [vmem:[#allocation11 + $0x70] sm:$0xff]  ;;  %v2912_v35 = vld [vmem:[#allocation11 + $0xfc8] sm:$0xff] }
 0x374   :  { %v2371_v12 = vmul.f32 1.442695, %v12524_v4  ;;  %v2357_v13 = vpop.f32.mrb[15].mxu1  ;;  %5820 = vmatprep.subr.bf16.mxu1 %v10508_v30  ;;  %v2884_v30 = vld [vmem:[#allocation11 + $0xee8] sm:$0xff]  ;;  %vm2381_vm10 = vcmp.gt.f32.partialorder %v12524_v4, 0.0  ;;  %v10085_v3 = vcombine.low %v2417_v2, %v2421_v5  ;;  %v2445_v18 = vld [vmem:[#allocation11 + $0x130] sm:$0xff] }
 0x375   :  { %v2373_v17 = vmul.f32 1.442695, %v12526_v6  ;;  %5667 = vmatpush1.bf16.msra.mxu0 %v10545_v24  ;;  %vm2382_vm11 = vcmp.gt.f32.partialorder %v12526_v6, 0.0  ;;  %v10548_v9 = vcombine.high %v2880_v63, %v2884_v30 }
 0x376   :  { %11975 = vpow2.f32 %v2371_v12  ;;  %5668 = vmatprep.subr.bf16.mxu0 %v10554_v11  ;;  %v2892_v11 = vld [vmem:[#allocation11 + $0xf28] sm:$0xff]  ;;  %v10077_v12 = vcombine.low %v2409_v59, %v2413_v60  ;;  %v10579_v60 = vcombine.low %v2912_v35, %v2916_v38 }
 0x377   :  { %11977 = vpow2.f32 %v2373_v17  ;;  %5821 = vmatpush1.bf16.msra.mxu1 %v10507_v10  ;;  %v2888_v10 = vld [vmem:[#allocation11 + $0xf08] sm:$0xff] }
 0x378   :  { %5822 = vmatprep.subr.bf16.mxu1 %v10516_v15  ;;  %v10547_v15 = vcombine.low %v2880_v63, %v2884_v30  ;;  %v2896_v17 = vld [vmem:[#allocation11 + $0xf48] sm:$0xff]  ;;  %v2457_v63 = vld [vmem:[#allocation11 + $0x190] sm:$0xff] }
 0x379   :  { %5669 = vmatpush1.bf16.msra.mxu0 %v10553_v21  ;;  %v10555_v21 = vcombine.low %v2888_v10, %v2892_v11  ;;  %v2461_v30 = vld [vmem:[#allocation11 + $0x1b0] sm:$0xff] }
 0x37a   :  { %5670 = vmatprep.subr.bf16.mxu0 %v10562_v19  ;;  %v10564_v19 = vcombine.high %v2896_v17, %v2900_v20 }
 0x37b   :  { %5823 = vmatpush1.bf16.msra.mxu1 %v10515_v22  ;;  %v10094_v22 = vcombine.high %v2425_v52, %v2429_v16  ;;  %v2473_v16 = vld [vmem:[#allocation11 + $0x210] sm:$0xff] }
 0x37c   :  { %5824 = vmatprep.subr.bf16.mxu1 %v10524_v25  ;;  %v2433_v25 = vld [vmem:[#allocation11 + $0xd0] sm:$0xff] }
 0x37d   :  { %5671 = vmatpush1.bf16.msra.mxu0 %v10561_v32  ;;  %v10563_v32 = vcombine.low %v2896_v17, %v2900_v20  ;;  %v10101_v39 = vcombine.low %v2433_v25, %v2437_v26  ;;  %v2477_v17 = vld [vmem:[#allocation11 + $0x230] sm:$0xff]  ;;  %v2434_v20 = vld [vmem:[#allocation11 + $0xd8] sm:$0xff] }
 0x37e   :  { %5672 = vmatprep.subr.bf16.mxu0 %v10570_v41  ;;  %v10572_v41 = vcombine.high %v2904_v27, %v2908_v28 }
 0x37f   :  { %5825 = vmatpush1.bf16.msra.mxu1 %v10523_v33  ;;  %v10102_v33 = vcombine.high %v2433_v25, %v2437_v26  ;;  %v2481_v26 = vld [vmem:[#allocation11 + $0x250] sm:$0xff] }
 0x380   :  { %v11976_v55 = vpop.eup %11975  ;;  %5826 = vmatprep.subr.bf16.mxu1 %v10532_v46  ;;  %v2441_v46 = vld [vmem:[#allocation11 + $0x110] sm:$0xff] }
 0x381   :  { %v11978_v57 = vpop.eup %11977  ;;  %v10071_v58 = vadd.f32 -1.0, %v11976_v55  ;;  %5673 = vmatpush1.bf16.msra.mxu0 %v10569_v40  ;;  %v10571_v40 = vcombine.low %v2904_v27, %v2908_v28  ;;  %v2449_v55 = vld [vmem:[#allocation11 + $0x150] sm:$0xff]  ;;  %v10109_v59 = vcombine.low %v2441_v46, %v2445_v18  ;;  %v2442_v28 = vld [vmem:[#allocation11 + $0x118] sm:$0xff] }
 0x382   :  { %v10072_v61 = vadd.f32 -1.0, %v11978_v57  ;;  %5674 = vmatprep.subr.bf16.mxu0 %v10578_v54  ;;  %v10580_v54 = vcombine.high %v2912_v35, %v2916_v38  ;;  %v2410_v57 = vld [vmem:[#allocation11 + $0x18] sm:$0xff]  ;;  %v2485_v27 = vld [vmem:[#allocation11 + $0x270] sm:$0xff] }
 0x383   :  { %5827 = vmatpush1.bf16.msra.mxu1 %v10531_v53  ;;  %v2397_v49 = vsel %vm2381_vm10, %v12524_v4, %v10071_v58  ;;  %v10086_v4 = vcombine.high %v2417_v2, %v2421_v5  ;;  %v10110_v53 = vcombine.high %v2441_v46, %v2445_v18  ;;  %v2414_v58 = vld [vmem:[#allocation11 + $0x38] sm:$0xff]  ;;  %v10126_v2 = vcombine.high %v2457_v63, %v2461_v30  ;;  %v2489_v46 = vld [vmem:[#allocation11 + $0x290] sm:$0xff] }
 0x384   :  { %v2398_v0 = vsel %vm2382_vm11, %v12526_v6, %v10072_v61  ;;  %5828 = vmatprep.subr.bf16.mxu1 %v10540_v56  ;;  %v12536_v13 = vpack.c.bf16 %v2397_v49, %v2397_v49  ;;  %v10556_v6 = vcombine.high %v2888_v10, %v2892_v11  ;;  %v2453_v56 = vld [vmem:[#allocation11 + $0x170] sm:$0xff]  ;;  %v2422_v49 = vld [vmem:[#allocation11 + $0x78] sm:$0xff] }
 0x385   :  { %v12534_v24 = vpack.c.bf16 %v2398_v0, %v2398_v0  ;;  %5675 = vmatpush1.bf16.msra.mxu0 %v10577_v62  ;;  %v10118_v61 = vcombine.high %v2449_v55, %v2453_v56  ;;  %v10080_v62 = vcombine.high %v2410_v57, %v2414_v58  ;;  %v10117_v0 = vcombine.low %v2449_v55, %v2453_v56  ;;  %v2469_v10 = vld [vmem:[#allocation11 + $0x1f0] sm:$0xff]  ;;  %v2426_v11 = vld [vmem:[#allocation11 + $0x98] sm:$0xff] }
 0x386   :  { %5849 = vmatprep.subr.bf16.mxu0 %v10078_v1  ;;  %v10079_v1 = vcombine.low %v2410_v57, %v2414_v58  ;;  %v2493_v18 = vld [vmem:[#allocation11 + $0x2b0] sm:$0xff]  ;;  %v2450_v35 = vld [vmem:[#allocation11 + $0x158] sm:$0xff] }
 0x387   :  { %5676 = vmatprep.mubr.bf16.mxu0 %v12534_v24  ;;  %5829 = vmatpush1.bf16.msra.mxu1 %v10539_v23  ;;  %v2418_v23 = vld [vmem:[#allocation11 + $0x58] sm:$0xff]  ;;  %v2497_v55 = vld [vmem:[#allocation11 + $0x2d0] sm:$0xff] }
 0x388   :  { %5840 = vmatprep.mubr.bf16.mxu1 %v12534_v24  ;;  %5677 = vmatmul.mubr.bf16.vlgmr.msra.gmra.mrb[12].mxu0 %v12536_v13  ;;  %v10088_v5 = vcombine.high %v2418_v23, %v2422_v49  ;;  %v2454_v38 = vld [vmem:[#allocation11 + $0x178] sm:$0xff]  ;;  %v2501_v56 = vld [vmem:[#allocation11 + $0x2f0] sm:$0xff] }
 0x389   :  { %5830 = vmatprep.subr.bf16.mxu1 %v10548_v9  ;;  %5850 = vmatpush1.bf16.msra.mxu0 %v10077_v12  ;;  %v2465_v9 = vld [vmem:[#allocation11 + $0x1d0] sm:$0xff]  ;;  %v2430_v12 = vld [vmem:[#allocation11 + $0xb8] sm:$0xff] }
 0x38a   :  { %5881 = vmatprep.mubr.bf16.mxu0 %v12464_v31  ;;  %5851 = vmatprep.subr.bf16.mxu0 %v10086_v4  ;;  %v10087_v4 = vcombine.low %v2418_v23, %v2422_v49  ;;  %v10096_v52 = vcombine.high %v2426_v11, %v2430_v12  ;;  %v2458_v57 = vld [vmem:[#allocation11 + $0x198] sm:$0xff] }
 0x38b   :  { %5831 = vmatpush1.bf16.msra.mxu1 %v10547_v15  ;;  %v10125_v15 = vcombine.low %v2457_v63, %v2461_v30  ;;  %v2462_v58 = vld [vmem:[#allocation11 + $0x1b8] sm:$0xff]  ;;  %v2505_v63 = vld [vmem:[#allocation11 + $0x310] sm:$0xff] }
 0x38c   :  { %5832 = vmatprep.subr.bf16.mxu1 %v10556_v6  ;;  %v10134_v6 = vcombine.high %v2465_v9, %v2469_v10  ;;  %v2509_v30 = vld [vmem:[#allocation11 + $0x330] sm:$0xff]  ;;  %v2466_v23 = vld [vmem:[#allocation11 + $0x1d8] sm:$0xff] }
 0x38d   :  { %5852 = vmatpush1.bf16.msra.mxu0 %v10085_v3  ;;  %v2438_v3 = vld [vmem:[#allocation11 + $0xf8] sm:$0xff] }
 0x38e   :  { %5853 = vmatprep.subr.bf16.mxu0 %v10094_v22  ;;  %v10095_v22 = vcombine.low %v2426_v11, %v2430_v12  ;;  %v10104_v25 = vcombine.high %v2434_v20, %v2438_v3  ;;  %v2470_v49 = vld [vmem:[#allocation11 + $0x1f8] sm:$0xff] }
 0x38f   :  { %5833 = vmatpush1.bf16.msra.mxu1 %v10555_v21  ;;  %v10133_v21 = vcombine.low %v2465_v9, %v2469_v10  ;;  %v2513_v9 = vld [vmem:[#allocation11 + $0x350] sm:$0xff]  ;;  %v2474_v11 = vld [vmem:[#allocation11 + $0x218] sm:$0xff] }
 0x390   :  { %5834 = vmatprep.subr.bf16.mxu1 %v10564_v19  ;;  %v10142_v19 = vcombine.high %v2473_v16, %v2477_v17  ;;  %v2517_v10 = vld [vmem:[#allocation11 + $0x370] sm:$0xff]  ;;  %v2478_v12 = vld [vmem:[#allocation11 + $0x238] sm:$0xff] }
 0x391   :  { %5854 = vmatpush1.bf16.msra.mxu0 %v10093_v29  ;;  %v2446_v29 = vld [vmem:[#allocation11 + $0x138] sm:$0xff] }
 0x392   :  { %5855 = vmatprep.subr.bf16.mxu0 %v10102_v33  ;;  %v10150_v33 = vcombine.high %v2481_v26, %v2485_v27 }
 0x393   :  { %5835 = vmatpush1.bf16.msra.mxu1 %v10563_v32  ;;  %v10103_v32 = vcombine.low %v2434_v20, %v2438_v3  ;;  %v2482_v20 = vld [vmem:[#allocation11 + $0x258] sm:$0xff] }
 0x394   :  { %5836 = vmatprep.subr.bf16.mxu1 %v10572_v41  ;;  %v10112_v41 = vcombine.high %v2442_v28, %v2446_v29  ;;  %v2486_v3 = vld [vmem:[#allocation11 + $0x278] sm:$0xff] }
 0x395   :  { %5856 = vmatpush1.bf16.msra.mxu0 %v10101_v39  ;;  %v10149_v39 = vcombine.low %v2481_v26, %v2485_v27  ;;  %v2529_v26 = vld [vmem:[#allocation11 + $0x3d0] sm:$0xff] }
 0x396   :  { %5857 = vmatprep.subr.bf16.mxu0 %v10110_v53  ;;  %v10158_v53 = vcombine.high %v2489_v46, %v2493_v18  ;;  %v2533_v27 = vld [vmem:[#allocation11 + $0x3f0] sm:$0xff] }
 0x397   :  { %5837 = vmatpush1.bf16.msra.mxu1 %v10571_v40  ;;  %v10111_v40 = vcombine.low %v2442_v28, %v2446_v29  ;;  %v2490_v28 = vld [vmem:[#allocation11 + $0x298] sm:$0xff] }
 0x398   :  { %5838 = vmatprep.subr.bf16.mxu1 %v10580_v54  ;;  %v10120_v54 = vcombine.high %v2450_v35, %v2454_v38  ;;  %v2494_v29 = vld [vmem:[#allocation11 + $0x2b8] sm:$0xff] }
 0x399   :  { %5858 = vmatpush1.bf16.msra.mxu0 %v10109_v59  ;;  %v10157_v59 = vcombine.low %v2489_v46, %v2493_v18  ;;  %v2537_v46 = vld [vmem:[#allocation11 + $0x410] sm:$0xff] }
 0x39a   :  { %5859 = vmatprep.subr.bf16.mxu0 %v10118_v61  ;;  %v10166_v61 = vcombine.high %v2497_v55, %v2501_v56  ;;  %v2541_v18 = vld [vmem:[#allocation11 + $0x430] sm:$0xff] }
 0x39b   :  { %5839 = vmatpush1.bf16.msra.mxu1 %v10579_v60  ;;  %v10119_v60 = vcombine.low %v2450_v35, %v2454_v38  ;;  %v2498_v35 = vld [vmem:[#allocation11 + $0x2d8] sm:$0xff] }
 0x39c   :  { %6013 = vmatprep.subr.bf16.mxu1 %v10080_v62  ;;  %v10128_v62 = vcombine.high %v2458_v57, %v2462_v58  ;;  %v2502_v38 = vld [vmem:[#allocation11 + $0x2f8] sm:$0xff] }
 0x39d   :  { %5860 = vmatpush1.bf16.msra.mxu0 %v10117_v0  ;;  %v10165_v0 = vcombine.low %v2497_v55, %v2501_v56  ;;  %v2545_v55 = vld [vmem:[#allocation11 + $0x450] sm:$0xff] }
 0x39e   :  { %5841 = vmatmul.mubr.bf16.vlgmr.msra.gmra.mrb[16].mxu1 %v12536_v13  ;;  %5861 = vmatprep.subr.bf16.mxu0 %v10126_v2  ;;  %v10174_v2 = vcombine.high %v2505_v63, %v2509_v30  ;;  %v2549_v56 = vld [vmem:[#allocation11 + $0x470] sm:$0xff] }
 0x39f   :  { %6014 = vmatpush1.bf16.msra.mxu1 %v10079_v1  ;;  %6045 = vmatprep.mubr.bf16.mxu1 %v12464_v31  ;;  %v10141_v31 = vcombine.low %v2473_v16, %v2477_v17  ;;  %v10127_v1 = vcombine.low %v2458_v57, %v2462_v58  ;;  %v2521_v16 = vld [vmem:[#allocation11 + $0x390] sm:$0xff]  ;;  %v2506_v57 = vld [vmem:[#allocation11 + $0x318] sm:$0xff] }
 0x3a0   :  { %6015 = vmatprep.subr.bf16.mxu1 %v10088_v5  ;;  %v10136_v5 = vcombine.high %v2466_v23, %v2470_v49  ;;  %v2525_v17 = vld [vmem:[#allocation11 + $0x3b0] sm:$0xff]  ;;  %v2510_v58 = vld [vmem:[#allocation11 + $0x338] sm:$0xff] }
 0x3a1   :  { %5862 = vmatpush1.bf16.msra.mxu0 %v10125_v15  ;;  %v10173_v15 = vcombine.low %v2505_v63, %v2509_v30  ;;  %v2553_v63 = vld [vmem:[#allocation11 + $0x490] sm:$0xff] }
 0x3a2   :  { %5863 = vmatprep.subr.bf16.mxu0 %v10134_v6  ;;  %v10182_v6 = vcombine.high %v2513_v9, %v2517_v10  ;;  %v2557_v30 = vld [vmem:[#allocation11 + $0x4b0] sm:$0xff] }
 0x3a3   :  { %6016 = vmatpush1.bf16.msra.mxu1 %v10087_v4  ;;  %v10135_v4 = vcombine.low %v2466_v23, %v2470_v49  ;;  %v2514_v23 = vld [vmem:[#allocation11 + $0x358] sm:$0xff] }
 0x3a4   :  { %6017 = vmatprep.subr.bf16.mxu1 %v10096_v52  ;;  %v10144_v52 = vcombine.high %v2474_v11, %v2478_v12  ;;  %v2518_v49 = vld [vmem:[#allocation11 + $0x378] sm:$0xff] }
 0x3a5   :  { %5864 = vmatpush1.bf16.msra.mxu0 %v10133_v21  ;;  %v10181_v21 = vcombine.low %v2513_v9, %v2517_v10  ;;  %v2561_v9 = vld [vmem:[#allocation11 + $0x4d0] sm:$0xff] }
 0x3a6   :  { %5865 = vmatprep.subr.bf16.mxu0 %v10142_v19  ;;  %v10190_v19 = vcombine.high %v2521_v16, %v2525_v17  ;;  %v2565_v10 = vld [vmem:[#allocation11 + $0x4f0] sm:$0xff] }
 0x3a7   :  { %6018 = vmatpush1.bf16.msra.mxu1 %v10095_v22  ;;  %v10143_v22 = vcombine.low %v2474_v11, %v2478_v12  ;;  %v2522_v11 = vld [vmem:[#allocation11 + $0x398] sm:$0xff] }
 0x3a8   :  { %6019 = vmatprep.subr.bf16.mxu1 %v10104_v25  ;;  %v10152_v25 = vcombine.high %v2482_v20, %v2486_v3  ;;  %v2526_v12 = vld [vmem:[#allocation11 + $0x3b8] sm:$0xff] }
 0x3a9   :  { %5866 = vmatpush1.bf16.msra.mxu0 %v10141_v31  ;;  %v10189_v31 = vcombine.low %v2521_v16, %v2525_v17  ;;  %v2569_v16 = vld [vmem:[#allocation11 + $0x510] sm:$0xff] }
 0x3aa   :  { %5867 = vmatprep.subr.bf16.mxu0 %v10150_v33  ;;  %v10198_v33 = vcombine.high %v2529_v26, %v2533_v27  ;;  %v2573_v17 = vld [vmem:[#allocation11 + $0x530] sm:$0xff] }
 0x3ab   :  { %6020 = vmatpush1.bf16.msra.mxu1 %v10103_v32  ;;  %v10151_v32 = vcombine.low %v2482_v20, %v2486_v3  ;;  %v2530_v20 = vld [vmem:[#allocation11 + $0x3d8] sm:$0xff] }
 0x3ac   :  { %6021 = vmatprep.subr.bf16.mxu1 %v10112_v41  ;;  %v10160_v41 = vcombine.high %v2490_v28, %v2494_v29  ;;  %v2534_v3 = vld [vmem:[#allocation11 + $0x3f8] sm:$0xff] }
 0x3ad   :  { %5868 = vmatpush1.bf16.msra.mxu0 %v10149_v39  ;;  %v10197_v39 = vcombine.low %v2529_v26, %v2533_v27  ;;  %v2577_v26 = vld [vmem:[#allocation11 + $0x550] sm:$0xff] }
 0x3ae   :  { %5869 = vmatprep.subr.bf16.mxu0 %v10158_v53  ;;  %v10206_v53 = vcombine.high %v2537_v46, %v2541_v18  ;;  %v2581_v27 = vld [vmem:[#allocation11 + $0x570] sm:$0xff] }
 0x3af   :  { %6022 = vmatpush1.bf16.msra.mxu1 %v10111_v40  ;;  %v10159_v40 = vcombine.low %v2490_v28, %v2494_v29  ;;  %v2538_v28 = vld [vmem:[#allocation11 + $0x418] sm:$0xff] }
 0x3b0   :  { %6023 = vmatprep.subr.bf16.mxu1 %v10120_v54  ;;  %v10168_v54 = vcombine.high %v2498_v35, %v2502_v38  ;;  %v2542_v29 = vld [vmem:[#allocation11 + $0x438] sm:$0xff] }
 0x3b1   :  { %5870 = vmatpush1.bf16.msra.mxu0 %v10157_v59  ;;  %v10205_v59 = vcombine.low %v2537_v46, %v2541_v18  ;;  %v2585_v46 = vld [vmem:[#allocation11 + $0x590] sm:$0xff] }
 0x3b2   :  { %5871 = vmatprep.subr.bf16.mxu0 %v10166_v61  ;;  %v10214_v61 = vcombine.high %v2545_v55, %v2549_v56  ;;  %v2589_v18 = vld [vmem:[#allocation11 + $0x5b0] sm:$0xff] }
 0x3b3   :  { %6024 = vmatpush1.bf16.msra.mxu1 %v10119_v60  ;;  %v10167_v60 = vcombine.low %v2498_v35, %v2502_v38  ;;  %v2546_v35 = vld [vmem:[#allocation11 + $0x458] sm:$0xff] }
 0x3b4   :  { %6025 = vmatprep.subr.bf16.mxu1 %v10128_v62  ;;  %v10176_v62 = vcombine.high %v2506_v57, %v2510_v58  ;;  %v2550_v38 = vld [vmem:[#allocation11 + $0x478] sm:$0xff] }
 0x3b5   :  { %5872 = vmatpush1.bf16.msra.mxu0 %v10165_v0  ;;  %v10213_v0 = vcombine.low %v2545_v55, %v2549_v56  ;;  %v2593_v55 = vld [vmem:[#allocation11 + $0x5d0] sm:$0xff] }
 0x3b6   :  { %5873 = vmatprep.subr.bf16.mxu0 %v10174_v2  ;;  %v10222_v2 = vcombine.high %v2553_v63, %v2557_v30  ;;  %v2597_v56 = vld [vmem:[#allocation11 + $0x5f0] sm:$0xff] }
 0x3b7   :  { %6026 = vmatpush1.bf16.msra.mxu1 %v10127_v1  ;;  %v10175_v1 = vcombine.low %v2506_v57, %v2510_v58  ;;  %v2554_v57 = vld [vmem:[#allocation11 + $0x498] sm:$0xff] }
 0x3b8   :  { %6027 = vmatprep.subr.bf16.mxu1 %v10136_v5  ;;  %v10184_v5 = vcombine.high %v2514_v23, %v2518_v49  ;;  %v2558_v58 = vld [vmem:[#allocation11 + $0x4b8] sm:$0xff] }
 0x3b9   :  { %5874 = vmatpush1.bf16.msra.mxu0 %v10173_v15  ;;  %v10221_v15 = vcombine.low %v2553_v63, %v2557_v30  ;;  %v2601_v63 = vld [vmem:[#allocation11 + $0x610] sm:$0xff] }
 0x3ba   :  { %5875 = vmatprep.subr.bf16.mxu0 %v10182_v6  ;;  %v10230_v6 = vcombine.high %v2561_v9, %v2565_v10  ;;  %v2605_v30 = vld [vmem:[#allocation11 + $0x630] sm:$0xff] }
 0x3bb   :  { %6028 = vmatpush1.bf16.msra.mxu1 %v10135_v4  ;;  %v10183_v4 = vcombine.low %v2514_v23, %v2518_v49  ;;  %v2562_v23 = vld [vmem:[#allocation11 + $0x4d8] sm:$0xff] }
 0x3bc   :  { %6029 = vmatprep.subr.bf16.mxu1 %v10144_v52  ;;  %v10192_v52 = vcombine.high %v2522_v11, %v2526_v12  ;;  %v2566_v49 = vld [vmem:[#allocation11 + $0x4f8] sm:$0xff] }
 0x3bd   :  { %5876 = vmatpush1.bf16.msra.mxu0 %v10181_v21  ;;  %v10229_v21 = vcombine.low %v2561_v9, %v2565_v10  ;;  %v2613_v9 = vld [vmem:[#allocation11 + $0x670] sm:$0xff]  ;;  %v2570_v10 = vld [vmem:[#allocation11 + $0x518] sm:$0xff] }
 0x3be   :  { %5877 = vmatprep.subr.bf16.mxu0 %v10190_v19  ;;  %v10238_v19 = vcombine.high %v2569_v16, %v2573_v17 }
 0x3bf   :  { %6030 = vmatpush1.bf16.msra.mxu1 %v10143_v22  ;;  %v10191_v22 = vcombine.low %v2522_v11, %v2526_v12  ;;  %v2574_v11 = vld [vmem:[#allocation11 + $0x538] sm:$0xff]  ;;  %v10231_v12 = vcombine.low %v2562_v23, %v2566_v49 }
 0x3c0   :  { %6031 = vmatprep.subr.bf16.mxu1 %v10152_v25  ;;  %v10200_v25 = vcombine.high %v2530_v20, %v2534_v3 }
 0x3c1   :  { %5878 = vmatpush1.bf16.msra.mxu0 %v10189_v31  ;;  %v10237_v31 = vcombine.low %v2569_v16, %v2573_v17  ;;  %v2578_v16 = vld [vmem:[#allocation11 + $0x558] sm:$0xff] }
 0x3c2   :  { %5879 = vmatprep.subr.bf16.mxu0 %v10198_v33  ;;  %v10246_v33 = vcombine.high %v2577_v26, %v2581_v27  ;;  %v2582_v17 = vld [vmem:[#allocation11 + $0x578] sm:$0xff] }
 0x3c3   :  { %6032 = vmatpush1.bf16.msra.mxu1 %v10151_v32  ;;  %v10199_v32 = vcombine.low %v2530_v20, %v2534_v3  ;;  %v10239_v3 = vcombine.low %v2570_v10, %v2574_v11 }
 0x3c4   :  { %6033 = vmatprep.subr.bf16.mxu1 %v10160_v41  ;;  %v10208_v41 = vcombine.high %v2538_v28, %v2542_v29 }
 0x3c5   :  { %5880 = vmatpush1.bf16.msra.mxu0 %v10197_v39  ;;  %v10245_v39 = vcombine.low %v2577_v26, %v2581_v27  ;;  %v2586_v26 = vld [vmem:[#allocation11 + $0x598] sm:$0xff] }
 0x3c6   :  { %5890 = vmatprep.subr.bf16.mxu0 %v10206_v53  ;;  %v10254_v53 = vcombine.high %v2585_v46, %v2589_v18  ;;  %v2590_v27 = vld [vmem:[#allocation11 + $0x5b8] sm:$0xff] }
 0x3c7   :  { %6034 = vmatpush1.bf16.msra.mxu1 %v10159_v40  ;;  %v10207_v40 = vcombine.low %v2538_v28, %v2542_v29  ;;  %v10247_v29 = vcombine.low %v2578_v16, %v2582_v17 }
 0x3c8   :  { %6035 = vmatprep.subr.bf16.mxu1 %v10168_v54  ;;  %5882 = vmatmul.mubr.bf16.vlgmr.msra.gmra.mrb[16].mxu0 %v12468_v37  ;;  %v10216_v54 = vcombine.high %v2546_v35, %v2550_v38 }
 0x3c9   :  { %5891 = vmatpush1.bf16.msra.mxu0 %v10205_v59  ;;  %5922 = vmatprep.mubr.bf16.mxu0 %v12489_v34  ;;  %v10253_v59 = vcombine.low %v2585_v46, %v2589_v18  ;;  %v2594_v46 = vld [vmem:[#allocation11 + $0x5d8] sm:$0xff] }
 0x3ca   :  { %5892 = vmatprep.subr.bf16.mxu0 %v10214_v61  ;;  %v10262_v61 = vcombine.high %v2593_v55, %v2597_v56  ;;  %v2598_v18 = vld [vmem:[#allocation11 + $0x5f8] sm:$0xff] }
 0x3cb   :  { %6036 = vmatpush1.bf16.msra.mxu1 %v10167_v60  ;;  %v10215_v60 = vcombine.low %v2546_v35, %v2550_v38  ;;  %v10255_v38 = vcombine.low %v2586_v26, %v2590_v27 }
 0x3cc   :  { %6037 = vmatprep.subr.bf16.mxu1 %v10176_v62  ;;  %v10224_v62 = vcombine.high %v2554_v57, %v2558_v58 }
 0x3cd   :  { %5893 = vmatpush1.bf16.msra.mxu0 %v10213_v0  ;;  %v10261_v0 = vcombine.low %v2593_v55, %v2597_v56  ;;  %v2602_v55 = vld [vmem:[#allocation11 + $0x618] sm:$0xff] }
 0x3ce   :  { %5894 = vmatprep.subr.bf16.mxu0 %v10222_v2  ;;  %v10270_v2 = vcombine.high %v2601_v63, %v2605_v30  ;;  %v2606_v56 = vld [vmem:[#allocation11 + $0x638] sm:$0xff] }
 0x3cf   :  { %6038 = vmatpush1.bf16.msra.mxu1 %v10175_v1  ;;  %v10223_v1 = vcombine.low %v2554_v57, %v2558_v58  ;;  %v10263_v58 = vcombine.low %v2594_v46, %v2598_v18 }
 0x3d0   :  { %6039 = vmatprep.subr.bf16.mxu1 %v10184_v5  ;;  %v2609_v5 = vld [vmem:[#allocation11 + $0x650] sm:$0xff] }
 0x3d1   :  { %5895 = vmatpush1.bf16.msra.mxu0 %v10221_v15  ;;  %v10278_v15 = vcombine.high %v2609_v5, %v2613_v9  ;;  %v10277_v20 = vcombine.low %v2609_v5, %v2613_v9  ;;  %v2618_v5 = vld [vmem:[#allocation11 + $0x698] sm:$0xff] }
 0x3d2   :  { %5896 = vmatprep.subr.bf16.mxu0 %v10230_v6  ;;  %v2617_v6 = vld [vmem:[#allocation11 + $0x690] sm:$0xff]  ;;  %v2622_v9 = vld [vmem:[#allocation11 + $0x6b8] sm:$0xff] }
 0x3d3   :  { %6040 = vmatpush1.bf16.msra.mxu1 %v10183_v4  ;;  %v10240_v4 = vcombine.high %v2570_v10, %v2574_v11 }
 0x3d4   :  { %6041 = vmatprep.subr.bf16.mxu1 %v10192_v52  ;;  %v2621_v52 = vld [vmem:[#allocation11 + $0x6b0] sm:$0xff] }
 0x3d5   :  { %5897 = vmatpush1.bf16.msra.mxu0 %v10229_v21  ;;  %v10286_v21 = vcombine.high %v2617_v6, %v2621_v52  ;;  %v10285_v28 = vcombine.low %v2617_v6, %v2621_v52  ;;  %v2626_v6 = vld [vmem:[#allocation11 + $0x6d8] sm:$0xff] }
 0x3d6   :  { %5898 = vmatprep.subr.bf16.mxu0 %v10238_v19  ;;  %v2625_v19 = vld [vmem:[#allocation11 + $0x6d0] sm:$0xff]  ;;  %v2630_v52 = vld [vmem:[#allocation11 + $0x6f8] sm:$0xff] }
 0x3d7   :  { %6042 = vmatpush1.bf16.msra.mxu1 %v10191_v22  ;;  %v10248_v22 = vcombine.high %v2578_v16, %v2582_v17  ;;  %v10287_v17 = vcombine.low %v2618_v5, %v2622_v9 }
 0x3d8   :  { %6043 = vmatprep.subr.bf16.mxu1 %v10200_v25  ;;  %v2629_v25 = vld [vmem:[#allocation11 + $0x6f0] sm:$0xff] }
 0x3d9   :  { %5899 = vmatpush1.bf16.msra.mxu0 %v10237_v31  ;;  %v10294_v31 = vcombine.high %v2625_v19, %v2629_v25  ;;  %v10293_v35 = vcombine.low %v2625_v19, %v2629_v25  ;;  %v2634_v19 = vld [vmem:[#allocation11 + $0x718] sm:$0xff] }
 0x3da   :  { %5900 = vmatprep.subr.bf16.mxu0 %v10246_v33  ;;  %v2633_v33 = vld [vmem:[#allocation11 + $0x710] sm:$0xff]  ;;  %v2638_v25 = vld [vmem:[#allocation11 + $0x738] sm:$0xff] }
 0x3db   :  { %6044 = vmatpush1.bf16.msra.mxu1 %v10199_v32  ;;  %v10256_v32 = vcombine.high %v2586_v26, %v2590_v27  ;;  %v10295_v27 = vcombine.low %v2626_v6, %v2630_v52 }
 0x3dc   :  { %6054 = vmatprep.subr.bf16.mxu1 %v10208_v41  ;;  %v2637_v41 = vld [vmem:[#allocation11 + $0x730] sm:$0xff] }
 0x3dd   :  { %5901 = vmatpush1.bf16.msra.mxu0 %v10245_v39  ;;  %v10302_v39 = vcombine.high %v2633_v33, %v2637_v41  ;;  %v10301_v57 = vcombine.low %v2633_v33, %v2637_v41  ;;  %v2642_v33 = vld [vmem:[#allocation11 + $0x758] sm:$0xff] }
 0x3de   :  { %6046 = vmatmul.mubr.bf16.vlgmr.msra.gmra.mrb[20].mxu1 %v12468_v37  ;;  %5902 = vmatprep.subr.bf16.mxu0 %v10254_v53  ;;  %v10232_v37 = vcombine.high %v2562_v23, %v2566_v49  ;;  %v2641_v53 = vld [vmem:[#allocation11 + $0x750] sm:$0xff]  ;;  %v10271_v49 = vcombine.low %v2602_v55, %v2606_v56  ;;  %v2646_v41 = vld [vmem:[#allocation11 + $0x778] sm:$0xff] }
 0x3df   :  { %6055 = vmatpush1.bf16.msra.mxu1 %v10207_v40  ;;  %6086 = vmatprep.mubr.bf16.mxu1 %v12489_v34  ;;  %v10269_v34 = vcombine.low %v2601_v63, %v2605_v30  ;;  %v10264_v40 = vcombine.high %v2594_v46, %v2598_v18  ;;  %v2610_v63 = vld [vmem:[#allocation11 + $0x658] sm:$0xff]  ;;  %v10303_v18 = vcombine.low %v2634_v19, %v2638_v25 }
 0x3e0   :  { %6056 = vmatprep.subr.bf16.mxu1 %v10216_v54  ;;  %v2645_v54 = vld [vmem:[#allocation11 + $0x770] sm:$0xff]  ;;  %v2614_v30 = vld [vmem:[#allocation11 + $0x678] sm:$0xff] }
 0x3e1   :  { %5903 = vmatpush1.bf16.msra.mxu0 %v10253_v59  ;;  %v10310_v59 = vcombine.high %v2641_v53, %v2645_v54  ;;  %v10309_v23 = vcombine.low %v2641_v53, %v2645_v54  ;;  %v10279_v11 = vcombine.low %v2610_v63, %v2614_v30  ;;  %v2650_v53 = vld [vmem:[#allocation11 + $0x798] sm:$0xff] }
 0x3e2   :  { %5904 = vmatprep.subr.bf16.mxu0 %v10262_v61  ;;  %v2649_v61 = vld [vmem:[#allocation11 + $0x790] sm:$0xff]  ;;  %v2654_v54 = vld [vmem:[#allocation11 + $0x7b8] sm:$0xff] }
 0x3e3   :  { %6057 = vmatpush1.bf16.msra.mxu1 %v10215_v60  ;;  %v10272_v60 = vcombine.high %v2602_v55, %v2606_v56  ;;  %v10311_v56 = vcombine.low %v2642_v33, %v2646_v41 }
 0x3e4   :  { %6058 = vmatprep.subr.bf16.mxu1 %v10224_v62  ;;  %v2653_v62 = vld [vmem:[#allocation11 + $0x7b0] sm:$0xff] }
 0x3e5   :  { %5905 = vmatpush1.bf16.msra.mxu0 %v10261_v0  ;;  %v10318_v0 = vcombine.high %v2649_v61, %v2653_v62  ;;  %v10317_v10 = vcombine.low %v2649_v61, %v2653_v62  ;;  %v2658_v61 = vld [vmem:[#allocation11 + $0x7d8] sm:$0xff] }
 0x3e6   :  { %5906 = vmatprep.subr.bf16.mxu0 %v10270_v2  ;;  %v2657_v2 = vld [vmem:[#allocation11 + $0x7d0] sm:$0xff]  ;;  %v2662_v62 = vld [vmem:[#allocation11 + $0x7f8] sm:$0xff] }
 0x3e7   :  { %6059 = vmatpush1.bf16.msra.mxu1 %v10223_v1  ;;  %v10280_v1 = vcombine.high %v2610_v63, %v2614_v30  ;;  %v10319_v30 = vcombine.low %v2650_v53, %v2654_v54 }
 0x3e8   :  { %6060 = vmatprep.subr.bf16.mxu1 %v10232_v37  ;;  %v2661_v37 = vld [vmem:[#allocation11 + $0x7f0] sm:$0xff] }
 0x3e9   :  { %5907 = vmatpush1.bf16.msra.mxu0 %v10269_v34  ;;  %v10326_v34 = vcombine.high %v2657_v2, %v2661_v37  ;;  %v10325_v16 = vcombine.low %v2657_v2, %v2661_v37  ;;  %v2666_v2 = vld [vmem:[#allocation11 + $0x818] sm:$0xff] }
 0x3ea   :  { %5908 = vmatprep.subr.bf16.mxu0 %v10278_v15  ;;  %v2665_v15 = vld [vmem:[#allocation11 + $0x810] sm:$0xff]  ;;  %v2670_v37 = vld [vmem:[#allocation11 + $0x838] sm:$0xff] }
 0x3eb   :  { %6061 = vmatpush1.bf16.msra.mxu1 %v10231_v12  ;;  %v10288_v12 = vcombine.high %v2618_v5, %v2622_v9  ;;  %v10327_v9 = vcombine.low %v2658_v61, %v2662_v62 }
 0x3ec   :  { %6062 = vmatprep.subr.bf16.mxu1 %v10240_v4  ;;  %v2669_v4 = vld [vmem:[#allocation11 + $0x830] sm:$0xff] }
 0x3ed   :  { %5909 = vmatpush1.bf16.msra.mxu0 %v10277_v20  ;;  %v10334_v20 = vcombine.high %v2665_v15, %v2669_v4  ;;  %v10333_v26 = vcombine.low %v2665_v15, %v2669_v4  ;;  %v2674_v15 = vld [vmem:[#allocation11 + $0x858] sm:$0xff] }
 0x3ee   :  { %5910 = vmatprep.subr.bf16.mxu0 %v10286_v21  ;;  %v2673_v21 = vld [vmem:[#allocation11 + $0x850] sm:$0xff]  ;;  %v2678_v4 = vld [vmem:[#allocation11 + $0x878] sm:$0xff] }
 0x3ef   :  { %6063 = vmatpush1.bf16.msra.mxu1 %v10239_v3  ;;  %v10296_v3 = vcombine.high %v2626_v6, %v2630_v52  ;;  %v10335_v52 = vcombine.low %v2666_v2, %v2670_v37 }
 0x3f0   :  { %6064 = vmatprep.subr.bf16.mxu1 %v10248_v22  ;;  %v2677_v22 = vld [vmem:[#allocation11 + $0x870] sm:$0xff] }
 0x3f1   :  { %5911 = vmatpush1.bf16.msra.mxu0 %v10285_v28  ;;  %v10342_v28 = vcombine.high %v2673_v21, %v2677_v22  ;;  %v10341_v46 = vcombine.low %v2673_v21, %v2677_v22  ;;  %v2682_v21 = vld [vmem:[#allocation11 + $0x898] sm:$0xff] }
 0x3f2   :  { %5912 = vmatprep.subr.bf16.mxu0 %v10294_v31  ;;  %v2681_v31 = vld [vmem:[#allocation11 + $0x890] sm:$0xff]  ;;  %v2686_v22 = vld [vmem:[#allocation11 + $0x8b8] sm:$0xff] }
 0x3f3   :  { %6065 = vmatpush1.bf16.msra.mxu1 %v10247_v29  ;;  %v10304_v29 = vcombine.high %v2634_v19, %v2638_v25  ;;  %v10343_v25 = vcombine.low %v2674_v15, %v2678_v4 }
 0x3f4   :  { %6066 = vmatprep.subr.bf16.mxu1 %v10256_v32  ;;  %v2685_v32 = vld [vmem:[#allocation11 + $0x8b0] sm:$0xff] }
 0x3f5   :  { %5913 = vmatpush1.bf16.msra.mxu0 %v10293_v35  ;;  %v10350_v35 = vcombine.high %v2681_v31, %v2685_v32  ;;  %v10349_v55 = vcombine.low %v2681_v31, %v2685_v32  ;;  %v2690_v31 = vld [vmem:[#allocation11 + $0x8d8] sm:$0xff] }
 0x3f6   :  { %5914 = vmatprep.subr.bf16.mxu0 %v10302_v39  ;;  %v2689_v39 = vld [vmem:[#allocation11 + $0x8d0] sm:$0xff]  ;;  %v2694_v32 = vld [vmem:[#allocation11 + $0x8f8] sm:$0xff] }
 0x3f7   :  { %6067 = vmatpush1.bf16.msra.mxu1 %v10255_v38  ;;  %v10312_v38 = vcombine.high %v2642_v33, %v2646_v41  ;;  %v10351_v41 = vcombine.low %v2682_v21, %v2686_v22 }
 0x3f8   :  { %6068 = vmatprep.subr.bf16.mxu1 %v10264_v40  ;;  %v2693_v40 = vld [vmem:[#allocation11 + $0x8f0] sm:$0xff] }
 0x3f9   :  { %5915 = vmatpush1.bf16.msra.mxu0 %v10301_v57  ;;  %v10358_v57 = vcombine.high %v2689_v39, %v2693_v40  ;;  %v10357_v63 = vcombine.low %v2689_v39, %v2693_v40  ;;  %v2702_v39 = vld [vmem:[#allocation11 + $0x938] sm:$0xff]  ;;  %v10359_v40 = vcombine.low %v2690_v31, %v2694_v32 }
 0x3fa   :  { %5916 = vmatprep.subr.bf16.mxu0 %v10310_v59  ;;  %v2697_v59 = vld [vmem:[#allocation11 + $0x910] sm:$0xff] }
 0x3fb   :  { %6069 = vmatpush1.bf16.msra.mxu1 %v10263_v58  ;;  %v10320_v58 = vcombine.high %v2650_v53, %v2654_v54 }
 0x3fc   :  { %6070 = vmatprep.subr.bf16.mxu1 %v10272_v60  ;;  %v2701_v60 = vld [vmem:[#allocation11 + $0x930] sm:$0xff] }
 0x3fd   :  { %5917 = vmatpush1.bf16.msra.mxu0 %v10309_v23  ;;  %v10366_v23 = vcombine.high %v2697_v59, %v2701_v60  ;;  %v10365_v5 = vcombine.low %v2697_v59, %v2701_v60 }
 0x3fe   :  { %5918 = vmatprep.subr.bf16.mxu0 %v10318_v0  ;;  %v2705_v0 = vld [vmem:[#allocation11 + $0x950] sm:$0xff] }
 0x3ff   :  { %6071 = vmatpush1.bf16.msra.mxu1 %v10271_v49  ;;  %v10328_v49 = vcombine.high %v2658_v61, %v2662_v62 }
 0x400   :  { %6072 = vmatprep.subr.bf16.mxu1 %v10280_v1  ;;  %v2709_v1 = vld [vmem:[#allocation11 + $0x970] sm:$0xff] }
 0x401   :  { %5919 = vmatpush1.bf16.msra.mxu0 %v10317_v10  ;;  %v10374_v10 = vcombine.high %v2705_v0, %v2709_v1  ;;  %v10373_v6 = vcombine.low %v2705_v0, %v2709_v1 }
 0x402   :  { %5920 = vmatprep.subr.bf16.mxu0 %v10326_v34  ;;  %v2713_v34 = vld [vmem:[#allocation11 + $0x990] sm:$0xff] }
 0x403   :  { %6073 = vmatpush1.bf16.msra.mxu1 %v10279_v11  ;;  %v10336_v11 = vcombine.high %v2666_v2, %v2670_v37 }
 0x404   :  { %6074 = vmatprep.subr.bf16.mxu1 %v10288_v12  ;;  %v2717_v12 = vld [vmem:[#allocation11 + $0x9b0] sm:$0xff] }
 0x405   :  { %5921 = vmatpush1.bf16.msra.mxu0 %v10325_v16  ;;  %v10382_v16 = vcombine.high %v2713_v34, %v2717_v12  ;;  %v10381_v19 = vcombine.low %v2713_v34, %v2717_v12 }
 0x406   :  { %5931 = vmatprep.subr.bf16.mxu0 %v10334_v20  ;;  %v2721_v20 = vld [vmem:[#allocation11 + $0x9d0] sm:$0xff] }
 0x407   :  { %6075 = vmatpush1.bf16.msra.mxu1 %v10287_v17  ;;  %v10344_v17 = vcombine.high %v2674_v15, %v2678_v4 }
 0x408   :  { %6076 = vmatprep.subr.bf16.mxu1 %v10296_v3  ;;  %5923 = vmatmul.mubr.bf16.vlgmr.msra.gmra.mrb[16].mxu0 %v12491_v36  ;;  %v2725_v3 = vld [vmem:[#allocation11 + $0x9f0] sm:$0xff] }
 0x409   :  { %5932 = vmatpush1.bf16.msra.mxu0 %v10333_v26  ;;  %5963 = vmatprep.mubr.bf16.mxu0 %v12493_v8  ;;  %v10390_v26 = vcombine.high %v2721_v20, %v2725_v3  ;;  %v10389_v33 = vcombine.low %v2721_v20, %v2725_v3 }
 0x40a   :  { %5933 = vmatprep.subr.bf16.mxu0 %v10342_v28  ;;  %v2729_v28 = vld [vmem:[#allocation11 + $0xa10] sm:$0xff] }
 0x40b   :  { %6077 = vmatpush1.bf16.msra.mxu1 %v10295_v27  ;;  %v10352_v27 = vcombine.high %v2682_v21, %v2686_v22 }
 0x40c   :  { %6078 = vmatprep.subr.bf16.mxu1 %v10304_v29  ;;  %v2733_v29 = vld [vmem:[#allocation11 + $0xa30] sm:$0xff] }
 0x40d   :  { %5934 = vmatpush1.bf16.msra.mxu0 %v10341_v46  ;;  %v10398_v46 = vcombine.high %v2729_v28, %v2733_v29 }
 0x40e   :  { %5935 = vmatprep.subr.bf16.mxu0 %v10350_v35  ;;  %v2741_v35 = vld [vmem:[#allocation11 + $0xa70] sm:$0xff] }
 0x40f   :  { %6079 = vmatpush1.bf16.msra.mxu1 %v10303_v18  ;;  %v2737_v18 = vld [vmem:[#allocation11 + $0xa50] sm:$0xff] }
 0x410   :  { %6080 = vmatprep.subr.bf16.mxu1 %v10312_v38  ;;  %v2698_v38 = vld [vmem:[#allocation11 + $0x918] sm:$0xff]  ;;  %v10406_v53 = vcombine.high %v2737_v18, %v2741_v35  ;;  %v10405_v59 = vcombine.low %v2737_v18, %v2741_v35 }
 0x411   :  { %5936 = vmatpush1.bf16.msra.mxu0 %v10349_v55  ;;  %v10368_v54 = vcombine.high %v2698_v38, %v2702_v39  ;;  %v2745_v55 = vld [vmem:[#allocation11 + $0xa90] sm:$0xff]  ;;  %v10367_v60 = vcombine.low %v2698_v38, %v2702_v39 }
 0x412   :  { %5937 = vmatprep.subr.bf16.mxu0 %v10358_v57  ;;  %v2706_v57 = vld [vmem:[#allocation11 + $0x958] sm:$0xff] }
 0x413   :  { %6081 = vmatpush1.bf16.msra.mxu1 %v10311_v56  ;;  %v2749_v56 = vld [vmem:[#allocation11 + $0xab0] sm:$0xff] }
 0x414   :  { %6082 = vmatprep.subr.bf16.mxu1 %v10320_v58  ;;  %v2710_v58 = vld [vmem:[#allocation11 + $0x978] sm:$0xff]  ;;  %v10414_v61 = vcombine.high %v2745_v55, %v2749_v56  ;;  %v10413_v0 = vcombine.low %v2745_v55, %v2749_v56 }
 0x415   :  { %5938 = vmatpush1.bf16.msra.mxu0 %v10357_v63  ;;  %v10376_v62 = vcombine.high %v2706_v57, %v2710_v58  ;;  %v2753_v63 = vld [vmem:[#allocation11 + $0xad0] sm:$0xff]  ;;  %v10375_v1 = vcombine.low %v2706_v57, %v2710_v58 }
 0x416   :  { %5939 = vmatprep.subr.bf16.mxu0 %v10366_v23  ;;  %v2714_v23 = vld [vmem:[#allocation11 + $0x998] sm:$0xff] }
 0x417   :  { %6083 = vmatpush1.bf16.msra.mxu1 %v10319_v30  ;;  %v2757_v30 = vld [vmem:[#allocation11 + $0xaf0] sm:$0xff] }
 0x418   :  { %6084 = vmatprep.subr.bf16.mxu1 %v10328_v49  ;;  %v2718_v49 = vld [vmem:[#allocation11 + $0x9b8] sm:$0xff]  ;;  %v10422_v2 = vcombine.high %v2753_v63, %v2757_v30  ;;  %v10421_v34 = vcombine.low %v2753_v63, %v2757_v30 }
 0x419   :  { %5940 = vmatpush1.bf16.msra.mxu0 %v10365_v5  ;;  %v10384_v37 = vcombine.high %v2714_v23, %v2718_v49  ;;  %v2761_v5 = vld [vmem:[#allocation11 + $0xb10] sm:$0xff]  ;;  %v10383_v12 = vcombine.low %v2714_v23, %v2718_v49 }
 0x41a   :  { %5941 = vmatprep.subr.bf16.mxu0 %v10374_v10  ;;  %v2722_v10 = vld [vmem:[#allocation11 + $0x9d8] sm:$0xff] }
 0x41b   :  { %6085 = vmatpush1.bf16.msra.mxu1 %v10327_v9  ;;  %v2765_v9 = vld [vmem:[#allocation11 + $0xb30] sm:$0xff] }
 0x41c   :  { %6095 = vmatprep.subr.bf16.mxu1 %v10336_v11  ;;  %v2726_v11 = vld [vmem:[#allocation11 + $0x9f8] sm:$0xff]  ;;  %v10430_v15 = vcombine.high %v2761_v5, %v2765_v9  ;;  %v10429_v20 = vcombine.low %v2761_v5, %v2765_v9 }
 0x41d   :  { %5942 = vmatpush1.bf16.msra.mxu0 %v10373_v6  ;;  %v10392_v4 = vcombine.high %v2722_v10, %v2726_v11  ;;  %v2769_v6 = vld [vmem:[#allocation11 + $0xb50] sm:$0xff]  ;;  %v10391_v3 = vcombine.low %v2722_v10, %v2726_v11 }
 0x41e   :  { %6087 = vmatmul.mubr.bf16.vlgmr.msra.gmra.mrb[20].mxu1 %v12491_v36  ;;  %5943 = vmatprep.subr.bf16.mxu0 %v10382_v16  ;;  %v10360_v36 = vcombine.high %v2690_v31, %v2694_v32  ;;  %v2730_v16 = vld [vmem:[#allocation11 + $0xa18] sm:$0xff] }
 0x41f   :  { %6096 = vmatpush1.bf16.msra.mxu1 %v10335_v52  ;;  %6127 = vmatprep.mubr.bf16.mxu1 %v12493_v8  ;;  %v10397_v8 = vcombine.low %v2729_v28, %v2733_v29  ;;  %v2773_v52 = vld [vmem:[#allocation11 + $0xb70] sm:$0xff] }
 0x420   :  { %6097 = vmatprep.subr.bf16.mxu1 %v10344_v17  ;;  %v2734_v17 = vld [vmem:[#allocation11 + $0xa38] sm:$0xff]  ;;  %v10438_v21 = vcombine.high %v2769_v6, %v2773_v52  ;;  %v10437_v28 = vcombine.low %v2769_v6, %v2773_v52 }
 0x421   :  { %5944 = vmatpush1.bf16.msra.mxu0 %v10381_v19  ;;  %v10400_v22 = vcombine.high %v2730_v16, %v2734_v17  ;;  %v2777_v19 = vld [vmem:[#allocation11 + $0xb90] sm:$0xff]  ;;  %v10399_v29 = vcombine.low %v2730_v16, %v2734_v17 }
 0x422   :  { %5945 = vmatprep.subr.bf16.mxu0 %v10390_v26  ;;  %v2738_v26 = vld [vmem:[#allocation11 + $0xa58] sm:$0xff] }
 0x423   :  { %6098 = vmatpush1.bf16.msra.mxu1 %v10343_v25  ;;  %v2781_v25 = vld [vmem:[#allocation11 + $0xbb0] sm:$0xff] }
 0x424   :  { %6099 = vmatprep.subr.bf16.mxu1 %v10352_v27  ;;  %v2742_v27 = vld [vmem:[#allocation11 + $0xa78] sm:$0xff]  ;;  %v10446_v31 = vcombine.high %v2777_v19, %v2781_v25  ;;  %v10445_v18 = vcombine.low %v2777_v19, %v2781_v25 }
 0x425   :  { %5946 = vmatpush1.bf16.msra.mxu0 %v10389_v33  ;;  %v10408_v32 = vcombine.high %v2738_v26, %v2742_v27  ;;  %v2785_v33 = vld [vmem:[#allocation11 + $0xbd0] sm:$0xff]  ;;  %v10407_v35 = vcombine.low %v2738_v26, %v2742_v27 }
 0x426   :  { %5947 = vmatprep.subr.bf16.mxu0 %v10398_v46  ;;  %v2746_v46 = vld [vmem:[#allocation11 + $0xa98] sm:$0xff] }
 0x427   :  { %6100 = vmatpush1.bf16.msra.mxu1 %v10351_v41  ;;  %v2789_v41 = vld [vmem:[#allocation11 + $0xbf0] sm:$0xff] }
 0x428   :  { %6101 = vmatprep.subr.bf16.mxu1 %v10360_v36  ;;  %v2750_v36 = vld [vmem:[#allocation11 + $0xab8] sm:$0xff]  ;;  %v10454_v38 = vcombine.high %v2785_v33, %v2789_v41  ;;  %v10453_v55 = vcombine.low %v2785_v33, %v2789_v41 }
 0x429   :  { %5948 = vmatpush1.bf16.msra.mxu0 %v10397_v8  ;;  %v10416_v39 = vcombine.high %v2746_v46, %v2750_v36  ;;  %v2793_v8 = vld [vmem:[#allocation11 + $0xc10] sm:$0xff]  ;;  %v10415_v56 = vcombine.low %v2746_v46, %v2750_v36 }
 0x42a   :  { %5949 = vmatprep.subr.bf16.mxu0 %v10406_v53  ;;  %v2754_v53 = vld [vmem:[#allocation11 + $0xad8] sm:$0xff] }
 0x42b   :  { %6102 = vmatpush1.bf16.msra.mxu1 %v10359_v40  ;;  %v2797_v40 = vld [vmem:[#allocation11 + $0xc30] sm:$0xff] }
 0x42c   :  { %6103 = vmatprep.subr.bf16.mxu1 %v10368_v54  ;;  %v2758_v54 = vld [vmem:[#allocation11 + $0xaf8] sm:$0xff]  ;;  %v10462_v57 = vcombine.high %v2793_v8, %v2797_v40  ;;  %v10461_v63 = vcombine.low %v2793_v8, %v2797_v40 }
 0x42d   :  { %5950 = vmatpush1.bf16.msra.mxu0 %v10405_v59  ;;  %v10424_v58 = vcombine.high %v2754_v53, %v2758_v54  ;;  %v2801_v59 = vld [vmem:[#allocation11 + $0xc50] sm:$0xff]  ;;  %v10423_v30 = vcombine.low %v2754_v53, %v2758_v54 }
 0x42e   :  { %5951 = vmatprep.subr.bf16.mxu0 %v10414_v61  ;;  %v2762_v61 = vld [vmem:[#allocation11 + $0xb18] sm:$0xff] }
 0x42f   :  { %6104 = vmatpush1.bf16.msra.mxu1 %v10367_v60  ;;  %v2805_v60 = vld [vmem:[#allocation11 + $0xc70] sm:$0xff] }
 0x430   :  { %6105 = vmatprep.subr.bf16.mxu1 %v10376_v62  ;;  %v2766_v62 = vld [vmem:[#allocation11 + $0xb38] sm:$0xff]  ;;  %v10470_v23 = vcombine.high %v2801_v59, %v2805_v60  ;;  %v10469_v5 = vcombine.low %v2801_v59, %v2805_v60 }
 0x431   :  { %5952 = vmatpush1.bf16.msra.mxu0 %v10413_v0  ;;  %v10432_v49 = vcombine.high %v2762_v61, %v2766_v62  ;;  %v2809_v0 = vld [vmem:[#allocation11 + $0xc90] sm:$0xff]  ;;  %v10431_v9 = vcombine.low %v2762_v61, %v2766_v62  ;;  %v2810_v59 = vld [vmem:[#allocation11 + $0xc98] sm:$0xff] }
 0x432   :  { %5953 = vmatprep.subr.bf16.mxu0 %v10422_v2  ;;  %v2770_v2 = vld [vmem:[#allocation11 + $0xb58] sm:$0xff] }
 0x433   :  { %6106 = vmatpush1.bf16.msra.mxu1 %v10375_v1  ;;  %v2813_v1 = vld [vmem:[#allocation11 + $0xcb0] sm:$0xff]  ;;  %v2814_v60 = vld [vmem:[#allocation11 + $0xcb8] sm:$0xff] }
 0x434   :  { %6107 = vmatprep.subr.bf16.mxu1 %v10384_v37  ;;  %v2774_v37 = vld [vmem:[#allocation11 + $0xb78] sm:$0xff]  ;;  %v10478_v10 = vcombine.high %v2809_v0, %v2813_v1  ;;  %v10477_v6 = vcombine.low %v2809_v0, %v2813_v1  ;;  %v2857_v0 = vld [vmem:[#allocation11 + $0xe10] sm:$0xff] }
 0x435   :  { %5954 = vmatpush1.bf16.msra.mxu0 %v10421_v34  ;;  %v10440_v11 = vcombine.high %v2770_v2, %v2774_v37  ;;  %v2817_v34 = vld [vmem:[#allocation11 + $0xcd0] sm:$0xff]  ;;  %v10439_v52 = vcombine.low %v2770_v2, %v2774_v37  ;;  %v2818_v2 = vld [vmem:[#allocation11 + $0xcd8] sm:$0xff] }
 0x436   :  { %5955 = vmatprep.subr.bf16.mxu0 %v10430_v15  ;;  %v2778_v15 = vld [vmem:[#allocation11 + $0xb98] sm:$0xff]  ;;  %v2861_v1 = vld [vmem:[#allocation11 + $0xe30] sm:$0xff] }
 0x437   :  { %6108 = vmatpush1.bf16.msra.mxu1 %v10383_v12  ;;  %v2821_v12 = vld [vmem:[#allocation11 + $0xcf0] sm:$0xff]  ;;  %v2822_v37 = vld [vmem:[#allocation11 + $0xcf8] sm:$0xff] }
 0x438   :  { %6109 = vmatprep.subr.bf16.mxu1 %v10392_v4  ;;  %v2782_v4 = vld [vmem:[#allocation11 + $0xbb8] sm:$0xff]  ;;  %v10486_v16 = vcombine.high %v2817_v34, %v2821_v12  ;;  %v10485_v19 = vcombine.low %v2817_v34, %v2821_v12  ;;  %v2869_v34 = vld [vmem:[#allocation11 + $0xe70] sm:$0xff]  ;;  %v12558_v12 = vld [vmem:[#allocation13] sm:$0xff] }
 0x439   :  { %5956 = vmatpush1.bf16.msra.mxu0 %v10429_v20  ;;  %v10448_v17 = vcombine.high %v2778_v15, %v2782_v4  ;;  %v2825_v20 = vld [vmem:[#allocation11 + $0xd10] sm:$0xff]  ;;  %v10447_v25 = vcombine.low %v2778_v15, %v2782_v4  ;;  %v2826_v15 = vld [vmem:[#allocation11 + $0xd18] sm:$0xff]  ;;  %v10525_v4 = vcombine.low %v2857_v0, %v2861_v1 }
 0x43a   :  { %5957 = vmatprep.subr.bf16.mxu0 %v10438_v21  ;;  %v2786_v21 = vld [vmem:[#allocation11 + $0xbd8] sm:$0xff] }
 0x43b   :  { %6110 = vmatpush1.bf16.msra.mxu1 %v10391_v3  ;;  %v2829_v3 = vld [vmem:[#allocation11 + $0xd30] sm:$0xff] }
 0x43c   :  { %6111 = vmatprep.subr.bf16.mxu1 %v10400_v22  ;;  %v2790_v22 = vld [vmem:[#allocation11 + $0xbf8] sm:$0xff]  ;;  %v10494_v26 = vcombine.high %v2825_v20, %v2829_v3  ;;  %v10493_v33 = vcombine.low %v2825_v20, %v2829_v3  ;;  %v2873_v20 = vld [vmem:[#allocation11 + $0xe90] sm:$0xff] }
 0x43d   :  { %5958 = vmatpush1.bf16.msra.mxu0 %v10437_v28  ;;  %v10456_v27 = vcombine.high %v2786_v21, %v2790_v22  ;;  %v2833_v28 = vld [vmem:[#allocation11 + $0xd50] sm:$0xff]  ;;  %v10455_v41 = vcombine.low %v2786_v21, %v2790_v22  ;;  %v2834_v21 = vld [vmem:[#allocation11 + $0xd58] sm:$0xff] }
 0x43e   :  { %5959 = vmatprep.subr.bf16.mxu0 %v10446_v31  ;;  %v2794_v31 = vld [vmem:[#allocation11 + $0xc18] sm:$0xff]  ;;  %v2877_v3 = vld [vmem:[#allocation11 + $0xeb0] sm:$0xff] }
 0x43f   :  { %6112 = vmatpush1.bf16.msra.mxu1 %v10399_v29  ;;  %v2837_v29 = vld [vmem:[#allocation11 + $0xd70] sm:$0xff]  ;;  %v2838_v22 = vld [vmem:[#allocation11 + $0xd78] sm:$0xff] }
 0x440   :  { %6113 = vmatprep.subr.bf16.mxu1 %v10408_v32  ;;  %v2798_v32 = vld [vmem:[#allocation11 + $0xc38] sm:$0xff]  ;;  %v10502_v46 = vcombine.high %v2833_v28, %v2837_v29  ;;  %v10501_v8 = vcombine.low %v2833_v28, %v2837_v29  ;;  %v10504_v28 = vcombine.high %v2834_v21, %v2838_v22  ;;  %v2881_v29 = vld [vmem:[#allocation11 + $0xed0] sm:$0xff] }
 0x441   :  { %5960 = vmatpush1.bf16.msra.mxu0 %v10445_v18  ;;  %v10464_v36 = vcombine.high %v2794_v31, %v2798_v32  ;;  %v2841_v18 = vld [vmem:[#allocation11 + $0xd90] sm:$0xff]  ;;  %v10463_v40 = vcombine.low %v2794_v31, %v2798_v32  ;;  %v2842_v32 = vld [vmem:[#allocation11 + $0xd98] sm:$0xff] }
 0x442   :  { %5961 = vmatprep.subr.bf16.mxu0 %v10454_v38  ;;  %v2802_v38 = vld [vmem:[#allocation11 + $0xc58] sm:$0xff]  ;;  %v2885_v31 = vld [vmem:[#allocation11 + $0xef0] sm:$0xff] }
 0x443   :  { %6114 = vmatpush1.bf16.msra.mxu1 %v10407_v35  ;;  %v2845_v35 = vld [vmem:[#allocation11 + $0xdb0] sm:$0xff] }
 0x444   :  { %6115 = vmatprep.subr.bf16.mxu1 %v10416_v39  ;;  %v2806_v39 = vld [vmem:[#allocation11 + $0xc78] sm:$0xff]  ;;  %v10510_v53 = vcombine.high %v2841_v18, %v2845_v35  ;;  %v10509_v62 = vcombine.low %v2841_v18, %v2845_v35  ;;  %v2889_v35 = vld [vmem:[#allocation11 + $0xf10] sm:$0xff] }
 0x445   :  { %5962 = vmatpush1.bf16.msra.mxu0 %v10453_v55  ;;  %v10472_v55 = vcombine.high %v2802_v38, %v2806_v39 }
 0x446   :  { %5972 = vmatprep.subr.bf16.mxu0 %v10462_v57  ;;  %v2853_v57 = vld [vmem:[#allocation11 + $0xdf0] sm:$0xff] }
 0x447   :  { %6116 = vmatpush1.bf16.msra.mxu1 %v10415_v56  ;;  %v2849_v56 = vld [vmem:[#allocation11 + $0xdd0] sm:$0xff] }
 0x448   :  { %6117 = vmatprep.subr.bf16.mxu1 %v10424_v58  ;;  %5964 = vmatmul.mubr.bf16.vlgmr.msra.gmra.mrb[16].mxu0 %v12514_v14 }
 0x449   :  { %5973 = vmatpush1.bf16.msra.mxu0 %v10461_v63  ;;  %6004 = vmatprep.mubr.bf16.mxu0 %v12534_v24 }
 0x44a   :  { %5974 = vmatprep.subr.bf16.mxu0 %v10470_v23  ;;  %v10518_v23 = vcombine.high %v2849_v56, %v2853_v57 }
 0x44b   :  { %6118 = vmatpush1.bf16.msra.mxu1 %v10423_v30  ;;  %v10471_v30 = vcombine.low %v2802_v38, %v2806_v39  ;;  %v2893_v38 = vld [vmem:[#allocation11 + $0xf30] sm:$0xff] }
 0x44c   :  { %6119 = vmatprep.subr.bf16.mxu1 %v10432_v49  ;;  %v10480_v49 = vcombine.high %v2810_v59, %v2814_v60 }
 0x44d   :  { %5975 = vmatpush1.bf16.msra.mxu0 %v10469_v5  ;;  %v10517_v5 = vcombine.low %v2849_v56, %v2853_v57 }
 0x44e   :  { %5976 = vmatprep.subr.bf16.mxu0 %v10478_v10  ;;  %v10488_v10 = vcombine.high %v2818_v2, %v2822_v37 }
 0x44f   :  { %6120 = vmatpush1.bf16.msra.mxu1 %v10431_v9  ;;  %v10479_v9 = vcombine.low %v2810_v59, %v2814_v60 }
 0x450   :  { %6121 = vmatprep.subr.bf16.mxu1 %v10440_v11  ;;  %v2865_v11 = vld [vmem:[#allocation11 + $0xe50] sm:$0xff] }
 0x451   :  { %5977 = vmatpush1.bf16.msra.mxu0 %v10477_v6  ;;  %v10487_v6 = vcombine.low %v2818_v2, %v2822_v37  ;;  %v2905_v2 = vld [vmem:[#allocation11 + $0xf90] sm:$0xff] }
 0x452   :  { %5978 = vmatprep.subr.bf16.mxu0 %v10486_v16  ;;  %v2928_v16 = vrot.slane %v12558_v12, %v12410_v47  ;;  %v2846_v47 = vld [vmem:[#allocation11 + $0xdb8] sm:$0xff]  ;;  %v2909_v37 = vld [vmem:[#allocation11 + $0xfb0] sm:$0xff] }
 0x453   :  { %6122 = vmatpush1.bf16.msra.mxu1 %v10439_v52  ;;  %v10534_v52 = vcombine.high %v2865_v11, %v2869_v34  ;;  %v10512_v18 = vcombine.high %v2842_v32, %v2846_v47  ;;  %v10511_v57 = vcombine.low %v2842_v32, %v2846_v47  ;;  %v2890_v32 = vld [vmem:[#allocation11 + $0xf18] sm:$0xff] }
 0x454   :  { %6123 = vmatprep.subr.bf16.mxu1 %v10448_v17  ;;  %v2894_v47 = vld [vmem:[#allocation11 + $0xf38] sm:$0xff] }
 0x455   :  { %5979 = vmatpush1.bf16.msra.mxu0 %v10485_v19  ;;  %v10533_v19 = vcombine.low %v2865_v11, %v2869_v34  ;;  %v10574_v11 = vcombine.high %v2905_v2, %v2909_v37 }
 0x456   :  { %5980 = vmatprep.subr.bf16.mxu0 %v10494_v26  ;;  %v10542_v26 = vcombine.high %v2873_v20, %v2877_v3 }
 0x457   :  { %6124 = vmatpush1.bf16.msra.mxu1 %v10447_v25 }
 0x458   :  { %6125 = vmatprep.subr.bf16.mxu1 %v10456_v27 }
 0x459   :  { %5981 = vmatpush1.bf16.msra.mxu0 %v10493_v33  ;;  %v10541_v33 = vcombine.low %v2873_v20, %v2877_v3 }
 0x45a   :  { %5982 = vmatprep.subr.bf16.mxu0 %v10502_v46  ;;  %v10550_v46 = vcombine.high %v2881_v29, %v2885_v31 }
 0x45b   :  { %6126 = vmatpush1.bf16.msra.mxu1 %v10455_v41  ;;  %v12554_v54 = vpop.f32.mrb[12].mxu0  ;;  %v10503_v41 = vcombine.low %v2834_v21, %v2838_v22  ;;  %v2882_v22 = vld [vmem:[#allocation11 + $0xed8] sm:$0xff] }
 0x45c   :  { %6136 = vmatprep.subr.bf16.mxu1 %v10464_v36  ;;  %v5680_v58 = vpop.f32.mrb[13].mxu0 }
 0x45d   :  { %5983 = vmatpush1.bf16.msra.mxu0 %v10501_v8  ;;  %v5682_v61 = vpop.f32.mrb[14].mxu0  ;;  %v12562_v27 = vadd.f32 %v5680_v58, %v2928_v16  ;;  %v2850_v8 = vld [vmem:[#allocation11 + $0xdd8] sm:$0xff]  ;;  %v10558_v58 = vcombine.high %v2889_v35, %v2893_v38  ;;  %v10573_v16 = vcombine.low %v2905_v2, %v2909_v37  ;;  %v11332_v37 = vld [vmem:[#allocation14 + $0x11c] ss:$28 sps:$4 sm:$0xff]  }
 0x45e   :  { %6128 = vmatmul.mubr.bf16.vlgmr.msra.gmra.mrb[20].mxu1 %v12514_v14  ;;  %v5683_v63 = vpop.f32.mrb[15].mxu0  ;;  %5984 = vmatprep.subr.bf16.mxu0 %v10510_v53  ;;  %v10526_v14 = vcombine.high %v2857_v0, %v2861_v1  ;;  %v2897_v61 = vld [vmem:[#allocation11 + $0xf50] sm:$0xff] }
 0x45f   :  { %6137 = vmatpush1.bf16.msra.mxu1 %v10463_v40  ;;  %6168 = vmatprep.mubr.bf16.mxu1 %v12534_v24  ;;  %v2830_v24 = vld [vmem:[#allocation11 + $0xd38] sm:$0xff]  ;;  %v6179_v36 = vmul.f32 1.442695, %v12562_v27  ;;  %vm6194_vm12 = vcmp.gt.f32.partialorder %v12562_v27, 0.0 }
 0x460   :  { %6138 = vmatprep.subr.bf16.mxu1 %v10472_v55  ;;  %v10496_v17 = vcombine.high %v2826_v15, %v2830_v24  ;;  %v10495_v25 = vcombine.low %v2826_v15, %v2830_v24  ;;  %v2854_v40 = vld [vmem:[#allocation11 + $0xdf8] sm:$0xff]  ;;  %v10549_v55 = vcombine.low %v2881_v29, %v2885_v31  ;;  %v2913_v15 = vld [vmem:[#allocation11 + $0xfd0] sm:$0xff] }
 0x461   :  { %5985 = vmatpush1.bf16.msra.mxu0 %v10509_v62  ;;  %11979 = vpow2.f32 %v6179_v36  ;;  %v10520_v60 = vcombine.high %v2850_v8, %v2854_v40  ;;  %v2901_v62 = vld [vmem:[#allocation11 + $0xf70] sm:$0xff]  ;;  %v2858_v63 = vld [vmem:[#allocation11 + $0xe18] sm:$0xff] }
 0x462   :  { %5986 = vmatprep.subr.bf16.mxu0 %v10518_v23  ;;  %v10557_v23 = vcombine.low %v2889_v35, %v2893_v38  ;;  %v10566_v0 = vcombine.high %v2897_v61, %v2901_v62  ;;  %v2917_v24 = vld [vmem:[#allocation11 + $0xff0] sm:$0xff]  ;;  %v2898_v35 = vld [vmem:[#allocation11 + $0xf58] sm:$0xff] }
 0x463   :  { %6139 = vmatpush1.bf16.msra.mxu1 %v10471_v30  ;;  %v2862_v30 = vld [vmem:[#allocation11 + $0xe38] sm:$0xff]  ;;  %v10582_v20 = vcombine.high %v2913_v15, %v2917_v24 }
 0x464   :  { %6140 = vmatprep.subr.bf16.mxu1 %v10480_v49  ;;  %v10519_v49 = vcombine.low %v2850_v8, %v2854_v40  ;;  %v10528_v1 = vcombine.high %v2858_v63, %v2862_v30  ;;  %v2902_v38 = vld [vmem:[#allocation11 + $0xf78] sm:$0xff]  ;;  %v10559_v8 = vcombine.low %v2890_v32, %v2894_v47 }
 0x465   :  { %5987 = vmatpush1.bf16.msra.mxu0 %v10517_v5  ;;  %v2866_v5 = vld [vmem:[#allocation11 + $0xe58] sm:$0xff] }
 0x466   :  { %5988 = vmatprep.subr.bf16.mxu0 %v10526_v14  ;;  %v10565_v14 = vcombine.low %v2897_v61, %v2901_v62  ;;  %v11323_v40 = vld [vmem:[#allocation14 + $0x74] ss:$28 sps:$4 sm:$0xff]  }
 0x467   :  { %6141 = vmatpush1.bf16.msra.mxu1 %v10479_v9  ;;  %v2870_v9 = vld [vmem:[#allocation11 + $0xe78] sm:$0xff] }
 0x468   :  { %6142 = vmatprep.subr.bf16.mxu1 %v10488_v10  ;;  %v10527_v10 = vcombine.low %v2858_v63, %v2862_v30  ;;  %v10536_v34 = vcombine.high %v2866_v5, %v2870_v9  ;;  %v2914_v62 = vld [vmem:[#allocation11 + $0xfd8] sm:$0xff]  ;;  %v11324_v30 = vld [vmem:[#allocation14 + $0xa8] ss:$28 sps:$4 sm:$0xff]  }
 0x469   :  { %5989 = vmatpush1.bf16.msra.mxu0 %v10525_v4  ;;  %v2874_v4 = vld [vmem:[#allocation11 + $0xe98] sm:$0xff] }
 0x46a   :  { %5990 = vmatprep.subr.bf16.mxu0 %v10534_v52  ;;  %v2918_v63 = vld [vmem:[#allocation11 + $0xff8] sm:$0xff] }
 0x46b   :  { %6143 = vmatpush1.bf16.msra.mxu1 %v10487_v6  ;;  %v2878_v6 = vld [vmem:[#allocation11 + $0xeb8] sm:$0xff]  ;;  %v11980_v52 = vpop.eup %11979  ;;  %v10583_v2 = vcombine.low %v2914_v62, %v2918_v63 }
 0x46c   :  { %6144 = vmatprep.subr.bf16.mxu1 %v10496_v17  ;;  %v10535_v17 = vcombine.low %v2866_v5, %v2870_v9  ;;  %v10544_v3 = vcombine.high %v2874_v4, %v2878_v6  ;;  %v10586_v21 = vadd.f32 -1.0, %v11980_v52  ;;  %v11335_v5 = vld [vmem:[#allocation14 + $0xc] ss:$28 sps:$4 sm:$0xff]   ;;  %v11330_v9 = vld [vmem:[#allocation14 + $0x118] ss:$28 sps:$4 sm:$0xff]  }
 0x46d   :  { %5991 = vmatpush1.bf16.msra.mxu0 %v10533_v19  ;;  %v2886_v19 = vld [vmem:[#allocation11 + $0xef8] sm:$0xff] }
 0x46e   :  { %5992 = vmatprep.subr.bf16.mxu0 %v10542_v26  ;;  %v10543_v26 = vcombine.low %v2874_v4, %v2878_v6  ;;  %v10552_v29 = vcombine.high %v2882_v22, %v2886_v19  ;;  %v6210_v31 = vsel %vm6194_vm12, %v12562_v27, %v10586_v21  ;;  %v11318_v27 = vld [vmem:[#allocation14 + $0x38] ss:$28 sps:$4 sm:$0xff]   ;;  %v11342_v6 = vld [vmem:[#allocation14 + $0x188] ss:$28 sps:$4 sm:$0xff]  }
 0x46f   :  { %6145 = vmatpush1.bf16.msra.mxu1 %v10495_v25  ;;  %v10581_v25 = vcombine.low %v2913_v15, %v2917_v24  ;;  %v12571_v36 = vpack.c.bf16 %v6210_v31, %v6210_v31  ;;  %v11339_v15 = vld [vmem:[#allocation14 + $0x40] ss:$28 sps:$4 sm:$0xff]   ;;  %v11344_v24 = vld [vmem:[#allocation14 + $0x18c] ss:$28 sps:$4 sm:$0xff]   ;;  %v11345_v52 = vld [vmem:[#allocation14 + $0x78] ss:$28 sps:$4 sm:$0xff]  }
 0x470   :  { %6146 = vmatprep.subr.bf16.mxu1 %v10504_v28  ;;  %v11317_v28 = vld [vmem:[#allocation14 + $0x4] ss:$28 sps:$4 sm:$0xff]   ;;  %v11347_v4 = vld [vmem:[#allocation14 + $0x7c] ss:$28 sps:$4 sm:$0xff]  }
 0x471   :  { %v12565_v39 = vpop.f32.mrb[16].mxu1  ;;  %5993 = vmatpush1.bf16.msra.mxu0 %v10541_v33  ;;  %v11315_v33 = vld [vmem:[#allocation14] ss:$28 sps:$4 sm:$0xff]  }
 0x472   :  { %v12567_v53 = vpop.f32.mrb[17].mxu1  ;;  %5994 = vmatprep.subr.bf16.mxu0 %v10550_v46  ;;  %v11320_v46 = vld [vmem:[#allocation14 + $0x3c] ss:$28 sps:$4 sm:$0xff]   ;;  %v11365_v31 = vld [vmem:[#allocation14 + $0x124] ss:$28 sps:$4 sm:$0xff]  }
 0x473   :  { %v5846_v56 = vpop.f32.mrb[18].mxu1  ;;  %6147 = vmatpush1.bf16.msra.mxu1 %v10503_v41  ;;  %v10551_v41 = vcombine.low %v2882_v22, %v2886_v19  ;;  %v11356_v21 = vld [vmem:[#allocation14 + $0x1fc] ss:$28 sps:$4 sm:$0xff]   ;;  %v2936_v22 = vrot.slane %v12558_v12, %v12413_v48  ;;  %v11359_v19 = vld [vmem:[#allocation14 + $0xec] ss:$28 sps:$4 sm:$0xff]  }
 0x474   :  { %v5847_v59 = vpop.f32.mrb[19].mxu1  ;;  %6148 = vmatprep.subr.bf16.mxu1 %v10512_v18  ;;  %v10560_v18 = vcombine.high %v2890_v32, %v2894_v47  ;;  %v2906_v56 = vld [vmem:[#allocation11 + $0xf98] sm:$0xff]  ;;  %v11363_v47 = vld [vmem:[#allocation14 + $0x120] ss:$28 sps:$4 sm:$0xff]  }
 0x475   :  { %5995 = vmatpush1.bf16.msra.mxu0 %v10549_v55  ;;  %v10568_v55 = vcombine.high %v2898_v35, %v2902_v38  ;;  %v10567_v59 = vcombine.low %v2898_v35, %v2902_v38  ;;  %v11360_v32 = vld [vmem:[#allocation14 + $0x230] ss:$28 sps:$4 sm:$0xff]   ;;  %v11372_v38 = vld [vmem:[#allocation14 + $0x2a0] ss:$28 sps:$4 sm:$0xff]  }
 0x476   :  { %5996 = vmatprep.subr.bf16.mxu0 %v10558_v58  ;;  %v11321_v58 = vld [vmem:[#allocation14 + $0x70] ss:$28 sps:$4 sm:$0xff]  }
 0x477   :  { %6149 = vmatpush1.bf16.msra.mxu1 %v10511_v57  ;;  %v2910_v57 = vld [vmem:[#allocation11 + $0xfb8] sm:$0xff] }
 0x478   :  { %6150 = vmatprep.subr.bf16.mxu1 %v10520_v60  ;;  %v11326_v60 = vld [vmem:[#allocation14 + $0xac] ss:$28 sps:$4 sm:$0xff]   ;;  %v10576_v61 = vcombine.high %v2906_v56, %v2910_v57  ;;  %v11377_v35 = vld [vmem:[#allocation14 + $0x194] ss:$28 sps:$4 sm:$0xff]  }
 0x479   :  { %5997 = vmatpush1.bf16.msra.mxu0 %v10557_v23  ;;  %v10575_v23 = vcombine.low %v2906_v56, %v2910_v57  ;;  %v11381_v56 = vld [vmem:[#allocation14 + $0x1c8] ss:$28 sps:$4 sm:$0xff]   ;;  %v11386_v57 = vld [vmem:[#allocation14 + $0x314] ss:$28 sps:$4 sm:$0xff]  }
 0x47a   :  { %5998 = vmatprep.subr.bf16.mxu0 %v10566_v0  ;;  %v10584_v0 = vcombine.high %v2914_v62, %v2918_v63  ;;  %v11387_v62 = vld [vmem:[#allocation14 + $0x200] ss:$28 sps:$4 sm:$0xff]   ;;  %v11392_v63 = vld [vmem:[#allocation14 + $0x34c] ss:$28 sps:$4 sm:$0xff]  }
 0x47b   :  { %6151 = vmatpush1.bf16.msra.mxu1 %v10519_v49  ;;  %v11329_v49 = vld [vmem:[#allocation14 + $0xe4] ss:$28 sps:$4 sm:$0xff]  }
 0x47c   :  { %6152 = vmatprep.subr.bf16.mxu1 %v10528_v1  ;;  %v11327_v1 = vld [vmem:[#allocation14 + $0xe0] ss:$28 sps:$4 sm:$0xff]  }
 0x47d   :  { %5999 = vmatpush1.bf16.msra.mxu0 %v10565_v14  ;;  %v11333_v14 = vld [vmem:[#allocation14 + $0x8] ss:$28 sps:$4 sm:$0xff]  }
 0x47e   :  { %6000 = vmatprep.subr.bf16.mxu0 %v10574_v11  ;;  %v11341_v11 = vld [vmem:[#allocation14 + $0x44] ss:$28 sps:$4 sm:$0xff]  }
 0x47f   :  { %6153 = vmatpush1.bf16.msra.mxu1 %v10527_v10  ;;  %v11338_v10 = vld [vmem:[#allocation14 + $0x154] ss:$28 sps:$4 sm:$0xff]  }
 0x480   :  { %6154 = vmatprep.subr.bf16.mxu1 %v10536_v34  ;;  %v11336_v34 = vld [vmem:[#allocation14 + $0x150] ss:$28 sps:$4 sm:$0xff]  }
 0x481   :  { %6001 = vmatpush1.bf16.msra.mxu0 %v10573_v16  ;;  %v11350_v16 = vld [vmem:[#allocation14 + $0x1c4] ss:$28 sps:$4 sm:$0xff]  }
 0x482   :  { %6002 = vmatprep.subr.bf16.mxu0 %v10582_v20  ;;  %v11348_v20 = vld [vmem:[#allocation14 + $0x1c0] ss:$28 sps:$4 sm:$0xff]  }
 0x483   :  { %6155 = vmatpush1.bf16.msra.mxu1 %v10535_v17  ;;  %v11353_v17 = vld [vmem:[#allocation14 + $0xb4] ss:$28 sps:$4 sm:$0xff]  }
 0x484   :  { %6156 = vmatprep.subr.bf16.mxu1 %v10544_v3  ;;  %v11351_v3 = vld [vmem:[#allocation14 + $0xb0] ss:$28 sps:$4 sm:$0xff]  }
 0x485   :  { %6003 = vmatpush1.bf16.msra.mxu0 %v10581_v25  ;;  %v11354_v25 = vld [vmem:[#allocation14 + $0x1f8] ss:$28 sps:$4 sm:$0xff]  }
 0x486   :  { %9041 = vmatprep.subr.bf16.mxu0 %v11317_v28  ;;  %v11357_v28 = vld [vmem:[#allocation14 + $0xe8] ss:$28 sps:$4 sm:$0xff]  }
 0x487   :  { %6157 = vmatpush1.bf16.msra.mxu1 %v10543_v26 }
 0x488   :  { %6158 = vmatprep.subr.bf16.mxu1 %v10552_v29  ;;  %6005 = vmatmul.mubr.bf16.vlgmr.msra.gmra.mrb[16].mxu0 %v12536_v13  ;;  %v11362_v29 = vld [vmem:[#allocation14 + $0x234] ss:$28 sps:$4 sm:$0xff]  }
 0x489   :  { %9042 = vmatpush1.bf16.msra.mxu0 %v11315_v33  ;;  %9073 = vmatprep.mubr.bf16.mxu0 %v12571_v36  ;;  %v11368_v33 = vld [vmem:[#allocation14 + $0x26c] ss:$28 sps:$4 sm:$0xff]  }
 0x48a   :  { %9043 = vmatprep.subr.bf16.mxu0 %v11320_v46  ;;  %v11366_v46 = vld [vmem:[#allocation14 + $0x268] ss:$28 sps:$4 sm:$0xff]  }
 0x48b   :  { %6159 = vmatpush1.bf16.msra.mxu1 %v10551_v41  ;;  %v11371_v41 = vld [vmem:[#allocation14 + $0x15c] ss:$28 sps:$4 sm:$0xff]  }
 0x48c   :  { %6160 = vmatprep.subr.bf16.mxu1 %v10560_v18  ;;  %v11374_v18 = vld [vmem:[#allocation14 + $0x2a4] ss:$28 sps:$4 sm:$0xff]  }
 0x48d   :  { %9044 = vmatpush1.bf16.msra.mxu0 %v11318_v27  ;;  %v11375_v27 = vld [vmem:[#allocation14 + $0x190] ss:$28 sps:$4 sm:$0xff]  }
 0x48e   :  { %9045 = vmatprep.subr.bf16.mxu0 %v11323_v40  ;;  %v11383_v40 = vld [vmem:[#allocation14 + $0x1cc] ss:$28 sps:$4 sm:$0xff]  }
 0x48f   :  { %6161 = vmatpush1.bf16.msra.mxu1 %v10559_v8  ;;  %v11380_v8 = vld [vmem:[#allocation14 + $0x2dc] ss:$28 sps:$4 sm:$0xff]  }
 0x490   :  { %6162 = vmatprep.subr.bf16.mxu1 %v10568_v55  ;;  %v11378_v55 = vld [vmem:[#allocation14 + $0x2d8] ss:$28 sps:$4 sm:$0xff]  }
 0x491   :  { %9046 = vmatpush1.bf16.msra.mxu0 %v11321_v58  ;;  %v11389_v58 = vld [vmem:[#allocation14 + $0x204] ss:$28 sps:$4 sm:$0xff]  }
 0x492   :  { %9047 = vmatprep.subr.bf16.mxu0 %v11326_v60 }
 0x493   :  { %6163 = vmatpush1.bf16.msra.mxu1 %v10567_v59 }
 0x494   :  { %6164 = vmatprep.subr.bf16.mxu1 %v10576_v61  ;;  %v11384_v61 = vld [vmem:[#allocation14 + $0x310] ss:$28 sps:$4 sm:$0xff]  }
 0x495   :  { %9048 = vmatpush1.bf16.msra.mxu0 %v11324_v30 }
 0x496   :  { %9049 = vmatprep.subr.bf16.mxu0 %v11329_v49 }
 0x497   :  { %6165 = vmatpush1.bf16.msra.mxu1 %v10575_v23  ;;  %v11395_v23 = vld [vmem:[#allocation14 + $0x23c] ss:$28 sps:$4 sm:$0xff]  }
 0x498   :  { %6166 = vmatprep.subr.bf16.mxu1 %v10584_v0  ;;  %v11390_v0 = vld [vmem:[#allocation14 + $0x348] ss:$28 sps:$4 sm:$0xff]  }
 0x499   :  { %9050 = vmatpush1.bf16.msra.mxu0 %v11327_v1  ;;  %v11393_v1 = vld [vmem:[#allocation14 + $0x238] ss:$28 sps:$4 sm:$0xff]  }
 0x49a   :  { %9051 = vmatprep.subr.bf16.mxu0 %v11332_v37 }
 0x49b   :  { %6167 = vmatpush1.bf16.msra.mxu1 %v10583_v2  ;;  %v11398_v2 = vld [vmem:[#allocation14 + $0x384] ss:$28 sps:$4 sm:$0xff]  }
 0x49c   :  { %9205 = vmatprep.subr.bf16.mxu1 %v11335_v5  ;;  %v11401_v5 = vld [vmem:[#allocation14 + $0x274] ss:$28 sps:$4 sm:$0xff]  }
 0x49d   :  { %9052 = vmatpush1.bf16.msra.mxu0 %v11330_v9 }
 0x49e   :  { %6169 = vmatmul.mubr.bf16.vlgmr.msra.gmra.mrb[20].mxu1 %v12536_v13  ;;  %9053 = vmatprep.subr.bf16.mxu0 %v11338_v10  ;;  %v2924_v13 = vrot.slane %v12558_v12, %v12404_v44  ;;  %v12585_v44 = vadd.f32 %v12567_v53, %v2936_v22  ;;  %v11369_v53 = vld [vmem:[#allocation14 + $0x158] ss:$28 sps:$4 sm:$0xff]  }
 0x49f   :  { %9206 = vmatpush1.bf16.msra.mxu1 %v11333_v14  ;;  %9237 = vmatprep.mubr.bf16.mxu1 %v12571_v36  ;;  %v11396_v14 = vld [vmem:[#allocation14 + $0x380] ss:$28 sps:$4 sm:$0xff]   ;;  %v11417_v22 = vld [vmem:[#allocation14 + $0x318] ss:$28 sps:$4 sm:$0xff]  }
 0x4a0   :  { %9207 = vmatprep.subr.bf16.mxu1 %v11341_v11  ;;  %v12582_v26 = vadd.f32 %v12554_v54, %v2924_v13  ;;  %v6183_v54 = vmul.f32 1.442695, %v12585_v44  ;;  %vm6196_vm14 = vcmp.gt.f32.partialorder %v12585_v44, 0.0  ;;  %v11399_v11 = vld [vmem:[#allocation14 + $0x270] ss:$28 sps:$4 sm:$0xff]  }
 0x4a1   :  { %9054 = vmatpush1.bf16.msra.mxu0 %v11336_v34  ;;  %v11404_v34 = vld [vmem:[#allocation14 + $0x3bc] ss:$28 sps:$4 sm:$0xff]   ;;  %v11416_v13 = vld [vmem:[#allocation14 + $0x42c] ss:$28 sps:$4 sm:$0xff]  }
 0x4a2   :  { %9055 = vmatprep.subr.bf16.mxu0 %v11344_v24  ;;  %v6177_v48 = vmul.f32 1.442695, %v12582_v26  ;;  %vm6193_vm13 = vcmp.gt.f32.partialorder %v12582_v26, 0.0  ;;  %v11407_v24 = vld [vmem:[#allocation14 + $0x2ac] ss:$28 sps:$4 sm:$0xff]  }
 0x4a3   :  { %9208 = vmatpush1.bf16.msra.mxu1 %v11339_v15 }
 0x4a4   :  { %9209 = vmatprep.subr.bf16.mxu1 %v11347_v4  ;;  %11981 = vpow2.f32 %v6177_v48  ;;  %v11402_v4 = vld [vmem:[#allocation14 + $0x3b8] ss:$28 sps:$4 sm:$0xff]  }
 0x4a5   :  { %9056 = vmatpush1.bf16.msra.mxu0 %v11342_v6  ;;  %11983 = vpow2.f32 %v6183_v54  ;;  %v11405_v6 = vld [vmem:[#allocation14 + $0x2a8] ss:$28 sps:$4 sm:$0xff]   ;;  %v11434_v48 = vld [vmem:[#allocation14 + $0x4d4] ss:$28 sps:$4 sm:$0xff]   ;;  %v11435_v54 = vld [vmem:[#allocation14 + $0x3c0] ss:$28 sps:$4 sm:$0xff]  }
 0x4a6   :  { %9057 = vmatprep.subr.bf16.mxu0 %v11350_v16  ;;  %v11413_v16 = vld [vmem:[#allocation14 + $0x2e4] ss:$28 sps:$4 sm:$0xff]  }
 0x4a7   :  { %9210 = vmatpush1.bf16.msra.mxu1 %v11345_v52  ;;  %v11410_v52 = vld [vmem:[#allocation14 + $0x3f4] ss:$28 sps:$4 sm:$0xff]  }
 0x4a8   :  { %9211 = vmatprep.subr.bf16.mxu1 %v11353_v17  ;;  %v11408_v17 = vld [vmem:[#allocation14 + $0x3f0] ss:$28 sps:$4 sm:$0xff]  }
 0x4a9   :  { %9058 = vmatpush1.bf16.msra.mxu0 %v11348_v20  ;;  %v11411_v20 = vld [vmem:[#allocation14 + $0x2e0] ss:$28 sps:$4 sm:$0xff]  }
 0x4aa   :  { %9059 = vmatprep.subr.bf16.mxu0 %v11356_v21  ;;  %v11414_v21 = vld [vmem:[#allocation14 + $0x428] ss:$28 sps:$4 sm:$0xff]  }
 0x4ab   :  { %9212 = vmatpush1.bf16.msra.mxu1 %v11351_v3  ;;  %v11419_v3 = vld [vmem:[#allocation14 + $0x31c] ss:$28 sps:$4 sm:$0xff]  }
 0x4ac   :  { %9213 = vmatprep.subr.bf16.mxu1 %v11359_v19  ;;  %v11422_v19 = vld [vmem:[#allocation14 + $0x464] ss:$28 sps:$4 sm:$0xff]  }
 0x4ad   :  { %9060 = vmatpush1.bf16.msra.mxu0 %v11354_v25  ;;  %v11425_v25 = vld [vmem:[#allocation14 + $0x354] ss:$28 sps:$4 sm:$0xff]  }
 0x4ae   :  { %9061 = vmatprep.subr.bf16.mxu0 %v11362_v29  ;;  %v11982_v59 = vpop.eup %11981  ;;  %v11428_v29 = vld [vmem:[#allocation14 + $0x49c] ss:$28 sps:$4 sm:$0xff]  }
 0x4af   :  { %9214 = vmatpush1.bf16.msra.mxu1 %v11357_v28  ;;  %v11984_v60 = vpop.eup %11983  ;;  %v10585_v30 = vadd.f32 -1.0, %v11982_v59  ;;  %v11423_v28 = vld [vmem:[#allocation14 + $0x350] ss:$28 sps:$4 sm:$0xff]   ;;  %v11453_v59 = vld [vmem:[#allocation14 + $0x468] ss:$28 sps:$4 sm:$0xff]  }
 0x4b0   :  { %9215 = vmatprep.subr.bf16.mxu1 %v11365_v31  ;;  %v10588_v49 = vadd.f32 -1.0, %v11984_v60  ;;  %v11426_v31 = vld [vmem:[#allocation14 + $0x498] ss:$28 sps:$4 sm:$0xff]  }
 0x4b1   :  { %9062 = vmatpush1.bf16.msra.mxu0 %v11360_v32  ;;  %v6209_v37 = vsel %vm6193_vm13, %v12582_v26, %v10585_v30  ;;  %v11420_v26 = vld [vmem:[#allocation14 + $0x460] ss:$28 sps:$4 sm:$0xff]   ;;  %v11429_v32 = vld [vmem:[#allocation14 + $0x388] ss:$28 sps:$4 sm:$0xff]   ;;  %v11458_v60 = vld [vmem:[#allocation14 + $0x5b4] ss:$28 sps:$4 sm:$0xff]  }
 0x4b2   :  { %9063 = vmatprep.subr.bf16.mxu0 %v11368_v33  ;;  %v6212_v9 = vsel %vm6196_vm14, %v12585_v44, %v10588_v49  ;;  %v12593_v10 = vpack.c.bf16 %v6209_v37, %v6209_v37  ;;  %v11431_v44 = vld [vmem:[#allocation14 + $0x38c] ss:$28 sps:$4 sm:$0xff]   ;;  %v11467_v30 = vld [vmem:[#allocation14 + $0x4dc] ss:$28 sps:$4 sm:$0xff]   ;;  %v11470_v49 = vld [vmem:[#allocation14 + $0x624] ss:$28 sps:$4 sm:$0xff]  }
 0x4b3   :  { %9216 = vmatpush1.bf16.msra.mxu1 %v11363_v47  ;;  %v12595_v15 = vpack.c.bf16 %v6212_v9, %v6212_v9  ;;  %v11437_v47 = vld [vmem:[#allocation14 + $0x3c4] ss:$28 sps:$4 sm:$0xff]   ;;  %v11432_v33 = vld [vmem:[#allocation14 + $0x4d0] ss:$28 sps:$4 sm:$0xff]   ;;  %v11476_v37 = vld [vmem:[#allocation14 + $0x65c] ss:$28 sps:$4 sm:$0xff]  }
 0x4b4   :  { %9217 = vmatprep.subr.bf16.mxu1 %v11371_v41  ;;  %v11440_v41 = vld [vmem:[#allocation14 + $0x50c] ss:$28 sps:$4 sm:$0xff]   ;;  %v11474_v9 = vld [vmem:[#allocation14 + $0x658] ss:$28 sps:$4 sm:$0xff]  }
 0x4b5   :  { %9064 = vmatpush1.bf16.msra.mxu0 %v11366_v46  ;;  %v11443_v46 = vld [vmem:[#allocation14 + $0x3fc] ss:$28 sps:$4 sm:$0xff]  }
 0x4b6   :  { %9065 = vmatprep.subr.bf16.mxu0 %v11374_v18  ;;  %v11441_v18 = vld [vmem:[#allocation14 + $0x3f8] ss:$28 sps:$4 sm:$0xff]  }
 0x4b7   :  { %9218 = vmatpush1.bf16.msra.mxu1 %v11369_v53  ;;  %v11438_v53 = vld [vmem:[#allocation14 + $0x508] ss:$28 sps:$4 sm:$0xff]  }
 0x4b8   :  { %9219 = vmatprep.subr.bf16.mxu1 %v11377_v35  ;;  %v11446_v35 = vld [vmem:[#allocation14 + $0x544] ss:$28 sps:$4 sm:$0xff]  }
 0x4b9   :  { %9066 = vmatpush1.bf16.msra.mxu0 %v11372_v38  ;;  %v11449_v38 = vld [vmem:[#allocation14 + $0x434] ss:$28 sps:$4 sm:$0xff]  }
 0x4ba   :  { %9067 = vmatprep.subr.bf16.mxu0 %v11380_v8  ;;  %v2932_v8 = vrot.slane %v12558_v12, %v12407_v45  ;;  %v11459_v45 = vld [vmem:[#allocation14 + $0x4a0] ss:$28 sps:$4 sm:$0xff]   ;;  %v11464_v12 = vld [vmem:[#allocation14 + $0x5ec] ss:$28 sps:$4 sm:$0xff]  }
 0x4bb   :  { %9220 = vmatpush1.bf16.msra.mxu1 %v11375_v27  ;;  %v11444_v27 = vld [vmem:[#allocation14 + $0x540] ss:$28 sps:$4 sm:$0xff]  }
 0x4bc   :  { %9221 = vmatprep.subr.bf16.mxu1 %v11383_v40  ;;  %v11447_v40 = vld [vmem:[#allocation14 + $0x430] ss:$28 sps:$4 sm:$0xff]  }
 0x4bd   :  { %9068 = vmatpush1.bf16.msra.mxu0 %v11378_v55  ;;  %v11452_v55 = vld [vmem:[#allocation14 + $0x57c] ss:$28 sps:$4 sm:$0xff]  }
 0x4be   :  { %9069 = vmatprep.subr.bf16.mxu0 %v11386_v57  ;;  %v11450_v57 = vld [vmem:[#allocation14 + $0x578] ss:$28 sps:$4 sm:$0xff]  }
 0x4bf   :  { %9222 = vmatpush1.bf16.msra.mxu1 %v11381_v56  ;;  %v11455_v56 = vld [vmem:[#allocation14 + $0x46c] ss:$28 sps:$4 sm:$0xff]  }
 0x4c0   :  { %9223 = vmatprep.subr.bf16.mxu1 %v11389_v58  ;;  %v11149_v58 = vadd.f32 %v12565_v39, %v2932_v8  ;;  %v11465_v39 = vld [vmem:[#allocation14 + $0x4d8] ss:$28 sps:$4 sm:$0xff]  }
 0x4c1   :  { %9070 = vmatpush1.bf16.msra.mxu0 %v11384_v61  ;;  %v11461_v61 = vld [vmem:[#allocation14 + $0x4a4] ss:$28 sps:$4 sm:$0xff]   ;;  %v11539_v8 = vld [vmem:[#allocation14 + $0x81c] ss:$28 sps:$4 sm:$0xff]  }
 0x4c2   :  { %9071 = vmatprep.subr.bf16.mxu0 %v11392_v63  ;;  %v6181_v63 = vmul.f32 1.442695, %v11149_v58  ;;  %vm6195_vm15 = vcmp.gt.f32.partialorder %v11149_v58, 0.0 }
 0x4c3   :  { %9224 = vmatpush1.bf16.msra.mxu1 %v11387_v62  ;;  %v11456_v62 = vld [vmem:[#allocation14 + $0x5b0] ss:$28 sps:$4 sm:$0xff]  }
 0x4c4   :  { %9225 = vmatprep.subr.bf16.mxu1 %v11395_v23  ;;  %v11462_v23 = vld [vmem:[#allocation14 + $0x5e8] ss:$28 sps:$4 sm:$0xff]   ;;  %11985 = vpow2.f32 %v6181_v63 }
 0x4c5   :  { %9072 = vmatpush1.bf16.msra.mxu0 %v11390_v0  ;;  %v11473_v0 = vld [vmem:[#allocation14 + $0x514] ss:$28 sps:$4 sm:$0xff]   ;;  %v11549_v63 = vld [vmem:[#allocation14 + $0x888] ss:$28 sps:$4 sm:$0xff]  }
 0x4c6   :  { %9082 = vmatprep.subr.bf16.mxu0 %v11398_v2  ;;  %v11471_v2 = vld [vmem:[#allocation14 + $0x510] ss:$28 sps:$4 sm:$0xff]  }
 0x4c7   :  { %9226 = vmatpush1.bf16.msra.mxu1 %v11393_v1  ;;  %v11468_v1 = vld [vmem:[#allocation14 + $0x620] ss:$28 sps:$4 sm:$0xff]  }
 0x4c8   :  { %9227 = vmatprep.subr.bf16.mxu1 %v11401_v5  ;;  %9074 = vmatmul.mubr.bf16.vlgmr.msra.gmra.mrb[20].mxu0 %v12593_v10  ;;  %v11479_v5 = vld [vmem:[#allocation14 + $0x54c] ss:$28 sps:$4 sm:$0xff]  }
 0x4c9   :  { %9083 = vmatpush1.bf16.msra.mxu0 %v11396_v14  ;;  %9114 = vmatprep.mubr.bf16.mxu0 %v12595_v15  ;;  %v11477_v14 = vld [vmem:[#allocation14 + $0x548] ss:$28 sps:$4 sm:$0xff]  }
 0x4ca   :  { %9084 = vmatprep.subr.bf16.mxu0 %v11404_v34  ;;  %v11485_v34 = vld [vmem:[#allocation14 + $0x584] ss:$28 sps:$4 sm:$0xff]  }
 0x4cb   :  { %9228 = vmatpush1.bf16.msra.mxu1 %v11399_v11  ;;  %v11482_v11 = vld [vmem:[#allocation14 + $0x694] ss:$28 sps:$4 sm:$0xff]  }
 0x4cc   :  { %9229 = vmatprep.subr.bf16.mxu1 %v11407_v24 }
 0x4cd   :  { %9085 = vmatpush1.bf16.msra.mxu0 %v11402_v4  ;;  %v11480_v4 = vld [vmem:[#allocation14 + $0x690] ss:$28 sps:$4 sm:$0xff]  }
 0x4ce   :  { %9086 = vmatprep.subr.bf16.mxu0 %v11410_v52  ;;  %v11986_v24 = vpop.eup %11985  ;;  %v11488_v52 = vld [vmem:[#allocation14 + $0x6cc] ss:$28 sps:$4 sm:$0xff]  }
 0x4cf   :  { %9230 = vmatpush1.bf16.msra.mxu1 %v11405_v6  ;;  %v11483_v6 = vld [vmem:[#allocation14 + $0x580] ss:$28 sps:$4 sm:$0xff]  }
 0x4d0   :  { %9231 = vmatprep.subr.bf16.mxu1 %v11413_v16  ;;  %v10587_v16 = vadd.f32 -1.0, %v11986_v24  ;;  %v11573_v24 = vld [vmem:[#allocation14 + $0x968] ss:$28 sps:$4 sm:$0xff]  }
 0x4d1   :  { %9087 = vmatpush1.bf16.msra.mxu0 %v11408_v17  ;;  %v11491_v17 = vld [vmem:[#allocation14 + $0x5bc] ss:$28 sps:$4 sm:$0xff]  }
 0x4d2   :  { %9088 = vmatprep.subr.bf16.mxu0 %v11416_v13  ;;  %v11489_v13 = vld [vmem:[#allocation14 + $0x5b8] ss:$28 sps:$4 sm:$0xff]  }
 0x4d3   :  { %9232 = vmatpush1.bf16.msra.mxu1 %v11411_v20  ;;  %v11486_v20 = vld [vmem:[#allocation14 + $0x6c8] ss:$28 sps:$4 sm:$0xff]  }
 0x4d4   :  { %9233 = vmatprep.subr.bf16.mxu1 %v11419_v3  ;;  %v11509_v3 = vld [vmem:[#allocation14 + $0x704] ss:$28 sps:$4 sm:$0xff]  }
 0x4d5   :  { %9089 = vmatpush1.bf16.msra.mxu0 %v11414_v21  ;;  %v6211_v21 = vsel %vm6195_vm15, %v11149_v58, %v10587_v16  ;;  %v11518_v58 = vld [vmem:[#allocation14 + $0x744] ss:$28 sps:$4 sm:$0xff]  }
 0x4d6   :  { %9090 = vmatprep.subr.bf16.mxu0 %v11422_v19  ;;  %v11507_v19 = vld [vmem:[#allocation14 + $0x700] ss:$28 sps:$4 sm:$0xff]  }
 0x4d7   :  { %9234 = vmatpush1.bf16.msra.mxu1 %v11417_v22  ;;  %v11494_v22 = vld [vmem:[#allocation14 + $0x5f4] ss:$28 sps:$4 sm:$0xff]   ;;  %v11579_v16 = vld [vmem:[#allocation14 + $0x9a0] ss:$28 sps:$4 sm:$0xff]  }
 0x4d8   :  { %9235 = vmatprep.subr.bf16.mxu1 %v11425_v25  ;;  %v12604_v25 = vpack.c.bf16 %v6211_v21, %v6211_v21  ;;  %v11558_v21 = vld [vmem:[#allocation14 + $0x8c8] ss:$28 sps:$4 sm:$0xff]  }
 0x4d9   :  { %9091 = vmatpush1.bf16.msra.mxu0 %v11420_v26  ;;  %v11492_v26 = vld [vmem:[#allocation14 + $0x5f0] ss:$28 sps:$4 sm:$0xff]  }
 0x4da   :  { %9092 = vmatprep.subr.bf16.mxu0 %v11428_v29  ;;  %v11497_v29 = vld [vmem:[#allocation14 + $0x62c] ss:$28 sps:$4 sm:$0xff]  }
 0x4db   :  { %9236 = vmatpush1.bf16.msra.mxu1 %v11423_v28  ;;  %v11515_v28 = vld [vmem:[#allocation14 + $0x73c] ss:$28 sps:$4 sm:$0xff]  }
 0x4dc   :  { %9246 = vmatprep.subr.bf16.mxu1 %v11431_v44  ;;  %v11513_v44 = vld [vmem:[#allocation14 + $0x738] ss:$28 sps:$4 sm:$0xff]  }
 0x4dd   :  { %9093 = vmatpush1.bf16.msra.mxu0 %v11426_v31  ;;  %v11495_v31 = vld [vmem:[#allocation14 + $0x628] ss:$28 sps:$4 sm:$0xff]  }
 0x4de   :  { %9238 = vmatmul.mubr.bf16.vlgmr.msra.gmra.mrb[24].mxu1 %v12593_v10  ;;  %9094 = vmatprep.subr.bf16.mxu0 %v11434_v48  ;;  %v11500_v48 = vld [vmem:[#allocation14 + $0x664] ss:$28 sps:$4 sm:$0xff]  }
 0x4df   :  { %9247 = vmatpush1.bf16.msra.mxu1 %v11429_v32  ;;  %9278 = vmatprep.mubr.bf16.mxu1 %v12595_v15  ;;  %v11521_v32 = vld [vmem:[#allocation14 + $0x774] ss:$28 sps:$4 sm:$0xff]  }
 0x4e0   :  { %9248 = vmatprep.subr.bf16.mxu1 %v11437_v47  ;;  %v11519_v47 = vld [vmem:[#allocation14 + $0x770] ss:$28 sps:$4 sm:$0xff]  }
 0x4e1   :  { %9095 = vmatpush1.bf16.msra.mxu0 %v11432_v33  ;;  %v11498_v33 = vld [vmem:[#allocation14 + $0x660] ss:$28 sps:$4 sm:$0xff]  }
 0x4e2   :  { %9096 = vmatprep.subr.bf16.mxu0 %v11440_v41  ;;  %v11503_v41 = vld [vmem:[#allocation14 + $0x69c] ss:$28 sps:$4 sm:$0xff]  }
 0x4e3   :  { %9249 = vmatpush1.bf16.msra.mxu1 %v11435_v54  ;;  %v11527_v54 = vld [vmem:[#allocation14 + $0x7ac] ss:$28 sps:$4 sm:$0xff]  }
 0x4e4   :  { %9250 = vmatprep.subr.bf16.mxu1 %v11443_v46  ;;  %v11525_v46 = vld [vmem:[#allocation14 + $0x7a8] ss:$28 sps:$4 sm:$0xff]  }
 0x4e5   :  { %9097 = vmatpush1.bf16.msra.mxu0 %v11438_v53  ;;  %v11501_v53 = vld [vmem:[#allocation14 + $0x698] ss:$28 sps:$4 sm:$0xff]  }
 0x4e6   :  { %9098 = vmatprep.subr.bf16.mxu0 %v11446_v35  ;;  %v11506_v35 = vld [vmem:[#allocation14 + $0x6d4] ss:$28 sps:$4 sm:$0xff]  }
 0x4e7   :  { %9251 = vmatpush1.bf16.msra.mxu1 %v11441_v18  ;;  %v11533_v18 = vld [vmem:[#allocation14 + $0x7e4] ss:$28 sps:$4 sm:$0xff]  }
 0x4e8   :  { %9252 = vmatprep.subr.bf16.mxu1 %v11449_v38  ;;  %v11531_v38 = vld [vmem:[#allocation14 + $0x7e0] ss:$28 sps:$4 sm:$0xff]  }
 0x4e9   :  { %9099 = vmatpush1.bf16.msra.mxu0 %v11444_v27  ;;  %v11504_v27 = vld [vmem:[#allocation14 + $0x6d0] ss:$28 sps:$4 sm:$0xff]  }
 0x4ea   :  { %9100 = vmatprep.subr.bf16.mxu0 %v11452_v55  ;;  %v11537_v55 = vld [vmem:[#allocation14 + $0x818] ss:$28 sps:$4 sm:$0xff]  }
 0x4eb   :  { %9253 = vmatpush1.bf16.msra.mxu1 %v11447_v40  ;;  %v11512_v40 = vld [vmem:[#allocation14 + $0x70c] ss:$28 sps:$4 sm:$0xff]  }
 0x4ec   :  { %9254 = vmatprep.subr.bf16.mxu1 %v11455_v56  ;;  %v11510_v56 = vld [vmem:[#allocation14 + $0x708] ss:$28 sps:$4 sm:$0xff]  }
 0x4ed   :  { %9101 = vmatpush1.bf16.msra.mxu0 %v11450_v57  ;;  %v11545_v57 = vld [vmem:[#allocation14 + $0x854] ss:$28 sps:$4 sm:$0xff]  }
 0x4ee   :  { %9102 = vmatprep.subr.bf16.mxu0 %v11458_v60  ;;  %v11516_v60 = vld [vmem:[#allocation14 + $0x740] ss:$28 sps:$4 sm:$0xff]  }
 0x4ef   :  { %9255 = vmatpush1.bf16.msra.mxu1 %v11453_v59  ;;  %v11543_v59 = vld [vmem:[#allocation14 + $0x850] ss:$28 sps:$4 sm:$0xff]  }
 0x4f0   :  { %9256 = vmatprep.subr.bf16.mxu1 %v11461_v61  ;;  %v11551_v61 = vld [vmem:[#allocation14 + $0x88c] ss:$28 sps:$4 sm:$0xff]  }
 0x4f1   :  { %9103 = vmatpush1.bf16.msra.mxu0 %v11456_v62  ;;  %v11524_v62 = vld [vmem:[#allocation14 + $0x77c] ss:$28 sps:$4 sm:$0xff]  }
 0x4f2   :  { %9104 = vmatprep.subr.bf16.mxu0 %v11464_v12  ;;  %v11557_v12 = vld [vmem:[#allocation14 + $0x8c4] ss:$28 sps:$4 sm:$0xff]  }
 0x4f3   :  { %9257 = vmatpush1.bf16.msra.mxu1 %v11459_v45  ;;  %v11522_v45 = vld [vmem:[#allocation14 + $0x778] ss:$28 sps:$4 sm:$0xff]  }
 0x4f4   :  { %9258 = vmatprep.subr.bf16.mxu1 %v11467_v30  ;;  %v11530_v30 = vld [vmem:[#allocation14 + $0x7b4] ss:$28 sps:$4 sm:$0xff]  }
 0x4f5   :  { %9105 = vmatpush1.bf16.msra.mxu0 %v11462_v23  ;;  %v11555_v23 = vld [vmem:[#allocation14 + $0x8c0] ss:$28 sps:$4 sm:$0xff]  }
 0x4f6   :  { %9106 = vmatprep.subr.bf16.mxu0 %v11470_v49  ;;  %v11563_v49 = vld [vmem:[#allocation14 + $0x8fc] ss:$28 sps:$4 sm:$0xff]  }
 0x4f7   :  { %9259 = vmatpush1.bf16.msra.mxu1 %v11465_v39  ;;  %v11528_v39 = vld [vmem:[#allocation14 + $0x7b0] ss:$28 sps:$4 sm:$0xff]  }
 0x4f8   :  { %9260 = vmatprep.subr.bf16.mxu1 %v11473_v0  ;;  %v11536_v0 = vld [vmem:[#allocation14 + $0x7ec] ss:$28 sps:$4 sm:$0xff]  }
 0x4f9   :  { %9107 = vmatpush1.bf16.msra.mxu0 %v11468_v1  ;;  %v11561_v1 = vld [vmem:[#allocation14 + $0x8f8] ss:$28 sps:$4 sm:$0xff]  }
 0x4fa   :  { %9108 = vmatprep.subr.bf16.mxu0 %v11476_v37  ;;  %v11569_v37 = vld [vmem:[#allocation14 + $0x934] ss:$28 sps:$4 sm:$0xff]  }
 0x4fb   :  { %9261 = vmatpush1.bf16.msra.mxu1 %v11471_v2  ;;  %v11534_v2 = vld [vmem:[#allocation14 + $0x7e8] ss:$28 sps:$4 sm:$0xff]  }
 0x4fc   :  { %9262 = vmatprep.subr.bf16.mxu1 %v11479_v5  ;;  %v11542_v5 = vld [vmem:[#allocation14 + $0x824] ss:$28 sps:$4 sm:$0xff]  }
 0x4fd   :  { %9109 = vmatpush1.bf16.msra.mxu0 %v11474_v9  ;;  %v11567_v9 = vld [vmem:[#allocation14 + $0x930] ss:$28 sps:$4 sm:$0xff]  }
 0x4fe   :  { %9110 = vmatprep.subr.bf16.mxu0 %v11482_v11  ;;  %v11575_v11 = vld [vmem:[#allocation14 + $0x96c] ss:$28 sps:$4 sm:$0xff]  }
 0x4ff   :  { %9263 = vmatpush1.bf16.msra.mxu1 %v11477_v14  ;;  %v11540_v14 = vld [vmem:[#allocation14 + $0x820] ss:$28 sps:$4 sm:$0xff]  }
 0x500   :  { %9264 = vmatprep.subr.bf16.mxu1 %v11485_v34  ;;  %v11548_v34 = vld [vmem:[#allocation14 + $0x85c] ss:$28 sps:$4 sm:$0xff]  }
 0x501   :  { %9111 = vmatpush1.bf16.msra.mxu0 %v11480_v4  ;;  %v11546_v4 = vld [vmem:[#allocation14 + $0x858] ss:$28 sps:$4 sm:$0xff]  }
 0x502   :  { %9112 = vmatprep.subr.bf16.mxu0 %v11488_v52  ;;  %v11554_v52 = vld [vmem:[#allocation14 + $0x894] ss:$28 sps:$4 sm:$0xff]  }
 0x503   :  { %9265 = vmatpush1.bf16.msra.mxu1 %v11483_v6  ;;  %v11581_v6 = vld [vmem:[#allocation14 + $0x9a4] ss:$28 sps:$4 sm:$0xff]  }
 0x504   :  { %9266 = vmatprep.subr.bf16.mxu1 %v11491_v17  ;;  %v11552_v17 = vld [vmem:[#allocation14 + $0x890] ss:$28 sps:$4 sm:$0xff]  }
 0x505   :  { %9113 = vmatpush1.bf16.msra.mxu0 %v11486_v20  ;;  %v11587_v20 = vld [vmem:[#allocation14 + $0x9dc] ss:$28 sps:$4 sm:$0xff]  }
 0x506   :  { %9123 = vmatprep.subr.bf16.mxu0 %v11509_v3  ;;  %v11585_v3 = vld [vmem:[#allocation14 + $0x9d8] ss:$28 sps:$4 sm:$0xff]  }
 0x507   :  { %9267 = vmatpush1.bf16.msra.mxu1 %v11489_v13  ;;  %v11560_v13 = vld [vmem:[#allocation14 + $0x8cc] ss:$28 sps:$4 sm:$0xff]  }
 0x508   :  { %9268 = vmatprep.subr.bf16.mxu1 %v11494_v22  ;;  %9115 = vmatmul.mubr.bf16.vlgmr.msra.gmra.mrb[20].mxu0 %v12604_v25  ;;  %v11593_v22 = vld [vmem:[#allocation14 + $0xa14] ss:$28 sps:$4 sm:$0xff]  }
 0x509   :  { %9124 = vmatpush1.bf16.msra.mxu0 %v11507_v19  ;;  %v11566_v19 = vld [vmem:[#allocation14 + $0x904] ss:$28 sps:$4 sm:$0xff]  }
 0x50a   :  { %9125 = vmatprep.subr.bf16.mxu0 %v11515_v28  ;;  %v11564_v28 = vld [vmem:[#allocation14 + $0x900] ss:$28 sps:$4 sm:$0xff]  }
 0x50b   :  { %9269 = vmatpush1.bf16.msra.mxu1 %v11492_v26  ;;  %v11591_v26 = vld [vmem:[#allocation14 + $0xa10] ss:$28 sps:$4 sm:$0xff]  }
 0x50c   :  { %9270 = vmatprep.subr.bf16.mxu1 %v11497_v29  ;;  %v11599_v29 = vld [vmem:[#allocation14 + $0xa4c] ss:$28 sps:$4 sm:$0xff]  }
 0x50d   :  { %9126 = vmatpush1.bf16.msra.mxu0 %v11513_v44  ;;  %v11572_v44 = vld [vmem:[#allocation14 + $0x93c] ss:$28 sps:$4 sm:$0xff]  }
 0x50e   :  { %9127 = vmatprep.subr.bf16.mxu0 %v11521_v32  ;;  %v11570_v32 = vld [vmem:[#allocation14 + $0x938] ss:$28 sps:$4 sm:$0xff]  }
 0x50f   :  { %9271 = vmatpush1.bf16.msra.mxu1 %v11495_v31  ;;  %v11597_v31 = vld [vmem:[#allocation14 + $0xa48] ss:$28 sps:$4 sm:$0xff]  }
 0x510   :  { %9272 = vmatprep.subr.bf16.mxu1 %v11500_v48  ;;  %v11605_v48 = vld [vmem:[#allocation14 + $0xa84] ss:$28 sps:$4 sm:$0xff]  }
 0x511   :  { %9128 = vmatpush1.bf16.msra.mxu0 %v11519_v47  ;;  %v11578_v47 = vld [vmem:[#allocation14 + $0x974] ss:$28 sps:$4 sm:$0xff]  }
 0x512   :  { %9129 = vmatprep.subr.bf16.mxu0 %v11527_v54  ;;  %v11584_v54 = vld [vmem:[#allocation14 + $0x9ac] ss:$28 sps:$4 sm:$0xff]  }
 0x513   :  { %9273 = vmatpush1.bf16.msra.mxu1 %v11498_v33  ;;  %v11576_v33 = vld [vmem:[#allocation14 + $0x970] ss:$28 sps:$4 sm:$0xff]  }
 0x514   :  { %9274 = vmatprep.subr.bf16.mxu1 %v11503_v41  ;;  %v11582_v41 = vld [vmem:[#allocation14 + $0x9a8] ss:$28 sps:$4 sm:$0xff]  }
 0x515   :  { %9130 = vmatpush1.bf16.msra.mxu0 %v11525_v46  ;;  %v11590_v46 = vld [vmem:[#allocation14 + $0x9e4] ss:$28 sps:$4 sm:$0xff]  }
 0x516   :  { %9131 = vmatprep.subr.bf16.mxu0 %v11533_v18  ;;  %v11596_v18 = vld [vmem:[#allocation14 + $0xa1c] ss:$28 sps:$4 sm:$0xff]  }
 0x517   :  { %9275 = vmatpush1.bf16.msra.mxu1 %v11501_v53  ;;  %v11588_v53 = vld [vmem:[#allocation14 + $0x9e0] ss:$28 sps:$4 sm:$0xff]  }
 0x518   :  { %9276 = vmatprep.subr.bf16.mxu1 %v11506_v35  ;;  %v11594_v35 = vld [vmem:[#allocation14 + $0xa18] ss:$28 sps:$4 sm:$0xff]  }
 0x519   :  { %9132 = vmatpush1.bf16.msra.mxu0 %v11531_v38  ;;  %v11602_v38 = vld [vmem:[#allocation14 + $0xa54] ss:$28 sps:$4 sm:$0xff]  }
 0x51a   :  { %9133 = vmatprep.subr.bf16.mxu0 %v11539_v8  ;;  %v11608_v8 = vld [vmem:[#allocation14 + $0xa8c] ss:$28 sps:$4 sm:$0xff]  }
 0x51b   :  { %9277 = vmatpush1.bf16.msra.mxu1 %v11504_v27  ;;  %v11600_v27 = vld [vmem:[#allocation14 + $0xa50] ss:$28 sps:$4 sm:$0xff]  }
 0x51c   :  { %9287 = vmatprep.subr.bf16.mxu1 %v11512_v40  ;;  %v12608_v40 = vld [vmem:[#allocation13] sm:$0xff] }
 0x51d   :  { %9134 = vmatpush1.bf16.msra.mxu0 %v11537_v55  ;;  %v2940_v55 = vrot.slane %v12608_v40, %v729_v51 }
 0x51e   :  { %9279 = vmatmul.mubr.bf16.vlgmr.msra.gmra.mrb[24].mxu1 %v12604_v25  ;;  %9135 = vmatprep.subr.bf16.mxu0 %v11545_v57 }
 0x51f   :  { %9288 = vmatpush1.bf16.msra.mxu1 %v11510_v56  ;;  %v2944_v56 = vrot.slane %v12608_v40, %v733_v42 }
 0x520   :  { %9289 = vmatprep.subr.bf16.mxu1 %v11518_v58 }
 0x521   :  { %9136 = vmatpush1.bf16.msra.mxu0 %v11543_v59 }
 0x522   :  { %9137 = vmatprep.subr.bf16.mxu0 %v11551_v61 }
 0x523   :  { %9290 = vmatpush1.bf16.msra.mxu1 %v11516_v60 }
 0x524   :  { %9291 = vmatprep.subr.bf16.mxu1 %v11524_v62 }
 0x525   :  { %9138 = vmatpush1.bf16.msra.mxu0 %v11549_v63 }
 0x526   :  { %9139 = vmatprep.subr.bf16.mxu0 %v11557_v12 }
 0x527   :  { %9292 = vmatpush1.bf16.msra.mxu1 %v11522_v45 }
 0x528   :  { %9293 = vmatprep.subr.bf16.mxu1 %v11530_v30 }
 0x529   :  { %9140 = vmatpush1.bf16.msra.mxu0 %v11555_v23 }
 0x52a   :  { %9141 = vmatprep.subr.bf16.mxu0 %v11563_v49  ;;  %v2952_v49 = vrot.slane %v12608_v40, %v741_v50 }
 0x52b   :  { %9294 = vmatpush1.bf16.msra.mxu1 %v11528_v39 }
 0x52c   :  { %9295 = vmatprep.subr.bf16.mxu1 %v11536_v0 }
 0x52d   :  { %9142 = vmatpush1.bf16.msra.mxu0 %v11561_v1  ;;  %v11603_v1 = vld [vmem:[#allocation14 + $0xa80] ss:$28 sps:$4 sm:$0xff]  }
 0x52e   :  { %9143 = vmatprep.subr.bf16.mxu0 %v11569_v37 }
 0x52f   :  { %9296 = vmatpush1.bf16.msra.mxu1 %v11534_v2  ;;  %v11606_v2 = vld [vmem:[#allocation14 + $0xa88] ss:$28 sps:$4 sm:$0xff]  }
 0x530   :  { %9297 = vmatprep.subr.bf16.mxu1 %v11542_v5 }
 0x531   :  { %9144 = vmatpush1.bf16.msra.mxu0 %v11567_v9  ;;  %v11611_v9 = vld [vmem:[#allocation14 + $0xabc] ss:$28 sps:$4 sm:$0xff]  }
 0x532   :  { %9145 = vmatprep.subr.bf16.mxu0 %v11575_v11 }
 0x533   :  { %9298 = vmatpush1.bf16.msra.mxu1 %v11540_v14  ;;  %v11614_v14 = vld [vmem:[#allocation14 + $0xac4] ss:$28 sps:$4 sm:$0xff]  }
 0x534   :  { %9299 = vmatprep.subr.bf16.mxu1 %v11548_v34 }
 0x535   :  { %9146 = vmatpush1.bf16.msra.mxu0 %v11573_v24 }
 0x536   :  { %9147 = vmatprep.subr.bf16.mxu0 %v11581_v6  ;;  %v11612_v6 = vld [vmem:[#allocation14 + $0xac0] ss:$28 sps:$4 sm:$0xff]  }
 0x537   :  { %9300 = vmatpush1.bf16.msra.mxu1 %v11546_v4  ;;  %v11609_v4 = vld [vmem:[#allocation14 + $0xab8] ss:$28 sps:$4 sm:$0xff]  }
 0x538   :  { %9301 = vmatprep.subr.bf16.mxu1 %v11554_v52 }
 0x539   :  { %9148 = vmatpush1.bf16.msra.mxu0 %v11579_v16  ;;  %v11617_v16 = vld [vmem:[#allocation14 + $0xaf4] ss:$28 sps:$4 sm:$0xff]  }
 0x53a   :  { %9149 = vmatprep.subr.bf16.mxu0 %v11587_v20  ;;  %v11615_v20 = vld [vmem:[#allocation14 + $0xaf0] ss:$28 sps:$4 sm:$0xff]  }
 0x53b   :  { %9302 = vmatpush1.bf16.msra.mxu1 %v11552_v17  ;;  %v11620_v17 = vld [vmem:[#allocation14 + $0xafc] ss:$28 sps:$4 sm:$0xff]  }
 0x53c   :  { %9303 = vmatprep.subr.bf16.mxu1 %v11560_v13  ;;  %v11618_v13 = vld [vmem:[#allocation14 + $0xaf8] ss:$28 sps:$4 sm:$0xff]  }
 0x53d   :  { %9150 = vmatpush1.bf16.msra.mxu0 %v11585_v3  ;;  %v11623_v3 = vld [vmem:[#allocation14 + $0xb2c] ss:$28 sps:$4 sm:$0xff]  }
 0x53e   :  { %9151 = vmatprep.subr.bf16.mxu0 %v11593_v22  ;;  %v11621_v22 = vld [vmem:[#allocation14 + $0xb28] ss:$28 sps:$4 sm:$0xff]  }
 0x53f   :  { %9304 = vmatpush1.bf16.msra.mxu1 %v11558_v21  ;;  %v11626_v21 = vld [vmem:[#allocation14 + $0xb34] ss:$28 sps:$4 sm:$0xff]  }
 0x540   :  { %9305 = vmatprep.subr.bf16.mxu1 %v11566_v19  ;;  %v11624_v19 = vld [vmem:[#allocation14 + $0xb30] ss:$28 sps:$4 sm:$0xff]  }
 0x541   :  { %9152 = vmatpush1.bf16.msra.mxu0 %v11591_v26  ;;  %v11629_v26 = vld [vmem:[#allocation14 + $0xb64] ss:$28 sps:$4 sm:$0xff]  }
 0x542   :  { %9153 = vmatprep.subr.bf16.mxu0 %v11599_v29  ;;  %v11627_v29 = vld [vmem:[#allocation14 + $0xb60] ss:$28 sps:$4 sm:$0xff]  }
 0x543   :  { %9306 = vmatpush1.bf16.msra.mxu1 %v11564_v28  ;;  %v11632_v28 = vld [vmem:[#allocation14 + $0xb6c] ss:$28 sps:$4 sm:$0xff]  }
 0x544   :  { %9307 = vmatprep.subr.bf16.mxu1 %v11572_v44  ;;  %v11630_v44 = vld [vmem:[#allocation14 + $0xb68] ss:$28 sps:$4 sm:$0xff]  }
 0x545   :  { %9154 = vmatpush1.bf16.msra.mxu0 %v11597_v31 }
 0x546   :  { %9164 = vmatprep.subr.bf16.mxu0 %v11605_v48  ;;  %v11638_v48 = vld [vmem:[#allocation14 + $0xba4] ss:$28 sps:$4 sm:$0xff]  }
 0x547   :  { %9308 = vmatpush1.bf16.msra.mxu1 %v11570_v32  ;;  %v11635_v32 = vld [vmem:[#allocation14 + $0xb9c] ss:$28 sps:$4 sm:$0xff]  }
 0x548   :  { %9309 = vmatprep.subr.bf16.mxu1 %v11578_v47 }
 0x54b   :  { %9310 = vmatpush1.bf16.msra.mxu1 %v11576_v33 }
 0x54c   :  { %9311 = vmatprep.subr.bf16.mxu1 %v11584_v54  ;;  %v11633_v54 = vld [vmem:[#allocation14 + $0xb98] ss:$28 sps:$4 sm:$0xff]  }
 0x54f   :  { %9312 = vmatpush1.bf16.msra.mxu1 %v11582_v41  ;;  %v11636_v41 = vld [vmem:[#allocation14 + $0xba0] ss:$28 sps:$4 sm:$0xff]  }
 0x550   :  { %9313 = vmatprep.subr.bf16.mxu1 %v11590_v46 }
 0x553   :  { %9314 = vmatpush1.bf16.msra.mxu1 %v11588_v53  ;;  %v11641_v53 = vld [vmem:[#allocation14 + $0xbd4] ss:$28 sps:$4 sm:$0xff]  }
 0x554   :  { %9315 = vmatprep.subr.bf16.mxu1 %v11596_v18  ;;  %v11644_v18 = vld [vmem:[#allocation14 + $0xbdc] ss:$28 sps:$4 sm:$0xff]  }
 0x557   :  { %9316 = vmatpush1.bf16.msra.mxu1 %v11594_v35  ;;  %v11639_v35 = vld [vmem:[#allocation14 + $0xbd0] ss:$28 sps:$4 sm:$0xff]  }
 0x558   :  { %9317 = vmatprep.subr.bf16.mxu1 %v11602_v38  ;;  %v11642_v38 = vld [vmem:[#allocation14 + $0xbd8] ss:$28 sps:$4 sm:$0xff]  }
 0x55b   :  { %9318 = vmatpush1.bf16.msra.mxu1 %v11600_v27  ;;  %v6006_v57 = vpop.f32.mrb[16].mxu0  ;;  %v11647_v27 = vld [vmem:[#allocation14 + $0xc0c] ss:$28 sps:$4 sm:$0xff]  }
 0x55c   :  { %9328 = vmatprep.subr.bf16.mxu1 %v11608_v8  ;;  %v11151_v58 = vadd.f32 %v6006_v57, %v2940_v55  ;;  %v6008_v59 = vpop.f32.mrb[17].mxu0  ;;  %v11650_v8 = vld [vmem:[#allocation14 + $0xc14] ss:$28 sps:$4 sm:$0xff]   ;;  %v11645_v55 = vld [vmem:[#allocation14 + $0xc08] ss:$28 sps:$4 sm:$0xff]  }
 0x55d   :  { %v11152_v60 = vadd.f32 %v6008_v59, %v2944_v56  ;;  %v6010_v61 = vpop.f32.mrb[18].mxu0  ;;  %v11648_v56 = vld [vmem:[#allocation14 + $0xc10] ss:$28 sps:$4 sm:$0xff]   ;;  %v11653_v57 = vld [vmem:[#allocation14 + $0xc44] ss:$28 sps:$4 sm:$0xff]  }
 0x55e   :  { %v6185_v62 = vmul.f32 1.442695, %v11151_v58  ;;  %v6011_v63 = vpop.f32.mrb[19].mxu0  ;;  %vm6197_vm0 = vcmp.gt.f32.partialorder %v11151_v58, 0.0  ;;  %v11651_v59 = vld [vmem:[#allocation14 + $0xc40] ss:$28 sps:$4 sm:$0xff]   ;;  %v2948_v61 = vrot.slane %v12608_v40, %v737_v7 }
 0x55f   :  { %v6187_v45 = vmul.f32 1.442695, %v11152_v60  ;;  %vm6198_vm1 = vcmp.gt.f32.partialorder %v11152_v60, 0.0  ;;  %v11662_v63 = vld [vmem:[#allocation14 + $0xc84] ss:$28 sps:$4 sm:$0xff]  }
 0x560   :  { %11987 = vpow2.f32 %v6185_v62  ;;  %v11659_v62 = vld [vmem:[#allocation14 + $0xc7c] ss:$28 sps:$4 sm:$0xff]   ;;  %v11671_v7 = vld [vmem:[#allocation14 + $0xcec] ss:$28 sps:$4 sm:$0xff]   ;;  %v11674_v40 = vld [vmem:[#allocation14 + $0xcf4] ss:$28 sps:$4 sm:$0xff]  }
 0x561   :  { %11989 = vpow2.f32 %v6187_v45  ;;  %v11657_v45 = vld [vmem:[#allocation14 + $0xc78] ss:$28 sps:$4 sm:$0xff]  }
 0x56a   :  { %v11988_v12 = vpop.eup %11987 }
 0x56b   :  { %v11990_v30 = vpop.eup %11989  ;;  %v10589_v23 = vadd.f32 -1.0, %v11988_v12  ;;  %v11660_v12 = vld [vmem:[#allocation14 + $0xc80] ss:$28 sps:$4 sm:$0xff]  }
 0x56c   :  { %v10590_v51 = vadd.f32 -1.0, %v11990_v30 }
 0x56d   :  { %v6213_v39 = vsel %vm6197_vm0, %v11151_v58, %v10589_v23  ;;  %v11656_v58 = vld [vmem:[#allocation14 + $0xc4c] ss:$28 sps:$4 sm:$0xff]   ;;  %v11665_v23 = vld [vmem:[#allocation14 + $0xcb4] ss:$28 sps:$4 sm:$0xff]  }
 0x56e   :  { %v6214_v42 = vsel %vm6198_vm1, %v11152_v60, %v10590_v51  ;;  %v12621_v37 = vpack.c.bf16 %v6213_v39, %v6213_v39  ;;  %v11654_v60 = vld [vmem:[#allocation14 + $0xc48] ss:$28 sps:$4 sm:$0xff]   ;;  %v11668_v51 = vld [vmem:[#allocation14 + $0xcbc] ss:$28 sps:$4 sm:$0xff]   ;;  %v11663_v39 = vld [vmem:[#allocation14 + $0xcb0] ss:$28 sps:$4 sm:$0xff]  }
 0x56f   :  { %v12619_v0 = vpack.c.bf16 %v6214_v42, %v6214_v42 }
 0x571   :  { %v12623_v5 = vpop.f32.mrb[20].mxu1  ;;  %9155 = vmatprep.mubr.bf16.mxu0 %v12619_v0  ;;  %9319 = vmatprep.mubr.bf16.mxu1 %v12619_v0 }
 0x572   :  { %v6172_v11 = vpop.f32.mrb[21].mxu1  ;;  %9156 = vmatmul.mubr.bf16.vlgmr.msra.gmra.mrb[20].mxu0 %v12621_v37  ;;  %9320 = vmatmul.mubr.bf16.vlgmr.msra.gmra.mrb[24].mxu1 %v12621_v37  ;;  %v11153_v30 = vadd.f32 %v12623_v5, %v2948_v61  ;;  %v11680_v5 = vld [vmem:[#allocation14 + $0xd2c] ss:$28 sps:$4 sm:$0xff]  }
 0x573   :  { %v11154_v50 = vadd.f32 %v6172_v11, %v2952_v49  ;;  %v6174_v34 = vpop.f32.mrb[22].mxu1  ;;  %9165 = vmatpush1.bf16.msra.mxu0 %v11603_v1  ;;  %9329 = vmatpush1.bf16.msra.mxu1 %v11606_v2  ;;  %v11669_v49 = vld [vmem:[#allocation14 + $0xce8] ss:$28 sps:$4 sm:$0xff]   ;;  %v11672_v1 = vld [vmem:[#allocation14 + $0xcf0] ss:$28 sps:$4 sm:$0xff]  }
 0x574   :  { %v6175_v24 = vpop.f32.mrb[23].mxu1  ;;  %9166 = vmatprep.subr.bf16.mxu0 %v11611_v9  ;;  %9330 = vmatprep.subr.bf16.mxu1 %v11614_v14  ;;  %v6189_v42 = vmul.f32 1.442695, %v11153_v30  ;;  %v11677_v2 = vld [vmem:[#allocation14 + $0xd24] ss:$28 sps:$4 sm:$0xff]   ;;  %vm6199_vm3 = vcmp.gt.f32.partialorder %v11153_v30, 0.0 }
 0x575   :  { %v6191_v52 = vmul.f32 1.442695, %v11154_v50  ;;  %vm6200_vm2 = vcmp.gt.f32.partialorder %v11154_v50, 0.0  ;;  %v11675_v9 = vld [vmem:[#allocation14 + $0xd20] ss:$28 sps:$4 sm:$0xff]  }
 0x576   :  { %v11678_v14 = vld [vmem:[#allocation14 + $0xd28] ss:$28 sps:$4 sm:$0xff]   ;;  %v11683_v11 = vld [vmem:[#allocation14 + $0xd5c] ss:$28 sps:$4 sm:$0xff]   ;;  %v11728_v61 = vld [vmem:[#allocation14 + $0x130] ss:$28 sps:$4 sm:$0xff]  }
 0x577   :  { %11991 = vpow2.f32 %v6191_v52  ;;  %9167 = vmatpush1.bf16.msra.mxu0 %v11609_v4  ;;  %9331 = vmatpush1.bf16.msra.mxu1 %v11612_v6  ;;  %v11681_v34 = vld [vmem:[#allocation14 + $0xd58] ss:$28 sps:$4 sm:$0xff]   ;;  %v11684_v24 = vld [vmem:[#allocation14 + $0xd60] ss:$28 sps:$4 sm:$0xff]  }
 0x578   :  { %9168 = vmatprep.subr.bf16.mxu0 %v11617_v16  ;;  %9332 = vmatprep.subr.bf16.mxu1 %v11620_v17  ;;  %11993 = vpow2.f32 %v6189_v42  ;;  %v11689_v4 = vld [vmem:[#allocation14 + $0xd94] ss:$28 sps:$4 sm:$0xff]   ;;  %v11692_v6 = vld [vmem:[#allocation14 + $0xd9c] ss:$28 sps:$4 sm:$0xff]  }
 0x579   :  { %v11687_v16 = vld [vmem:[#allocation14 + $0xd90] ss:$28 sps:$4 sm:$0xff]   ;;  %v11690_v17 = vld [vmem:[#allocation14 + $0xd98] ss:$28 sps:$4 sm:$0xff]  }
 0x57a   :  { %v11742_v42 = vld [vmem:[#allocation14 + $0x558] ss:$28 sps:$4 sm:$0xff]  }
 0x57b   :  { %9169 = vmatpush1.bf16.msra.mxu0 %v11615_v20  ;;  %9333 = vmatpush1.bf16.msra.mxu1 %v11618_v13  ;;  %v11695_v20 = vld [vmem:[#allocation14 + $0xdcc] ss:$28 sps:$4 sm:$0xff]   ;;  %v11698_v13 = vld [vmem:[#allocation14 + $0xdd4] ss:$28 sps:$4 sm:$0xff]  }
 0x57c   :  { %9170 = vmatprep.subr.bf16.mxu0 %v11623_v3  ;;  %9334 = vmatprep.subr.bf16.mxu1 %v11626_v21  ;;  %v11693_v21 = vld [vmem:[#allocation14 + $0xdc8] ss:$28 sps:$4 sm:$0xff]  }
 0x57f   :  { %9171 = vmatpush1.bf16.msra.mxu0 %v11621_v22  ;;  %9335 = vmatpush1.bf16.msra.mxu1 %v11624_v19  ;;  %v11696_v22 = vld [vmem:[#allocation14 + $0xdd0] ss:$28 sps:$4 sm:$0xff]  }
 0x580   :  { %9172 = vmatprep.subr.bf16.mxu0 %v11629_v26  ;;  %9336 = vmatprep.subr.bf16.mxu1 %v11632_v28  ;;  %v11701_v19 = vld [vmem:[#allocation14 + $0x14] ss:$28 sps:$4 sm:$0xff]  }
 0x581   :  { %v11992_v31 = vpop.eup %11991  ;;  %v11702_v26 = vld [vmem:[#allocation14 + $0x1d8] ss:$28 sps:$4 sm:$0xff]  }
 0x582   :  { %v10592_v47 = vadd.f32 -1.0, %v11992_v31  ;;  %v11994_v52 = vpop.eup %11993  ;;  %v11703_v31 = vld [vmem:[#allocation14 + $0x18] ss:$28 sps:$4 sm:$0xff]  }
 0x583   :  { %9173 = vmatpush1.bf16.msra.mxu0 %v11627_v29  ;;  %9337 = vmatpush1.bf16.msra.mxu1 %v11630_v44  ;;  %v10591_v3 = vadd.f32 -1.0, %v11994_v52  ;;  %v11699_v29 = vld [vmem:[#allocation14 + $0x10] ss:$28 sps:$4 sm:$0xff]  }
 0x584   :  { %v6216_v33 = vsel %vm6200_vm2, %v11154_v50, %v10592_v47  ;;  %9174 = vmatprep.subr.bf16.mxu0 %v11635_v32  ;;  %9338 = vmatprep.subr.bf16.mxu1 %v11638_v48  ;;  %v11686_v50 = vld [vmem:[#allocation14 + $0xd64] ss:$28 sps:$4 sm:$0xff]   ;;  %v11706_v32 = vld [vmem:[#allocation14 + $0x4c] ss:$28 sps:$4 sm:$0xff]   ;;  %v11761_v52 = vld [vmem:[#allocation14 + $0x2b4] ss:$28 sps:$4 sm:$0xff]  }
 0x585   :  { %v12629_v46 = vpack.c.bf16 %v6216_v33, %v6216_v33  ;;  %v6215_v28 = vsel %vm6199_vm3, %v11153_v30, %v10591_v3  ;;  %v11707_v48 = vld [vmem:[#allocation14 + $0x210] ss:$28 sps:$4 sm:$0xff]   ;;  %v11704_v47 = vld [vmem:[#allocation14 + $0x48] ss:$28 sps:$4 sm:$0xff]   ;;  %v11736_v30 = vld [vmem:[#allocation14 + $0x19c] ss:$28 sps:$4 sm:$0xff]  }
 0x586   :  { %v12637_v44 = vpack.c.bf16 %v6215_v28, %v6215_v28  ;;  %v11708_v33 = vld [vmem:[#allocation14 + $0x50] ss:$28 sps:$4 sm:$0xff]   ;;  %v11769_v28 = vld [vmem:[#allocation14 + $0x320] ss:$28 sps:$4 sm:$0xff]  }
 0x587   :  { %9196 = vmatprep.mubr.bf16.mxu0 %v12629_v46  ;;  %9360 = vmatprep.mubr.bf16.mxu1 %v12629_v46  ;;  %v11767_v3 = vld [vmem:[#allocation14 + $0x670] ss:$28 sps:$4 sm:$0xff]  }
 0x588   :  { %9175 = vmatpush1.bf16.msra.mxu0 %v11633_v54  ;;  %9339 = vmatpush1.bf16.msra.mxu1 %v11636_v41  ;;  %v11711_v54 = vld [vmem:[#allocation14 + $0x84] ss:$28 sps:$4 sm:$0xff]  }
 0x589   :  { %9176 = vmatprep.subr.bf16.mxu0 %v11641_v53  ;;  %9340 = vmatprep.subr.bf16.mxu1 %v11644_v18  ;;  %v11712_v41 = vld [vmem:[#allocation14 + $0x248] ss:$28 sps:$4 sm:$0xff]   ;;  %v11709_v53 = vld [vmem:[#allocation14 + $0x80] ss:$28 sps:$4 sm:$0xff]  }
 0x58a   :  { %v11713_v18 = vld [vmem:[#allocation14 + $0x88] ss:$28 sps:$4 sm:$0xff]  }
 0x58c   :  { %9177 = vmatpush1.bf16.msra.mxu0 %v11639_v35  ;;  %9341 = vmatpush1.bf16.msra.mxu1 %v11642_v38  ;;  %v11716_v35 = vld [vmem:[#allocation14 + $0xbc] ss:$28 sps:$4 sm:$0xff]  }
 0x58d   :  { %9178 = vmatprep.subr.bf16.mxu0 %v11647_v27  ;;  %9342 = vmatprep.subr.bf16.mxu1 %v11650_v8  ;;  %v11717_v38 = vld [vmem:[#allocation14 + $0x280] ss:$28 sps:$4 sm:$0xff]   ;;  %v11714_v27 = vld [vmem:[#allocation14 + $0xb8] ss:$28 sps:$4 sm:$0xff]  }
 0x58e   :  { %v11718_v8 = vld [vmem:[#allocation14 + $0xc0] ss:$28 sps:$4 sm:$0xff]  }
 0x590   :  { %9179 = vmatpush1.bf16.msra.mxu0 %v11645_v55  ;;  %9343 = vmatpush1.bf16.msra.mxu1 %v11648_v56  ;;  %v11721_v55 = vld [vmem:[#allocation14 + $0xf4] ss:$28 sps:$4 sm:$0xff]  }
 0x591   :  { %9180 = vmatprep.subr.bf16.mxu0 %v11653_v57  ;;  %9344 = vmatprep.subr.bf16.mxu1 %v11656_v58  ;;  %v11719_v56 = vld [vmem:[#allocation14 + $0xf0] ss:$28 sps:$4 sm:$0xff]   ;;  %v11723_v57 = vld [vmem:[#allocation14 + $0xf8] ss:$28 sps:$4 sm:$0xff]  }
 0x592   :  { %v11726_v58 = vld [vmem:[#allocation14 + $0x12c] ss:$28 sps:$4 sm:$0xff]  }
 0x594   :  { %9181 = vmatpush1.bf16.msra.mxu0 %v11651_v59  ;;  %9345 = vmatpush1.bf16.msra.mxu1 %v11654_v60  ;;  %v11727_v59 = vld [vmem:[#allocation14 + $0x2f0] ss:$28 sps:$4 sm:$0xff]   ;;  %v11724_v60 = vld [vmem:[#allocation14 + $0x128] ss:$28 sps:$4 sm:$0xff]  }
 0x595   :  { %9182 = vmatprep.subr.bf16.mxu0 %v11659_v62  ;;  %9346 = vmatprep.subr.bf16.mxu1 %v11662_v63  ;;  %v11731_v62 = vld [vmem:[#allocation14 + $0x164] ss:$28 sps:$4 sm:$0xff]  }
 0x596   :  { %v11732_v63 = vld [vmem:[#allocation14 + $0x328] ss:$28 sps:$4 sm:$0xff]  }
 0x598   :  { %9183 = vmatpush1.bf16.msra.mxu0 %v11657_v45  ;;  %9347 = vmatpush1.bf16.msra.mxu1 %v11660_v12  ;;  %v11729_v45 = vld [vmem:[#allocation14 + $0x160] ss:$28 sps:$4 sm:$0xff]   ;;  %v11733_v12 = vld [vmem:[#allocation14 + $0x168] ss:$28 sps:$4 sm:$0xff]  }
 0x599   :  { %9184 = vmatprep.subr.bf16.mxu0 %v11665_v23  ;;  %9348 = vmatprep.subr.bf16.mxu1 %v11668_v51  ;;  %v11737_v23 = vld [vmem:[#allocation14 + $0x360] ss:$28 sps:$4 sm:$0xff]   ;;  %v11734_v51 = vld [vmem:[#allocation14 + $0x198] ss:$28 sps:$4 sm:$0xff]  }
 0x59c   :  { %9185 = vmatpush1.bf16.msra.mxu0 %v11663_v39  ;;  %9349 = vmatpush1.bf16.msra.mxu1 %v11666_v43  ;;  %v11738_v39 = vld [vmem:[#allocation14 + $0x1a0] ss:$28 sps:$4 sm:$0xff]   ;;  %v11741_v43 = vld [vmem:[#allocation14 + $0x1d4] ss:$28 sps:$4 sm:$0xff]  }
 0x59d   :  { %9186 = vmatprep.subr.bf16.mxu0 %v11671_v7  ;;  %9350 = vmatprep.subr.bf16.mxu1 %v11674_v40  ;;  %v11739_v7 = vld [vmem:[#allocation14 + $0x1d0] ss:$28 sps:$4 sm:$0xff]   ;;  %v11743_v40 = vld [vmem:[#allocation14 + $0x398] ss:$28 sps:$4 sm:$0xff]  }
 0x5a0   :  { %9187 = vmatpush1.bf16.msra.mxu0 %v11669_v49  ;;  %9351 = vmatpush1.bf16.msra.mxu1 %v11672_v1  ;;  %v11746_v49 = vld [vmem:[#allocation14 + $0x20c] ss:$28 sps:$4 sm:$0xff]  }
 0x5a1   :  { %9188 = vmatprep.subr.bf16.mxu0 %v11677_v2  ;;  %9352 = vmatprep.subr.bf16.mxu1 %v11680_v5  ;;  %v11747_v1 = vld [vmem:[#allocation14 + $0x590] ss:$28 sps:$4 sm:$0xff]   ;;  %v11744_v2 = vld [vmem:[#allocation14 + $0x208] ss:$28 sps:$4 sm:$0xff]  }
 0x5a2   :  { %v11748_v5 = vld [vmem:[#allocation14 + $0x3d0] ss:$28 sps:$4 sm:$0xff]  }
 0x5a4   :  { %9189 = vmatpush1.bf16.msra.mxu0 %v11675_v9  ;;  %9353 = vmatpush1.bf16.msra.mxu1 %v11678_v14  ;;  %v11751_v9 = vld [vmem:[#allocation14 + $0x244] ss:$28 sps:$4 sm:$0xff]  }
 0x5a5   :  { %9190 = vmatprep.subr.bf16.mxu0 %v11683_v11  ;;  %9354 = vmatprep.subr.bf16.mxu1 %v11686_v50  ;;  %v11752_v14 = vld [vmem:[#allocation14 + $0x5c8] ss:$28 sps:$4 sm:$0xff]   ;;  %v11749_v11 = vld [vmem:[#allocation14 + $0x240] ss:$28 sps:$4 sm:$0xff]  }
 0x5a6   :  { %v11753_v50 = vld [vmem:[#allocation14 + $0x408] ss:$28 sps:$4 sm:$0xff]  }
 0x5a8   :  { %9191 = vmatpush1.bf16.msra.mxu0 %v11681_v34  ;;  %9355 = vmatpush1.bf16.msra.mxu1 %v11684_v24  ;;  %v11756_v34 = vld [vmem:[#allocation14 + $0x27c] ss:$28 sps:$4 sm:$0xff]  }
 0x5a9   :  { %9192 = vmatprep.subr.bf16.mxu0 %v11689_v4  ;;  %9356 = vmatprep.subr.bf16.mxu1 %v11692_v6  ;;  %v11757_v24 = vld [vmem:[#allocation14 + $0x600] ss:$28 sps:$4 sm:$0xff]   ;;  %v11754_v4 = vld [vmem:[#allocation14 + $0x278] ss:$28 sps:$4 sm:$0xff]  }
 0x5aa   :  { %v11758_v6 = vld [vmem:[#allocation14 + $0x440] ss:$28 sps:$4 sm:$0xff]  }
 0x5ac   :  { %9193 = vmatpush1.bf16.msra.mxu0 %v11687_v16  ;;  %9357 = vmatpush1.bf16.msra.mxu1 %v11690_v17  ;;  %v11762_v16 = vld [vmem:[#allocation14 + $0x638] ss:$28 sps:$4 sm:$0xff]   ;;  %v11759_v17 = vld [vmem:[#allocation14 + $0x2b0] ss:$28 sps:$4 sm:$0xff]  }
 0x5ad   :  { %9194 = vmatprep.subr.bf16.mxu0 %v11695_v20  ;;  %9358 = vmatprep.subr.bf16.mxu1 %v11698_v13  ;;  %v11763_v20 = vld [vmem:[#allocation14 + $0x478] ss:$28 sps:$4 sm:$0xff]   ;;  %v11766_v13 = vld [vmem:[#allocation14 + $0x2ec] ss:$28 sps:$4 sm:$0xff]  }
 0x5b0   :  { %9195 = vmatpush1.bf16.msra.mxu0 %v11693_v21  ;;  %9359 = vmatpush1.bf16.msra.mxu1 %v11696_v22  ;;  %v11764_v21 = vld [vmem:[#allocation14 + $0x2e8] ss:$28 sps:$4 sm:$0xff]   ;;  %v11768_v22 = vld [vmem:[#allocation14 + $0x4b0] ss:$28 sps:$4 sm:$0xff]  }
 0x5b1   :  { %9369 = vmatprep.subr.bf16.mxu0 %v11701_v19  ;;  %11049 = vmatprep.subr.bf16.mxu1 %v11702_v26  ;;  %v11771_v19 = vld [vmem:[#allocation14 + $0x324] ss:$28 sps:$4 sm:$0xff]  }
 0x5b2   :  { %v11772_v26 = vld [vmem:[#allocation14 + $0x6a8] ss:$28 sps:$4 sm:$0xff]  }
 0x5b3   :  { %9197 = vmatmul.mubr.bf16.vlgmr.msra.gmra.mrb[20].mxu0 %v12637_v44  ;;  %9361 = vmatmul.mubr.bf16.vlgmr.msra.gmra.mrb[24].mxu1 %v12637_v44 }
 0x5b4   :  { %9370 = vmatpush1.bf16.msra.mxu0 %v11699_v29  ;;  %9401 = vmatprep.mubr.bf16.mxu0 %v12571_v36  ;;  %v11773_v29 = vld [vmem:[#allocation14 + $0x4e8] ss:$28 sps:$4 sm:$0xff]  }
 0x5b5   :  { %11050 = vmatpush3.bf16.msra.mxu1 %v11703_v31  ;;  %9565 = vmatprep.mubr.bf16.mxu1 %v12571_v36  ;;  %v11722_v36 = vld [vmem:[#allocation14 + $0x2b8] ss:$28 sps:$4 sm:$0xff]  }
 0x5b6   :  { %9371 = vmatprep.subr.bf16.mxu0 %v11706_v32  ;;  %11051 = vmatprep.subr.bf16.mxu1 %v11707_v48  ;;  %v11776_v31 = vld [vmem:[#allocation14 + $0x35c] ss:$28 sps:$4 sm:$0xff]  }
 0x5b7   :  { %v11777_v32 = vld [vmem:[#allocation14 + $0x6e0] ss:$28 sps:$4 sm:$0xff]   ;;  %v11774_v48 = vld [vmem:[#allocation14 + $0x358] ss:$28 sps:$4 sm:$0xff]  }
 0x5b8   :  { %9372 = vmatpush1.bf16.msra.mxu0 %v11704_v47  ;;  %v11778_v47 = vld [vmem:[#allocation14 + $0x520] ss:$28 sps:$4 sm:$0xff]  }
 0x5b9   :  { %11052 = vmatpush3.bf16.msra.mxu1 %v11708_v33  ;;  %9373 = vmatprep.subr.bf16.mxu0 %v11711_v54  ;;  %v11781_v33 = vld [vmem:[#allocation14 + $0x394] ss:$28 sps:$4 sm:$0xff]  }
 0x5ba   :  { %11053 = vmatprep.subr.bf16.mxu1 %v11712_v41  ;;  %v11782_v54 = vld [vmem:[#allocation14 + $0x8d8] ss:$28 sps:$4 sm:$0xff]   ;;  %v11779_v41 = vld [vmem:[#allocation14 + $0x390] ss:$28 sps:$4 sm:$0xff]  }
 0x5bc   :  { %9374 = vmatpush1.bf16.msra.mxu0 %v11709_v53  ;;  %v11783_v53 = vld [vmem:[#allocation14 + $0x718] ss:$28 sps:$4 sm:$0xff]  }
 0x5bd   :  { %11054 = vmatpush3.bf16.msra.mxu1 %v11713_v18  ;;  %9375 = vmatprep.subr.bf16.mxu0 %v11716_v35  ;;  %v11786_v18 = vld [vmem:[#allocation14 + $0x3cc] ss:$28 sps:$4 sm:$0xff]  }
 0x5be   :  { %11055 = vmatprep.subr.bf16.mxu1 %v11717_v38  ;;  %v11787_v35 = vld [vmem:[#allocation14 + $0x910] ss:$28 sps:$4 sm:$0xff]   ;;  %v11784_v38 = vld [vmem:[#allocation14 + $0x3c8] ss:$28 sps:$4 sm:$0xff]  }
 0x5c0   :  { %9376 = vmatpush1.bf16.msra.mxu0 %v11714_v27  ;;  %v11788_v27 = vld [vmem:[#allocation14 + $0x750] ss:$28 sps:$4 sm:$0xff]  }
 0x5c1   :  { %11056 = vmatpush3.bf16.msra.mxu1 %v11718_v8  ;;  %9377 = vmatprep.subr.bf16.mxu0 %v11721_v55  ;;  %v11791_v8 = vld [vmem:[#allocation14 + $0x404] ss:$28 sps:$4 sm:$0xff]  }
 0x5c2   :  { %11057 = vmatprep.subr.bf16.mxu1 %v11722_v36  ;;  %v11792_v55 = vld [vmem:[#allocation14 + $0x948] ss:$28 sps:$4 sm:$0xff]   ;;  %v11789_v36 = vld [vmem:[#allocation14 + $0x400] ss:$28 sps:$4 sm:$0xff]  }
 0x5c4   :  { %9378 = vmatpush1.bf16.msra.mxu0 %v11719_v56  ;;  %v11796_v56 = vld [vmem:[#allocation14 + $0x43c] ss:$28 sps:$4 sm:$0xff]  }
 0x5c5   :  { %11058 = vmatpush3.bf16.msra.mxu1 %v11723_v57  ;;  %9379 = vmatprep.subr.bf16.mxu0 %v11726_v58  ;;  %v11797_v57 = vld [vmem:[#allocation14 + $0x980] ss:$28 sps:$4 sm:$0xff]   ;;  %v11794_v58 = vld [vmem:[#allocation14 + $0x438] ss:$28 sps:$4 sm:$0xff]  }
 0x5c6   :  { %11059 = vmatprep.subr.bf16.mxu1 %v11727_v59  ;;  %v11801_v59 = vld [vmem:[#allocation14 + $0x474] ss:$28 sps:$4 sm:$0xff]  }
 0x5c8   :  { %9380 = vmatpush1.bf16.msra.mxu0 %v11724_v60  ;;  %v11802_v60 = vld [vmem:[#allocation14 + $0x9b8] ss:$28 sps:$4 sm:$0xff]  }
 0x5c9   :  { %11060 = vmatpush3.bf16.msra.mxu1 %v11728_v61  ;;  %9381 = vmatprep.subr.bf16.mxu0 %v11731_v62  ;;  %v11799_v61 = vld [vmem:[#allocation14 + $0x470] ss:$28 sps:$4 sm:$0xff]   ;;  %v11803_v62 = vld [vmem:[#allocation14 + $0x7f8] ss:$28 sps:$4 sm:$0xff]  }
 0x5ca   :  { %11061 = vmatprep.subr.bf16.mxu1 %v11732_v63  ;;  %v11806_v63 = vld [vmem:[#allocation14 + $0x4ac] ss:$28 sps:$4 sm:$0xff]  }
 0x5cc   :  { %9382 = vmatpush1.bf16.msra.mxu0 %v11729_v45  ;;  %v11807_v45 = vld [vmem:[#allocation14 + $0x9f0] ss:$28 sps:$4 sm:$0xff]  }
 0x5cd   :  { %11062 = vmatpush3.bf16.msra.mxu1 %v11733_v12  ;;  %9383 = vmatprep.subr.bf16.mxu0 %v11736_v30  ;;  %v11804_v12 = vld [vmem:[#allocation14 + $0x4a8] ss:$28 sps:$4 sm:$0xff]   ;;  %v11808_v30 = vld [vmem:[#allocation14 + $0x830] ss:$28 sps:$4 sm:$0xff]  }
 0x5ce   :  { %11063 = vmatprep.subr.bf16.mxu1 %v11737_v23  ;;  %v11811_v23 = vld [vmem:[#allocation14 + $0x4e4] ss:$28 sps:$4 sm:$0xff]  }
 0x5d0   :  { %9384 = vmatpush1.bf16.msra.mxu0 %v11734_v51  ;;  %v11812_v51 = vld [vmem:[#allocation14 + $0xa28] ss:$28 sps:$4 sm:$0xff]  }
 0x5d1   :  { %11064 = vmatpush3.bf16.msra.mxu1 %v11738_v39  ;;  %9385 = vmatprep.subr.bf16.mxu0 %v11741_v43  ;;  %v11809_v39 = vld [vmem:[#allocation14 + $0x4e0] ss:$28 sps:$4 sm:$0xff]   ;;  %v11813_v43 = vld [vmem:[#allocation14 + $0x868] ss:$28 sps:$4 sm:$0xff]  }
 0x5d2   :  { %11071 = vmatprep.subr.bf16.mxu1 %v11742_v42  ;;  %v11816_v42 = vld [vmem:[#allocation14 + $0x51c] ss:$28 sps:$4 sm:$0xff]  }
 0x5d4   :  { %9566 = vmatmul.mubr.bf16.vlgmr.msra.gmra.mrb[28].mxu1 %v12593_v10  ;;  %9386 = vmatpush1.bf16.msra.mxu0 %v11739_v7  ;;  %v11817_v7 = vld [vmem:[#allocation14 + $0xa60] ss:$28 sps:$4 sm:$0xff]  }
 0x5d5   :  { %11072 = vmatpush3.bf16.msra.mxu1 %v11743_v40  ;;  %9605 = vmatprep.mubr.bf16.mxu1 %v12595_v15  ;;  %v11814_v40 = vld [vmem:[#allocation14 + $0x518] ss:$28 sps:$4 sm:$0xff]  }
 0x5d6   :  { %9387 = vmatprep.subr.bf16.mxu0 %v11746_v49  ;;  %11073 = vmatprep.subr.bf16.mxu1 %v11747_v1  ;;  %v11818_v49 = vld [vmem:[#allocation14 + $0x8a0] ss:$28 sps:$4 sm:$0xff]   ;;  %v11821_v1 = vld [vmem:[#allocation14 + $0x554] ss:$28 sps:$4 sm:$0xff]  }
 0x5d8   :  { %9388 = vmatpush1.bf16.msra.mxu0 %v11744_v2  ;;  %v11822_v2 = vld [vmem:[#allocation14 + $0xc58] ss:$28 sps:$4 sm:$0xff]  }
 0x5d9   :  { %11074 = vmatpush3.bf16.msra.mxu1 %v11748_v5  ;;  %9389 = vmatprep.subr.bf16.mxu0 %v11751_v9  ;;  %v11819_v5 = vld [vmem:[#allocation14 + $0x550] ss:$28 sps:$4 sm:$0xff]   ;;  %v11823_v9 = vld [vmem:[#allocation14 + $0xa98] ss:$28 sps:$4 sm:$0xff]  }
 0x5da   :  { %11075 = vmatprep.subr.bf16.mxu1 %v11752_v14  ;;  %v11826_v14 = vld [vmem:[#allocation14 + $0x58c] ss:$28 sps:$4 sm:$0xff]  }
 0x5dc   :  { %9390 = vmatpush1.bf16.msra.mxu0 %v11749_v11  ;;  %v11827_v11 = vld [vmem:[#allocation14 + $0xc90] ss:$28 sps:$4 sm:$0xff]  }
 0x5dd   :  { %11076 = vmatpush3.bf16.msra.mxu1 %v11753_v50  ;;  %9391 = vmatprep.subr.bf16.mxu0 %v11756_v34  ;;  %v11824_v50 = vld [vmem:[#allocation14 + $0x588] ss:$28 sps:$4 sm:$0xff]   ;;  %v11828_v34 = vld [vmem:[#allocation14 + $0xad0] ss:$28 sps:$4 sm:$0xff]  }
 0x5de   :  { %11077 = vmatprep.subr.bf16.mxu1 %v11757_v24  ;;  %v11831_v24 = vld [vmem:[#allocation14 + $0x5c4] ss:$28 sps:$4 sm:$0xff]  }
 0x5e0   :  { %9392 = vmatpush1.bf16.msra.mxu0 %v11754_v4  ;;  %v11832_v4 = vld [vmem:[#allocation14 + $0xcc8] ss:$28 sps:$4 sm:$0xff]  }
 0x5e1   :  { %11078 = vmatpush3.bf16.msra.mxu1 %v11758_v6  ;;  %9393 = vmatprep.subr.bf16.mxu0 %v11761_v52  ;;  %v11829_v6 = vld [vmem:[#allocation14 + $0x5c0] ss:$28 sps:$4 sm:$0xff]   ;;  %v11833_v52 = vld [vmem:[#allocation14 + $0xb08] ss:$28 sps:$4 sm:$0xff]  }
 0x5e2   :  { %11079 = vmatprep.subr.bf16.mxu1 %v11762_v16  ;;  %v11836_v16 = vld [vmem:[#allocation14 + $0x5fc] ss:$28 sps:$4 sm:$0xff]  }
 0x5e4   :  { %9394 = vmatpush1.bf16.msra.mxu0 %v11759_v17  ;;  %v11837_v17 = vld [vmem:[#allocation14 + $0xd00] ss:$28 sps:$4 sm:$0xff]  }
 0x5e5   :  { %11080 = vmatpush3.bf16.msra.mxu1 %v11763_v20  ;;  %9395 = vmatprep.subr.bf16.mxu0 %v11766_v13  ;;  %v11834_v20 = vld [vmem:[#allocation14 + $0x5f8] ss:$28 sps:$4 sm:$0xff]   ;;  %v11838_v13 = vld [vmem:[#allocation14 + $0xb40] ss:$28 sps:$4 sm:$0xff]  }
 0x5e6   :  { %11081 = vmatprep.subr.bf16.mxu1 %v11767_v3  ;;  %v11841_v3 = vld [vmem:[#allocation14 + $0x634] ss:$28 sps:$4 sm:$0xff]  }
 0x5e8   :  { %9396 = vmatpush1.bf16.msra.mxu0 %v11764_v21  ;;  %v11842_v21 = vld [vmem:[#allocation14 + $0xd38] ss:$28 sps:$4 sm:$0xff]  }
 0x5e9   :  { %11082 = vmatpush3.bf16.msra.mxu1 %v11768_v22  ;;  %9397 = vmatprep.subr.bf16.mxu0 %v11771_v19  ;;  %v11839_v22 = vld [vmem:[#allocation14 + $0x630] ss:$28 sps:$4 sm:$0xff]   ;;  %v11843_v19 = vld [vmem:[#allocation14 + $0xb78] ss:$28 sps:$4 sm:$0xff]  }
 0x5ea   :  { %11083 = vmatprep.subr.bf16.mxu1 %v11772_v26  ;;  %v11846_v26 = vld [vmem:[#allocation14 + $0x66c] ss:$28 sps:$4 sm:$0xff]  }
 0x5ec   :  { %9398 = vmatpush1.bf16.msra.mxu0 %v11769_v28  ;;  %v11847_v28 = vld [vmem:[#allocation14 + $0xd70] ss:$28 sps:$4 sm:$0xff]  }
 0x5ed   :  { %11084 = vmatpush3.bf16.msra.mxu1 %v11773_v29  ;;  %9399 = vmatprep.subr.bf16.mxu0 %v11776_v31  ;;  %v11844_v29 = vld [vmem:[#allocation14 + $0x668] ss:$28 sps:$4 sm:$0xff]   ;;  %v11848_v31 = vld [vmem:[#allocation14 + $0xbb0] ss:$28 sps:$4 sm:$0xff]  }
 0x5ee   :  { %11085 = vmatprep.subr.bf16.mxu1 %v11777_v32  ;;  %v11851_v32 = vld [vmem:[#allocation14 + $0x6a4] ss:$28 sps:$4 sm:$0xff]  }
 0x5f0   :  { %9400 = vmatpush1.bf16.msra.mxu0 %v11774_v48  ;;  %v11852_v48 = vld [vmem:[#allocation14 + $0xda8] ss:$28 sps:$4 sm:$0xff]  }
 0x5f1   :  { %11086 = vmatpush3.bf16.msra.mxu1 %v11778_v47  ;;  %9410 = vmatprep.subr.bf16.mxu0 %v11781_v33  ;;  %v11849_v47 = vld [vmem:[#allocation14 + $0x6a0] ss:$28 sps:$4 sm:$0xff]   ;;  %v11853_v33 = vld [vmem:[#allocation14 + $0xbe8] ss:$28 sps:$4 sm:$0xff]  }
 0x5f2   :  { %11093 = vmatprep.subr.bf16.mxu1 %v11782_v54  ;;  %v11856_v54 = vld [vmem:[#allocation14 + $0x6dc] ss:$28 sps:$4 sm:$0xff]  }
 0x5f3   :  { %9402 = vmatmul.mubr.bf16.vlgmr.msra.gmra.mrb[24].mxu0 %v12593_v10  ;;  %v11793_v10 = vld [vmem:[#allocation14 + $0x788] ss:$28 sps:$4 sm:$0xff]  }
 0x5f4   :  { %9606 = vmatmul.mubr.bf16.vlgmr.msra.gmra.mrb[32].mxu1 %v12604_v25  ;;  %9411 = vmatpush1.bf16.msra.mxu0 %v11779_v41  ;;  %v11857_v41 = vld [vmem:[#allocation14 + $0xde0] ss:$28 sps:$4 sm:$0xff]  }
 0x5f5   :  { %9442 = vmatprep.mubr.bf16.mxu0 %v12595_v15  ;;  %11094 = vmatpush3.bf16.msra.mxu1 %v11783_v53  ;;  %v11798_v15 = vld [vmem:[#allocation14 + $0x7c0] ss:$28 sps:$4 sm:$0xff]   ;;  %v11854_v53 = vld [vmem:[#allocation14 + $0x6d8] ss:$28 sps:$4 sm:$0xff]  }
 0x5f6   :  { %9645 = vmatprep.mubr.bf16.mxu1 %v12619_v0  ;;  %9412 = vmatprep.subr.bf16.mxu0 %v11786_v18  ;;  %v11858_v18 = vld [vmem:[#allocation14 + $0xc20] ss:$28 sps:$4 sm:$0xff]  }
 0x5f7   :  { %11095 = vmatprep.subr.bf16.mxu1 %v11787_v35  ;;  %v11861_v35 = vld [vmem:[#allocation14 + $0x714] ss:$28 sps:$4 sm:$0xff]  }
 0x5f8   :  { %9413 = vmatpush1.bf16.msra.mxu0 %v11784_v38  ;;  %v11859_v38 = vld [vmem:[#allocation14 + $0x710] ss:$28 sps:$4 sm:$0xff]  }
 0x5f9   :  { %11096 = vmatpush3.bf16.msra.mxu1 %v11788_v27  ;;  %9414 = vmatprep.subr.bf16.mxu0 %v11791_v8  ;;  %v11864_v27 = vld [vmem:[#allocation14 + $0x74c] ss:$28 sps:$4 sm:$0xff]  }
 0x5fa   :  { %11097 = vmatprep.subr.bf16.mxu1 %v11792_v55  ;;  %v11862_v8 = vld [vmem:[#allocation14 + $0x748] ss:$28 sps:$4 sm:$0xff]  }
 0x5fb   :  { %v11867_v55 = vld [vmem:[#allocation14 + $0x784] ss:$28 sps:$4 sm:$0xff]  }
 0x5fc   :  { %9415 = vmatpush1.bf16.msra.mxu0 %v11789_v36  ;;  %v11865_v36 = vld [vmem:[#allocation14 + $0x780] ss:$28 sps:$4 sm:$0xff]  }
 0x5fd   :  { %11098 = vmatpush3.bf16.msra.mxu1 %v11793_v10  ;;  %9416 = vmatprep.subr.bf16.mxu0 %v11796_v56  ;;  %v11870_v10 = vld [vmem:[#allocation14 + $0x7bc] ss:$28 sps:$4 sm:$0xff]  }
 0x5fe   :  { %11099 = vmatprep.subr.bf16.mxu1 %v11797_v57  ;;  %v11868_v56 = vld [vmem:[#allocation14 + $0x7b8] ss:$28 sps:$4 sm:$0xff]  }
 0x5ff   :  { %v11873_v57 = vld [vmem:[#allocation14 + $0x7f4] ss:$28 sps:$4 sm:$0xff]  }
 0x600   :  { %9417 = vmatpush1.bf16.msra.mxu0 %v11794_v58  ;;  %v11871_v58 = vld [vmem:[#allocation14 + $0x7f0] ss:$28 sps:$4 sm:$0xff]  }
 0x601   :  { %11100 = vmatpush3.bf16.msra.mxu1 %v11798_v15  ;;  %9418 = vmatprep.subr.bf16.mxu0 %v11801_v59  ;;  %v11874_v15 = vld [vmem:[#allocation14 + $0x828] ss:$28 sps:$4 sm:$0xff]  }
 0x602   :  { %11101 = vmatprep.subr.bf16.mxu1 %v11802_v60  ;;  %v11879_v59 = vld [vmem:[#allocation14 + $0x864] ss:$28 sps:$4 sm:$0xff]   ;;  %v11882_v60 = vld [vmem:[#allocation14 + $0x89c] ss:$28 sps:$4 sm:$0xff]  }
 0x604   :  { %9419 = vmatpush1.bf16.msra.mxu0 %v11799_v61  ;;  %v11880_v61 = vld [vmem:[#allocation14 + $0x898] ss:$28 sps:$4 sm:$0xff]  }
 0x605   :  { %11102 = vmatpush3.bf16.msra.mxu1 %v11803_v62  ;;  %9420 = vmatprep.subr.bf16.mxu0 %v11806_v63  ;;  %v11885_v62 = vld [vmem:[#allocation14 + $0x8d4] ss:$28 sps:$4 sm:$0xff]  }
 0x606   :  { %11103 = vmatprep.subr.bf16.mxu1 %v11807_v45  ;;  %v11883_v63 = vld [vmem:[#allocation14 + $0x8d0] ss:$28 sps:$4 sm:$0xff]  }
 0x607   :  { %v11888_v45 = vld [vmem:[#allocation14 + $0x90c] ss:$28 sps:$4 sm:$0xff]  }
 0x608   :  { %9421 = vmatpush1.bf16.msra.mxu0 %v11804_v12  ;;  %v11886_v12 = vld [vmem:[#allocation14 + $0x908] ss:$28 sps:$4 sm:$0xff]  }
 0x609   :  { %11104 = vmatpush3.bf16.msra.mxu1 %v11808_v30  ;;  %9422 = vmatprep.subr.bf16.mxu0 %v11811_v23  ;;  %v11891_v30 = vld [vmem:[#allocation14 + $0x944] ss:$28 sps:$4 sm:$0xff]  }
 0x60a   :  { %11105 = vmatprep.subr.bf16.mxu1 %v11812_v51  ;;  %v11889_v23 = vld [vmem:[#allocation14 + $0x940] ss:$28 sps:$4 sm:$0xff]  }
 0x60b   :  { %v11894_v51 = vld [vmem:[#allocation14 + $0x97c] ss:$28 sps:$4 sm:$0xff]  }
 0x60c   :  { %9423 = vmatpush1.bf16.msra.mxu0 %v11809_v39  ;;  %v11892_v39 = vld [vmem:[#allocation14 + $0x978] ss:$28 sps:$4 sm:$0xff]  }
 0x60d   :  { %11106 = vmatpush3.bf16.msra.mxu1 %v11813_v43  ;;  %9424 = vmatprep.subr.bf16.mxu0 %v11816_v42  ;;  %v11897_v43 = vld [vmem:[#allocation14 + $0x9b4] ss:$28 sps:$4 sm:$0xff]  }
 0x60e   :  { %11107 = vmatprep.subr.bf16.mxu1 %v11817_v7  ;;  %v11895_v42 = vld [vmem:[#allocation14 + $0x9b0] ss:$28 sps:$4 sm:$0xff]  }
 0x60f   :  { %v11900_v7 = vld [vmem:[#allocation14 + $0x9ec] ss:$28 sps:$4 sm:$0xff]  }
 0x610   :  { %9425 = vmatpush1.bf16.msra.mxu0 %v11814_v40  ;;  %v11898_v40 = vld [vmem:[#allocation14 + $0x9e8] ss:$28 sps:$4 sm:$0xff]  }
 0x611   :  { %11108 = vmatpush3.bf16.msra.mxu1 %v11818_v49  ;;  %9426 = vmatprep.subr.bf16.mxu0 %v11821_v1  ;;  %v11903_v49 = vld [vmem:[#allocation14 + $0xa24] ss:$28 sps:$4 sm:$0xff]  }
 0x612   :  { %11115 = vmatprep.subr.bf16.mxu1 %v11822_v2  ;;  %v11901_v1 = vld [vmem:[#allocation14 + $0xa20] ss:$28 sps:$4 sm:$0xff]  }
 0x613   :  { %v11906_v2 = vld [vmem:[#allocation14 + $0xa5c] ss:$28 sps:$4 sm:$0xff]  }
 0x614   :  { %9646 = vmatmul.mubr.bf16.vlgmr.msra.gmra.mrb[36].mxu1 %v12621_v37  ;;  %9427 = vmatpush1.bf16.msra.mxu0 %v11819_v5  ;;  %v11904_v5 = vld [vmem:[#allocation14 + $0xa58] ss:$28 sps:$4 sm:$0xff]  }
 0x615   :  { %11116 = vmatpush3.bf16.msra.mxu1 %v11823_v9  ;;  %9685 = vmatprep.mubr.bf16.mxu1 %v12629_v46  ;;  %v11909_v9 = vld [vmem:[#allocation14 + $0xa94] ss:$28 sps:$4 sm:$0xff]  }
 0x616   :  { %9428 = vmatprep.subr.bf16.mxu0 %v11826_v14  ;;  %11117 = vmatprep.subr.bf16.mxu1 %v11827_v11  ;;  %v11907_v14 = vld [vmem:[#allocation14 + $0xa90] ss:$28 sps:$4 sm:$0xff]  }
 0x617   :  { %v11912_v11 = vld [vmem:[#allocation14 + $0xacc] ss:$28 sps:$4 sm:$0xff]  }
 0x618   :  { %9429 = vmatpush1.bf16.msra.mxu0 %v11824_v50  ;;  %v11910_v50 = vld [vmem:[#allocation14 + $0xac8] ss:$28 sps:$4 sm:$0xff]  }
 0x619   :  { %11118 = vmatpush3.bf16.msra.mxu1 %v11828_v34  ;;  %9430 = vmatprep.subr.bf16.mxu0 %v11831_v24  ;;  %v11915_v34 = vld [vmem:[#allocation14 + $0xb04] ss:$28 sps:$4 sm:$0xff]  }
 0x61a   :  { %11119 = vmatprep.subr.bf16.mxu1 %v11832_v4  ;;  %v11913_v24 = vld [vmem:[#allocation14 + $0xb00] ss:$28 sps:$4 sm:$0xff]  }
 0x61b   :  { %v11918_v4 = vld [vmem:[#allocation14 + $0xb3c] ss:$28 sps:$4 sm:$0xff]  }
 0x61c   :  { %9431 = vmatpush1.bf16.msra.mxu0 %v11829_v6  ;;  %v11916_v6 = vld [vmem:[#allocation14 + $0xb38] ss:$28 sps:$4 sm:$0xff]  }
 0x61d   :  { %11120 = vmatpush3.bf16.msra.mxu1 %v11833_v52  ;;  %9432 = vmatprep.subr.bf16.mxu0 %v11836_v16  ;;  %v11921_v52 = vld [vmem:[#allocation14 + $0xb74] ss:$28 sps:$4 sm:$0xff]  }
 0x61e   :  { %11121 = vmatprep.subr.bf16.mxu1 %v11837_v17  ;;  %v11919_v16 = vld [vmem:[#allocation14 + $0xb70] ss:$28 sps:$4 sm:$0xff]  }
 0x61f   :  { %v11924_v17 = vld [vmem:[#allocation14 + $0xbac] ss:$28 sps:$4 sm:$0xff]  }
 0x620   :  { %9433 = vmatpush1.bf16.msra.mxu0 %v11834_v20  ;;  %v11927_v20 = vld [vmem:[#allocation14 + $0xbe4] ss:$28 sps:$4 sm:$0xff]  }
 0x621   :  { %11122 = vmatpush3.bf16.msra.mxu1 %v11838_v13  ;;  %9434 = vmatprep.subr.bf16.mxu0 %v11841_v3 }
 0x622   :  { %11123 = vmatprep.subr.bf16.mxu1 %v11842_v21 }
 0x624   :  { %9435 = vmatpush1.bf16.msra.mxu0 %v11839_v22 }
 0x625   :  { %11124 = vmatpush3.bf16.msra.mxu1 %v11843_v19  ;;  %9436 = vmatprep.subr.bf16.mxu0 %v11846_v26 }
 0x626   :  { %11125 = vmatprep.subr.bf16.mxu1 %v11847_v28 }
 0x628   :  { %9437 = vmatpush1.bf16.msra.mxu0 %v11844_v29 }
 0x629   :  { %11126 = vmatpush3.bf16.msra.mxu1 %v11848_v31  ;;  %9438 = vmatprep.subr.bf16.mxu0 %v11851_v32  ;;  %v11925_v32 = vld [vmem:[#allocation14 + $0xbe0] ss:$28 sps:$4 sm:$0xff]  }
 0x62a   :  { %11127 = vmatprep.subr.bf16.mxu1 %v11852_v48 }
 0x62c   :  { %9439 = vmatpush1.bf16.msra.mxu0 %v11849_v47 }
 0x62d   :  { %11128 = vmatpush3.bf16.msra.mxu1 %v11853_v33  ;;  %9440 = vmatprep.subr.bf16.mxu0 %v11856_v54  ;;  %v11930_v33 = vld [vmem:[#allocation14 + $0xc1c] ss:$28 sps:$4 sm:$0xff]  }
 0x62e   :  { %11129 = vmatprep.subr.bf16.mxu1 %v11857_v41  ;;  %v11928_v54 = vld [vmem:[#allocation14 + $0xc18] ss:$28 sps:$4 sm:$0xff]  }
 0x62f   :  { %v11933_v41 = vld [vmem:[#allocation14 + $0xc54] ss:$28 sps:$4 sm:$0xff]  }
 0x630   :  { %9441 = vmatpush1.bf16.msra.mxu0 %v11854_v53  ;;  %v11931_v53 = vld [vmem:[#allocation14 + $0xc50] ss:$28 sps:$4 sm:$0xff]  }
 0x631   :  { %11130 = vmatpush3.bf16.msra.mxu1 %v11858_v18  ;;  %9451 = vmatprep.subr.bf16.mxu0 %v11861_v35  ;;  %v11936_v18 = vld [vmem:[#allocation14 + $0xc8c] ss:$28 sps:$4 sm:$0xff]  }
 0x633   :  { %9443 = vmatmul.mubr.bf16.vlgmr.msra.gmra.mrb[24].mxu0 %v12604_v25  ;;  %v11876_v25 = vld [vmem:[#allocation14 + $0x82c] ss:$28 sps:$4 sm:$0xff]  }
 0x634   :  { %9686 = vmatmul.mubr.bf16.vlgmr.msra.gmra.mrb[40].mxu1 %v12637_v44  ;;  %9452 = vmatpush1.bf16.msra.mxu0 %v11859_v38 }
 0x635   :  { %9483 = vmatprep.mubr.bf16.mxu0 %v12619_v0  ;;  %9453 = vmatprep.subr.bf16.mxu0 %v11864_v27  ;;  %v11877_v0 = vld [vmem:[#allocation14 + $0x860] ss:$28 sps:$4 sm:$0xff]  }
 0x638   :  { %9454 = vmatpush1.bf16.msra.mxu0 %v11862_v8  ;;  %v11934_v8 = vld [vmem:[#allocation14 + $0xc88] ss:$28 sps:$4 sm:$0xff]  }
 0x639   :  { %9455 = vmatprep.subr.bf16.mxu0 %v11867_v55 }
 0x63c   :  { %9456 = vmatpush1.bf16.msra.mxu0 %v11865_v36 }
 0x63d   :  { %9457 = vmatprep.subr.bf16.mxu0 %v11870_v10  ;;  %v11939_v10 = vld [vmem:[#allocation14 + $0xcc4] ss:$28 sps:$4 sm:$0xff]  }
 0x640   :  { %9458 = vmatpush1.bf16.msra.mxu0 %v11868_v56 }
 0x641   :  { %9459 = vmatprep.subr.bf16.mxu0 %v11873_v57 }
 0x644   :  { %9460 = vmatpush1.bf16.msra.mxu0 %v11871_v58 }
 0x645   :  { %9461 = vmatprep.subr.bf16.mxu0 %v11876_v25 }
 0x648   :  { %9462 = vmatpush1.bf16.msra.mxu0 %v11874_v15 }
 0x649   :  { %9463 = vmatprep.subr.bf16.mxu0 %v11879_v59 }
 0x64c   :  { %9464 = vmatpush1.bf16.msra.mxu0 %v11877_v0  ;;  %v11937_v0 = vld [vmem:[#allocation14 + $0xcc0] ss:$28 sps:$4 sm:$0xff]  }
 0x64d   :  { %9465 = vmatprep.subr.bf16.mxu0 %v11882_v60 }
 0x650   :  { %9466 = vmatpush1.bf16.msra.mxu0 %v11880_v61  ;;  %v11942_v61 = vld [vmem:[#allocation14 + $0xcfc] ss:$28 sps:$4 sm:$0xff]  }
 0x651   :  { %9467 = vmatprep.subr.bf16.mxu0 %v11885_v62 }
 0x654   :  { %9468 = vmatpush1.bf16.msra.mxu0 %v11883_v63 }
 0x655   :  { %9469 = vmatprep.subr.bf16.mxu0 %v11888_v45  ;;  %v11940_v45 = vld [vmem:[#allocation14 + $0xcf8] ss:$28 sps:$4 sm:$0xff]  }
 0x658   :  { %9470 = vmatpush1.bf16.msra.mxu0 %v11886_v12  ;;  %v11945_v12 = vld [vmem:[#allocation14 + $0xd34] ss:$28 sps:$4 sm:$0xff]  }
 0x659   :  { %9471 = vmatprep.subr.bf16.mxu0 %v11891_v30  ;;  %v11943_v30 = vld [vmem:[#allocation14 + $0xd30] ss:$28 sps:$4 sm:$0xff]  }
 0x65c   :  { %9472 = vmatpush1.bf16.msra.mxu0 %v11889_v23  ;;  %v11948_v23 = vld [vmem:[#allocation14 + $0xd6c] ss:$28 sps:$4 sm:$0xff]  }
 0x65d   :  { %9473 = vmatprep.subr.bf16.mxu0 %v11894_v51  ;;  %v11946_v51 = vld [vmem:[#allocation14 + $0xd68] ss:$28 sps:$4 sm:$0xff]  }
 0x660   :  { %9474 = vmatpush1.bf16.msra.mxu0 %v11892_v39  ;;  %v11951_v39 = vld [vmem:[#allocation14 + $0xda4] ss:$28 sps:$4 sm:$0xff]  }
 0x661   :  { %9475 = vmatprep.subr.bf16.mxu0 %v11897_v43 }
 0x664   :  { %9476 = vmatpush1.bf16.msra.mxu0 %v11895_v42 }
 0x665   :  { %9477 = vmatprep.subr.bf16.mxu0 %v11900_v7  ;;  %v11949_v7 = vld [vmem:[#allocation14 + $0xda0] ss:$28 sps:$4 sm:$0xff]  }
 0x668   :  { %9478 = vmatpush1.bf16.msra.mxu0 %v11898_v40 }
 0x669   :  { %9479 = vmatprep.subr.bf16.mxu0 %v11903_v49 }
 0x66c   :  { %9480 = vmatpush1.bf16.msra.mxu0 %v11901_v1  ;;  %v11954_v1 = vld [vmem:[#allocation14 + $0xddc] ss:$28 sps:$4 sm:$0xff]  }
 0x66d   :  { %9481 = vmatprep.subr.bf16.mxu0 %v11906_v2 }
 0x670   :  { %9482 = vmatpush1.bf16.msra.mxu0 %v11904_v5  ;;  %v11952_v5 = vld [vmem:[#allocation14 + $0xdd8] ss:$28 sps:$4 sm:$0xff]  }
 0x671   :  { %9492 = vmatprep.subr.bf16.mxu0 %v11909_v9 }
 0x673   :  { %9484 = vmatmul.mubr.bf16.vlgmr.msra.gmra.mrb[24].mxu0 %v12621_v37  ;;  %v11922_v37 = vld [vmem:[#allocation14 + $0xba8] ss:$28 sps:$4 sm:$0xff]  }
 0x674   :  { %9493 = vmatpush1.bf16.msra.mxu0 %v11907_v14  ;;  %9524 = vmatprep.mubr.bf16.mxu0 %v12629_v46 }
 0x675   :  { %9494 = vmatprep.subr.bf16.mxu0 %v11912_v11 }
 0x678   :  { %9495 = vmatpush1.bf16.msra.mxu0 %v11910_v50 }
 0x679   :  { %9496 = vmatprep.subr.bf16.mxu0 %v11915_v34 }
 0x67c   :  { %9497 = vmatpush1.bf16.msra.mxu0 %v11913_v24 }
 0x67d   :  { %9498 = vmatprep.subr.bf16.mxu0 %v11918_v4 }
 0x680   :  { %9499 = vmatpush1.bf16.msra.mxu0 %v11916_v6 }
 0x681   :  { %9500 = vmatprep.subr.bf16.mxu0 %v11921_v52 }
 0x684   :  { %9501 = vmatpush1.bf16.msra.mxu0 %v11919_v16 }
 0x685   :  { %9502 = vmatprep.subr.bf16.mxu0 %v11924_v17 }
 0x686   :  { %v9198_v46 = vpop.f32.mrb[20].mxu0  ;;  %v9362_v13 = vpop.f32.mrb[24].mxu1 }
 0x687   :  { %v9693_v3 = vmul.f32 0.5, %v9198_v46  ;;  %v9695_v21 = vmul.f32 0.5, %v9362_v13  ;;  %v9200_v22 = vpop.f32.mrb[21].mxu0  ;;  %v9364_v19 = vpop.f32.mrb[25].mxu1 }
 0x688   :  { %v9694_v26 = vmul.f32 0.5, %v9200_v22  ;;  %v9696_v28 = vmul.f32 0.5, %v9364_v19  ;;  %v9202_v29 = vpop.f32.mrb[22].mxu0  ;;  %v9366_v31 = vpop.f32.mrb[26].mxu1  ;;  %9503 = vmatpush1.bf16.msra.mxu0 %v11922_v37 }
 0x689   :  { %11995 = vtanh.f32 %v9693_v3  ;;  %v9203_v48 = vpop.f32.mrb[23].mxu0  ;;  %v9367_v47 = vpop.f32.mrb[27].mxu1  ;;  %9504 = vmatprep.subr.bf16.mxu0 %v11927_v20 }
 0x68a   :  { %11997 = vtanh.f32 %v9695_v21 }
 0x68b   :  { %11999 = vtanh.f32 %v9694_v26 }
 0x68c   :  { %12001 = vtanh.f32 %v9696_v28  ;;  %9505 = vmatpush1.bf16.msra.mxu0 %v11925_v32 }
 0x68d   :  { %9506 = vmatprep.subr.bf16.mxu0 %v11930_v33 }
 0x690   :  { %9507 = vmatpush1.bf16.msra.mxu0 %v11928_v54 }
 0x691   :  { %9508 = vmatprep.subr.bf16.mxu0 %v11933_v41 }
 0x693   :  { %v11996_v35 = vpop.eup %11995 }
 0x694   :  { %v11998_v38 = vpop.eup %11997  ;;  %v9707_v27 = vmul.f32 0.5, %v11996_v35  ;;  %9509 = vmatpush1.bf16.msra.mxu0 %v11931_v53 }
 0x695   :  { %v12000_v55 = vpop.eup %11999  ;;  %v9709_v36 = vmul.f32 0.5, %v11998_v38  ;;  %9510 = vmatprep.subr.bf16.mxu0 %v11936_v18 }
 0x696   :  { %v12002_v56 = vpop.eup %12001  ;;  %v9714_v57 = vadd.f32 0.5, %v9707_v27  ;;  %v9708_v58 = vmul.f32 0.5, %v12000_v55 }
 0x697   :  { %v9716_v25 = vadd.f32 0.5, %v9709_v36  ;;  %v9710_v15 = vmul.f32 0.5, %v12002_v56 }
 0x698   :  { %v9715_v59 = vadd.f32 0.5, %v9708_v58  ;;  %9511 = vmatpush1.bf16.msra.mxu0 %v11934_v8 }
 0x699   :  { %v9717_v60 = vadd.f32 0.5, %v9710_v15  ;;  %9512 = vmatprep.subr.bf16.mxu0 %v11939_v10 }
 0x69a   :  { %v11045_v62 = vpack.c.bf16 %v9715_v59, %v9714_v57 }
 0x69b   :  { %v11046_v63 = vpack.c.bf16 %v9717_v60, %v9716_v25 }
 0x69c   :  { %9750 = vst [vmem:[#allocation16] sm:$0xff] %v11045_v62  ;;  %9513 = vmatpush1.bf16.msra.mxu0 %v11937_v0 }
 0x69d   :  { %9751 = vst [vmem:[#allocation16 + $0x8] sm:$0xff] %v11046_v63  ;;  %9514 = vmatprep.subr.bf16.mxu0 %v11942_v61 }
 0x6a0   :  { %9515 = vmatpush1.bf16.msra.mxu0 %v11940_v45 }
 0x6a1   :  { %9516 = vmatprep.subr.bf16.mxu0 %v11945_v12 }
 0x6a4   :  { %9517 = vmatpush1.bf16.msra.mxu0 %v11943_v30 }
 0x6a5   :  { %9518 = vmatprep.subr.bf16.mxu0 %v11948_v23 }
 0x6a7   :  { %v11065_v43 = vpop.f32.mrb[28].mxu1 }
 0x6a8   :  { %v11066_v42 = vpop.f32.mrb[29].mxu1  ;;  %9519 = vmatpush1.bf16.msra.mxu0 %v11946_v51 }
 0x6a9   :  { %v11067_v40 = vadd.f32 %v11066_v42, %v11065_v43  ;;  %v11068_v49 = vpop.f32.mrb[30].mxu1  ;;  %9520 = vmatprep.subr.bf16.mxu0 %v11951_v39 }
 0x6aa   :  { %v11069_v2 = vpop.f32.mrb[31].mxu1 }
 0x6ac   :  { %9521 = vmatpush1.bf16.msra.mxu0 %v11949_v7 }
 0x6ad   :  { %9522 = vmatprep.subr.bf16.mxu0 %v11954_v1 }
 0x6b0   :  { %9523 = vmatpush1.bf16.msra.mxu0 %v11952_v5 }
 0x6b3   :  { %9525 = vmatmul.mubr.bf16.vlgmr.msra.gmra.mrb[24].mxu0 %v12637_v44 }
 0x6c7   :  { %v11087_v9 = vpop.f32.mrb[32].mxu1 }
 0x6c8   :  { %v11088_v14 = vpop.f32.mrb[33].mxu1 }
 0x6c9   :  { %v11089_v11 = vadd.f32 %v11088_v14, %v11087_v9  ;;  %v11090_v50 = vpop.f32.mrb[34].mxu1 }
 0x6ca   :  { %v11091_v34 = vpop.f32.mrb[35].mxu1 }
 0x6cb   :  { %v9608_v24 = vadd.f32 %v11089_v11, %v11067_v40 }
 0x6e7   :  { %v11109_v4 = vpop.f32.mrb[36].mxu1 }
 0x6e8   :  { %v11110_v6 = vpop.f32.mrb[37].mxu1 }
 0x6e9   :  { %v11111_v52 = vadd.f32 %v11110_v6, %v11109_v4  ;;  %v11112_v16 = vpop.f32.mrb[38].mxu1 }
 0x6ea   :  { %v11113_v17 = vpop.f32.mrb[39].mxu1 }
 0x6eb   :  { %v9648_v37 = vadd.f32 %v11111_v52, %v9608_v24 }
 0x707   :  { %v11131_v20 = vpop.f32.mrb[40].mxu1 }
 0x708   :  { %v11132_v46 = vpop.f32.mrb[41].mxu1 }
 0x709   :  { %v11133_v13 = vadd.f32 %v11132_v46, %v11131_v20  ;;  %v11134_v3 = vpop.f32.mrb[42].mxu1 }
 0x70a   :  { %v11135_v21 = vpop.f32.mrb[43].mxu1 }
 0x70b   :  { %v9688_v22 = vadd.f32 %v11133_v13, %v9648_v37 }
 0x70d   :  { %v9699_v19 = vmul.f32 0.5, %v9688_v22 }
 0x70f   :  { %12003 = vtanh.f32 %v9699_v19 }
 0x719   :  { %v12004_v44 = vpop.eup %12003 }
 0x71a   :  { %v9713_v26 = vmul.f32 0.5, %v12004_v44 }
 0x71c   :  { %v9720_v28 = vadd.f32 0.5, %v9713_v26 }
 0x71e   :  { %v11048_v29 = vpack.c.bf16 %v9720_v28, %v9720_v28 }
 0x720   :  { %9753 = vst [vmem:[#allocation16 + $0x18] sm:$0xf] %v11048_v29 }
 0x786   :  { %v9526_v31 = vpop.f32.mrb[24].mxu0 }
 0x787   :  { %v9697_v32 = vmul.f32 0.5, %v9526_v31  ;;  %v9528_v48 = vpop.f32.mrb[25].mxu0 }
 0x788   :  { %v9698_v47 = vmul.f32 0.5, %v9528_v48  ;;  %v9530_v33 = vpop.f32.mrb[26].mxu0 }
 0x789   :  { %12005 = vtanh.f32 %v9697_v32  ;;  %v9531_v54 = vpop.f32.mrb[27].mxu0 }
 0x78a   :  { %12007 = vtanh.f32 %v9698_v47 }
 0x793   :  { %v12006_v41 = vpop.eup %12005 }
 0x794   :  { %v12008_v53 = vpop.eup %12007  ;;  %v9711_v18 = vmul.f32 0.5, %v12006_v41 }
 0x795   :  { %v9712_v35 = vmul.f32 0.5, %v12008_v53 }
 0x796   :  { %v9718_v38 = vadd.f32 0.5, %v9711_v18 }
 0x797   :  { %v9719_v27 = vadd.f32 0.5, %v9712_v35 }
 0x799   :  { %v11047_v8 = vpack.c.bf16 %v9719_v27, %v9718_v38 }
 0x79b   :  { %9752 = vst [vmem:[#allocation16 + $0x10] sm:$0xff] %v11047_v8 }
 0x79c   :  { %12198 = shalt.err (!%p12195_p12)
}
 0x79d   :  { %s12199_s5 = scalar_lea.hbm %s12677_s8, 448 }
 0x79e   :  { %p12200_p13 = scmp.ne.s32.totalorder %s12677_s8, %s12199_s5  ;;  %p12203_p0 = scmp.lt.u32.totalorder %s12199_s5, %s12677_s8 }
 0x7a0   :  { %p12205_p1 = pnand %p12203_p0, %p12200_p13 }
 0x7a2   :  { %12208 = shalt.err (!%p12205_p1)
}
 0x7a3   :  { %9763 = dma.vmem_to_hbm [thread:$0]  %s9761_s29, 448, %s12677_s8, [#allocation4]  }
 0x7a4   :  { %12219 = dma.done.wait [#allocation4], 448  }
 0x7a5   :  { %12220 = vsyncadd [#allocation4], 4294966848 }
 0x7a6   :  { %9767 = vsyncpa [#allocation3], 1 }
 0x7a7   :  { %9768 = vsyncpa [#allocation6], 1 }
 0x7a8   :  { %9769 = vsyncpa [#allocation9], 1 }
 0x7a9   :  { %9770 = vsyncpa [#allocation12], 1 }
 0x7aa   :  { %9771 = vsyncpa [#allocation15], 1 }
 0x7ab   :  { %9772 = vsyncpa [#allocation4], 1 }

</bundles_post_ra>
